<compile_context>
chip_gen: v7x
topology: tpu7x:2x2x1
jax: 0.10.0
libtpu: 0.0.40
codegen_flags: <defaults>
</compile_context>

<pallas_src>
import functools
import math

import numpy as np
import jax
import jax.numpy as jnp
from jax.experimental import pallas as pl
from jax.experimental.pallas import tpu as pltpu

_LN_EPS = 1e-6            # ieps_ln_default
_NEG_INF = -1e30          # masked-score fill value
_TM_CAP = 512             # row-tile cap (multiple of 8)
_TN_CAP = 512             # col-tile cap (multiple of 128)
_TM_GATE_CAP = 128        # smaller row tile for the out-proj + gate fused kernel
_TQ_CAP = 256             # query-tile cap for attention


@functools.lru_cache(maxsize=None)
def _vmem_limit():
    # v5e/v6e have 128 MiB physical VMEM -> raise the scoped limit to amortize pipeline depth.
    # v7x (and unknown chips) only have 64 MiB physical -> stay at the conservative default;
    # bf16 weights already halve the weight-tile footprint there.
    try:
        kind = jax.devices()[0].device_kind.lower()
    except Exception:
        kind = ""
    if "v5" in kind or "v6" in kind:
        return 96 * 1024 * 1024
    return 32 * 1024 * 1024


def _gelu(x):
    # tanh-approximate GELU. TODO(synk): reference torch GeLU may be erf-exact (~1e-3 delta).
    return 0.5 * x * (1.0 + jnp.tanh(0.7978845608028654 * (x + 0.044715 * x * x * x)))


# ----------------------------- Pallas kernels -----------------------------

def _ln_linear_kernel(x_ref, g_ref, b_ref, w_ref, bias_ref, o_ref, xn_ref, *, activation):
    # Fused LayerNorm -> matmul (+bias) -> optional GELU.  K (feature dim) is whole per block.
    # LN is computed once per row tile (N-tile j == 0) and cached in VMEM scratch; every other
    # N tile reuses the cached normalized rows (saves redundant XLU/VALU work under the MXU).
    @pl.when(pl.program_id(1) == 0)
    def _():
        x = x_ref[...]
        mu = jnp.mean(x, axis=-1, keepdims=True)
        xc = x - mu
        var = jnp.mean(xc * xc, axis=-1, keepdims=True)
        xn_ref[...] = xc * jax.lax.rsqrt(var + _LN_EPS) * g_ref[...] + b_ref[...]

    h = jnp.dot(xn_ref[...].astype(jnp.bfloat16), w_ref[...],
                preferred_element_type=jnp.float32) + bias_ref[...]
    if activation:
        h = _gelu(h)
    o_ref[...] = h


def _linear_kernel(x_ref, w_ref, b_ref, o_ref):
    o_ref[...] = jnp.dot(x_ref[...].astype(jnp.bfloat16), w_ref[...],
                         preferred_element_type=jnp.float32) + b_ref[...]


def _linear_residual_kernel(x_ref, w_ref, b_ref, r_ref, o_ref):
    # Fused matmul (+bias) + residual add.
    o_ref[...] = (jnp.dot(x_ref[...].astype(jnp.bfloat16), w_ref[...],
                          preferred_element_type=jnp.float32)
                  + b_ref[...] + r_ref[...])


def _out_gate_kernel(x_ref, w_ref, b_ref, x2_ref, gwa_ref, gwb_ref, gb_ref, o_ref, *, self_gate):
    # Fused cross-attn output projection + Gate combine.
    #   x1 = x @ Wo + bo ; z = x1 @ Wa + x2 @ Wb + bg ; g = sigmoid(z)
    #   GateResidual: out = x1*g + x2*(1-g)
    #   SelfGate:     out = x1*g + x2     (TODO(synk): exact SelfGate source not provided)
    x1 = jnp.dot(x_ref[...].astype(jnp.bfloat16), w_ref[...],
                 preferred_element_type=jnp.float32) + b_ref[...]
    x2 = x2_ref[...]
    z = (jnp.dot(x1.astype(jnp.bfloat16), gwa_ref[...], preferred_element_type=jnp.float32)
         + jnp.dot(x2.astype(jnp.bfloat16), gwb_ref[...], preferred_element_type=jnp.float32)
         + gb_ref[...])
    g = 1.0 / (1.0 + jnp.exp(-z))          # exact sigmoid (gate scales residual mixing)
    if self_gate:
        o_ref[...] = x1 * g + x2
    else:
        o_ref[...] = x1 * g + x2 * (1.0 - g)


def _layernorm_kernel(x_ref, g_ref, b_ref, o_ref):
    x = x_ref[...]
    mu = jnp.mean(x, axis=-1, keepdims=True)
    xc = x - mu
    var = jnp.mean(xc * xc, axis=-1, keepdims=True)
    o_ref[...] = xc * jax.lax.rsqrt(var + _LN_EPS) * g_ref[...] + b_ref[...]


def _attend_heads(q_rows, kv_rows, bias, nhead, hsz, kv_off, scale):
    # q_rows: (tq, *), kv_rows: (Lk, *), bias: (1, Lk) additive (-1e30 on padded keys).
    # Per-head bf16 MXU matmuls; contexts collected and concatenated so the caller can do one
    # lane-dense store (no per-head masked partial stores).
    dh = hsz // nhead
    ctx = []
    for h in range(nhead):
        qh = q_rows[:, h * dh:(h + 1) * dh].astype(jnp.bfloat16)
        kh = kv_rows[:, kv_off + h * dh: kv_off + (h + 1) * dh].astype(jnp.bfloat16)
        vh = kv_rows[:, kv_off + hsz + h * dh: kv_off + hsz + (h + 1) * dh].astype(jnp.bfloat16)
        s = jax.lax.dot_general(qh, kh, (((1,), (1,)), ((), ())),
                                preferred_element_type=jnp.float32) * scale + bias
        s = s - jnp.max(s, axis=-1, keepdims=True)
        e = jnp.exp(s)
        p = e * pl.reciprocal(jnp.sum(e, axis=-1, keepdims=True), approx=True)
        ctx.append(jax.lax.dot_general(p.astype(jnp.bfloat16), vh, (((1,), (0,)), ((), ())),
                                       preferred_element_type=jnp.float32))
    return jnp.concatenate(ctx, axis=-1)


def _self_mha_kernel(qkv_ref, bias_ref, o_ref, *, nhead, scale):
    # Grid: (sentence, query tile).  The qkv block is the whole sentence (constant block index
    # across query tiles -> fetched once); the query tile rows are sliced in-kernel.
    hsz = o_ref.shape[-1]
    tq = o_ref.shape[1]
    qi = pl.program_id(1)
    q_rows = qkv_ref[0, pl.ds(qi * tq, tq), :]          # (tq, 3H)
    kv_rows = qkv_ref[0]                                # (Lk, 3H)
    o_ref[0] = _attend_heads(q_rows, kv_rows, bias_ref[0], nhead, hsz, hsz, scale)


def _cross_mha_kernel(q_ref, kv_ref, bias_ref, o_ref, *, nhead, scale):
    hsz = o_ref.shape[-1]
    o_ref[0] = _attend_heads(q_ref[0], kv_ref[0], bias_ref[0], nhead, hsz, 0, scale)


# ----------------------------- kernel wrappers -----------------------------

def _flat2d(x):
    shp = x.shape
    m = 1
    for d in shp[:-1]:
        m *= d
    return x.reshape(m, shp[-1]), shp


def _pick_q_tile(lq, cap=_TQ_CAP):
    # Largest query tile <= cap that divides lq (multiple of 8), else the whole length.
    if lq <= cap:
        return lq
    t = cap
    while t >= 8:
        if lq % t == 0:
            return t
        t -= 8
    return lq


def _mm_params(sem=("parallel", "parallel")):
    return pltpu.CompilerParams(dimension_semantics=sem, vmem_limit_bytes=_vmem_limit())


def ln_linear(x, ln, w, b, activation=False):
    # NOTE: the weight matrix is re-streamed once per row tile ((M/tm) * bytes(W)); tm is capped
    # at 512 and W is bf16 to keep these calls near the HBM roofline.
    x2, shp = _flat2d(x)
    m, k = x2.shape
    n = w.shape[1]
    tm, tn = min(m, _TM_CAP), min(n, _TN_CAP)
    out = pl.pallas_call(
        functools.partial(_ln_linear_kernel, activation=activation),
        out_shape=jax.ShapeDtypeStruct((m, n), jnp.float32),
        grid=(pl.cdiv(m, tm), pl.cdiv(n, tn)),
        in_specs=[pl.BlockSpec((tm, k), lambda i, j: (i, 0)),
                  pl.BlockSpec((1, k), lambda i, j: (0, 0)),
                  pl.BlockSpec((1, k), lambda i, j: (0, 0)),
                  pl.BlockSpec((k, tn), lambda i, j: (0, j)),
                  pl.BlockSpec((1, tn), lambda i, j: (0, j))],
        out_specs=pl.BlockSpec((tm, tn), lambda i, j: (i, j)),
        scratch_shapes=[pltpu.VMEM((tm, k), jnp.float32)],
        compiler_params=_mm_params(("parallel", "arbitrary")),   # scratch carries across j
        cost_estimate=pl.CostEstimate(
            flops=2 * m * k * n,
            transcendentals=(m * n) if activation else 0,
            bytes_accessed=4 * (m * k + 2 * k + n + m * n) + 2 * k * n),
    )(x2, ln['g'].reshape(1, k), ln['b'].reshape(1, k), w, b.reshape(1, n))
    return out.reshape(shp[:-1] + (n,))


def linear(x, w, b):
    x2, shp = _flat2d(x)
    m, k = x2.shape
    n = w.shape[1]
    tm, tn = min(m, _TM_CAP), min(n, _TN_CAP)
    out = pl.pallas_call(
        _linear_kernel,
        out_shape=jax.ShapeDtypeStruct((m, n), jnp.float32),
        grid=(pl.cdiv(m, tm), pl.cdiv(n, tn)),
        in_specs=[pl.BlockSpec((tm, k), lambda i, j: (i, 0)),
                  pl.BlockSpec((k, tn), lambda i, j: (0, j)),
                  pl.BlockSpec((1, tn), lambda i, j: (0, j))],
        out_specs=pl.BlockSpec((tm, tn), lambda i, j: (i, j)),
        compiler_params=_mm_params(),
        cost_estimate=pl.CostEstimate(
            flops=2 * m * k * n, transcendentals=0,
            bytes_accessed=4 * (m * k + n + m * n) + 2 * k * n),
    )(x2, w, b.reshape(1, n))
    return out.reshape(shp[:-1] + (n,))


def linear_residual(x, w, b, r):
    x2, _ = _flat2d(x)
    r2, rshp = _flat2d(r)
    m, k = x2.shape
    n = w.shape[1]
    tm, tn = min(m, _TM_CAP), min(n, _TN_CAP)
    out = pl.pallas_call(
        _linear_residual_kernel,
        out_shape=jax.ShapeDtypeStruct((m, n), jnp.float32),
        grid=(pl.cdiv(m, tm), pl.cdiv(n, tn)),
        in_specs=[pl.BlockSpec((tm, k), lambda i, j: (i, 0)),
                  pl.BlockSpec((k, tn), lambda i, j: (0, j)),
                  pl.BlockSpec((1, tn), lambda i, j: (0, j)),
                  pl.BlockSpec((tm, tn), lambda i, j: (i, j))],
        out_specs=pl.BlockSpec((tm, tn), lambda i, j: (i, j)),
        compiler_params=_mm_params(),
        cost_estimate=pl.CostEstimate(
            flops=2 * m * k * n, transcendentals=0,
            bytes_accessed=4 * (m * k + n + 2 * m * n) + 2 * k * n),
    )(x2, w, b.reshape(1, n), r2)
    return out.reshape(rshp)


def linear_out_gate(x, w, b, x2, gate_p, self_gate):
    # Cross-attn output projection fused with GateResidual / SelfGate combine.  Smaller row tile
    # (128) bounds the four chained tm*n f32 temporaries; Wo/Wa/Wb are bf16 grid-invariant blocks.
    x1_2, _ = _flat2d(x)
    x2_2, shp2 = _flat2d(x2)
    m, k = x1_2.shape
    n = w.shape[1]                     # == isize
    wa, wb = gate_p['w'][:n], gate_p['w'][n:]
    tm = min(m, _TM_GATE_CAP)
    out = pl.pallas_call(
        functools.partial(_out_gate_kernel, self_gate=self_gate),
        out_shape=jax.ShapeDtypeStruct((m, n), jnp.float32),
        grid=(pl.cdiv(m, tm),),
        in_specs=[pl.BlockSpec((tm, k), lambda i: (i, 0)),
                  pl.BlockSpec((k, n), lambda i: (0, 0)),
                  pl.BlockSpec((1, n), lambda i: (0, 0)),
                  pl.BlockSpec((tm, n), lambda i: (i, 0)),
                  pl.BlockSpec((n, n), lambda i: (0, 0)),
                  pl.BlockSpec((n, n), lambda i: (0, 0)),
                  pl.BlockSpec((1, n), lambda i: (0, 0))],
        out_specs=pl.BlockSpec((tm, n), lambda i: (i, 0)),
        compiler_params=pltpu.CompilerParams(dimension_semantics=("parallel",),
                                             vmem_limit_bytes=_vmem_limit()),
        cost_estimate=pl.CostEstimate(
            flops=2 * m * n * (k + 2 * n), transcendentals=m * n,
            bytes_accessed=4 * (m * k + 2 * n + 2 * m * n) + 2 * (k * n + 2 * n * n)),
    )(x1_2, w, b.reshape(1, n), x2_2, wa, wb, gate_p['b'].reshape(1, n))
    return out.reshape(shp2)


def layer_norm(x, p):
    x2, shp = _flat2d(x)
    m, e = x2.shape
    tm = min(m, _TM_CAP)
    out = pl.pallas_call(
        _layernorm_kernel,
        out_shape=jax.ShapeDtypeStruct((m, e), jnp.float32),
        grid=(pl.cdiv(m, tm),),
        in_specs=[pl.BlockSpec((tm, e), lambda i: (i, 0)),
                  pl.BlockSpec((1, e), lambda i: (0, 0)),
                  pl.BlockSpec((1, e), lambda i: (0, 0))],
        out_specs=pl.BlockSpec((tm, e), lambda i: (i, 0)),
        compiler_params=pltpu.CompilerParams(dimension_semantics=("parallel",),
                                             vmem_limit_bytes=_vmem_limit()),
    )(x2, p['g'].reshape(1, e), p['b'].reshape(1, e))
    return out.reshape(shp)


def mha_self(qkv, mask, nhead):
    sb, lq, h3 = qkv.shape
    hsz = h3 // 3
    dh = hsz // nhead
    tq = _pick_q_tile(lq)
    bias = mask * _NEG_INF                       # additive mask precomputed once in JAX
    return pl.pallas_call(
        functools.partial(_self_mha_kernel, nhead=nhead, scale=1.0 / math.sqrt(dh)),
        out_shape=jax.ShapeDtypeStruct((sb, lq, hsz), jnp.float32),
        grid=(sb, lq // tq),
        in_specs=[pl.BlockSpec((1, lq, h3), lambda b, q: (b, 0, 0)),
                  pl.BlockSpec((1, 1, lq), lambda b, q: (b, 0, 0))],
        out_specs=pl.BlockSpec((1, tq, hsz), lambda b, q: (b, q, 0)),
        compiler_params=pltpu.CompilerParams(dimension_semantics=("parallel", "parallel"),
                                             vmem_limit_bytes=_vmem_limit()),
    )(qkv, bias)


def mha_cross(q, kv, mask, nhead):
    sb, lq, hsz = q.shape
    lk = kv.shape[1]
    dh = hsz // nhead
    tq = _pick_q_tile(lq)
    bias = mask * _NEG_INF
    return pl.pallas_call(
        functools.partial(_cross_mha_kernel, nhead=nhead, scale=1.0 / math.sqrt(dh)),
        out_shape=jax.ShapeDtypeStruct((sb, lq, hsz), jnp.float32),
        grid=(sb, lq // tq),
        in_specs=[pl.BlockSpec((1, tq, hsz), lambda b, q: (b, q, 0)),
                  pl.BlockSpec((1, lk, 2 * hsz), lambda b, q: (b, 0, 0)),
                  pl.BlockSpec((1, 1, lk), lambda b, q: (b, 0, 0))],
        out_specs=pl.BlockSpec((1, tq, hsz), lambda b, q: (b, q, 0)),
        compiler_params=pltpu.CompilerParams(dimension_semantics=("parallel", "parallel"),
                                             vmem_limit_bytes=_vmem_limit()),
    )(q, kv, bias)


# ----------------------------- layers -----------------------------

def position_ff(x, p):
    h = ln_linear(x, p['ln'], p['w1'], p['b1'], activation=True)   # LN + W1 + GELU fused
    return linear_residual(h, p['w2'], p['b2'], x)                 # W2 + residual fused


def encoder_layer(x, mask, p, nhead):
    a = p['attn']
    qkv = ln_linear(x, p['ln'], a['wqkv'], a['bqkv'])              # LN fused into QKV proj
    ctx = mha_self(qkv, mask, nhead)                               # merged-head output
    ctx = linear_residual(ctx, a['wo'], a['bo'], x)                # out proj + residual fused
    return position_ff(ctx, p['ff'])


def cross_encoder_layer(x, xc, mask, cmask, p, nhead, self_gate):
    a, c = p['attn'], p['cattn']
    qkv = ln_linear(x, p['ln'], a['wqkv'], a['bqkv'])
    ctx = mha_self(qkv, mask, nhead)
    ctx = linear_residual(ctx, a['wo'], a['bo'], x)                # ctx = self-attn + x
    q = ln_linear(ctx, p['cattn_ln'], c['wq'], c['bq'])            # cattn_ln fused into Q proj
    kv = linear(xc, c['wkv'], c['bkv'])
    co = mha_cross(q, kv, cmask, nhead)
    ctx = linear_out_gate(co, c['wo'], c['bo'], ctx, p['gr'], self_gate)   # out proj + gate fused
    return position_ff(ctx, p['ff'])


def _sin_pos_emb(seql, isize):
    pos = np.arange(seql, dtype=np.float32)[:, None]
    half = isize // 2
    freq = np.exp(-math.log(10000.0) * np.arange(half, dtype=np.float32) / half)
    pe = np.zeros((seql, isize), dtype=np.float32)
    pe[:, 0::2] = np.sin(pos * freq)
    pe[:, 1::2] = np.cos(pos * freq)
    return jnp.asarray(pe)


def encoder_base(params, tokens, mask, nhead):
    # tokens: (sb, seql) int32 ; mask: (sb, 1, seql) float32
    seql = tokens.shape[1]
    emb = params['wemb'][tokens]                        # glue: embedding gather (XLA)
    isize = emb.shape[-1]
    out = emb * math.sqrt(isize) + params['pemb'][None, :seql, :]
    for lp in params['layers']:
        out = encoder_layer(out, mask, lp, nhead)
    return layer_norm(out, params['out_normer'])


# ----------------------------- full Encoder.forward -----------------------------

def encoder_forward(params, inputs, mask, nhead, nprev):
    bsize, nsent, seql = inputs.shape
    sbsize = bsize * nsent
    ence = encoder_base(params['enc'], inputs.reshape(sbsize, seql),
                        mask.reshape(sbsize, 1, seql), nhead)
    isize = ence.shape[-1]
    ence = ence.reshape(bsize, nsent, seql, isize)

    context_l, cmask_l, enc4ctx_l, emask_l, ndl = [], [], [], [], []
    base = nsent - nprev
    for i in range(nprev):
        nc = base + i
        context_l.append(ence[:, 0:nc])
        cmask_l.append(mask[:, :, 0:nc])
        sind = nprev - i
        enc4ctx_l.append(ence[:, sind:sind + nc])
        emask_l.append(mask[:, :, sind:sind + nc])
        ndl.append(nc)
    context = jnp.concatenate(context_l, axis=1)
    context_mask = jnp.concatenate(cmask_l, axis=2)
    enc4ctx = jnp.concatenate(enc4ctx_l, axis=1)
    enc_mask = jnp.concatenate(emask_l, axis=2)
    # TODO(synk): clear_pad_mask trims trailing all-pad columns (data-dependent shapes, impossible
    # under JAX static shapes); it is the identity for the test inputs used here (no padding).

    _nsent, _seql = context.shape[1], context.shape[2]
    sb = bsize * _nsent
    context_f = context.reshape(sb, _seql, isize)
    enc4ctx_f = enc4ctx.reshape(sb, -1, isize)
    cmask_f = context_mask.reshape(sb, 1, _seql)
    emask_f = enc_mask.reshape(sb, 1, -1)

    # NOTE: every context_genc layer receives the ORIGINAL context_f (not the previous layer's
    # output) — this mirrors the torch source (`_context = net(context, ...)` in the loop).
    _context = context_f
    for lp in params['context_genc']:          # GateEncoderLayer (SelfGate)
        _context = cross_encoder_layer(context_f, enc4ctx_f, cmask_f, emask_f,
                                       lp, nhead, self_gate=True)
    context = _context.reshape(bsize, _nsent, _seql, isize)

    contexts, context_masks = [], []
    lind = 0
    for i in range(nprev):
        nc = ndl[i]
        _ctx = context[:, lind:lind + nc] + params['sent_pemb'][i]
        _msk = context_mask[:, :, lind:lind + nc]
        npad = nprev - i - 1
        if npad > 0:
            sl = _ctx.shape[2]
            _ctx = jnp.concatenate(
                [jnp.zeros((bsize, npad, sl, isize), jnp.float32), _ctx], axis=1)
            _msk = jnp.concatenate(
                [jnp.ones((bsize, 1, npad, sl), jnp.float32), _msk], axis=2)
        contexts.append(_ctx)
        context_masks.append(_msk)
        lind += nc
    context = jnp.concatenate(contexts, axis=2)
    context_mask = jnp.concatenate(context_masks, axis=-1)

    nsent_out = nsent - 1
    enc_out = ence[:, 1:nsent]
    enc_mask2 = mask[:, :, 1:nsent]
    sb2 = bsize * nsent_out
    enc_out_f = enc_out.reshape(sb2, seql, isize)
    enc_mask_f = enc_mask2.reshape(sb2, 1, seql)
    context_f2 = context.reshape(sb2, -1, isize)
    context_mask_f2 = context_mask.reshape(sb2, 1, -1)

    enc_context = enc_out_f
    for lp in params['genc']:                  # CrossEncoderLayer (GateResidual)
        enc_context = cross_encoder_layer(enc_context, context_f2, enc_mask_f,
                                          context_mask_f2, lp, nhead, self_gate=False)
    enc_context = layer_norm(enc_context, params['out_normer_ctx'])
    return enc_out_f, enc_context, context_f2, enc_mask_f, context_mask_f2


# ----------------------------- deterministic parameter init -----------------------------

def _init_ln(isize):
    return {'g': jnp.ones((isize,), jnp.float32), 'b': jnp.zeros((isize,), jnp.float32)}


def _init_lin(key, din, dout):
    kw, kb = jax.random.split(key)
    s = 1.0 / math.sqrt(din)
    # Weights stored in bf16 (MXU-native); biases stay f32.
    w = jax.random.uniform(kw, (din, dout), jnp.float32, -s, s).astype(jnp.bfloat16)
    b = jax.random.uniform(kb, (dout,), jnp.float32, -s, s)
    return w, b


def _init_attn(key, isize, hsize):
    k1, k2 = jax.random.split(key)
    wqkv, bqkv = _init_lin(k1, isize, 3 * hsize)
    wo, bo = _init_lin(k2, hsize, isize)
    return {'wqkv': wqkv, 'bqkv': bqkv, 'wo': wo, 'bo': bo}


def _init_cattn(key, isize, hsize):
    k1, k2, k3 = jax.random.split(key, 3)
    wq, bq = _init_lin(k1, isize, hsize)
    wkv, bkv = _init_lin(k2, isize, 2 * hsize)
    wo, bo = _init_lin(k3, hsize, isize)
    return {'wq': wq, 'bq': bq, 'wkv': wkv, 'bkv': bkv, 'wo': wo, 'bo': bo}


def _init_ff(key, isize, fhsize):
    k1, k2 = jax.random.split(key)
    w1, b1 = _init_lin(k1, isize, fhsize)
    w2, b2 = _init_lin(k2, fhsize, isize)
    return {'ln': _init_ln(isize), 'w1': w1, 'b1': b1, 'w2': w2, 'b2': b2}


def _init_enc_layer(key, isize, fhsize, ahsize):
    k1, k2 = jax.random.split(key)
    return {'ln': _init_ln(isize), 'attn': _init_attn(k1, isize, ahsize),
            'ff': _init_ff(k2, isize, fhsize)}


def _init_cross_layer(key, isize, fhsize, ahsize):
    k1, k2, k3, k4 = jax.random.split(key, 4)
    gw, gb = _init_lin(k3, 2 * isize, isize)
    return {'ln': _init_ln(isize),
            'attn': _init_attn(k1, isize, ahsize),
            'cattn_ln': _init_ln(isize),
            'cattn': _init_cattn(k2, isize, ahsize),
            'gr': {'w': gw, 'b': gb},
            'ff': _init_ff(k4, isize, fhsize)}


def init_params(key, isize, nwd, num_layer, fhsize, ahsize, nprev, num_layer_cross, xseql):
    keys = jax.random.split(key, 6)
    wemb = jax.random.normal(keys[0], (nwd, isize), jnp.float32) * 0.1
    wemb = wemb.at[0].set(0.0)                       # padding_idx = 0
    enc_layers = [_init_enc_layer(k, isize, fhsize, ahsize)
                  for k in jax.random.split(keys[1], num_layer)]
    enc = {'wemb': wemb, 'pemb': _sin_pos_emb(xseql, isize),
           'layers': enc_layers, 'out_normer': _init_ln(isize)}
    bnd = math.sqrt(2.0 / (isize + nprev))
    sent_pemb = jax.random.uniform(keys[2], (nprev, isize), jnp.float32, -bnd, bnd)
    cg = [_init_cross_layer(k, isize, fhsize, ahsize)
          for k in jax.random.split(keys[3], num_layer_cross)]
    g = [_init_cross_layer(k, isize, fhsize, ahsize)
         for k in jax.random.split(keys[4], num_layer_cross)]
    return {'enc': enc, 'sent_pemb': sent_pemb, 'context_genc': cg, 'genc': g,
            'out_normer_ctx': _init_ln(isize)}


# ----------------------------- main -----------------------------

if __name__ == "__main__":
    ISIZE, NWD = 32, 64
    NUM_LAYER, NUM_LAYER_CROSS = 2, 1
    NHEAD, NPREV = 4, 2
    FHSIZE, AHSIZE = ISIZE * 4, ISIZE
    BSIZE, NSENT, SEQL = 2, 4, 8

    key = jax.random.PRNGKey(0)
    kp, ki = jax.random.split(key)
    params = init_params(kp, ISIZE, NWD, NUM_LAYER, FHSIZE, AHSIZE, NPREV,
                         NUM_LAYER_CROSS, xseql=SEQL)

    inputs = jax.random.randint(ki, (BSIZE, NSENT, SEQL), 1, NWD, dtype=jnp.int32)
    # no padded tokens -> clear_pad_mask is exactly the identity
    mask = jnp.zeros((BSIZE, 1, NSENT, SEQL), jnp.float32)

    fwd = jax.jit(functools.partial(encoder_forward, nhead=NHEAD, nprev=NPREV))
    outs = jax.block_until_ready(fwd(params, inputs, mask))
    enc_out, enc_context, context, enc_mask, context_mask = outs

    assert enc_out.shape == (BSIZE * (NSENT - 1), SEQL, ISIZE)
    assert enc_context.shape == (BSIZE * (NSENT - 1), SEQL, ISIZE)
    assert context.shape == (BSIZE * (NSENT - 1), NPREV * SEQL, ISIZE)
    assert enc_mask.shape == (BSIZE * (NSENT - 1), 1, SEQL)
    assert context_mask.shape == (BSIZE * (NSENT - 1), 1, NPREV * SEQL)
    for o in (enc_out, enc_context, context):
        assert bool(jnp.all(jnp.isfinite(o)))

    print("KERNEL_OK")
</pallas_src>

<mosaic_0001>
module attributes {stable_mosaic.version = 11 : i64} {
  func.func @_ln_linear_kernel(%arg0: i32, %arg1: i32, %arg2: memref<64x32xf32, #tpu.memory_space<vmem>>, %arg3: memref<1x32xf32, #tpu.memory_space<vmem>>, %arg4: memref<1x32xf32, #tpu.memory_space<vmem>>, %arg5: memref<32x96xbf16, #tpu.memory_space<vmem>>, %arg6: memref<1x96xf32, #tpu.memory_space<vmem>>, %arg7: memref<64x96xf32, #tpu.memory_space<vmem>>, %arg8: memref<64x32xf32, #tpu.memory_space<vmem>>) attributes {dimension_semantics = [#tpu.dimension_semantics<parallel>, #tpu.dimension_semantics<arbitrary>], iteration_bounds = array<i64: 1, 1>, scalar_prefetch = 0 : i64, scratch_operands = 1 : i64, tpu.core_type = #tpu.core_type<tc>, window_params = [{transform_indices = @transform_0, window_bounds = array<i64: 64, 32>}, {pipeline_mode = #tpu.pipeline_mode<synchronous>, transform_indices = @transform_1, window_bounds = array<i64: 1, 32>}, {pipeline_mode = #tpu.pipeline_mode<synchronous>, transform_indices = @transform_2, window_bounds = array<i64: 1, 32>}, {transform_indices = @transform_3, window_bounds = array<i64: 32, 96>}, {transform_indices = @transform_4, window_bounds = array<i64: 1, 96>}, {transform_indices = @transform_5, window_bounds = array<i64: 64, 96>}]} {
    %c0_i32 = arith.constant 0 : i32
    %0 = arith.cmpi eq, %arg1, %c0_i32 : i32
    %1 = arith.extui %0 : i1 to i32
    %c0_i32_0 = arith.constant 0 : i32
    %2 = arith.cmpi ne, %1, %c0_i32_0 : i32
    scf.if %2 {
      %c0_8 = arith.constant 0 : index
      %c0_9 = arith.constant 0 : index
      %11 = vector.load %arg2[%c0_8, %c0_9] : memref<64x32xf32, #tpu.memory_space<vmem>>, vector<64x32xf32>
      %cst_10 = arith.constant dense<0.000000e+00> : vector<64xf32>
      %12 = vector.multi_reduction <add>, %11, %cst_10 [1] : vector<64x32xf32> to vector<64xf32>
      %13 = vector.shape_cast %12 : vector<64xf32> to vector<64x1xf32>
      %cst_11 = arith.constant 3.200000e+01 : f32
      %14 = vector.broadcast %cst_11 : f32 to vector<64x1xf32>
      %15 = arith.divf %13, %14 : vector<64x1xf32>
      %16 = vector.broadcast %15 : vector<64x1xf32> to vector<64x32xf32>
      %17 = arith.subf %11, %16 : vector<64x32xf32>
      %18 = arith.mulf %17, %17 : vector<64x32xf32>
      %cst_12 = arith.constant dense<0.000000e+00> : vector<64xf32>
      %19 = vector.multi_reduction <add>, %18, %cst_12 [1] : vector<64x32xf32> to vector<64xf32>
      %20 = vector.shape_cast %19 : vector<64xf32> to vector<64x1xf32>
      %cst_13 = arith.constant 3.200000e+01 : f32
      %21 = vector.broadcast %cst_13 : f32 to vector<64x1xf32>
      %22 = arith.divf %20, %21 : vector<64x1xf32>
      %cst_14 = arith.constant 9.99999997E-7 : f32
      %23 = vector.broadcast %cst_14 : f32 to vector<64x1xf32>
      %24 = arith.addf %22, %23 : vector<64x1xf32>
      %25 = math.rsqrt %24 : vector<64x1xf32>
      %26 = vector.broadcast %25 : vector<64x1xf32> to vector<64x32xf32>
      %27 = arith.mulf %17, %26 : vector<64x32xf32>
      %c0_15 = arith.constant 0 : index
      %c0_16 = arith.constant 0 : index
      %28 = vector.load %arg3[%c0_15, %c0_16] : memref<1x32xf32, #tpu.memory_space<vmem>>, vector<1x32xf32>
      %29 = vector.broadcast %28 : vector<1x32xf32> to vector<64x32xf32>
      %30 = arith.mulf %27, %29 : vector<64x32xf32>
      %c0_17 = arith.constant 0 : index
      %c0_18 = arith.constant 0 : index
      %31 = vector.load %arg4[%c0_17, %c0_18] : memref<1x32xf32, #tpu.memory_space<vmem>>, vector<1x32xf32>
      %32 = vector.broadcast %31 : vector<1x32xf32> to vector<64x32xf32>
      %33 = arith.addf %30, %32 : vector<64x32xf32>
      %c0_19 = arith.constant 0 : index
      %c0_20 = arith.constant 0 : index
      %34 = vector.load %arg8[%c0_19, %c0_20] : memref<64x32xf32, #tpu.memory_space<vmem>>, vector<64x32xf32>
      tpu.vector_store %arg8[%c0_19, %c0_20], %33 {strides = array<i32>} : memref<64x32xf32, #tpu.memory_space<vmem>>, vector<64x32xf32>,
    } else {
    }
    %c0 = arith.constant 0 : index
    %c0_1 = arith.constant 0 : index
    %3 = vector.load %arg8[%c0, %c0_1] : memref<64x32xf32, #tpu.memory_space<vmem>>, vector<64x32xf32>
    %4 = arith.truncf %3 : vector<64x32xf32> to vector<64x32xbf16>
    %c0_2 = arith.constant 0 : index
    %c0_3 = arith.constant 0 : index
    %5 = vector.load %arg5[%c0_2, %c0_3] : memref<32x96xbf16, #tpu.memory_space<vmem>>, vector<32x96xbf16>
    %cst = arith.constant dense<0.000000e+00> : vector<64x96xf32>
    %6 = tpu.matmul %4, %5, %cst {dimension_numbers = #tpu.dot_dimension_numbers<[1], [0], [0], [1], [0, 0, 1, 1], [], []>} : vector<64x32xbf16>, vector<32x96xbf16>, vector<64x96xf32> -> vector<64x96xf32>
    %c0_4 = arith.constant 0 : index
    %c0_5 = arith.constant 0 : index
    %7 = vector.load %arg6[%c0_4, %c0_5] : memref<1x96xf32, #tpu.memory_space<vmem>>, vector<1x96xf32>
    %8 = vector.broadcast %7 : vector<1x96xf32> to vector<64x96xf32>
    %9 = arith.addf %6, %8 : vector<64x96xf32>
    %c0_6 = arith.constant 0 : index
    %c0_7 = arith.constant 0 : index
    %10 = vector.load %arg7[%c0_6, %c0_7] : memref<64x96xf32, #tpu.memory_space<vmem>>, vector<64x96xf32>
    tpu.vector_store %arg7[%c0_6, %c0_7], %9 {strides = array<i32>} : memref<64x96xf32, #tpu.memory_space<vmem>>, vector<64x96xf32>,
    return
  }
  func.func @transform_0(%arg0: i32, %arg1: i32) -> (i32, i32) {
    %c0_i32 = arith.constant 0 : i32
    %c0_i32_0 = arith.constant 0 : i32
    return %arg0, %c0_i32 : i32, i32
  }
  func.func @transform_1(%arg0: i32, %arg1: i32) -> (i32, i32) {
    %c0_i32 = arith.constant 0 : i32
    %c0_i32_0 = arith.constant 0 : i32
    %c0_i32_1 = arith.constant 0 : i32
    return %c0_i32, %c0_i32_0 : i32, i32
  }
  func.func @transform_2(%arg0: i32, %arg1: i32) -> (i32, i32) {
    %c0_i32 = arith.constant 0 : i32
    %c0_i32_0 = arith.constant 0 : i32
    %c0_i32_1 = arith.constant 0 : i32
    return %c0_i32, %c0_i32_0 : i32, i32
  }
  func.func @transform_3(%arg0: i32, %arg1: i32) -> (i32, i32) {
    %c0_i32 = arith.constant 0 : i32
    %c0_i32_0 = arith.constant 0 : i32
    return %c0_i32, %arg1 : i32, i32
  }
  func.func @transform_4(%arg0: i32, %arg1: i32) -> (i32, i32) {
    %c0_i32 = arith.constant 0 : i32
    %c0_i32_0 = arith.constant 0 : i32
    return %c0_i32, %arg1 : i32, i32
  }
  func.func @transform_5(%arg0: i32, %arg1: i32) -> (i32, i32) {
    %c0_i32 = arith.constant 0 : i32
    return %arg0, %arg1 : i32, i32
  }
}

module attributes {stable_mosaic.version = 11 : i64} {
  func.func @_linear_residual_kernel(%arg0: i32, %arg1: i32, %arg2: memref<64x32xf32, #tpu.memory_space<vmem>>, %arg3: memref<32x32xbf16, #tpu.memory_space<vmem>>, %arg4: memref<1x32xf32, #tpu.memory_space<vmem>>, %arg5: memref<64x32xf32, #tpu.memory_space<vmem>>, %arg6: memref<64x32xf32, #tpu.memory_space<vmem>>) attributes {dimension_semantics = [#tpu.dimension_semantics<parallel>, #tpu.dimension_semantics<parallel>], iteration_bounds = array<i64: 1, 1>, scalar_prefetch = 0 : i64, scratch_operands = 0 : i64, tpu.core_type = #tpu.core_type<tc>, window_params = [{transform_indices = @transform_0, window_bounds = array<i64: 64, 32>}, {transform_indices = @transform_1, window_bounds = array<i64: 32, 32>}, {transform_indices = @transform_2, window_bounds = array<i64: 1, 32>}, {transform_indices = @transform_3, window_bounds = array<i64: 64, 32>}, {transform_indices = @transform_4, window_bounds = array<i64: 64, 32>}]} {
    %c0 = arith.constant 0 : index
    %c0_0 = arith.constant 0 : index
    %0 = vector.load %arg2[%c0, %c0_0] : memref<64x32xf32, #tpu.memory_space<vmem>>, vector<64x32xf32>
    %1 = arith.truncf %0 : vector<64x32xf32> to vector<64x32xbf16>
    %c0_1 = arith.constant 0 : index
    %c0_2 = arith.constant 0 : index
    %2 = vector.load %arg3[%c0_1, %c0_2] : memref<32x32xbf16, #tpu.memory_space<vmem>>, vector<32x32xbf16>
    %cst = arith.constant dense<0.000000e+00> : vector<64x32xf32>
    %3 = tpu.matmul %1, %2, %cst {dimension_numbers = #tpu.dot_dimension_numbers<[1], [0], [0], [1], [0, 0, 1, 1], [], []>} : vector<64x32xbf16>, vector<32x32xbf16>, vector<64x32xf32> -> vector<64x32xf32>
    %c0_3 = arith.constant 0 : index
    %c0_4 = arith.constant 0 : index
    %4 = vector.load %arg4[%c0_3, %c0_4] : memref<1x32xf32, #tpu.memory_space<vmem>>, vector<1x32xf32>
    %5 = vector.broadcast %4 : vector<1x32xf32> to vector<64x32xf32>
    %6 = arith.addf %3, %5 : vector<64x32xf32>
    %c0_5 = arith.constant 0 : index
    %c0_6 = arith.constant 0 : index
    %7 = vector.load %arg5[%c0_5, %c0_6] : memref<64x32xf32, #tpu.memory_space<vmem>>, vector<64x32xf32>
    %8 = arith.addf %6, %7 : vector<64x32xf32>
    %c0_7 = arith.constant 0 : index
    %c0_8 = arith.constant 0 : index
    %9 = vector.load %arg6[%c0_7, %c0_8] : memref<64x32xf32, #tpu.memory_space<vmem>>, vector<64x32xf32>
    tpu.vector_store %arg6[%c0_7, %c0_8], %8 {strides = array<i32>} : memref<64x32xf32, #tpu.memory_space<vmem>>, vector<64x32xf32>,
    return
  }
  func.func @transform_0(%arg0: i32, %arg1: i32) -> (i32, i32) {
    %c0_i32 = arith.constant 0 : i32
    %c0_i32_0 = arith.constant 0 : i32
    return %arg0, %c0_i32 : i32, i32
  }
  func.func @transform_1(%arg0: i32, %arg1: i32) -> (i32, i32) {
    %c0_i32 = arith.constant 0 : i32
    %c0_i32_0 = arith.constant 0 : i32
    return %c0_i32, %arg1 : i32, i32
  }
  func.func @transform_2(%arg0: i32, %arg1: i32) -> (i32, i32) {
    %c0_i32 = arith.constant 0 : i32
    %c0_i32_0 = arith.constant 0 : i32
    return %c0_i32, %arg1 : i32, i32
  }
  func.func @transform_3(%arg0: i32, %arg1: i32) -> (i32, i32) {
    %c0_i32 = arith.constant 0 : i32
    return %arg0, %arg1 : i32, i32
  }
  func.func @transform_4(%arg0: i32, %arg1: i32) -> (i32, i32) {
    %c0_i32 = arith.constant 0 : i32
    return %arg0, %arg1 : i32, i32
  }
}

module attributes {stable_mosaic.version = 11 : i64} {
  func.func @_ln_linear_kernel(%arg0: i32, %arg1: i32, %arg2: memref<64x32xf32, #tpu.memory_space<vmem>>, %arg3: memref<1x32xf32, #tpu.memory_space<vmem>>, %arg4: memref<1x32xf32, #tpu.memory_space<vmem>>, %arg5: memref<32x128xbf16, #tpu.memory_space<vmem>>, %arg6: memref<1x128xf32, #tpu.memory_space<vmem>>, %arg7: memref<64x128xf32, #tpu.memory_space<vmem>>, %arg8: memref<64x32xf32, #tpu.memory_space<vmem>>) attributes {dimension_semantics = [#tpu.dimension_semantics<parallel>, #tpu.dimension_semantics<arbitrary>], iteration_bounds = array<i64: 1, 1>, scalar_prefetch = 0 : i64, scratch_operands = 1 : i64, tpu.core_type = #tpu.core_type<tc>, window_params = [{transform_indices = @transform_0, window_bounds = array<i64: 64, 32>}, {pipeline_mode = #tpu.pipeline_mode<synchronous>, transform_indices = @transform_1, window_bounds = array<i64: 1, 32>}, {pipeline_mode = #tpu.pipeline_mode<synchronous>, transform_indices = @transform_2, window_bounds = array<i64: 1, 32>}, {transform_indices = @transform_3, window_bounds = array<i64: 32, 128>}, {transform_indices = @transform_4, window_bounds = array<i64: 1, 128>}, {transform_indices = @transform_5, window_bounds = array<i64: 64, 128>}]} {
    %c0_i32 = arith.constant 0 : i32
    %0 = arith.cmpi eq, %arg1, %c0_i32 : i32
    %1 = arith.extui %0 : i1 to i32
    %c0_i32_0 = arith.constant 0 : i32
    %2 = arith.cmpi ne, %1, %c0_i32_0 : i32
    scf.if %2 {
      %c0_12 = arith.constant 0 : index
      %c0_13 = arith.constant 0 : index
      %24 = vector.load %arg2[%c0_12, %c0_13] : memref<64x32xf32, #tpu.memory_space<vmem>>, vector<64x32xf32>
      %cst_14 = arith.constant dense<0.000000e+00> : vector<64xf32>
      %25 = vector.multi_reduction <add>, %24, %cst_14 [1] : vector<64x32xf32> to vector<64xf32>
      %26 = vector.shape_cast %25 : vector<64xf32> to vector<64x1xf32>
      %cst_15 = arith.constant 3.200000e+01 : f32
      %27 = vector.broadcast %cst_15 : f32 to vector<64x1xf32>
      %28 = arith.divf %26, %27 : vector<64x1xf32>
      %29 = vector.broadcast %28 : vector<64x1xf32> to vector<64x32xf32>
      %30 = arith.subf %24, %29 : vector<64x32xf32>
      %31 = arith.mulf %30, %30 : vector<64x32xf32>
      %cst_16 = arith.constant dense<0.000000e+00> : vector<64xf32>
      %32 = vector.multi_reduction <add>, %31, %cst_16 [1] : vector<64x32xf32> to vector<64xf32>
      %33 = vector.shape_cast %32 : vector<64xf32> to vector<64x1xf32>
      %cst_17 = arith.constant 3.200000e+01 : f32
      %34 = vector.broadcast %cst_17 : f32 to vector<64x1xf32>
      %35 = arith.divf %33, %34 : vector<64x1xf32>
      %cst_18 = arith.constant 9.99999997E-7 : f32
      %36 = vector.broadcast %cst_18 : f32 to vector<64x1xf32>
      %37 = arith.addf %35, %36 : vector<64x1xf32>
      %38 = math.rsqrt %37 : vector<64x1xf32>
      %39 = vector.broadcast %38 : vector<64x1xf32> to vector<64x32xf32>
      %40 = arith.mulf %30, %39 : vector<64x32xf32>
      %c0_19 = arith.constant 0 : index
      %c0_20 = arith.constant 0 : index
      %41 = vector.load %arg3[%c0_19, %c0_20] : memref<1x32xf32, #tpu.memory_space<vmem>>, vector<1x32xf32>
      %42 = vector.broadcast %41 : vector<1x32xf32> to vector<64x32xf32>
      %43 = arith.mulf %40, %42 : vector<64x32xf32>
      %c0_21 = arith.constant 0 : index
      %c0_22 = arith.constant 0 : index
      %44 = vector.load %arg4[%c0_21, %c0_22] : memref<1x32xf32, #tpu.memory_space<vmem>>, vector<1x32xf32>
      %45 = vector.broadcast %44 : vector<1x32xf32> to vector<64x32xf32>
      %46 = arith.addf %43, %45 : vector<64x32xf32>
      %c0_23 = arith.constant 0 : index
      %c0_24 = arith.constant 0 : index
      %47 = vector.load %arg8[%c0_23, %c0_24] : memref<64x32xf32, #tpu.memory_space<vmem>>, vector<64x32xf32>
      tpu.vector_store %arg8[%c0_23, %c0_24], %46 {strides = array<i32>} : memref<64x32xf32, #tpu.memory_space<vmem>>, vector<64x32xf32>,
    } else {
    }
    %c0 = arith.constant 0 : index
    %c0_1 = arith.constant 0 : index
    %3 = vector.load %arg8[%c0, %c0_1] : memref<64x32xf32, #tpu.memory_space<vmem>>, vector<64x32xf32>
    %4 = arith.truncf %3 : vector<64x32xf32> to vector<64x32xbf16>
    %c0_2 = arith.constant 0 : index
    %c0_3 = arith.constant 0 : index
    %5 = vector.load %arg5[%c0_2, %c0_3] : memref<32x128xbf16, #tpu.memory_space<vmem>>, vector<32x128xbf16>
    %cst = arith.constant dense<0.000000e+00> : vector<64x128xf32>
    %6 = tpu.matmul %4, %5, %cst {dimension_numbers = #tpu.dot_dimension_numbers<[1], [0], [0], [1], [0, 0, 1, 1], [], []>} : vector<64x32xbf16>, vector<32x128xbf16>, vector<64x128xf32> -> vector<64x128xf32>
    %c0_4 = arith.constant 0 : index
    %c0_5 = arith.constant 0 : index
    %7 = vector.load %arg6[%c0_4, %c0_5] : memref<1x128xf32, #tpu.memory_space<vmem>>, vector<1x128xf32>
    %8 = vector.broadcast %7 : vector<1x128xf32> to vector<64x128xf32>
    %9 = arith.addf %6, %8 : vector<64x128xf32>
    %cst_6 = arith.constant 5.000000e-01 : f32
    %10 = vector.broadcast %cst_6 : f32 to vector<64x128xf32>
    %11 = arith.mulf %10, %9 : vector<64x128xf32>
    %cst_7 = arith.constant 4.471500e-02 : f32
    %12 = vector.broadcast %cst_7 : f32 to vector<64x128xf32>
    %13 = arith.mulf %12, %9 : vector<64x128xf32>
    %14 = arith.mulf %13, %9 : vector<64x128xf32>
    %15 = arith.mulf %14, %9 : vector<64x128xf32>
    %16 = arith.addf %9, %15 : vector<64x128xf32>
    %cst_8 = arith.constant 0.797884583 : f32
    %17 = vector.broadcast %cst_8 : f32 to vector<64x128xf32>
    %18 = arith.mulf %17, %16 : vector<64x128xf32>
    %19 = math.tanh %18 : vector<64x128xf32>
    %cst_9 = arith.constant 1.000000e+00 : f32
    %20 = vector.broadcast %cst_9 : f32 to vector<64x128xf32>
    %21 = arith.addf %20, %19 : vector<64x128xf32>
    %22 = arith.mulf %11, %21 : vector<64x128xf32>
    %c0_10 = arith.constant 0 : index
    %c0_11 = arith.constant 0 : index
    %23 = vector.load %arg7[%c0_10, %c0_11] : memref<64x128xf32, #tpu.memory_space<vmem>>, vector<64x128xf32>
    tpu.vector_store %arg7[%c0_10, %c0_11], %22 {strides = array<i32>} : memref<64x128xf32, #tpu.memory_space<vmem>>, vector<64x128xf32>,
    return
  }
  func.func @transform_0(%arg0: i32, %arg1: i32) -> (i32, i32) {
    %c0_i32 = arith.constant 0 : i32
    %c0_i32_0 = arith.constant 0 : i32
    return %arg0, %c0_i32 : i32, i32
  }
  func.func @transform_1(%arg0: i32, %arg1: i32) -> (i32, i32) {
    %c0_i32 = arith.constant 0 : i32
    %c0_i32_0 = arith.constant 0 : i32
    %c0_i32_1 = arith.constant 0 : i32
    return %c0_i32, %c0_i32_0 : i32, i32
  }
  func.func @transform_2(%arg0: i32, %arg1: i32) -> (i32, i32) {
    %c0_i32 = arith.constant 0 : i32
    %c0_i32_0 = arith.constant 0 : i32
    %c0_i32_1 = arith.constant 0 : i32
    return %c0_i32, %c0_i32_0 : i32, i32
  }
  func.func @transform_3(%arg0: i32, %arg1: i32) -> (i32, i32) {
    %c0_i32 = arith.constant 0 : i32
    %c0_i32_0 = arith.constant 0 : i32
    return %c0_i32, %arg1 : i32, i32
  }
  func.func @transform_4(%arg0: i32, %arg1: i32) -> (i32, i32) {
    %c0_i32 = arith.constant 0 : i32
    %c0_i32_0 = arith.constant 0 : i32
    return %c0_i32, %arg1 : i32, i32
  }
  func.func @transform_5(%arg0: i32, %arg1: i32) -> (i32, i32) {
    %c0_i32 = arith.constant 0 : i32
    return %arg0, %arg1 : i32, i32
  }
}

module attributes {stable_mosaic.version = 11 : i64} {
  func.func @_self_mha_kernel(%arg0: i32, %arg1: i32, %arg2: memref<1x8x96xf32, #tpu.memory_space<vmem>>, %arg3: memref<1x1x8xf32, #tpu.memory_space<vmem>>, %arg4: memref<1x8x32xf32, #tpu.memory_space<vmem>>) attributes {dimension_semantics = [#tpu.dimension_semantics<parallel>, #tpu.dimension_semantics<parallel>], iteration_bounds = array<i64: 8, 1>, scalar_prefetch = 0 : i64, scratch_operands = 0 : i64, tpu.core_type = #tpu.core_type<tc>, window_params = [{transform_indices = @transform_0, window_bounds = array<i64: 1, 8, 96>}, {transform_indices = @transform_1, window_bounds = array<i64: 1, 1, 8>}, {transform_indices = @transform_2, window_bounds = array<i64: 1, 8, 32>}]} {
    %c8_i32 = arith.constant 8 : i32
    %0 = arith.muli %arg1, %c8_i32 : i32
    %c0 = arith.constant 0 : index
    %1 = arith.index_cast %0 : i32 to index
    %c0_0 = arith.constant 0 : index
    %2 = vector.load %arg2[%c0, %1, %c0_0] : memref<1x8x96xf32, #tpu.memory_space<vmem>>, vector<1x8x96xf32>
    %3 = vector.shape_cast %2 : vector<1x8x96xf32> to vector<8x96xf32>
    %c0_1 = arith.constant 0 : index
    %c0_2 = arith.constant 0 : index
    %c0_3 = arith.constant 0 : index
    %4 = vector.load %arg2[%c0_1, %c0_2, %c0_3] : memref<1x8x96xf32, #tpu.memory_space<vmem>>, vector<1x8x96xf32>
    %5 = vector.shape_cast %4 : vector<1x8x96xf32> to vector<8x96xf32>
    %c0_4 = arith.constant 0 : index
    %c0_5 = arith.constant 0 : index
    %c0_6 = arith.constant 0 : index
    %6 = vector.load %arg3[%c0_4, %c0_5, %c0_6] : memref<1x1x8xf32, #tpu.memory_space<vmem>>, vector<1x1x8xf32>
    %7 = vector.shape_cast %6 : vector<1x1x8xf32> to vector<1x8xf32>
    %8 = vector.extract_strided_slice %3 {offsets = [0, 0], sizes = [8, 8], strides = [1, 1]} : vector<8x96xf32> to vector<8x8xf32>
    %9 = arith.truncf %8 : vector<8x8xf32> to vector<8x8xbf16>
    %10 = vector.extract_strided_slice %5 {offsets = [0, 32], sizes = [8, 8], strides = [1, 1]} : vector<8x96xf32> to vector<8x8xf32>
    %11 = arith.truncf %10 : vector<8x8xf32> to vector<8x8xbf16>
    %12 = vector.extract_strided_slice %5 {offsets = [0, 64], sizes = [8, 8], strides = [1, 1]} : vector<8x96xf32> to vector<8x8xf32>
    %13 = arith.truncf %12 : vector<8x8xf32> to vector<8x8xbf16>
    %cst = arith.constant dense<0.000000e+00> : vector<8x8xf32>
    %14 = tpu.matmul %9, %11, %cst {dimension_numbers = #tpu.dot_dimension_numbers<[1], [1], [0], [0], [0, 0, 1, 0], [], []>} : vector<8x8xbf16>, vector<8x8xbf16>, vector<8x8xf32> -> vector<8x8xf32>
    %cst_7 = arith.constant 0.353553385 : f32
    %15 = vector.broadcast %cst_7 : f32 to vector<8x8xf32>
    %16 = arith.mulf %14, %15 : vector<8x8xf32>
    %17 = vector.broadcast %7 : vector<1x8xf32> to vector<8x8xf32>
    %18 = arith.addf %16, %17 : vector<8x8xf32>
    %cst_8 = arith.constant dense<0xFF800000> : vector<8xf32>
    %19 = vector.multi_reduction <maximumf>, %18, %cst_8 [1] : vector<8x8xf32> to vector<8xf32>
    %20 = vector.shape_cast %19 : vector<8xf32> to vector<8x1xf32>
    %21 = vector.broadcast %20 : vector<8x1xf32> to vector<8x8xf32>
    %22 = arith.subf %18, %21 : vector<8x8xf32>
    %23 = math.exp %22 : vector<8x8xf32>
    %cst_9 = arith.constant dense<0.000000e+00> : vector<8xf32>
    %24 = vector.multi_reduction <add>, %23, %cst_9 [1] : vector<8x8xf32> to vector<8xf32>
    %25 = vector.shape_cast %24 : vector<8xf32> to vector<8x1xf32>
    %26 = tpu.reciprocal %25 {approx = true} : vector<8x1xf32> -> vector<8x1xf32>
    %27 = vector.broadcast %26 : vector<8x1xf32> to vector<8x8xf32>
    %28 = arith.mulf %23, %27 : vector<8x8xf32>
    %29 = arith.truncf %28 : vector<8x8xf32> to vector<8x8xbf16>
    %cst_10 = arith.constant dense<0.000000e+00> : vector<8x8xf32>
    %30 = tpu.matmul %29, %13, %cst_10 {dimension_numbers = #tpu.dot_dimension_numbers<[1], [0], [0], [1], [0, 0, 1, 1], [], []>} : vector<8x8xbf16>, vector<8x8xbf16>, vector<8x8xf32> -> vector<8x8xf32>
    %31 = vector.extract_strided_slice %3 {offsets = [0, 8], sizes = [8, 8], strides = [1, 1]} : vector<8x96xf32> to vector<8x8xf32>
    %32 = arith.truncf %31 : vector<8x8xf32> to vector<8x8xbf16>
    %33 = vector.extract_strided_slice %5 {offsets = [0, 40], sizes = [8, 8], strides = [1, 1]} : vector<8x96xf32> to vector<8x8xf32>
    %34 = arith.truncf %33 : vector<8x8xf32> to vector<8x8xbf16>
    %35 = vector.extract_strided_slice %5 {offsets = [0, 72], sizes = [8, 8], strides = [1, 1]} : vector<8x96xf32> to vector<8x8xf32>
    %36 = arith.truncf %35 : vector<8x8xf32> to vector<8x8xbf16>
    %cst_11 = arith.constant dense<0.000000e+00> : vector<8x8xf32>
    %37 = tpu.matmul %32, %34, %cst_11 {dimension_numbers = #tpu.dot_dimension_numbers<[1], [1], [0], [0], [0, 0, 1, 0], [], []>} : vector<8x8xbf16>, vector<8x8xbf16>, vector<8x8xf32> -> vector<8x8xf32>
    %cst_12 = arith.constant 0.353553385 : f32
    %38 = vector.broadcast %cst_12 : f32 to vector<8x8xf32>
    %39 = arith.mulf %37, %38 : vector<8x8xf32>
    %40 = vector.broadcast %7 : vector<1x8xf32> to vector<8x8xf32>
    %41 = arith.addf %39, %40 : vector<8x8xf32>
    %cst_13 = arith.constant dense<0xFF800000> : vector<8xf32>
    %42 = vector.multi_reduction <maximumf>, %41, %cst_13 [1] : vector<8x8xf32> to vector<8xf32>
    %43 = vector.shape_cast %42 : vector<8xf32> to vector<8x1xf32>
    %44 = vector.broadcast %43 : vector<8x1xf32> to vector<8x8xf32>
    %45 = arith.subf %41, %44 : vector<8x8xf32>
    %46 = math.exp %45 : vector<8x8xf32>
    %cst_14 = arith.constant dense<0.000000e+00> : vector<8xf32>
    %47 = vector.multi_reduction <add>, %46, %cst_14 [1] : vector<8x8xf32> to vector<8xf32>
    %48 = vector.shape_cast %47 : vector<8xf32> to vector<8x1xf32>
    %49 = tpu.reciprocal %48 {approx = true} : vector<8x1xf32> -> vector<8x1xf32>
    %50 = vector.broadcast %49 : vector<8x1xf32> to vector<8x8xf32>
    %51 = arith.mulf %46, %50 : vector<8x8xf32>
    %52 = arith.truncf %51 : vector<8x8xf32> to vector<8x8xbf16>
    %cst_15 = arith.constant dense<0.000000e+00> : vector<8x8xf32>
    %53 = tpu.matmul %52, %36, %cst_15 {dimension_numbers = #tpu.dot_dimension_numbers<[1], [0], [0], [1], [0, 0, 1, 1], [], []>} : vector<8x8xbf16>, vector<8x8xbf16>, vector<8x8xf32> -> vector<8x8xf32>
    %54 = vector.extract_strided_slice %3 {offsets = [0, 16], sizes = [8, 8], strides = [1, 1]} : vector<8x96xf32> to vector<8x8xf32>
    %55 = arith.truncf %54 : vector<8x8xf32> to vector<8x8xbf16>
    %56 = vector.extract_strided_slice %5 {offsets = [0, 48], sizes = [8, 8], strides = [1, 1]} : vector<8x96xf32> to vector<8x8xf32>
    %57 = arith.truncf %56 : vector<8x8xf32> to vector<8x8xbf16>
    %58 = vector.extract_strided_slice %5 {offsets = [0, 80], sizes = [8, 8], strides = [1, 1]} : vector<8x96xf32> to vector<8x8xf32>
    %59 = arith.truncf %58 : vector<8x8xf32> to vector<8x8xbf16>
    %cst_16 = arith.constant dense<0.000000e+00> : vector<8x8xf32>
    %60 = tpu.matmul %55, %57, %cst_16 {dimension_numbers = #tpu.dot_dimension_numbers<[1], [1], [0], [0], [0, 0, 1, 0], [], []>} : vector<8x8xbf16>, vector<8x8xbf16>, vector<8x8xf32> -> vector<8x8xf32>
    %cst_17 = arith.constant 0.353553385 : f32
    %61 = vector.broadcast %cst_17 : f32 to vector<8x8xf32>
    %62 = arith.mulf %60, %61 : vector<8x8xf32>
    %63 = vector.broadcast %7 : vector<1x8xf32> to vector<8x8xf32>
    %64 = arith.addf %62, %63 : vector<8x8xf32>
    %cst_18 = arith.constant dense<0xFF800000> : vector<8xf32>
    %65 = vector.multi_reduction <maximumf>, %64, %cst_18 [1] : vector<8x8xf32> to vector<8xf32>
    %66 = vector.shape_cast %65 : vector<8xf32> to vector<8x1xf32>
    %67 = vector.broadcast %66 : vector<8x1xf32> to vector<8x8xf32>
    %68 = arith.subf %64, %67 : vector<8x8xf32>
    %69 = math.exp %68 : vector<8x8xf32>
    %cst_19 = arith.constant dense<0.000000e+00> : vector<8xf32>
    %70 = vector.multi_reduction <add>, %69, %cst_19 [1] : vector<8x8xf32> to vector<8xf32>
    %71 = vector.shape_cast %70 : vector<8xf32> to vector<8x1xf32>
    %72 = tpu.reciprocal %71 {approx = true} : vector<8x1xf32> -> vector<8x1xf32>
    %73 = vector.broadcast %72 : vector<8x1xf32> to vector<8x8xf32>
    %74 = arith.mulf %69, %73 : vector<8x8xf32>
    %75 = arith.truncf %74 : vector<8x8xf32> to vector<8x8xbf16>
    %cst_20 = arith.constant dense<0.000000e+00> : vector<8x8xf32>
    %76 = tpu.matmul %75, %59, %cst_20 {dimension_numbers = #tpu.dot_dimension_numbers<[1], [0], [0], [1], [0, 0, 1, 1], [], []>} : vector<8x8xbf16>, vector<8x8xbf16>, vector<8x8xf32> -> vector<8x8xf32>
    %77 = vector.extract_strided_slice %3 {offsets = [0, 24], sizes = [8, 8], strides = [1, 1]} : vector<8x96xf32> to vector<8x8xf32>
    %78 = arith.truncf %77 : vector<8x8xf32> to vector<8x8xbf16>
    %79 = vector.extract_strided_slice %5 {offsets = [0, 56], sizes = [8, 8], strides = [1, 1]} : vector<8x96xf32> to vector<8x8xf32>
    %80 = arith.truncf %79 : vector<8x8xf32> to vector<8x8xbf16>
    %81 = vector.extract_strided_slice %5 {offsets = [0, 88], sizes = [8, 8], strides = [1, 1]} : vector<8x96xf32> to vector<8x8xf32>
    %82 = arith.truncf %81 : vector<8x8xf32> to vector<8x8xbf16>
    %cst_21 = arith.constant dense<0.000000e+00> : vector<8x8xf32>
    %83 = tpu.matmul %78, %80, %cst_21 {dimension_numbers = #tpu.dot_dimension_numbers<[1], [1], [0], [0], [0, 0, 1, 0], [], []>} : vector<8x8xbf16>, vector<8x8xbf16>, vector<8x8xf32> -> vector<8x8xf32>
    %cst_22 = arith.constant 0.353553385 : f32
    %84 = vector.broadcast %cst_22 : f32 to vector<8x8xf32>
    %85 = arith.mulf %83, %84 : vector<8x8xf32>
    %86 = vector.broadcast %7 : vector<1x8xf32> to vector<8x8xf32>
    %87 = arith.addf %85, %86 : vector<8x8xf32>
    %cst_23 = arith.constant dense<0xFF800000> : vector<8xf32>
    %88 = vector.multi_reduction <maximumf>, %87, %cst_23 [1] : vector<8x8xf32> to vector<8xf32>
    %89 = vector.shape_cast %88 : vector<8xf32> to vector<8x1xf32>
    %90 = vector.broadcast %89 : vector<8x1xf32> to vector<8x8xf32>
    %91 = arith.subf %87, %90 : vector<8x8xf32>
    %92 = math.exp %91 : vector<8x8xf32>
    %cst_24 = arith.constant dense<0.000000e+00> : vector<8xf32>
    %93 = vector.multi_reduction <add>, %92, %cst_24 [1] : vector<8x8xf32> to vector<8xf32>
    %94 = vector.shape_cast %93 : vector<8xf32> to vector<8x1xf32>
    %95 = tpu.reciprocal %94 {approx = true} : vector<8x1xf32> -> vector<8x1xf32>
    %96 = vector.broadcast %95 : vector<8x1xf32> to vector<8x8xf32>
    %97 = arith.mulf %92, %96 : vector<8x8xf32>
    %98 = arith.truncf %97 : vector<8x8xf32> to vector<8x8xbf16>
    %cst_25 = arith.constant dense<0.000000e+00> : vector<8x8xf32>
    %99 = tpu.matmul %98, %82, %cst_25 {dimension_numbers = #tpu.dot_dimension_numbers<[1], [0], [0], [1], [0, 0, 1, 1], [], []>} : vector<8x8xbf16>, vector<8x8xbf16>, vector<8x8xf32> -> vector<8x8xf32>
    %100 = tpu.concatenate %30, %53, %76, %99 in 1 : vector<8x8xf32>, vector<8x8xf32>, vector<8x8xf32>, vector<8x8xf32> -> vector<8x32xf32>
    %c0_26 = arith.constant 0 : index
    %c0_27 = arith.constant 0 : index
    %c0_28 = arith.constant 0 : index
    %101 = vector.load %arg4[%c0_26, %c0_27, %c0_28] : memref<1x8x32xf32, #tpu.memory_space<vmem>>, vector<1x8x32xf32>
    %102 = vector.shape_cast %101 : vector<1x8x32xf32> to vector<8x32xf32>
    %103 = vector.shape_cast %100 : vector<8x32xf32> to vector<1x8x32xf32>
    tpu.vector_store %arg4[%c0_26, %c0_27, %c0_28], %103 {strides = array<i32>} : memref<1x8x32xf32, #tpu.memory_space<vmem>>, vector<1x8x32xf32>,
    return
  }
  func.func @transform_0(%arg0: i32, %arg1: i32) -> (i32, i32, i32) {
    %c0_i32 = arith.constant 0 : i32
    %c0_i32_0 = arith.constant 0 : i32
    %c0_i32_1 = arith.constant 0 : i32
    return %arg0, %c0_i32, %c0_i32_0 : i32, i32, i32
  }
  func.func @transform_1(%arg0: i32, %arg1: i32) -> (i32, i32, i32) {
    %c0_i32 = arith.constant 0 : i32
    %c0_i32_0 = arith.constant 0 : i32
    %c0_i32_1 = arith.constant 0 : i32
    return %arg0, %c0_i32, %c0_i32_0 : i32, i32, i32
  }
  func.func @transform_2(%arg0: i32, %arg1: i32) -> (i32, i32, i32) {
    %c0_i32 = arith.constant 0 : i32
    %c0_i32_0 = arith.constant 0 : i32
    return %arg0, %arg1, %c0_i32 : i32, i32, i32
  }
}

module attributes {stable_mosaic.version = 11 : i64} {
  func.func @_linear_residual_kernel(%arg0: i32, %arg1: i32, %arg2: memref<64x128xf32, #tpu.memory_space<vmem>>, %arg3: memref<128x32xbf16, #tpu.memory_space<vmem>>, %arg4: memref<1x32xf32, #tpu.memory_space<vmem>>, %arg5: memref<64x32xf32, #tpu.memory_space<vmem>>, %arg6: memref<64x32xf32, #tpu.memory_space<vmem>>) attributes {dimension_semantics = [#tpu.dimension_semantics<parallel>, #tpu.dimension_semantics<parallel>], iteration_bounds = array<i64: 1, 1>, scalar_prefetch = 0 : i64, scratch_operands = 0 : i64, tpu.core_type = #tpu.core_type<tc>, window_params = [{transform_indices = @transform_0, window_bounds = array<i64: 64, 128>}, {transform_indices = @transform_1, window_bounds = array<i64: 128, 32>}, {transform_indices = @transform_2, window_bounds = array<i64: 1, 32>}, {transform_indices = @transform_3, window_bounds = array<i64: 64, 32>}, {transform_indices = @transform_4, window_bounds = array<i64: 64, 32>}]} {
    %c0 = arith.constant 0 : index
    %c0_0 = arith.constant 0 : index
    %0 = vector.load %arg2[%c0, %c0_0] : memref<64x128xf32, #tpu.memory_space<vmem>>, vector<64x128xf32>
    %1 = arith.truncf %0 : vector<64x128xf32> to vector<64x128xbf16>
    %c0_1 = arith.constant 0 : index
    %c0_2 = arith.constant 0 : index
    %2 = vector.load %arg3[%c0_1, %c0_2] : memref<128x32xbf16, #tpu.memory_space<vmem>>, vector<128x32xbf16>
    %cst = arith.constant dense<0.000000e+00> : vector<64x32xf32>
    %3 = tpu.matmul %1, %2, %cst {dimension_numbers = #tpu.dot_dimension_numbers<[1], [0], [0], [1], [0, 0, 1, 1], [], []>} : vector<64x128xbf16>, vector<128x32xbf16>, vector<64x32xf32> -> vector<64x32xf32>
    %c0_3 = arith.constant 0 : index
    %c0_4 = arith.constant 0 : index
    %4 = vector.load %arg4[%c0_3, %c0_4] : memref<1x32xf32, #tpu.memory_space<vmem>>, vector<1x32xf32>
    %5 = vector.broadcast %4 : vector<1x32xf32> to vector<64x32xf32>
    %6 = arith.addf %3, %5 : vector<64x32xf32>
    %c0_5 = arith.constant 0 : index
    %c0_6 = arith.constant 0 : index
    %7 = vector.load %arg5[%c0_5, %c0_6] : memref<64x32xf32, #tpu.memory_space<vmem>>, vector<64x32xf32>
    %8 = arith.addf %6, %7 : vector<64x32xf32>
    %c0_7 = arith.constant 0 : index
    %c0_8 = arith.constant 0 : index
    %9 = vector.load %arg6[%c0_7, %c0_8] : memref<64x32xf32, #tpu.memory_space<vmem>>, vector<64x32xf32>
    tpu.vector_store %arg6[%c0_7, %c0_8], %8 {strides = array<i32>} : memref<64x32xf32, #tpu.memory_space<vmem>>, vector<64x32xf32>,
    return
  }
  func.func @transform_0(%arg0: i32, %arg1: i32) -> (i32, i32) {
    %c0_i32 = arith.constant 0 : i32
    %c0_i32_0 = arith.constant 0 : i32
    return %arg0, %c0_i32 : i32, i32
  }
  func.func @transform_1(%arg0: i32, %arg1: i32) -> (i32, i32) {
    %c0_i32 = arith.constant 0 : i32
    %c0_i32_0 = arith.constant 0 : i32
    return %c0_i32, %arg1 : i32, i32
  }
  func.func @transform_2(%arg0: i32, %arg1: i32) -> (i32, i32) {
    %c0_i32 = arith.constant 0 : i32
    %c0_i32_0 = arith.constant 0 : i32
    return %c0_i32, %arg1 : i32, i32
  }
  func.func @transform_3(%arg0: i32, %arg1: i32) -> (i32, i32) {
    %c0_i32 = arith.constant 0 : i32
    return %arg0, %arg1 : i32, i32
  }
  func.func @transform_4(%arg0: i32, %arg1: i32) -> (i32, i32) {
    %c0_i32 = arith.constant 0 : i32
    return %arg0, %arg1 : i32, i32
  }
}

module attributes {stable_mosaic.version = 11 : i64} {
  func.func @_layernorm_kernel(%arg0: i32, %arg1: memref<64x32xf32, #tpu.memory_space<vmem>>, %arg2: memref<1x32xf32, #tpu.memory_space<vmem>>, %arg3: memref<1x32xf32, #tpu.memory_space<vmem>>, %arg4: memref<64x32xf32, #tpu.memory_space<vmem>>) attributes {dimension_semantics = [#tpu.dimension_semantics<parallel>], iteration_bounds = array<i64: 1>, scalar_prefetch = 0 : i64, scratch_operands = 0 : i64, tpu.core_type = #tpu.core_type<tc>, window_params = [{transform_indices = @transform_0, window_bounds = array<i64: 64, 32>}, {pipeline_mode = #tpu.pipeline_mode<synchronous>, transform_indices = @transform_1, window_bounds = array<i64: 1, 32>}, {pipeline_mode = #tpu.pipeline_mode<synchronous>, transform_indices = @transform_2, window_bounds = array<i64: 1, 32>}, {transform_indices = @transform_3, window_bounds = array<i64: 64, 32>}]} {
    %c0 = arith.constant 0 : index
    %c0_0 = arith.constant 0 : index
    %0 = vector.load %arg1[%c0, %c0_0] : memref<64x32xf32, #tpu.memory_space<vmem>>, vector<64x32xf32>
    %cst = arith.constant dense<0.000000e+00> : vector<64xf32>
    %1 = vector.multi_reduction <add>, %0, %cst [1] : vector<64x32xf32> to vector<64xf32>
    %2 = vector.shape_cast %1 : vector<64xf32> to vector<64x1xf32>
    %cst_1 = arith.constant 3.200000e+01 : f32
    %3 = vector.broadcast %cst_1 : f32 to vector<64x1xf32>
    %4 = arith.divf %2, %3 : vector<64x1xf32>
    %5 = vector.broadcast %4 : vector<64x1xf32> to vector<64x32xf32>
    %6 = arith.subf %0, %5 : vector<64x32xf32>
    %7 = arith.mulf %6, %6 : vector<64x32xf32>
    %cst_2 = arith.constant dense<0.000000e+00> : vector<64xf32>
    %8 = vector.multi_reduction <add>, %7, %cst_2 [1] : vector<64x32xf32> to vector<64xf32>
    %9 = vector.shape_cast %8 : vector<64xf32> to vector<64x1xf32>
    %cst_3 = arith.constant 3.200000e+01 : f32
    %10 = vector.broadcast %cst_3 : f32 to vector<64x1xf32>
    %11 = arith.divf %9, %10 : vector<64x1xf32>
    %cst_4 = arith.constant 9.99999997E-7 : f32
    %12 = vector.broadcast %cst_4 : f32 to vector<64x1xf32>
    %13 = arith.addf %11, %12 : vector<64x1xf32>
    %14 = math.rsqrt %13 : vector<64x1xf32>
    %15 = vector.broadcast %14 : vector<64x1xf32> to vector<64x32xf32>
    %16 = arith.mulf %6, %15 : vector<64x32xf32>
    %c0_5 = arith.constant 0 : index
    %c0_6 = arith.constant 0 : index
    %17 = vector.load %arg2[%c0_5, %c0_6] : memref<1x32xf32, #tpu.memory_space<vmem>>, vector<1x32xf32>
    %18 = vector.broadcast %17 : vector<1x32xf32> to vector<64x32xf32>
    %19 = arith.mulf %16, %18 : vector<64x32xf32>
    %c0_7 = arith.constant 0 : index
    %c0_8 = arith.constant 0 : index
    %20 = vector.load %arg3[%c0_7, %c0_8] : memref<1x32xf32, #tpu.memory_space<vmem>>, vector<1x32xf32>
    %21 = vector.broadcast %20 : vector<1x32xf32> to vector<64x32xf32>
    %22 = arith.addf %19, %21 : vector<64x32xf32>
    %c0_9 = arith.constant 0 : index
    %c0_10 = arith.constant 0 : index
    %23 = vector.load %arg4[%c0_9, %c0_10] : memref<64x32xf32, #tpu.memory_space<vmem>>, vector<64x32xf32>
    tpu.vector_store %arg4[%c0_9, %c0_10], %22 {strides = array<i32>} : memref<64x32xf32, #tpu.memory_space<vmem>>, vector<64x32xf32>,
    return
  }
  func.func @transform_0(%arg0: i32) -> (i32, i32) {
    %c0_i32 = arith.constant 0 : i32
    %c0_i32_0 = arith.constant 0 : i32
    return %arg0, %c0_i32 : i32, i32
  }
  func.func @transform_1(%arg0: i32) -> (i32, i32) {
    %c0_i32 = arith.constant 0 : i32
    %c0_i32_0 = arith.constant 0 : i32
    %c0_i32_1 = arith.constant 0 : i32
    return %c0_i32, %c0_i32_0 : i32, i32
  }
  func.func @transform_2(%arg0: i32) -> (i32, i32) {
    %c0_i32 = arith.constant 0 : i32
    %c0_i32_0 = arith.constant 0 : i32
    %c0_i32_1 = arith.constant 0 : i32
    return %c0_i32, %c0_i32_0 : i32, i32
  }
  func.func @transform_3(%arg0: i32) -> (i32, i32) {
    %c0_i32 = arith.constant 0 : i32
    %c0_i32_0 = arith.constant 0 : i32
    return %arg0, %c0_i32 : i32, i32
  }
}

module attributes {stable_mosaic.version = 11 : i64} {
  func.func @_ln_linear_kernel(%arg0: i32, %arg1: i32, %arg2: memref<80x32xf32, #tpu.memory_space<vmem>>, %arg3: memref<1x32xf32, #tpu.memory_space<vmem>>, %arg4: memref<1x32xf32, #tpu.memory_space<vmem>>, %arg5: memref<32x96xbf16, #tpu.memory_space<vmem>>, %arg6: memref<1x96xf32, #tpu.memory_space<vmem>>, %arg7: memref<80x96xf32, #tpu.memory_space<vmem>>, %arg8: memref<80x32xf32, #tpu.memory_space<vmem>>) attributes {dimension_semantics = [#tpu.dimension_semantics<parallel>, #tpu.dimension_semantics<arbitrary>], iteration_bounds = array<i64: 1, 1>, scalar_prefetch = 0 : i64, scratch_operands = 1 : i64, tpu.core_type = #tpu.core_type<tc>, window_params = [{transform_indices = @transform_0, window_bounds = array<i64: 80, 32>}, {pipeline_mode = #tpu.pipeline_mode<synchronous>, transform_indices = @transform_1, window_bounds = array<i64: 1, 32>}, {pipeline_mode = #tpu.pipeline_mode<synchronous>, transform_indices = @transform_2, window_bounds = array<i64: 1, 32>}, {transform_indices = @transform_3, window_bounds = array<i64: 32, 96>}, {transform_indices = @transform_4, window_bounds = array<i64: 1, 96>}, {transform_indices = @transform_5, window_bounds = array<i64: 80, 96>}]} {
    %c0_i32 = arith.constant 0 : i32
    %0 = arith.cmpi eq, %arg1, %c0_i32 : i32
    %1 = arith.extui %0 : i1 to i32
    %c0_i32_0 = arith.constant 0 : i32
    %2 = arith.cmpi ne, %1, %c0_i32_0 : i32
    scf.if %2 {
      %c0_8 = arith.constant 0 : index
      %c0_9 = arith.constant 0 : index
      %11 = vector.load %arg2[%c0_8, %c0_9] : memref<80x32xf32, #tpu.memory_space<vmem>>, vector<80x32xf32>
      %cst_10 = arith.constant dense<0.000000e+00> : vector<80xf32>
      %12 = vector.multi_reduction <add>, %11, %cst_10 [1] : vector<80x32xf32> to vector<80xf32>
      %13 = vector.shape_cast %12 : vector<80xf32> to vector<80x1xf32>
      %cst_11 = arith.constant 3.200000e+01 : f32
      %14 = vector.broadcast %cst_11 : f32 to vector<80x1xf32>
      %15 = arith.divf %13, %14 : vector<80x1xf32>
      %16 = vector.broadcast %15 : vector<80x1xf32> to vector<80x32xf32>
      %17 = arith.subf %11, %16 : vector<80x32xf32>
      %18 = arith.mulf %17, %17 : vector<80x32xf32>
      %cst_12 = arith.constant dense<0.000000e+00> : vector<80xf32>
      %19 = vector.multi_reduction <add>, %18, %cst_12 [1] : vector<80x32xf32> to vector<80xf32>
      %20 = vector.shape_cast %19 : vector<80xf32> to vector<80x1xf32>
      %cst_13 = arith.constant 3.200000e+01 : f32
      %21 = vector.broadcast %cst_13 : f32 to vector<80x1xf32>
      %22 = arith.divf %20, %21 : vector<80x1xf32>
      %cst_14 = arith.constant 9.99999997E-7 : f32
      %23 = vector.broadcast %cst_14 : f32 to vector<80x1xf32>
      %24 = arith.addf %22, %23 : vector<80x1xf32>
      %25 = math.rsqrt %24 : vector<80x1xf32>
      %26 = vector.broadcast %25 : vector<80x1xf32> to vector<80x32xf32>
      %27 = arith.mulf %17, %26 : vector<80x32xf32>
      %c0_15 = arith.constant 0 : index
      %c0_16 = arith.constant 0 : index
      %28 = vector.load %arg3[%c0_15, %c0_16] : memref<1x32xf32, #tpu.memory_space<vmem>>, vector<1x32xf32>
      %29 = vector.broadcast %28 : vector<1x32xf32> to vector<80x32xf32>
      %30 = arith.mulf %27, %29 : vector<80x32xf32>
      %c0_17 = arith.constant 0 : index
      %c0_18 = arith.constant 0 : index
      %31 = vector.load %arg4[%c0_17, %c0_18] : memref<1x32xf32, #tpu.memory_space<vmem>>, vector<1x32xf32>
      %32 = vector.broadcast %31 : vector<1x32xf32> to vector<80x32xf32>
      %33 = arith.addf %30, %32 : vector<80x32xf32>
      %c0_19 = arith.constant 0 : index
      %c0_20 = arith.constant 0 : index
      %34 = vector.load %arg8[%c0_19, %c0_20] : memref<80x32xf32, #tpu.memory_space<vmem>>, vector<80x32xf32>
      tpu.vector_store %arg8[%c0_19, %c0_20], %33 {strides = array<i32>} : memref<80x32xf32, #tpu.memory_space<vmem>>, vector<80x32xf32>,
    } else {
    }
    %c0 = arith.constant 0 : index
    %c0_1 = arith.constant 0 : index
    %3 = vector.load %arg8[%c0, %c0_1] : memref<80x32xf32, #tpu.memory_space<vmem>>, vector<80x32xf32>
    %4 = arith.truncf %3 : vector<80x32xf32> to vector<80x32xbf16>
    %c0_2 = arith.constant 0 : index
    %c0_3 = arith.constant 0 : index
    %5 = vector.load %arg5[%c0_2, %c0_3] : memref<32x96xbf16, #tpu.memory_space<vmem>>, vector<32x96xbf16>
    %cst = arith.constant dense<0.000000e+00> : vector<80x96xf32>
    %6 = tpu.matmul %4, %5, %cst {dimension_numbers = #tpu.dot_dimension_numbers<[1], [0], [0], [1], [0, 0, 1, 1], [], []>} : vector<80x32xbf16>, vector<32x96xbf16>, vector<80x96xf32> -> vector<80x96xf32>
    %c0_4 = arith.constant 0 : index
    %c0_5 = arith.constant 0 : index
    %7 = vector.load %arg6[%c0_4, %c0_5] : memref<1x96xf32, #tpu.memory_space<vmem>>, vector<1x96xf32>
    %8 = vector.broadcast %7 : vector<1x96xf32> to vector<80x96xf32>
    %9 = arith.addf %6, %8 : vector<80x96xf32>
    %c0_6 = arith.constant 0 : index
    %c0_7 = arith.constant 0 : index
    %10 = vector.load %arg7[%c0_6, %c0_7] : memref<80x96xf32, #tpu.memory_space<vmem>>, vector<80x96xf32>
    tpu.vector_store %arg7[%c0_6, %c0_7], %9 {strides = array<i32>} : memref<80x96xf32, #tpu.memory_space<vmem>>, vector<80x96xf32>,
    return
  }
  func.func @transform_0(%arg0: i32, %arg1: i32) -> (i32, i32) {
    %c0_i32 = arith.constant 0 : i32
    %c0_i32_0 = arith.constant 0 : i32
    return %arg0, %c0_i32 : i32, i32
  }
  func.func @transform_1(%arg0: i32, %arg1: i32) -> (i32, i32) {
    %c0_i32 = arith.constant 0 : i32
    %c0_i32_0 = arith.constant 0 : i32
    %c0_i32_1 = arith.constant 0 : i32
    return %c0_i32, %c0_i32_0 : i32, i32
  }
  func.func @transform_2(%arg0: i32, %arg1: i32) -> (i32, i32) {
    %c0_i32 = arith.constant 0 : i32
    %c0_i32_0 = arith.constant 0 : i32
    %c0_i32_1 = arith.constant 0 : i32
    return %c0_i32, %c0_i32_0 : i32, i32
  }
  func.func @transform_3(%arg0: i32, %arg1: i32) -> (i32, i32) {
    %c0_i32 = arith.constant 0 : i32
    %c0_i32_0 = arith.constant 0 : i32
    return %c0_i32, %arg1 : i32, i32
  }
  func.func @transform_4(%arg0: i32, %arg1: i32) -> (i32, i32) {
    %c0_i32 = arith.constant 0 : i32
    %c0_i32_0 = arith.constant 0 : i32
    return %c0_i32, %arg1 : i32, i32
  }
  func.func @transform_5(%arg0: i32, %arg1: i32) -> (i32, i32) {
    %c0_i32 = arith.constant 0 : i32
    return %arg0, %arg1 : i32, i32
  }
}

module attributes {stable_mosaic.version = 11 : i64} {
  func.func @_self_mha_kernel(%arg0: i32, %arg1: i32, %arg2: memref<1x8x96xf32, #tpu.memory_space<vmem>>, %arg3: memref<1x1x8xf32, #tpu.memory_space<vmem>>, %arg4: memref<1x8x32xf32, #tpu.memory_space<vmem>>) attributes {dimension_semantics = [#tpu.dimension_semantics<parallel>, #tpu.dimension_semantics<parallel>], iteration_bounds = array<i64: 10, 1>, scalar_prefetch = 0 : i64, scratch_operands = 0 : i64, tpu.core_type = #tpu.core_type<tc>, window_params = [{transform_indices = @transform_0, window_bounds = array<i64: 1, 8, 96>}, {transform_indices = @transform_1, window_bounds = array<i64: 1, 1, 8>}, {transform_indices = @transform_2, window_bounds = array<i64: 1, 8, 32>}]} {
    %c8_i32 = arith.constant 8 : i32
    %0 = arith.muli %arg1, %c8_i32 : i32
    %c0 = arith.constant 0 : index
    %1 = arith.index_cast %0 : i32 to index
    %c0_0 = arith.constant 0 : index
    %2 = vector.load %arg2[%c0, %1, %c0_0] : memref<1x8x96xf32, #tpu.memory_space<vmem>>, vector<1x8x96xf32>
    %3 = vector.shape_cast %2 : vector<1x8x96xf32> to vector<8x96xf32>
    %c0_1 = arith.constant 0 : index
    %c0_2 = arith.constant 0 : index
    %c0_3 = arith.constant 0 : index
    %4 = vector.load %arg2[%c0_1, %c0_2, %c0_3] : memref<1x8x96xf32, #tpu.memory_space<vmem>>, vector<1x8x96xf32>
    %5 = vector.shape_cast %4 : vector<1x8x96xf32> to vector<8x96xf32>
    %c0_4 = arith.constant 0 : index
    %c0_5 = arith.constant 0 : index
    %c0_6 = arith.constant 0 : index
    %6 = vector.load %arg3[%c0_4, %c0_5, %c0_6] : memref<1x1x8xf32, #tpu.memory_space<vmem>>, vector<1x1x8xf32>
    %7 = vector.shape_cast %6 : vector<1x1x8xf32> to vector<1x8xf32>
    %8 = vector.extract_strided_slice %3 {offsets = [0, 0], sizes = [8, 8], strides = [1, 1]} : vector<8x96xf32> to vector<8x8xf32>
    %9 = arith.truncf %8 : vector<8x8xf32> to vector<8x8xbf16>
    %10 = vector.extract_strided_slice %5 {offsets = [0, 32], sizes = [8, 8], strides = [1, 1]} : vector<8x96xf32> to vector<8x8xf32>
    %11 = arith.truncf %10 : vector<8x8xf32> to vector<8x8xbf16>
    %12 = vector.extract_strided_slice %5 {offsets = [0, 64], sizes = [8, 8], strides = [1, 1]} : vector<8x96xf32> to vector<8x8xf32>
    %13 = arith.truncf %12 : vector<8x8xf32> to vector<8x8xbf16>
    %cst = arith.constant dense<0.000000e+00> : vector<8x8xf32>
    %14 = tpu.matmul %9, %11, %cst {dimension_numbers = #tpu.dot_dimension_numbers<[1], [1], [0], [0], [0, 0, 1, 0], [], []>} : vector<8x8xbf16>, vector<8x8xbf16>, vector<8x8xf32> -> vector<8x8xf32>
    %cst_7 = arith.constant 0.353553385 : f32
    %15 = vector.broadcast %cst_7 : f32 to vector<8x8xf32>
    %16 = arith.mulf %14, %15 : vector<8x8xf32>
    %17 = vector.broadcast %7 : vector<1x8xf32> to vector<8x8xf32>
    %18 = arith.addf %16, %17 : vector<8x8xf32>
    %cst_8 = arith.constant dense<0xFF800000> : vector<8xf32>
    %19 = vector.multi_reduction <maximumf>, %18, %cst_8 [1] : vector<8x8xf32> to vector<8xf32>
    %20 = vector.shape_cast %19 : vector<8xf32> to vector<8x1xf32>
    %21 = vector.broadcast %20 : vector<8x1xf32> to vector<8x8xf32>
    %22 = arith.subf %18, %21 : vector<8x8xf32>
    %23 = math.exp %22 : vector<8x8xf32>
    %cst_9 = arith.constant dense<0.000000e+00> : vector<8xf32>
    %24 = vector.multi_reduction <add>, %23, %cst_9 [1] : vector<8x8xf32> to vector<8xf32>
    %25 = vector.shape_cast %24 : vector<8xf32> to vector<8x1xf32>
    %26 = tpu.reciprocal %25 {approx = true} : vector<8x1xf32> -> vector<8x1xf32>
    %27 = vector.broadcast %26 : vector<8x1xf32> to vector<8x8xf32>
    %28 = arith.mulf %23, %27 : vector<8x8xf32>
    %29 = arith.truncf %28 : vector<8x8xf32> to vector<8x8xbf16>
    %cst_10 = arith.constant dense<0.000000e+00> : vector<8x8xf32>
    %30 = tpu.matmul %29, %13, %cst_10 {dimension_numbers = #tpu.dot_dimension_numbers<[1], [0], [0], [1], [0, 0, 1, 1], [], []>} : vector<8x8xbf16>, vector<8x8xbf16>, vector<8x8xf32> -> vector<8x8xf32>
    %31 = vector.extract_strided_slice %3 {offsets = [0, 8], sizes = [8, 8], strides = [1, 1]} : vector<8x96xf32> to vector<8x8xf32>
    %32 = arith.truncf %31 : vector<8x8xf32> to vector<8x8xbf16>
    %33 = vector.extract_strided_slice %5 {offsets = [0, 40], sizes = [8, 8], strides = [1, 1]} : vector<8x96xf32> to vector<8x8xf32>
    %34 = arith.truncf %33 : vector<8x8xf32> to vector<8x8xbf16>
    %35 = vector.extract_strided_slice %5 {offsets = [0, 72], sizes = [8, 8], strides = [1, 1]} : vector<8x96xf32> to vector<8x8xf32>
    %36 = arith.truncf %35 : vector<8x8xf32> to vector<8x8xbf16>
    %cst_11 = arith.constant dense<0.000000e+00> : vector<8x8xf32>
    %37 = tpu.matmul %32, %34, %cst_11 {dimension_numbers = #tpu.dot_dimension_numbers<[1], [1], [0], [0], [0, 0, 1, 0], [], []>} : vector<8x8xbf16>, vector<8x8xbf16>, vector<8x8xf32> -> vector<8x8xf32>
    %cst_12 = arith.constant 0.353553385 : f32
    %38 = vector.broadcast %cst_12 : f32 to vector<8x8xf32>
    %39 = arith.mulf %37, %38 : vector<8x8xf32>
    %40 = vector.broadcast %7 : vector<1x8xf32> to vector<8x8xf32>
    %41 = arith.addf %39, %40 : vector<8x8xf32>
    %cst_13 = arith.constant dense<0xFF800000> : vector<8xf32>
    %42 = vector.multi_reduction <maximumf>, %41, %cst_13 [1] : vector<8x8xf32> to vector<8xf32>
    %43 = vector.shape_cast %42 : vector<8xf32> to vector<8x1xf32>
    %44 = vector.broadcast %43 : vector<8x1xf32> to vector<8x8xf32>
    %45 = arith.subf %41, %44 : vector<8x8xf32>
    %46 = math.exp %45 : vector<8x8xf32>
    %cst_14 = arith.constant dense<0.000000e+00> : vector<8xf32>
    %47 = vector.multi_reduction <add>, %46, %cst_14 [1] : vector<8x8xf32> to vector<8xf32>
    %48 = vector.shape_cast %47 : vector<8xf32> to vector<8x1xf32>
    %49 = tpu.reciprocal %48 {approx = true} : vector<8x1xf32> -> vector<8x1xf32>
    %50 = vector.broadcast %49 : vector<8x1xf32> to vector<8x8xf32>
    %51 = arith.mulf %46, %50 : vector<8x8xf32>
    %52 = arith.truncf %51 : vector<8x8xf32> to vector<8x8xbf16>
    %cst_15 = arith.constant dense<0.000000e+00> : vector<8x8xf32>
    %53 = tpu.matmul %52, %36, %cst_15 {dimension_numbers = #tpu.dot_dimension_numbers<[1], [0], [0], [1], [0, 0, 1, 1], [], []>} : vector<8x8xbf16>, vector<8x8xbf16>, vector<8x8xf32> -> vector<8x8xf32>
    %54 = vector.extract_strided_slice %3 {offsets = [0, 16], sizes = [8, 8], strides = [1, 1]} : vector<8x96xf32> to vector<8x8xf32>
    %55 = arith.truncf %54 : vector<8x8xf32> to vector<8x8xbf16>
    %56 = vector.extract_strided_slice %5 {offsets = [0, 48], sizes = [8, 8], strides = [1, 1]} : vector<8x96xf32> to vector<8x8xf32>
    %57 = arith.truncf %56 : vector<8x8xf32> to vector<8x8xbf16>
    %58 = vector.extract_strided_slice %5 {offsets = [0, 80], sizes = [8, 8], strides = [1, 1]} : vector<8x96xf32> to vector<8x8xf32>
    %59 = arith.truncf %58 : vector<8x8xf32> to vector<8x8xbf16>
    %cst_16 = arith.constant dense<0.000000e+00> : vector<8x8xf32>
    %60 = tpu.matmul %55, %57, %cst_16 {dimension_numbers = #tpu.dot_dimension_numbers<[1], [1], [0], [0], [0, 0, 1, 0], [], []>} : vector<8x8xbf16>, vector<8x8xbf16>, vector<8x8xf32> -> vector<8x8xf32>
    %cst_17 = arith.constant 0.353553385 : f32
    %61 = vector.broadcast %cst_17 : f32 to vector<8x8xf32>
    %62 = arith.mulf %60, %61 : vector<8x8xf32>
    %63 = vector.broadcast %7 : vector<1x8xf32> to vector<8x8xf32>
    %64 = arith.addf %62, %63 : vector<8x8xf32>
    %cst_18 = arith.constant dense<0xFF800000> : vector<8xf32>
    %65 = vector.multi_reduction <maximumf>, %64, %cst_18 [1] : vector<8x8xf32> to vector<8xf32>
    %66 = vector.shape_cast %65 : vector<8xf32> to vector<8x1xf32>
    %67 = vector.broadcast %66 : vector<8x1xf32> to vector<8x8xf32>
    %68 = arith.subf %64, %67 : vector<8x8xf32>
    %69 = math.exp %68 : vector<8x8xf32>
    %cst_19 = arith.constant dense<0.000000e+00> : vector<8xf32>
    %70 = vector.multi_reduction <add>, %69, %cst_19 [1] : vector<8x8xf32> to vector<8xf32>
    %71 = vector.shape_cast %70 : vector<8xf32> to vector<8x1xf32>
    %72 = tpu.reciprocal %71 {approx = true} : vector<8x1xf32> -> vector<8x1xf32>
    %73 = vector.broadcast %72 : vector<8x1xf32> to vector<8x8xf32>
    %74 = arith.mulf %69, %73 : vector<8x8xf32>
    %75 = arith.truncf %74 : vector<8x8xf32> to vector<8x8xbf16>
    %cst_20 = arith.constant dense<0.000000e+00> : vector<8x8xf32>
    %76 = tpu.matmul %75, %59, %cst_20 {dimension_numbers = #tpu.dot_dimension_numbers<[1], [0], [0], [1], [0, 0, 1, 1], [], []>} : vector<8x8xbf16>, vector<8x8xbf16>, vector<8x8xf32> -> vector<8x8xf32>
    %77 = vector.extract_strided_slice %3 {offsets = [0, 24], sizes = [8, 8], strides = [1, 1]} : vector<8x96xf32> to vector<8x8xf32>
    %78 = arith.truncf %77 : vector<8x8xf32> to vector<8x8xbf16>
    %79 = vector.extract_strided_slice %5 {offsets = [0, 56], sizes = [8, 8], strides = [1, 1]} : vector<8x96xf32> to vector<8x8xf32>
    %80 = arith.truncf %79 : vector<8x8xf32> to vector<8x8xbf16>
    %81 = vector.extract_strided_slice %5 {offsets = [0, 88], sizes = [8, 8], strides = [1, 1]} : vector<8x96xf32> to vector<8x8xf32>
    %82 = arith.truncf %81 : vector<8x8xf32> to vector<8x8xbf16>
    %cst_21 = arith.constant dense<0.000000e+00> : vector<8x8xf32>
    %83 = tpu.matmul %78, %80, %cst_21 {dimension_numbers = #tpu.dot_dimension_numbers<[1], [1], [0], [0], [0, 0, 1, 0], [], []>} : vector<8x8xbf16>, vector<8x8xbf16>, vector<8x8xf32> -> vector<8x8xf32>
    %cst_22 = arith.constant 0.353553385 : f32
    %84 = vector.broadcast %cst_22 : f32 to vector<8x8xf32>
    %85 = arith.mulf %83, %84 : vector<8x8xf32>
    %86 = vector.broadcast %7 : vector<1x8xf32> to vector<8x8xf32>
    %87 = arith.addf %85, %86 : vector<8x8xf32>
    %cst_23 = arith.constant dense<0xFF800000> : vector<8xf32>
    %88 = vector.multi_reduction <maximumf>, %87, %cst_23 [1] : vector<8x8xf32> to vector<8xf32>
    %89 = vector.shape_cast %88 : vector<8xf32> to vector<8x1xf32>
    %90 = vector.broadcast %89 : vector<8x1xf32> to vector<8x8xf32>
    %91 = arith.subf %87, %90 : vector<8x8xf32>
    %92 = math.exp %91 : vector<8x8xf32>
    %cst_24 = arith.constant dense<0.000000e+00> : vector<8xf32>
    %93 = vector.multi_reduction <add>, %92, %cst_24 [1] : vector<8x8xf32> to vector<8xf32>
    %94 = vector.shape_cast %93 : vector<8xf32> to vector<8x1xf32>
    %95 = tpu.reciprocal %94 {approx = true} : vector<8x1xf32> -> vector<8x1xf32>
    %96 = vector.broadcast %95 : vector<8x1xf32> to vector<8x8xf32>
    %97 = arith.mulf %92, %96 : vector<8x8xf32>
    %98 = arith.truncf %97 : vector<8x8xf32> to vector<8x8xbf16>
    %cst_25 = arith.constant dense<0.000000e+00> : vector<8x8xf32>
    %99 = tpu.matmul %98, %82, %cst_25 {dimension_numbers = #tpu.dot_dimension_numbers<[1], [0], [0], [1], [0, 0, 1, 1], [], []>} : vector<8x8xbf16>, vector<8x8xbf16>, vector<8x8xf32> -> vector<8x8xf32>
    %100 = tpu.concatenate %30, %53, %76, %99 in 1 : vector<8x8xf32>, vector<8x8xf32>, vector<8x8xf32>, vector<8x8xf32> -> vector<8x32xf32>
    %c0_26 = arith.constant 0 : index
    %c0_27 = arith.constant 0 : index
    %c0_28 = arith.constant 0 : index
    %101 = vector.load %arg4[%c0_26, %c0_27, %c0_28] : memref<1x8x32xf32, #tpu.memory_space<vmem>>, vector<1x8x32xf32>
    %102 = vector.shape_cast %101 : vector<1x8x32xf32> to vector<8x32xf32>
    %103 = vector.shape_cast %100 : vector<8x32xf32> to vector<1x8x32xf32>
    tpu.vector_store %arg4[%c0_26, %c0_27, %c0_28], %103 {strides = array<i32>} : memref<1x8x32xf32, #tpu.memory_space<vmem>>, vector<1x8x32xf32>,
    return
  }
  func.func @transform_0(%arg0: i32, %arg1: i32) -> (i32, i32, i32) {
    %c0_i32 = arith.constant 0 : i32
    %c0_i32_0 = arith.constant 0 : i32
    %c0_i32_1 = arith.constant 0 : i32
    return %arg0, %c0_i32, %c0_i32_0 : i32, i32, i32
  }
  func.func @transform_1(%arg0: i32, %arg1: i32) -> (i32, i32, i32) {
    %c0_i32 = arith.constant 0 : i32
    %c0_i32_0 = arith.constant 0 : i32
    %c0_i32_1 = arith.constant 0 : i32
    return %arg0, %c0_i32, %c0_i32_0 : i32, i32, i32
  }
  func.func @transform_2(%arg0: i32, %arg1: i32) -> (i32, i32, i32) {
    %c0_i32 = arith.constant 0 : i32
    %c0_i32_0 = arith.constant 0 : i32
    return %arg0, %arg1, %c0_i32 : i32, i32, i32
  }
}

module attributes {stable_mosaic.version = 11 : i64} {
  func.func @_linear_residual_kernel(%arg0: i32, %arg1: i32, %arg2: memref<80x32xf32, #tpu.memory_space<vmem>>, %arg3: memref<32x32xbf16, #tpu.memory_space<vmem>>, %arg4: memref<1x32xf32, #tpu.memory_space<vmem>>, %arg5: memref<80x32xf32, #tpu.memory_space<vmem>>, %arg6: memref<80x32xf32, #tpu.memory_space<vmem>>) attributes {dimension_semantics = [#tpu.dimension_semantics<parallel>, #tpu.dimension_semantics<parallel>], iteration_bounds = array<i64: 1, 1>, scalar_prefetch = 0 : i64, scratch_operands = 0 : i64, tpu.core_type = #tpu.core_type<tc>, window_params = [{transform_indices = @transform_0, window_bounds = array<i64: 80, 32>}, {transform_indices = @transform_1, window_bounds = array<i64: 32, 32>}, {transform_indices = @transform_2, window_bounds = array<i64: 1, 32>}, {transform_indices = @transform_3, window_bounds = array<i64: 80, 32>}, {transform_indices = @transform_4, window_bounds = array<i64: 80, 32>}]} {
    %c0 = arith.constant 0 : index
    %c0_0 = arith.constant 0 : index
    %0 = vector.load %arg2[%c0, %c0_0] : memref<80x32xf32, #tpu.memory_space<vmem>>, vector<80x32xf32>
    %1 = arith.truncf %0 : vector<80x32xf32> to vector<80x32xbf16>
    %c0_1 = arith.constant 0 : index
    %c0_2 = arith.constant 0 : index
    %2 = vector.load %arg3[%c0_1, %c0_2] : memref<32x32xbf16, #tpu.memory_space<vmem>>, vector<32x32xbf16>
    %cst = arith.constant dense<0.000000e+00> : vector<80x32xf32>
    %3 = tpu.matmul %1, %2, %cst {dimension_numbers = #tpu.dot_dimension_numbers<[1], [0], [0], [1], [0, 0, 1, 1], [], []>} : vector<80x32xbf16>, vector<32x32xbf16>, vector<80x32xf32> -> vector<80x32xf32>
    %c0_3 = arith.constant 0 : index
    %c0_4 = arith.constant 0 : index
    %4 = vector.load %arg4[%c0_3, %c0_4] : memref<1x32xf32, #tpu.memory_space<vmem>>, vector<1x32xf32>
    %5 = vector.broadcast %4 : vector<1x32xf32> to vector<80x32xf32>
    %6 = arith.addf %3, %5 : vector<80x32xf32>
    %c0_5 = arith.constant 0 : index
    %c0_6 = arith.constant 0 : index
    %7 = vector.load %arg5[%c0_5, %c0_6] : memref<80x32xf32, #tpu.memory_space<vmem>>, vector<80x32xf32>
    %8 = arith.addf %6, %7 : vector<80x32xf32>
    %c0_7 = arith.constant 0 : index
    %c0_8 = arith.constant 0 : index
    %9 = vector.load %arg6[%c0_7, %c0_8] : memref<80x32xf32, #tpu.memory_space<vmem>>, vector<80x32xf32>
    tpu.vector_store %arg6[%c0_7, %c0_8], %8 {strides = array<i32>} : memref<80x32xf32, #tpu.memory_space<vmem>>, vector<80x32xf32>,
    return
  }
  func.func @transform_0(%arg0: i32, %arg1: i32) -> (i32, i32) {
    %c0_i32 = arith.constant 0 : i32
    %c0_i32_0 = arith.constant 0 : i32
    return %arg0, %c0_i32 : i32, i32
  }
  func.func @transform_1(%arg0: i32, %arg1: i32) -> (i32, i32) {
    %c0_i32 = arith.constant 0 : i32
    %c0_i32_0 = arith.constant 0 : i32
    return %c0_i32, %arg1 : i32, i32
  }
  func.func @transform_2(%arg0: i32, %arg1: i32) -> (i32, i32) {
    %c0_i32 = arith.constant 0 : i32
    %c0_i32_0 = arith.constant 0 : i32
    return %c0_i32, %arg1 : i32, i32
  }
  func.func @transform_3(%arg0: i32, %arg1: i32) -> (i32, i32) {
    %c0_i32 = arith.constant 0 : i32
    return %arg0, %arg1 : i32, i32
  }
  func.func @transform_4(%arg0: i32, %arg1: i32) -> (i32, i32) {
    %c0_i32 = arith.constant 0 : i32
    return %arg0, %arg1 : i32, i32
  }
}

module attributes {stable_mosaic.version = 11 : i64} {
  func.func @_ln_linear_kernel(%arg0: i32, %arg1: i32, %arg2: memref<80x32xf32, #tpu.memory_space<vmem>>, %arg3: memref<1x32xf32, #tpu.memory_space<vmem>>, %arg4: memref<1x32xf32, #tpu.memory_space<vmem>>, %arg5: memref<32x32xbf16, #tpu.memory_space<vmem>>, %arg6: memref<1x32xf32, #tpu.memory_space<vmem>>, %arg7: memref<80x32xf32, #tpu.memory_space<vmem>>, %arg8: memref<80x32xf32, #tpu.memory_space<vmem>>) attributes {dimension_semantics = [#tpu.dimension_semantics<parallel>, #tpu.dimension_semantics<arbitrary>], iteration_bounds = array<i64: 1, 1>, scalar_prefetch = 0 : i64, scratch_operands = 1 : i64, tpu.core_type = #tpu.core_type<tc>, window_params = [{transform_indices = @transform_0, window_bounds = array<i64: 80, 32>}, {pipeline_mode = #tpu.pipeline_mode<synchronous>, transform_indices = @transform_1, window_bounds = array<i64: 1, 32>}, {pipeline_mode = #tpu.pipeline_mode<synchronous>, transform_indices = @transform_2, window_bounds = array<i64: 1, 32>}, {transform_indices = @transform_3, window_bounds = array<i64: 32, 32>}, {transform_indices = @transform_4, window_bounds = array<i64: 1, 32>}, {transform_indices = @transform_5, window_bounds = array<i64: 80, 32>}]} {
    %c0_i32 = arith.constant 0 : i32
    %0 = arith.cmpi eq, %arg1, %c0_i32 : i32
    %1 = arith.extui %0 : i1 to i32
    %c0_i32_0 = arith.constant 0 : i32
    %2 = arith.cmpi ne, %1, %c0_i32_0 : i32
    scf.if %2 {
      %c0_8 = arith.constant 0 : index
      %c0_9 = arith.constant 0 : index
      %11 = vector.load %arg2[%c0_8, %c0_9] : memref<80x32xf32, #tpu.memory_space<vmem>>, vector<80x32xf32>
      %cst_10 = arith.constant dense<0.000000e+00> : vector<80xf32>
      %12 = vector.multi_reduction <add>, %11, %cst_10 [1] : vector<80x32xf32> to vector<80xf32>
      %13 = vector.shape_cast %12 : vector<80xf32> to vector<80x1xf32>
      %cst_11 = arith.constant 3.200000e+01 : f32
      %14 = vector.broadcast %cst_11 : f32 to vector<80x1xf32>
      %15 = arith.divf %13, %14 : vector<80x1xf32>
      %16 = vector.broadcast %15 : vector<80x1xf32> to vector<80x32xf32>
      %17 = arith.subf %11, %16 : vector<80x32xf32>
      %18 = arith.mulf %17, %17 : vector<80x32xf32>
      %cst_12 = arith.constant dense<0.000000e+00> : vector<80xf32>
      %19 = vector.multi_reduction <add>, %18, %cst_12 [1] : vector<80x32xf32> to vector<80xf32>
      %20 = vector.shape_cast %19 : vector<80xf32> to vector<80x1xf32>
      %cst_13 = arith.constant 3.200000e+01 : f32
      %21 = vector.broadcast %cst_13 : f32 to vector<80x1xf32>
      %22 = arith.divf %20, %21 : vector<80x1xf32>
      %cst_14 = arith.constant 9.99999997E-7 : f32
      %23 = vector.broadcast %cst_14 : f32 to vector<80x1xf32>
      %24 = arith.addf %22, %23 : vector<80x1xf32>
      %25 = math.rsqrt %24 : vector<80x1xf32>
      %26 = vector.broadcast %25 : vector<80x1xf32> to vector<80x32xf32>
      %27 = arith.mulf %17, %26 : vector<80x32xf32>
      %c0_15 = arith.constant 0 : index
      %c0_16 = arith.constant 0 : index
      %28 = vector.load %arg3[%c0_15, %c0_16] : memref<1x32xf32, #tpu.memory_space<vmem>>, vector<1x32xf32>
      %29 = vector.broadcast %28 : vector<1x32xf32> to vector<80x32xf32>
      %30 = arith.mulf %27, %29 : vector<80x32xf32>
      %c0_17 = arith.constant 0 : index
      %c0_18 = arith.constant 0 : index
      %31 = vector.load %arg4[%c0_17, %c0_18] : memref<1x32xf32, #tpu.memory_space<vmem>>, vector<1x32xf32>
      %32 = vector.broadcast %31 : vector<1x32xf32> to vector<80x32xf32>
      %33 = arith.addf %30, %32 : vector<80x32xf32>
      %c0_19 = arith.constant 0 : index
      %c0_20 = arith.constant 0 : index
      %34 = vector.load %arg8[%c0_19, %c0_20] : memref<80x32xf32, #tpu.memory_space<vmem>>, vector<80x32xf32>
      tpu.vector_store %arg8[%c0_19, %c0_20], %33 {strides = array<i32>} : memref<80x32xf32, #tpu.memory_space<vmem>>, vector<80x32xf32>,
    } else {
    }
    %c0 = arith.constant 0 : index
    %c0_1 = arith.constant 0 : index
    %3 = vector.load %arg8[%c0, %c0_1] : memref<80x32xf32, #tpu.memory_space<vmem>>, vector<80x32xf32>
    %4 = arith.truncf %3 : vector<80x32xf32> to vector<80x32xbf16>
    %c0_2 = arith.constant 0 : index
    %c0_3 = arith.constant 0 : index
    %5 = vector.load %arg5[%c0_2, %c0_3] : memref<32x32xbf16, #tpu.memory_space<vmem>>, vector<32x32xbf16>
    %cst = arith.constant dense<0.000000e+00> : vector<80x32xf32>
    %6 = tpu.matmul %4, %5, %cst {dimension_numbers = #tpu.dot_dimension_numbers<[1], [0], [0], [1], [0, 0, 1, 1], [], []>} : vector<80x32xbf16>, vector<32x32xbf16>, vector<80x32xf32> -> vector<80x32xf32>
    %c0_4 = arith.constant 0 : index
    %c0_5 = arith.constant 0 : index
    %7 = vector.load %arg6[%c0_4, %c0_5] : memref<1x32xf32, #tpu.memory_space<vmem>>, vector<1x32xf32>
    %8 = vector.broadcast %7 : vector<1x32xf32> to vector<80x32xf32>
    %9 = arith.addf %6, %8 : vector<80x32xf32>
    %c0_6 = arith.constant 0 : index
    %c0_7 = arith.constant 0 : index
    %10 = vector.load %arg7[%c0_6, %c0_7] : memref<80x32xf32, #tpu.memory_space<vmem>>, vector<80x32xf32>
    tpu.vector_store %arg7[%c0_6, %c0_7], %9 {strides = array<i32>} : memref<80x32xf32, #tpu.memory_space<vmem>>, vector<80x32xf32>,
    return
  }
  func.func @transform_0(%arg0: i32, %arg1: i32) -> (i32, i32) {
    %c0_i32 = arith.constant 0 : i32
    %c0_i32_0 = arith.constant 0 : i32
    return %arg0, %c0_i32 : i32, i32
  }
  func.func @transform_1(%arg0: i32, %arg1: i32) -> (i32, i32) {
    %c0_i32 = arith.constant 0 : i32
    %c0_i32_0 = arith.constant 0 : i32
    %c0_i32_1 = arith.constant 0 : i32
    return %c0_i32, %c0_i32_0 : i32, i32
  }
  func.func @transform_2(%arg0: i32, %arg1: i32) -> (i32, i32) {
    %c0_i32 = arith.constant 0 : i32
    %c0_i32_0 = arith.constant 0 : i32
    %c0_i32_1 = arith.constant 0 : i32
    return %c0_i32, %c0_i32_0 : i32, i32
  }
  func.func @transform_3(%arg0: i32, %arg1: i32) -> (i32, i32) {
    %c0_i32 = arith.constant 0 : i32
    %c0_i32_0 = arith.constant 0 : i32
    return %c0_i32, %arg1 : i32, i32
  }
  func.func @transform_4(%arg0: i32, %arg1: i32) -> (i32, i32) {
    %c0_i32 = arith.constant 0 : i32
    %c0_i32_0 = arith.constant 0 : i32
    return %c0_i32, %arg1 : i32, i32
  }
  func.func @transform_5(%arg0: i32, %arg1: i32) -> (i32, i32) {
    %c0_i32 = arith.constant 0 : i32
    return %arg0, %arg1 : i32, i32
  }
}

module attributes {stable_mosaic.version = 11 : i64} {
  func.func @_linear_kernel(%arg0: i32, %arg1: i32, %arg2: memref<80x32xf32, #tpu.memory_space<vmem>>, %arg3: memref<32x64xbf16, #tpu.memory_space<vmem>>, %arg4: memref<1x64xf32, #tpu.memory_space<vmem>>, %arg5: memref<80x64xf32, #tpu.memory_space<vmem>>) attributes {dimension_semantics = [#tpu.dimension_semantics<parallel>, #tpu.dimension_semantics<parallel>], iteration_bounds = array<i64: 1, 1>, scalar_prefetch = 0 : i64, scratch_operands = 0 : i64, tpu.core_type = #tpu.core_type<tc>, window_params = [{transform_indices = @transform_0, window_bounds = array<i64: 80, 32>}, {transform_indices = @transform_1, window_bounds = array<i64: 32, 64>}, {transform_indices = @transform_2, window_bounds = array<i64: 1, 64>}, {transform_indices = @transform_3, window_bounds = array<i64: 80, 64>}]} {
    %c0 = arith.constant 0 : index
    %c0_0 = arith.constant 0 : index
    %0 = vector.load %arg2[%c0, %c0_0] : memref<80x32xf32, #tpu.memory_space<vmem>>, vector<80x32xf32>
    %1 = arith.truncf %0 : vector<80x32xf32> to vector<80x32xbf16>
    %c0_1 = arith.constant 0 : index
    %c0_2 = arith.constant 0 : index
    %2 = vector.load %arg3[%c0_1, %c0_2] : memref<32x64xbf16, #tpu.memory_space<vmem>>, vector<32x64xbf16>
    %cst = arith.constant dense<0.000000e+00> : vector<80x64xf32>
    %3 = tpu.matmul %1, %2, %cst {dimension_numbers = #tpu.dot_dimension_numbers<[1], [0], [0], [1], [0, 0, 1, 1], [], []>} : vector<80x32xbf16>, vector<32x64xbf16>, vector<80x64xf32> -> vector<80x64xf32>
    %c0_3 = arith.constant 0 : index
    %c0_4 = arith.constant 0 : index
    %4 = vector.load %arg4[%c0_3, %c0_4] : memref<1x64xf32, #tpu.memory_space<vmem>>, vector<1x64xf32>
    %5 = vector.broadcast %4 : vector<1x64xf32> to vector<80x64xf32>
    %6 = arith.addf %3, %5 : vector<80x64xf32>
    %c0_5 = arith.constant 0 : index
    %c0_6 = arith.constant 0 : index
    %7 = vector.load %arg5[%c0_5, %c0_6] : memref<80x64xf32, #tpu.memory_space<vmem>>, vector<80x64xf32>
    tpu.vector_store %arg5[%c0_5, %c0_6], %6 {strides = array<i32>} : memref<80x64xf32, #tpu.memory_space<vmem>>, vector<80x64xf32>,
    return
  }
  func.func @transform_0(%arg0: i32, %arg1: i32) -> (i32, i32) {
    %c0_i32 = arith.constant 0 : i32
    %c0_i32_0 = arith.constant 0 : i32
    return %arg0, %c0_i32 : i32, i32
  }
  func.func @transform_1(%arg0: i32, %arg1: i32) -> (i32, i32) {
    %c0_i32 = arith.constant 0 : i32
    %c0_i32_0 = arith.constant 0 : i32
    return %c0_i32, %arg1 : i32, i32
  }
  func.func @transform_2(%arg0: i32, %arg1: i32) -> (i32, i32) {
    %c0_i32 = arith.constant 0 : i32
    %c0_i32_0 = arith.constant 0 : i32
    return %c0_i32, %arg1 : i32, i32
  }
  func.func @transform_3(%arg0: i32, %arg1: i32) -> (i32, i32) {
    %c0_i32 = arith.constant 0 : i32
    return %arg0, %arg1 : i32, i32
  }
}

module attributes {stable_mosaic.version = 11 : i64} {
  func.func @_cross_mha_kernel(%arg0: i32, %arg1: i32, %arg2: memref<1x8x32xf32, #tpu.memory_space<vmem>>, %arg3: memref<1x8x64xf32, #tpu.memory_space<vmem>>, %arg4: memref<1x1x8xf32, #tpu.memory_space<vmem>>, %arg5: memref<1x8x32xf32, #tpu.memory_space<vmem>>) attributes {dimension_semantics = [#tpu.dimension_semantics<parallel>, #tpu.dimension_semantics<parallel>], iteration_bounds = array<i64: 10, 1>, scalar_prefetch = 0 : i64, scratch_operands = 0 : i64, tpu.core_type = #tpu.core_type<tc>, window_params = [{transform_indices = @transform_0, window_bounds = array<i64: 1, 8, 32>}, {transform_indices = @transform_1, window_bounds = array<i64: 1, 8, 64>}, {transform_indices = @transform_2, window_bounds = array<i64: 1, 1, 8>}, {transform_indices = @transform_3, window_bounds = array<i64: 1, 8, 32>}]} {
    %c0 = arith.constant 0 : index
    %c0_0 = arith.constant 0 : index
    %c0_1 = arith.constant 0 : index
    %0 = vector.load %arg2[%c0, %c0_0, %c0_1] : memref<1x8x32xf32, #tpu.memory_space<vmem>>, vector<1x8x32xf32>
    %1 = vector.shape_cast %0 : vector<1x8x32xf32> to vector<8x32xf32>
    %c0_2 = arith.constant 0 : index
    %c0_3 = arith.constant 0 : index
    %c0_4 = arith.constant 0 : index
    %2 = vector.load %arg3[%c0_2, %c0_3, %c0_4] : memref<1x8x64xf32, #tpu.memory_space<vmem>>, vector<1x8x64xf32>
    %3 = vector.shape_cast %2 : vector<1x8x64xf32> to vector<8x64xf32>
    %c0_5 = arith.constant 0 : index
    %c0_6 = arith.constant 0 : index
    %c0_7 = arith.constant 0 : index
    %4 = vector.load %arg4[%c0_5, %c0_6, %c0_7] : memref<1x1x8xf32, #tpu.memory_space<vmem>>, vector<1x1x8xf32>
    %5 = vector.shape_cast %4 : vector<1x1x8xf32> to vector<1x8xf32>
    %6 = vector.extract_strided_slice %1 {offsets = [0, 0], sizes = [8, 8], strides = [1, 1]} : vector<8x32xf32> to vector<8x8xf32>
    %7 = arith.truncf %6 : vector<8x8xf32> to vector<8x8xbf16>
    %8 = vector.extract_strided_slice %3 {offsets = [0, 0], sizes = [8, 8], strides = [1, 1]} : vector<8x64xf32> to vector<8x8xf32>
    %9 = arith.truncf %8 : vector<8x8xf32> to vector<8x8xbf16>
    %10 = vector.extract_strided_slice %3 {offsets = [0, 32], sizes = [8, 8], strides = [1, 1]} : vector<8x64xf32> to vector<8x8xf32>
    %11 = arith.truncf %10 : vector<8x8xf32> to vector<8x8xbf16>
    %cst = arith.constant dense<0.000000e+00> : vector<8x8xf32>
    %12 = tpu.matmul %7, %9, %cst {dimension_numbers = #tpu.dot_dimension_numbers<[1], [1], [0], [0], [0, 0, 1, 0], [], []>} : vector<8x8xbf16>, vector<8x8xbf16>, vector<8x8xf32> -> vector<8x8xf32>
    %cst_8 = arith.constant 0.353553385 : f32
    %13 = vector.broadcast %cst_8 : f32 to vector<8x8xf32>
    %14 = arith.mulf %12, %13 : vector<8x8xf32>
    %15 = vector.broadcast %5 : vector<1x8xf32> to vector<8x8xf32>
    %16 = arith.addf %14, %15 : vector<8x8xf32>
    %cst_9 = arith.constant dense<0xFF800000> : vector<8xf32>
    %17 = vector.multi_reduction <maximumf>, %16, %cst_9 [1] : vector<8x8xf32> to vector<8xf32>
    %18 = vector.shape_cast %17 : vector<8xf32> to vector<8x1xf32>
    %19 = vector.broadcast %18 : vector<8x1xf32> to vector<8x8xf32>
    %20 = arith.subf %16, %19 : vector<8x8xf32>
    %21 = math.exp %20 : vector<8x8xf32>
    %cst_10 = arith.constant dense<0.000000e+00> : vector<8xf32>
    %22 = vector.multi_reduction <add>, %21, %cst_10 [1] : vector<8x8xf32> to vector<8xf32>
    %23 = vector.shape_cast %22 : vector<8xf32> to vector<8x1xf32>
    %24 = tpu.reciprocal %23 {approx = true} : vector<8x1xf32> -> vector<8x1xf32>
    %25 = vector.broadcast %24 : vector<8x1xf32> to vector<8x8xf32>
    %26 = arith.mulf %21, %25 : vector<8x8xf32>
    %27 = arith.truncf %26 : vector<8x8xf32> to vector<8x8xbf16>
    %cst_11 = arith.constant dense<0.000000e+00> : vector<8x8xf32>
    %28 = tpu.matmul %27, %11, %cst_11 {dimension_numbers = #tpu.dot_dimension_numbers<[1], [0], [0], [1], [0, 0, 1, 1], [], []>} : vector<8x8xbf16>, vector<8x8xbf16>, vector<8x8xf32> -> vector<8x8xf32>
    %29 = vector.extract_strided_slice %1 {offsets = [0, 8], sizes = [8, 8], strides = [1, 1]} : vector<8x32xf32> to vector<8x8xf32>
    %30 = arith.truncf %29 : vector<8x8xf32> to vector<8x8xbf16>
    %31 = vector.extract_strided_slice %3 {offsets = [0, 8], sizes = [8, 8], strides = [1, 1]} : vector<8x64xf32> to vector<8x8xf32>
    %32 = arith.truncf %31 : vector<8x8xf32> to vector<8x8xbf16>
    %33 = vector.extract_strided_slice %3 {offsets = [0, 40], sizes = [8, 8], strides = [1, 1]} : vector<8x64xf32> to vector<8x8xf32>
    %34 = arith.truncf %33 : vector<8x8xf32> to vector<8x8xbf16>
    %cst_12 = arith.constant dense<0.000000e+00> : vector<8x8xf32>
    %35 = tpu.matmul %30, %32, %cst_12 {dimension_numbers = #tpu.dot_dimension_numbers<[1], [1], [0], [0], [0, 0, 1, 0], [], []>} : vector<8x8xbf16>, vector<8x8xbf16>, vector<8x8xf32> -> vector<8x8xf32>
    %cst_13 = arith.constant 0.353553385 : f32
    %36 = vector.broadcast %cst_13 : f32 to vector<8x8xf32>
    %37 = arith.mulf %35, %36 : vector<8x8xf32>
    %38 = vector.broadcast %5 : vector<1x8xf32> to vector<8x8xf32>
    %39 = arith.addf %37, %38 : vector<8x8xf32>
    %cst_14 = arith.constant dense<0xFF800000> : vector<8xf32>
    %40 = vector.multi_reduction <maximumf>, %39, %cst_14 [1] : vector<8x8xf32> to vector<8xf32>
    %41 = vector.shape_cast %40 : vector<8xf32> to vector<8x1xf32>
    %42 = vector.broadcast %41 : vector<8x1xf32> to vector<8x8xf32>
    %43 = arith.subf %39, %42 : vector<8x8xf32>
    %44 = math.exp %43 : vector<8x8xf32>
    %cst_15 = arith.constant dense<0.000000e+00> : vector<8xf32>
    %45 = vector.multi_reduction <add>, %44, %cst_15 [1] : vector<8x8xf32> to vector<8xf32>
    %46 = vector.shape_cast %45 : vector<8xf32> to vector<8x1xf32>
    %47 = tpu.reciprocal %46 {approx = true} : vector<8x1xf32> -> vector<8x1xf32>
    %48 = vector.broadcast %47 : vector<8x1xf32> to vector<8x8xf32>
    %49 = arith.mulf %44, %48 : vector<8x8xf32>
    %50 = arith.truncf %49 : vector<8x8xf32> to vector<8x8xbf16>
    %cst_16 = arith.constant dense<0.000000e+00> : vector<8x8xf32>
    %51 = tpu.matmul %50, %34, %cst_16 {dimension_numbers = #tpu.dot_dimension_numbers<[1], [0], [0], [1], [0, 0, 1, 1], [], []>} : vector<8x8xbf16>, vector<8x8xbf16>, vector<8x8xf32> -> vector<8x8xf32>
    %52 = vector.extract_strided_slice %1 {offsets = [0, 16], sizes = [8, 8], strides = [1, 1]} : vector<8x32xf32> to vector<8x8xf32>
    %53 = arith.truncf %52 : vector<8x8xf32> to vector<8x8xbf16>
    %54 = vector.extract_strided_slice %3 {offsets = [0, 16], sizes = [8, 8], strides = [1, 1]} : vector<8x64xf32> to vector<8x8xf32>
    %55 = arith.truncf %54 : vector<8x8xf32> to vector<8x8xbf16>
    %56 = vector.extract_strided_slice %3 {offsets = [0, 48], sizes = [8, 8], strides = [1, 1]} : vector<8x64xf32> to vector<8x8xf32>
    %57 = arith.truncf %56 : vector<8x8xf32> to vector<8x8xbf16>
    %cst_17 = arith.constant dense<0.000000e+00> : vector<8x8xf32>
    %58 = tpu.matmul %53, %55, %cst_17 {dimension_numbers = #tpu.dot_dimension_numbers<[1], [1], [0], [0], [0, 0, 1, 0], [], []>} : vector<8x8xbf16>, vector<8x8xbf16>, vector<8x8xf32> -> vector<8x8xf32>
    %cst_18 = arith.constant 0.353553385 : f32
    %59 = vector.broadcast %cst_18 : f32 to vector<8x8xf32>
    %60 = arith.mulf %58, %59 : vector<8x8xf32>
    %61 = vector.broadcast %5 : vector<1x8xf32> to vector<8x8xf32>
    %62 = arith.addf %60, %61 : vector<8x8xf32>
    %cst_19 = arith.constant dense<0xFF800000> : vector<8xf32>
    %63 = vector.multi_reduction <maximumf>, %62, %cst_19 [1] : vector<8x8xf32> to vector<8xf32>
    %64 = vector.shape_cast %63 : vector<8xf32> to vector<8x1xf32>
    %65 = vector.broadcast %64 : vector<8x1xf32> to vector<8x8xf32>
    %66 = arith.subf %62, %65 : vector<8x8xf32>
    %67 = math.exp %66 : vector<8x8xf32>
    %cst_20 = arith.constant dense<0.000000e+00> : vector<8xf32>
    %68 = vector.multi_reduction <add>, %67, %cst_20 [1] : vector<8x8xf32> to vector<8xf32>
    %69 = vector.shape_cast %68 : vector<8xf32> to vector<8x1xf32>
    %70 = tpu.reciprocal %69 {approx = true} : vector<8x1xf32> -> vector<8x1xf32>
    %71 = vector.broadcast %70 : vector<8x1xf32> to vector<8x8xf32>
    %72 = arith.mulf %67, %71 : vector<8x8xf32>
    %73 = arith.truncf %72 : vector<8x8xf32> to vector<8x8xbf16>
    %cst_21 = arith.constant dense<0.000000e+00> : vector<8x8xf32>
    %74 = tpu.matmul %73, %57, %cst_21 {dimension_numbers = #tpu.dot_dimension_numbers<[1], [0], [0], [1], [0, 0, 1, 1], [], []>} : vector<8x8xbf16>, vector<8x8xbf16>, vector<8x8xf32> -> vector<8x8xf32>
    %75 = vector.extract_strided_slice %1 {offsets = [0, 24], sizes = [8, 8], strides = [1, 1]} : vector<8x32xf32> to vector<8x8xf32>
    %76 = arith.truncf %75 : vector<8x8xf32> to vector<8x8xbf16>
    %77 = vector.extract_strided_slice %3 {offsets = [0, 24], sizes = [8, 8], strides = [1, 1]} : vector<8x64xf32> to vector<8x8xf32>
    %78 = arith.truncf %77 : vector<8x8xf32> to vector<8x8xbf16>
    %79 = vector.extract_strided_slice %3 {offsets = [0, 56], sizes = [8, 8], strides = [1, 1]} : vector<8x64xf32> to vector<8x8xf32>
    %80 = arith.truncf %79 : vector<8x8xf32> to vector<8x8xbf16>
    %cst_22 = arith.constant dense<0.000000e+00> : vector<8x8xf32>
    %81 = tpu.matmul %76, %78, %cst_22 {dimension_numbers = #tpu.dot_dimension_numbers<[1], [1], [0], [0], [0, 0, 1, 0], [], []>} : vector<8x8xbf16>, vector<8x8xbf16>, vector<8x8xf32> -> vector<8x8xf32>
    %cst_23 = arith.constant 0.353553385 : f32
    %82 = vector.broadcast %cst_23 : f32 to vector<8x8xf32>
    %83 = arith.mulf %81, %82 : vector<8x8xf32>
    %84 = vector.broadcast %5 : vector<1x8xf32> to vector<8x8xf32>
    %85 = arith.addf %83, %84 : vector<8x8xf32>
    %cst_24 = arith.constant dense<0xFF800000> : vector<8xf32>
    %86 = vector.multi_reduction <maximumf>, %85, %cst_24 [1] : vector<8x8xf32> to vector<8xf32>
    %87 = vector.shape_cast %86 : vector<8xf32> to vector<8x1xf32>
    %88 = vector.broadcast %87 : vector<8x1xf32> to vector<8x8xf32>
    %89 = arith.subf %85, %88 : vector<8x8xf32>
    %90 = math.exp %89 : vector<8x8xf32>
    %cst_25 = arith.constant dense<0.000000e+00> : vector<8xf32>
    %91 = vector.multi_reduction <add>, %90, %cst_25 [1] : vector<8x8xf32> to vector<8xf32>
    %92 = vector.shape_cast %91 : vector<8xf32> to vector<8x1xf32>
    %93 = tpu.reciprocal %92 {approx = true} : vector<8x1xf32> -> vector<8x1xf32>
    %94 = vector.broadcast %93 : vector<8x1xf32> to vector<8x8xf32>
    %95 = arith.mulf %90, %94 : vector<8x8xf32>
    %96 = arith.truncf %95 : vector<8x8xf32> to vector<8x8xbf16>
    %cst_26 = arith.constant dense<0.000000e+00> : vector<8x8xf32>
    %97 = tpu.matmul %96, %80, %cst_26 {dimension_numbers = #tpu.dot_dimension_numbers<[1], [0], [0], [1], [0, 0, 1, 1], [], []>} : vector<8x8xbf16>, vector<8x8xbf16>, vector<8x8xf32> -> vector<8x8xf32>
    %98 = tpu.concatenate %28, %51, %74, %97 in 1 : vector<8x8xf32>, vector<8x8xf32>, vector<8x8xf32>, vector<8x8xf32> -> vector<8x32xf32>
    %c0_27 = arith.constant 0 : index
    %c0_28 = arith.constant 0 : index
    %c0_29 = arith.constant 0 : index
    %99 = vector.load %arg5[%c0_27, %c0_28, %c0_29] : memref<1x8x32xf32, #tpu.memory_space<vmem>>, vector<1x8x32xf32>
    %100 = vector.shape_cast %99 : vector<1x8x32xf32> to vector<8x32xf32>
    %101 = vector.shape_cast %98 : vector<8x32xf32> to vector<1x8x32xf32>
    tpu.vector_store %arg5[%c0_27, %c0_28, %c0_29], %101 {strides = array<i32>} : memref<1x8x32xf32, #tpu.memory_space<vmem>>, vector<1x8x32xf32>,
    return
  }
  func.func @transform_0(%arg0: i32, %arg1: i32) -> (i32, i32, i32) {
    %c0_i32 = arith.constant 0 : i32
    %c0_i32_0 = arith.constant 0 : i32
    return %arg0, %arg1, %c0_i32 : i32, i32, i32
  }
  func.func @transform_1(%arg0: i32, %arg1: i32) -> (i32, i32, i32) {
    %c0_i32 = arith.constant 0 : i32
    %c0_i32_0 = arith.constant 0 : i32
    %c0_i32_1 = arith.constant 0 : i32
    return %arg0, %c0_i32, %c0_i32_0 : i32, i32, i32
  }
  func.func @transform_2(%arg0: i32, %arg1: i32) -> (i32, i32, i32) {
    %c0_i32 = arith.constant 0 : i32
    %c0_i32_0 = arith.constant 0 : i32
    %c0_i32_1 = arith.constant 0 : i32
    return %arg0, %c0_i32, %c0_i32_0 : i32, i32, i32
  }
  func.func @transform_3(%arg0: i32, %arg1: i32) -> (i32, i32, i32) {
    %c0_i32 = arith.constant 0 : i32
    %c0_i32_0 = arith.constant 0 : i32
    return %arg0, %arg1, %c0_i32 : i32, i32, i32
  }
}

module attributes {stable_mosaic.version = 11 : i64} {
  func.func @_out_gate_kernel(%arg0: i32, %arg1: memref<80x32xf32, #tpu.memory_space<vmem>>, %arg2: memref<32x32xbf16, #tpu.memory_space<vmem>>, %arg3: memref<1x32xf32, #tpu.memory_space<vmem>>, %arg4: memref<80x32xf32, #tpu.memory_space<vmem>>, %arg5: memref<32x32xbf16, #tpu.memory_space<vmem>>, %arg6: memref<32x32xbf16, #tpu.memory_space<vmem>>, %arg7: memref<1x32xf32, #tpu.memory_space<vmem>>, %arg8: memref<80x32xf32, #tpu.memory_space<vmem>>) attributes {dimension_semantics = [#tpu.dimension_semantics<parallel>], iteration_bounds = array<i64: 1>, scalar_prefetch = 0 : i64, scratch_operands = 0 : i64, tpu.core_type = #tpu.core_type<tc>, window_params = [{transform_indices = @transform_0, window_bounds = array<i64: 80, 32>}, {pipeline_mode = #tpu.pipeline_mode<synchronous>, transform_indices = @transform_1, window_bounds = array<i64: 32, 32>}, {pipeline_mode = #tpu.pipeline_mode<synchronous>, transform_indices = @transform_2, window_bounds = array<i64: 1, 32>}, {transform_indices = @transform_3, window_bounds = array<i64: 80, 32>}, {pipeline_mode = #tpu.pipeline_mode<synchronous>, transform_indices = @transform_4, window_bounds = array<i64: 32, 32>}, {pipeline_mode = #tpu.pipeline_mode<synchronous>, transform_indices = @transform_5, window_bounds = array<i64: 32, 32>}, {pipeline_mode = #tpu.pipeline_mode<synchronous>, transform_indices = @transform_6, window_bounds = array<i64: 1, 32>}, {transform_indices = @transform_7, window_bounds = array<i64: 80, 32>}]} {
    %c0 = arith.constant 0 : index
    %c0_0 = arith.constant 0 : index
    %0 = vector.load %arg1[%c0, %c0_0] : memref<80x32xf32, #tpu.memory_space<vmem>>, vector<80x32xf32>
    %1 = arith.truncf %0 : vector<80x32xf32> to vector<80x32xbf16>
    %c0_1 = arith.constant 0 : index
    %c0_2 = arith.constant 0 : index
    %2 = vector.load %arg2[%c0_1, %c0_2] : memref<32x32xbf16, #tpu.memory_space<vmem>>, vector<32x32xbf16>
    %cst = arith.constant dense<0.000000e+00> : vector<80x32xf32>
    %3 = tpu.matmul %1, %2, %cst {dimension_numbers = #tpu.dot_dimension_numbers<[1], [0], [0], [1], [0, 0, 1, 1], [], []>} : vector<80x32xbf16>, vector<32x32xbf16>, vector<80x32xf32> -> vector<80x32xf32>
    %c0_3 = arith.constant 0 : index
    %c0_4 = arith.constant 0 : index
    %4 = vector.load %arg3[%c0_3, %c0_4] : memref<1x32xf32, #tpu.memory_space<vmem>>, vector<1x32xf32>
    %5 = vector.broadcast %4 : vector<1x32xf32> to vector<80x32xf32>
    %6 = arith.addf %3, %5 : vector<80x32xf32>
    %c0_5 = arith.constant 0 : index
    %c0_6 = arith.constant 0 : index
    %7 = vector.load %arg4[%c0_5, %c0_6] : memref<80x32xf32, #tpu.memory_space<vmem>>, vector<80x32xf32>
    %8 = arith.truncf %6 : vector<80x32xf32> to vector<80x32xbf16>
    %c0_7 = arith.constant 0 : index
    %c0_8 = arith.constant 0 : index
    %9 = vector.load %arg5[%c0_7, %c0_8] : memref<32x32xbf16, #tpu.memory_space<vmem>>, vector<32x32xbf16>
    %cst_9 = arith.constant dense<0.000000e+00> : vector<80x32xf32>
    %10 = tpu.matmul %8, %9, %cst_9 {dimension_numbers = #tpu.dot_dimension_numbers<[1], [0], [0], [1], [0, 0, 1, 1], [], []>} : vector<80x32xbf16>, vector<32x32xbf16>, vector<80x32xf32> -> vector<80x32xf32>
    %11 = arith.truncf %7 : vector<80x32xf32> to vector<80x32xbf16>
    %c0_10 = arith.constant 0 : index
    %c0_11 = arith.constant 0 : index
    %12 = vector.load %arg6[%c0_10, %c0_11] : memref<32x32xbf16, #tpu.memory_space<vmem>>, vector<32x32xbf16>
    %cst_12 = arith.constant dense<0.000000e+00> : vector<80x32xf32>
    %13 = tpu.matmul %11, %12, %cst_12 {dimension_numbers = #tpu.dot_dimension_numbers<[1], [0], [0], [1], [0, 0, 1, 1], [], []>} : vector<80x32xbf16>, vector<32x32xbf16>, vector<80x32xf32> -> vector<80x32xf32>
    %14 = arith.addf %10, %13 : vector<80x32xf32>
    %c0_13 = arith.constant 0 : index
    %c0_14 = arith.constant 0 : index
    %15 = vector.load %arg7[%c0_13, %c0_14] : memref<1x32xf32, #tpu.memory_space<vmem>>, vector<1x32xf32>
    %16 = vector.broadcast %15 : vector<1x32xf32> to vector<80x32xf32>
    %17 = arith.addf %14, %16 : vector<80x32xf32>
    %cst_15 = arith.constant 0.000000e+00 : f32
    %18 = vector.broadcast %cst_15 : f32 to vector<80x32xf32>
    %19 = arith.subf %18, %17 : vector<80x32xf32>
    %20 = math.exp %19 : vector<80x32xf32>
    %cst_16 = arith.constant 1.000000e+00 : f32
    %21 = vector.broadcast %cst_16 : f32 to vector<80x32xf32>
    %22 = arith.addf %21, %20 : vector<80x32xf32>
    %cst_17 = arith.constant 1.000000e+00 : f32
    %23 = vector.broadcast %cst_17 : f32 to vector<80x32xf32>
    %24 = arith.divf %23, %22 : vector<80x32xf32>
    %25 = arith.mulf %6, %24 : vector<80x32xf32>
    %26 = arith.addf %25, %7 : vector<80x32xf32>
    %c0_18 = arith.constant 0 : index
    %c0_19 = arith.constant 0 : index
    %27 = vector.load %arg8[%c0_18, %c0_19] : memref<80x32xf32, #tpu.memory_space<vmem>>, vector<80x32xf32>
    tpu.vector_store %arg8[%c0_18, %c0_19], %26 {strides = array<i32>} : memref<80x32xf32, #tpu.memory_space<vmem>>, vector<80x32xf32>,
    return
  }
  func.func @transform_0(%arg0: i32) -> (i32, i32) {
    %c0_i32 = arith.constant 0 : i32
    %c0_i32_0 = arith.constant 0 : i32
    return %arg0, %c0_i32 : i32, i32
  }
  func.func @transform_1(%arg0: i32) -> (i32, i32) {
    %c0_i32 = arith.constant 0 : i32
    %c0_i32_0 = arith.constant 0 : i32
    %c0_i32_1 = arith.constant 0 : i32
    return %c0_i32, %c0_i32_0 : i32, i32
  }
  func.func @transform_2(%arg0: i32) -> (i32, i32) {
    %c0_i32 = arith.constant 0 : i32
    %c0_i32_0 = arith.constant 0 : i32
    %c0_i32_1 = arith.constant 0 : i32
    return %c0_i32, %c0_i32_0 : i32, i32
  }
  func.func @transform_3(%arg0: i32) -> (i32, i32) {
    %c0_i32 = arith.constant 0 : i32
    %c0_i32_0 = arith.constant 0 : i32
    return %arg0, %c0_i32 : i32, i32
  }
  func.func @transform_4(%arg0: i32) -> (i32, i32) {
    %c0_i32 = arith.constant 0 : i32
    %c0_i32_0 = arith.constant 0 : i32
    %c0_i32_1 = arith.constant 0 : i32
    return %c0_i32, %c0_i32_0 : i32, i32
  }
  func.func @transform_5(%arg0: i32) -> (i32, i32) {
    %c0_i32 = arith.constant 0 : i32
    %c0_i32_0 = arith.constant 0 : i32
    %c0_i32_1 = arith.constant 0 : i32
    return %c0_i32, %c0_i32_0 : i32, i32
  }
  func.func @transform_6(%arg0: i32) -> (i32, i32) {
    %c0_i32 = arith.constant 0 : i32
    %c0_i32_0 = arith.constant 0 : i32
    %c0_i32_1 = arith.constant 0 : i32
    return %c0_i32, %c0_i32_0 : i32, i32
  }
  func.func @transform_7(%arg0: i32) -> (i32, i32) {
    %c0_i32 = arith.constant 0 : i32
    %c0_i32_0 = arith.constant 0 : i32
    return %arg0, %c0_i32 : i32, i32
  }
}

module attributes {stable_mosaic.version = 11 : i64} {
  func.func @_ln_linear_kernel(%arg0: i32, %arg1: i32, %arg2: memref<80x32xf32, #tpu.memory_space<vmem>>, %arg3: memref<1x32xf32, #tpu.memory_space<vmem>>, %arg4: memref<1x32xf32, #tpu.memory_space<vmem>>, %arg5: memref<32x128xbf16, #tpu.memory_space<vmem>>, %arg6: memref<1x128xf32, #tpu.memory_space<vmem>>, %arg7: memref<80x128xf32, #tpu.memory_space<vmem>>, %arg8: memref<80x32xf32, #tpu.memory_space<vmem>>) attributes {dimension_semantics = [#tpu.dimension_semantics<parallel>, #tpu.dimension_semantics<arbitrary>], iteration_bounds = array<i64: 1, 1>, scalar_prefetch = 0 : i64, scratch_operands = 1 : i64, tpu.core_type = #tpu.core_type<tc>, window_params = [{transform_indices = @transform_0, window_bounds = array<i64: 80, 32>}, {pipeline_mode = #tpu.pipeline_mode<synchronous>, transform_indices = @transform_1, window_bounds = array<i64: 1, 32>}, {pipeline_mode = #tpu.pipeline_mode<synchronous>, transform_indices = @transform_2, window_bounds = array<i64: 1, 32>}, {transform_indices = @transform_3, window_bounds = array<i64: 32, 128>}, {transform_indices = @transform_4, window_bounds = array<i64: 1, 128>}, {transform_indices = @transform_5, window_bounds = array<i64: 80, 128>}]} {
    %c0_i32 = arith.constant 0 : i32
    %0 = arith.cmpi eq, %arg1, %c0_i32 : i32
    %1 = arith.extui %0 : i1 to i32
    %c0_i32_0 = arith.constant 0 : i32
    %2 = arith.cmpi ne, %1, %c0_i32_0 : i32
    scf.if %2 {
      %c0_12 = arith.constant 0 : index
      %c0_13 = arith.constant 0 : index
      %24 = vector.load %arg2[%c0_12, %c0_13] : memref<80x32xf32, #tpu.memory_space<vmem>>, vector<80x32xf32>
      %cst_14 = arith.constant dense<0.000000e+00> : vector<80xf32>
      %25 = vector.multi_reduction <add>, %24, %cst_14 [1] : vector<80x32xf32> to vector<80xf32>
      %26 = vector.shape_cast %25 : vector<80xf32> to vector<80x1xf32>
      %cst_15 = arith.constant 3.200000e+01 : f32
      %27 = vector.broadcast %cst_15 : f32 to vector<80x1xf32>
      %28 = arith.divf %26, %27 : vector<80x1xf32>
      %29 = vector.broadcast %28 : vector<80x1xf32> to vector<80x32xf32>
      %30 = arith.subf %24, %29 : vector<80x32xf32>
      %31 = arith.mulf %30, %30 : vector<80x32xf32>
      %cst_16 = arith.constant dense<0.000000e+00> : vector<80xf32>
      %32 = vector.multi_reduction <add>, %31, %cst_16 [1] : vector<80x32xf32> to vector<80xf32>
      %33 = vector.shape_cast %32 : vector<80xf32> to vector<80x1xf32>
      %cst_17 = arith.constant 3.200000e+01 : f32
      %34 = vector.broadcast %cst_17 : f32 to vector<80x1xf32>
      %35 = arith.divf %33, %34 : vector<80x1xf32>
      %cst_18 = arith.constant 9.99999997E-7 : f32
      %36 = vector.broadcast %cst_18 : f32 to vector<80x1xf32>
      %37 = arith.addf %35, %36 : vector<80x1xf32>
      %38 = math.rsqrt %37 : vector<80x1xf32>
      %39 = vector.broadcast %38 : vector<80x1xf32> to vector<80x32xf32>
      %40 = arith.mulf %30, %39 : vector<80x32xf32>
      %c0_19 = arith.constant 0 : index
      %c0_20 = arith.constant 0 : index
      %41 = vector.load %arg3[%c0_19, %c0_20] : memref<1x32xf32, #tpu.memory_space<vmem>>, vector<1x32xf32>
      %42 = vector.broadcast %41 : vector<1x32xf32> to vector<80x32xf32>
      %43 = arith.mulf %40, %42 : vector<80x32xf32>
      %c0_21 = arith.constant 0 : index
      %c0_22 = arith.constant 0 : index
      %44 = vector.load %arg4[%c0_21, %c0_22] : memref<1x32xf32, #tpu.memory_space<vmem>>, vector<1x32xf32>
      %45 = vector.broadcast %44 : vector<1x32xf32> to vector<80x32xf32>
      %46 = arith.addf %43, %45 : vector<80x32xf32>
      %c0_23 = arith.constant 0 : index
      %c0_24 = arith.constant 0 : index
      %47 = vector.load %arg8[%c0_23, %c0_24] : memref<80x32xf32, #tpu.memory_space<vmem>>, vector<80x32xf32>
      tpu.vector_store %arg8[%c0_23, %c0_24], %46 {strides = array<i32>} : memref<80x32xf32, #tpu.memory_space<vmem>>, vector<80x32xf32>,
    } else {
    }
    %c0 = arith.constant 0 : index
    %c0_1 = arith.constant 0 : index
    %3 = vector.load %arg8[%c0, %c0_1] : memref<80x32xf32, #tpu.memory_space<vmem>>, vector<80x32xf32>
    %4 = arith.truncf %3 : vector<80x32xf32> to vector<80x32xbf16>
    %c0_2 = arith.constant 0 : index
    %c0_3 = arith.constant 0 : index
    %5 = vector.load %arg5[%c0_2, %c0_3] : memref<32x128xbf16, #tpu.memory_space<vmem>>, vector<32x128xbf16>
    %cst = arith.constant dense<0.000000e+00> : vector<80x128xf32>
    %6 = tpu.matmul %4, %5, %cst {dimension_numbers = #tpu.dot_dimension_numbers<[1], [0], [0], [1], [0, 0, 1, 1], [], []>} : vector<80x32xbf16>, vector<32x128xbf16>, vector<80x128xf32> -> vector<80x128xf32>
    %c0_4 = arith.constant 0 : index
    %c0_5 = arith.constant 0 : index
    %7 = vector.load %arg6[%c0_4, %c0_5] : memref<1x128xf32, #tpu.memory_space<vmem>>, vector<1x128xf32>
    %8 = vector.broadcast %7 : vector<1x128xf32> to vector<80x128xf32>
    %9 = arith.addf %6, %8 : vector<80x128xf32>
    %cst_6 = arith.constant 5.000000e-01 : f32
    %10 = vector.broadcast %cst_6 : f32 to vector<80x128xf32>
    %11 = arith.mulf %10, %9 : vector<80x128xf32>
    %cst_7 = arith.constant 4.471500e-02 : f32
    %12 = vector.broadcast %cst_7 : f32 to vector<80x128xf32>
    %13 = arith.mulf %12, %9 : vector<80x128xf32>
    %14 = arith.mulf %13, %9 : vector<80x128xf32>
    %15 = arith.mulf %14, %9 : vector<80x128xf32>
    %16 = arith.addf %9, %15 : vector<80x128xf32>
    %cst_8 = arith.constant 0.797884583 : f32
    %17 = vector.broadcast %cst_8 : f32 to vector<80x128xf32>
    %18 = arith.mulf %17, %16 : vector<80x128xf32>
    %19 = math.tanh %18 : vector<80x128xf32>
    %cst_9 = arith.constant 1.000000e+00 : f32
    %20 = vector.broadcast %cst_9 : f32 to vector<80x128xf32>
    %21 = arith.addf %20, %19 : vector<80x128xf32>
    %22 = arith.mulf %11, %21 : vector<80x128xf32>
    %c0_10 = arith.constant 0 : index
    %c0_11 = arith.constant 0 : index
    %23 = vector.load %arg7[%c0_10, %c0_11] : memref<80x128xf32, #tpu.memory_space<vmem>>, vector<80x128xf32>
    tpu.vector_store %arg7[%c0_10, %c0_11], %22 {strides = array<i32>} : memref<80x128xf32, #tpu.memory_space<vmem>>, vector<80x128xf32>,
    return
  }
  func.func @transform_0(%arg0: i32, %arg1: i32) -> (i32, i32) {
    %c0_i32 = arith.constant 0 : i32
    %c0_i32_0 = arith.constant 0 : i32
    return %arg0, %c0_i32 : i32, i32
  }
  func.func @transform_1(%arg0: i32, %arg1: i32) -> (i32, i32) {
    %c0_i32 = arith.constant 0 : i32
    %c0_i32_0 = arith.constant 0 : i32
    %c0_i32_1 = arith.constant 0 : i32
    return %c0_i32, %c0_i32_0 : i32, i32
  }
  func.func @transform_2(%arg0: i32, %arg1: i32) -> (i32, i32) {
    %c0_i32 = arith.constant 0 : i32
    %c0_i32_0 = arith.constant 0 : i32
    %c0_i32_1 = arith.constant 0 : i32
    return %c0_i32, %c0_i32_0 : i32, i32
  }
  func.func @transform_3(%arg0: i32, %arg1: i32) -> (i32, i32) {
    %c0_i32 = arith.constant 0 : i32
    %c0_i32_0 = arith.constant 0 : i32
    return %c0_i32, %arg1 : i32, i32
  }
  func.func @transform_4(%arg0: i32, %arg1: i32) -> (i32, i32) {
    %c0_i32 = arith.constant 0 : i32
    %c0_i32_0 = arith.constant 0 : i32
    return %c0_i32, %arg1 : i32, i32
  }
  func.func @transform_5(%arg0: i32, %arg1: i32) -> (i32, i32) {
    %c0_i32 = arith.constant 0 : i32
    return %arg0, %arg1 : i32, i32
  }
}

module attributes {stable_mosaic.version = 11 : i64} {
  func.func @_linear_residual_kernel(%arg0: i32, %arg1: i32, %arg2: memref<80x128xf32, #tpu.memory_space<vmem>>, %arg3: memref<128x32xbf16, #tpu.memory_space<vmem>>, %arg4: memref<1x32xf32, #tpu.memory_space<vmem>>, %arg5: memref<80x32xf32, #tpu.memory_space<vmem>>, %arg6: memref<80x32xf32, #tpu.memory_space<vmem>>) attributes {dimension_semantics = [#tpu.dimension_semantics<parallel>, #tpu.dimension_semantics<parallel>], iteration_bounds = array<i64: 1, 1>, scalar_prefetch = 0 : i64, scratch_operands = 0 : i64, tpu.core_type = #tpu.core_type<tc>, window_params = [{transform_indices = @transform_0, window_bounds = array<i64: 80, 128>}, {transform_indices = @transform_1, window_bounds = array<i64: 128, 32>}, {transform_indices = @transform_2, window_bounds = array<i64: 1, 32>}, {transform_indices = @transform_3, window_bounds = array<i64: 80, 32>}, {transform_indices = @transform_4, window_bounds = array<i64: 80, 32>}]} {
    %c0 = arith.constant 0 : index
    %c0_0 = arith.constant 0 : index
    %0 = vector.load %arg2[%c0, %c0_0] : memref<80x128xf32, #tpu.memory_space<vmem>>, vector<80x128xf32>
    %1 = arith.truncf %0 : vector<80x128xf32> to vector<80x128xbf16>
    %c0_1 = arith.constant 0 : index
    %c0_2 = arith.constant 0 : index
    %2 = vector.load %arg3[%c0_1, %c0_2] : memref<128x32xbf16, #tpu.memory_space<vmem>>, vector<128x32xbf16>
    %cst = arith.constant dense<0.000000e+00> : vector<80x32xf32>
    %3 = tpu.matmul %1, %2, %cst {dimension_numbers = #tpu.dot_dimension_numbers<[1], [0], [0], [1], [0, 0, 1, 1], [], []>} : vector<80x128xbf16>, vector<128x32xbf16>, vector<80x32xf32> -> vector<80x32xf32>
    %c0_3 = arith.constant 0 : index
    %c0_4 = arith.constant 0 : index
    %4 = vector.load %arg4[%c0_3, %c0_4] : memref<1x32xf32, #tpu.memory_space<vmem>>, vector<1x32xf32>
    %5 = vector.broadcast %4 : vector<1x32xf32> to vector<80x32xf32>
    %6 = arith.addf %3, %5 : vector<80x32xf32>
    %c0_5 = arith.constant 0 : index
    %c0_6 = arith.constant 0 : index
    %7 = vector.load %arg5[%c0_5, %c0_6] : memref<80x32xf32, #tpu.memory_space<vmem>>, vector<80x32xf32>
    %8 = arith.addf %6, %7 : vector<80x32xf32>
    %c0_7 = arith.constant 0 : index
    %c0_8 = arith.constant 0 : index
    %9 = vector.load %arg6[%c0_7, %c0_8] : memref<80x32xf32, #tpu.memory_space<vmem>>, vector<80x32xf32>
    tpu.vector_store %arg6[%c0_7, %c0_8], %8 {strides = array<i32>} : memref<80x32xf32, #tpu.memory_space<vmem>>, vector<80x32xf32>,
    return
  }
  func.func @transform_0(%arg0: i32, %arg1: i32) -> (i32, i32) {
    %c0_i32 = arith.constant 0 : i32
    %c0_i32_0 = arith.constant 0 : i32
    return %arg0, %c0_i32 : i32, i32
  }
  func.func @transform_1(%arg0: i32, %arg1: i32) -> (i32, i32) {
    %c0_i32 = arith.constant 0 : i32
    %c0_i32_0 = arith.constant 0 : i32
    return %c0_i32, %arg1 : i32, i32
  }
  func.func @transform_2(%arg0: i32, %arg1: i32) -> (i32, i32) {
    %c0_i32 = arith.constant 0 : i32
    %c0_i32_0 = arith.constant 0 : i32
    return %c0_i32, %arg1 : i32, i32
  }
  func.func @transform_3(%arg0: i32, %arg1: i32) -> (i32, i32) {
    %c0_i32 = arith.constant 0 : i32
    return %arg0, %arg1 : i32, i32
  }
  func.func @transform_4(%arg0: i32, %arg1: i32) -> (i32, i32) {
    %c0_i32 = arith.constant 0 : i32
    return %arg0, %arg1 : i32, i32
  }
}

module attributes {stable_mosaic.version = 11 : i64} {
  func.func @_linear_kernel(%arg0: i32, %arg1: i32, %arg2: memref<96x32xf32, #tpu.memory_space<vmem>>, %arg3: memref<32x64xbf16, #tpu.memory_space<vmem>>, %arg4: memref<1x64xf32, #tpu.memory_space<vmem>>, %arg5: memref<96x64xf32, #tpu.memory_space<vmem>>) attributes {dimension_semantics = [#tpu.dimension_semantics<parallel>, #tpu.dimension_semantics<parallel>], iteration_bounds = array<i64: 1, 1>, scalar_prefetch = 0 : i64, scratch_operands = 0 : i64, tpu.core_type = #tpu.core_type<tc>, window_params = [{transform_indices = @transform_0, window_bounds = array<i64: 96, 32>}, {transform_indices = @transform_1, window_bounds = array<i64: 32, 64>}, {transform_indices = @transform_2, window_bounds = array<i64: 1, 64>}, {transform_indices = @transform_3, window_bounds = array<i64: 96, 64>}]} {
    %c0 = arith.constant 0 : index
    %c0_0 = arith.constant 0 : index
    %0 = vector.load %arg2[%c0, %c0_0] : memref<96x32xf32, #tpu.memory_space<vmem>>, vector<96x32xf32>
    %1 = arith.truncf %0 : vector<96x32xf32> to vector<96x32xbf16>
    %c0_1 = arith.constant 0 : index
    %c0_2 = arith.constant 0 : index
    %2 = vector.load %arg3[%c0_1, %c0_2] : memref<32x64xbf16, #tpu.memory_space<vmem>>, vector<32x64xbf16>
    %cst = arith.constant dense<0.000000e+00> : vector<96x64xf32>
    %3 = tpu.matmul %1, %2, %cst {dimension_numbers = #tpu.dot_dimension_numbers<[1], [0], [0], [1], [0, 0, 1, 1], [], []>} : vector<96x32xbf16>, vector<32x64xbf16>, vector<96x64xf32> -> vector<96x64xf32>
    %c0_3 = arith.constant 0 : index
    %c0_4 = arith.constant 0 : index
    %4 = vector.load %arg4[%c0_3, %c0_4] : memref<1x64xf32, #tpu.memory_space<vmem>>, vector<1x64xf32>
    %5 = vector.broadcast %4 : vector<1x64xf32> to vector<96x64xf32>
    %6 = arith.addf %3, %5 : vector<96x64xf32>
    %c0_5 = arith.constant 0 : index
    %c0_6 = arith.constant 0 : index
    %7 = vector.load %arg5[%c0_5, %c0_6] : memref<96x64xf32, #tpu.memory_space<vmem>>, vector<96x64xf32>
    tpu.vector_store %arg5[%c0_5, %c0_6], %6 {strides = array<i32>} : memref<96x64xf32, #tpu.memory_space<vmem>>, vector<96x64xf32>,
    return
  }
  func.func @transform_0(%arg0: i32, %arg1: i32) -> (i32, i32) {
    %c0_i32 = arith.constant 0 : i32
    %c0_i32_0 = arith.constant 0 : i32
    return %arg0, %c0_i32 : i32, i32
  }
  func.func @transform_1(%arg0: i32, %arg1: i32) -> (i32, i32) {
    %c0_i32 = arith.constant 0 : i32
    %c0_i32_0 = arith.constant 0 : i32
    return %c0_i32, %arg1 : i32, i32
  }
  func.func @transform_2(%arg0: i32, %arg1: i32) -> (i32, i32) {
    %c0_i32 = arith.constant 0 : i32
    %c0_i32_0 = arith.constant 0 : i32
    return %c0_i32, %arg1 : i32, i32
  }
  func.func @transform_3(%arg0: i32, %arg1: i32) -> (i32, i32) {
    %c0_i32 = arith.constant 0 : i32
    return %arg0, %arg1 : i32, i32
  }
}

module attributes {stable_mosaic.version = 11 : i64} {
  func.func @_ln_linear_kernel(%arg0: i32, %arg1: i32, %arg2: memref<48x32xf32, #tpu.memory_space<vmem>>, %arg3: memref<1x32xf32, #tpu.memory_space<vmem>>, %arg4: memref<1x32xf32, #tpu.memory_space<vmem>>, %arg5: memref<32x96xbf16, #tpu.memory_space<vmem>>, %arg6: memref<1x96xf32, #tpu.memory_space<vmem>>, %arg7: memref<48x96xf32, #tpu.memory_space<vmem>>, %arg8: memref<48x32xf32, #tpu.memory_space<vmem>>) attributes {dimension_semantics = [#tpu.dimension_semantics<parallel>, #tpu.dimension_semantics<arbitrary>], iteration_bounds = array<i64: 1, 1>, scalar_prefetch = 0 : i64, scratch_operands = 1 : i64, tpu.core_type = #tpu.core_type<tc>, window_params = [{transform_indices = @transform_0, window_bounds = array<i64: 48, 32>}, {pipeline_mode = #tpu.pipeline_mode<synchronous>, transform_indices = @transform_1, window_bounds = array<i64: 1, 32>}, {pipeline_mode = #tpu.pipeline_mode<synchronous>, transform_indices = @transform_2, window_bounds = array<i64: 1, 32>}, {transform_indices = @transform_3, window_bounds = array<i64: 32, 96>}, {transform_indices = @transform_4, window_bounds = array<i64: 1, 96>}, {transform_indices = @transform_5, window_bounds = array<i64: 48, 96>}]} {
    %c0_i32 = arith.constant 0 : i32
    %0 = arith.cmpi eq, %arg1, %c0_i32 : i32
    %1 = arith.extui %0 : i1 to i32
    %c0_i32_0 = arith.constant 0 : i32
    %2 = arith.cmpi ne, %1, %c0_i32_0 : i32
    scf.if %2 {
      %c0_8 = arith.constant 0 : index
      %c0_9 = arith.constant 0 : index
      %11 = vector.load %arg2[%c0_8, %c0_9] : memref<48x32xf32, #tpu.memory_space<vmem>>, vector<48x32xf32>
      %cst_10 = arith.constant dense<0.000000e+00> : vector<48xf32>
      %12 = vector.multi_reduction <add>, %11, %cst_10 [1] : vector<48x32xf32> to vector<48xf32>
      %13 = vector.shape_cast %12 : vector<48xf32> to vector<48x1xf32>
      %cst_11 = arith.constant 3.200000e+01 : f32
      %14 = vector.broadcast %cst_11 : f32 to vector<48x1xf32>
      %15 = arith.divf %13, %14 : vector<48x1xf32>
      %16 = vector.broadcast %15 : vector<48x1xf32> to vector<48x32xf32>
      %17 = arith.subf %11, %16 : vector<48x32xf32>
      %18 = arith.mulf %17, %17 : vector<48x32xf32>
      %cst_12 = arith.constant dense<0.000000e+00> : vector<48xf32>
      %19 = vector.multi_reduction <add>, %18, %cst_12 [1] : vector<48x32xf32> to vector<48xf32>
      %20 = vector.shape_cast %19 : vector<48xf32> to vector<48x1xf32>
      %cst_13 = arith.constant 3.200000e+01 : f32
      %21 = vector.broadcast %cst_13 : f32 to vector<48x1xf32>
      %22 = arith.divf %20, %21 : vector<48x1xf32>
      %cst_14 = arith.constant 9.99999997E-7 : f32
      %23 = vector.broadcast %cst_14 : f32 to vector<48x1xf32>
      %24 = arith.addf %22, %23 : vector<48x1xf32>
      %25 = math.rsqrt %24 : vector<48x1xf32>
      %26 = vector.broadcast %25 : vector<48x1xf32> to vector<48x32xf32>
      %27 = arith.mulf %17, %26 : vector<48x32xf32>
      %c0_15 = arith.constant 0 : index
      %c0_16 = arith.constant 0 : index
      %28 = vector.load %arg3[%c0_15, %c0_16] : memref<1x32xf32, #tpu.memory_space<vmem>>, vector<1x32xf32>
      %29 = vector.broadcast %28 : vector<1x32xf32> to vector<48x32xf32>
      %30 = arith.mulf %27, %29 : vector<48x32xf32>
      %c0_17 = arith.constant 0 : index
      %c0_18 = arith.constant 0 : index
      %31 = vector.load %arg4[%c0_17, %c0_18] : memref<1x32xf32, #tpu.memory_space<vmem>>, vector<1x32xf32>
      %32 = vector.broadcast %31 : vector<1x32xf32> to vector<48x32xf32>
      %33 = arith.addf %30, %32 : vector<48x32xf32>
      %c0_19 = arith.constant 0 : index
      %c0_20 = arith.constant 0 : index
      %34 = vector.load %arg8[%c0_19, %c0_20] : memref<48x32xf32, #tpu.memory_space<vmem>>, vector<48x32xf32>
      tpu.vector_store %arg8[%c0_19, %c0_20], %33 {strides = array<i32>} : memref<48x32xf32, #tpu.memory_space<vmem>>, vector<48x32xf32>,
    } else {
    }
    %c0 = arith.constant 0 : index
    %c0_1 = arith.constant 0 : index
    %3 = vector.load %arg8[%c0, %c0_1] : memref<48x32xf32, #tpu.memory_space<vmem>>, vector<48x32xf32>
    %4 = arith.truncf %3 : vector<48x32xf32> to vector<48x32xbf16>
    %c0_2 = arith.constant 0 : index
    %c0_3 = arith.constant 0 : index
    %5 = vector.load %arg5[%c0_2, %c0_3] : memref<32x96xbf16, #tpu.memory_space<vmem>>, vector<32x96xbf16>
    %cst = arith.constant dense<0.000000e+00> : vector<48x96xf32>
    %6 = tpu.matmul %4, %5, %cst {dimension_numbers = #tpu.dot_dimension_numbers<[1], [0], [0], [1], [0, 0, 1, 1], [], []>} : vector<48x32xbf16>, vector<32x96xbf16>, vector<48x96xf32> -> vector<48x96xf32>
    %c0_4 = arith.constant 0 : index
    %c0_5 = arith.constant 0 : index
    %7 = vector.load %arg6[%c0_4, %c0_5] : memref<1x96xf32, #tpu.memory_space<vmem>>, vector<1x96xf32>
    %8 = vector.broadcast %7 : vector<1x96xf32> to vector<48x96xf32>
    %9 = arith.addf %6, %8 : vector<48x96xf32>
    %c0_6 = arith.constant 0 : index
    %c0_7 = arith.constant 0 : index
    %10 = vector.load %arg7[%c0_6, %c0_7] : memref<48x96xf32, #tpu.memory_space<vmem>>, vector<48x96xf32>
    tpu.vector_store %arg7[%c0_6, %c0_7], %9 {strides = array<i32>} : memref<48x96xf32, #tpu.memory_space<vmem>>, vector<48x96xf32>,
    return
  }
  func.func @transform_0(%arg0: i32, %arg1: i32) -> (i32, i32) {
    %c0_i32 = arith.constant 0 : i32
    %c0_i32_0 = arith.constant 0 : i32
    return %arg0, %c0_i32 : i32, i32
  }
  func.func @transform_1(%arg0: i32, %arg1: i32) -> (i32, i32) {
    %c0_i32 = arith.constant 0 : i32
    %c0_i32_0 = arith.constant 0 : i32
    %c0_i32_1 = arith.constant 0 : i32
    return %c0_i32, %c0_i32_0 : i32, i32
  }
  func.func @transform_2(%arg0: i32, %arg1: i32) -> (i32, i32) {
    %c0_i32 = arith.constant 0 : i32
    %c0_i32_0 = arith.constant 0 : i32
    %c0_i32_1 = arith.constant 0 : i32
    return %c0_i32, %c0_i32_0 : i32, i32
  }
  func.func @transform_3(%arg0: i32, %arg1: i32) -> (i32, i32) {
    %c0_i32 = arith.constant 0 : i32
    %c0_i32_0 = arith.constant 0 : i32
    return %c0_i32, %arg1 : i32, i32
  }
  func.func @transform_4(%arg0: i32, %arg1: i32) -> (i32, i32) {
    %c0_i32 = arith.constant 0 : i32
    %c0_i32_0 = arith.constant 0 : i32
    return %c0_i32, %arg1 : i32, i32
  }
  func.func @transform_5(%arg0: i32, %arg1: i32) -> (i32, i32) {
    %c0_i32 = arith.constant 0 : i32
    return %arg0, %arg1 : i32, i32
  }
}

module attributes {stable_mosaic.version = 11 : i64} {
  func.func @_self_mha_kernel(%arg0: i32, %arg1: i32, %arg2: memref<1x8x96xf32, #tpu.memory_space<vmem>>, %arg3: memref<1x1x8xf32, #tpu.memory_space<vmem>>, %arg4: memref<1x8x32xf32, #tpu.memory_space<vmem>>) attributes {dimension_semantics = [#tpu.dimension_semantics<parallel>, #tpu.dimension_semantics<parallel>], iteration_bounds = array<i64: 6, 1>, scalar_prefetch = 0 : i64, scratch_operands = 0 : i64, tpu.core_type = #tpu.core_type<tc>, window_params = [{transform_indices = @transform_0, window_bounds = array<i64: 1, 8, 96>}, {transform_indices = @transform_1, window_bounds = array<i64: 1, 1, 8>}, {transform_indices = @transform_2, window_bounds = array<i64: 1, 8, 32>}]} {
    %c8_i32 = arith.constant 8 : i32
    %0 = arith.muli %arg1, %c8_i32 : i32
    %c0 = arith.constant 0 : index
    %1 = arith.index_cast %0 : i32 to index
    %c0_0 = arith.constant 0 : index
    %2 = vector.load %arg2[%c0, %1, %c0_0] : memref<1x8x96xf32, #tpu.memory_space<vmem>>, vector<1x8x96xf32>
    %3 = vector.shape_cast %2 : vector<1x8x96xf32> to vector<8x96xf32>
    %c0_1 = arith.constant 0 : index
    %c0_2 = arith.constant 0 : index
    %c0_3 = arith.constant 0 : index
    %4 = vector.load %arg2[%c0_1, %c0_2, %c0_3] : memref<1x8x96xf32, #tpu.memory_space<vmem>>, vector<1x8x96xf32>
    %5 = vector.shape_cast %4 : vector<1x8x96xf32> to vector<8x96xf32>
    %c0_4 = arith.constant 0 : index
    %c0_5 = arith.constant 0 : index
    %c0_6 = arith.constant 0 : index
    %6 = vector.load %arg3[%c0_4, %c0_5, %c0_6] : memref<1x1x8xf32, #tpu.memory_space<vmem>>, vector<1x1x8xf32>
    %7 = vector.shape_cast %6 : vector<1x1x8xf32> to vector<1x8xf32>
    %8 = vector.extract_strided_slice %3 {offsets = [0, 0], sizes = [8, 8], strides = [1, 1]} : vector<8x96xf32> to vector<8x8xf32>
    %9 = arith.truncf %8 : vector<8x8xf32> to vector<8x8xbf16>
    %10 = vector.extract_strided_slice %5 {offsets = [0, 32], sizes = [8, 8], strides = [1, 1]} : vector<8x96xf32> to vector<8x8xf32>
    %11 = arith.truncf %10 : vector<8x8xf32> to vector<8x8xbf16>
    %12 = vector.extract_strided_slice %5 {offsets = [0, 64], sizes = [8, 8], strides = [1, 1]} : vector<8x96xf32> to vector<8x8xf32>
    %13 = arith.truncf %12 : vector<8x8xf32> to vector<8x8xbf16>
    %cst = arith.constant dense<0.000000e+00> : vector<8x8xf32>
    %14 = tpu.matmul %9, %11, %cst {dimension_numbers = #tpu.dot_dimension_numbers<[1], [1], [0], [0], [0, 0, 1, 0], [], []>} : vector<8x8xbf16>, vector<8x8xbf16>, vector<8x8xf32> -> vector<8x8xf32>
    %cst_7 = arith.constant 0.353553385 : f32
    %15 = vector.broadcast %cst_7 : f32 to vector<8x8xf32>
    %16 = arith.mulf %14, %15 : vector<8x8xf32>
    %17 = vector.broadcast %7 : vector<1x8xf32> to vector<8x8xf32>
    %18 = arith.addf %16, %17 : vector<8x8xf32>
    %cst_8 = arith.constant dense<0xFF800000> : vector<8xf32>
    %19 = vector.multi_reduction <maximumf>, %18, %cst_8 [1] : vector<8x8xf32> to vector<8xf32>
    %20 = vector.shape_cast %19 : vector<8xf32> to vector<8x1xf32>
    %21 = vector.broadcast %20 : vector<8x1xf32> to vector<8x8xf32>
    %22 = arith.subf %18, %21 : vector<8x8xf32>
    %23 = math.exp %22 : vector<8x8xf32>
    %cst_9 = arith.constant dense<0.000000e+00> : vector<8xf32>
    %24 = vector.multi_reduction <add>, %23, %cst_9 [1] : vector<8x8xf32> to vector<8xf32>
    %25 = vector.shape_cast %24 : vector<8xf32> to vector<8x1xf32>
    %26 = tpu.reciprocal %25 {approx = true} : vector<8x1xf32> -> vector<8x1xf32>
    %27 = vector.broadcast %26 : vector<8x1xf32> to vector<8x8xf32>
    %28 = arith.mulf %23, %27 : vector<8x8xf32>
    %29 = arith.truncf %28 : vector<8x8xf32> to vector<8x8xbf16>
    %cst_10 = arith.constant dense<0.000000e+00> : vector<8x8xf32>
    %30 = tpu.matmul %29, %13, %cst_10 {dimension_numbers = #tpu.dot_dimension_numbers<[1], [0], [0], [1], [0, 0, 1, 1], [], []>} : vector<8x8xbf16>, vector<8x8xbf16>, vector<8x8xf32> -> vector<8x8xf32>
    %31 = vector.extract_strided_slice %3 {offsets = [0, 8], sizes = [8, 8], strides = [1, 1]} : vector<8x96xf32> to vector<8x8xf32>
    %32 = arith.truncf %31 : vector<8x8xf32> to vector<8x8xbf16>
    %33 = vector.extract_strided_slice %5 {offsets = [0, 40], sizes = [8, 8], strides = [1, 1]} : vector<8x96xf32> to vector<8x8xf32>
    %34 = arith.truncf %33 : vector<8x8xf32> to vector<8x8xbf16>
    %35 = vector.extract_strided_slice %5 {offsets = [0, 72], sizes = [8, 8], strides = [1, 1]} : vector<8x96xf32> to vector<8x8xf32>
    %36 = arith.truncf %35 : vector<8x8xf32> to vector<8x8xbf16>
    %cst_11 = arith.constant dense<0.000000e+00> : vector<8x8xf32>
    %37 = tpu.matmul %32, %34, %cst_11 {dimension_numbers = #tpu.dot_dimension_numbers<[1], [1], [0], [0], [0, 0, 1, 0], [], []>} : vector<8x8xbf16>, vector<8x8xbf16>, vector<8x8xf32> -> vector<8x8xf32>
    %cst_12 = arith.constant 0.353553385 : f32
    %38 = vector.broadcast %cst_12 : f32 to vector<8x8xf32>
    %39 = arith.mulf %37, %38 : vector<8x8xf32>
    %40 = vector.broadcast %7 : vector<1x8xf32> to vector<8x8xf32>
    %41 = arith.addf %39, %40 : vector<8x8xf32>
    %cst_13 = arith.constant dense<0xFF800000> : vector<8xf32>
    %42 = vector.multi_reduction <maximumf>, %41, %cst_13 [1] : vector<8x8xf32> to vector<8xf32>
    %43 = vector.shape_cast %42 : vector<8xf32> to vector<8x1xf32>
    %44 = vector.broadcast %43 : vector<8x1xf32> to vector<8x8xf32>
    %45 = arith.subf %41, %44 : vector<8x8xf32>
    %46 = math.exp %45 : vector<8x8xf32>
    %cst_14 = arith.constant dense<0.000000e+00> : vector<8xf32>
    %47 = vector.multi_reduction <add>, %46, %cst_14 [1] : vector<8x8xf32> to vector<8xf32>
    %48 = vector.shape_cast %47 : vector<8xf32> to vector<8x1xf32>
    %49 = tpu.reciprocal %48 {approx = true} : vector<8x1xf32> -> vector<8x1xf32>
    %50 = vector.broadcast %49 : vector<8x1xf32> to vector<8x8xf32>
    %51 = arith.mulf %46, %50 : vector<8x8xf32>
    %52 = arith.truncf %51 : vector<8x8xf32> to vector<8x8xbf16>
    %cst_15 = arith.constant dense<0.000000e+00> : vector<8x8xf32>
    %53 = tpu.matmul %52, %36, %cst_15 {dimension_numbers = #tpu.dot_dimension_numbers<[1], [0], [0], [1], [0, 0, 1, 1], [], []>} : vector<8x8xbf16>, vector<8x8xbf16>, vector<8x8xf32> -> vector<8x8xf32>
    %54 = vector.extract_strided_slice %3 {offsets = [0, 16], sizes = [8, 8], strides = [1, 1]} : vector<8x96xf32> to vector<8x8xf32>
    %55 = arith.truncf %54 : vector<8x8xf32> to vector<8x8xbf16>
    %56 = vector.extract_strided_slice %5 {offsets = [0, 48], sizes = [8, 8], strides = [1, 1]} : vector<8x96xf32> to vector<8x8xf32>
    %57 = arith.truncf %56 : vector<8x8xf32> to vector<8x8xbf16>
    %58 = vector.extract_strided_slice %5 {offsets = [0, 80], sizes = [8, 8], strides = [1, 1]} : vector<8x96xf32> to vector<8x8xf32>
    %59 = arith.truncf %58 : vector<8x8xf32> to vector<8x8xbf16>
    %cst_16 = arith.constant dense<0.000000e+00> : vector<8x8xf32>
    %60 = tpu.matmul %55, %57, %cst_16 {dimension_numbers = #tpu.dot_dimension_numbers<[1], [1], [0], [0], [0, 0, 1, 0], [], []>} : vector<8x8xbf16>, vector<8x8xbf16>, vector<8x8xf32> -> vector<8x8xf32>
    %cst_17 = arith.constant 0.353553385 : f32
    %61 = vector.broadcast %cst_17 : f32 to vector<8x8xf32>
    %62 = arith.mulf %60, %61 : vector<8x8xf32>
    %63 = vector.broadcast %7 : vector<1x8xf32> to vector<8x8xf32>
    %64 = arith.addf %62, %63 : vector<8x8xf32>
    %cst_18 = arith.constant dense<0xFF800000> : vector<8xf32>
    %65 = vector.multi_reduction <maximumf>, %64, %cst_18 [1] : vector<8x8xf32> to vector<8xf32>
    %66 = vector.shape_cast %65 : vector<8xf32> to vector<8x1xf32>
    %67 = vector.broadcast %66 : vector<8x1xf32> to vector<8x8xf32>
    %68 = arith.subf %64, %67 : vector<8x8xf32>
    %69 = math.exp %68 : vector<8x8xf32>
    %cst_19 = arith.constant dense<0.000000e+00> : vector<8xf32>
    %70 = vector.multi_reduction <add>, %69, %cst_19 [1] : vector<8x8xf32> to vector<8xf32>
    %71 = vector.shape_cast %70 : vector<8xf32> to vector<8x1xf32>
    %72 = tpu.reciprocal %71 {approx = true} : vector<8x1xf32> -> vector<8x1xf32>
    %73 = vector.broadcast %72 : vector<8x1xf32> to vector<8x8xf32>
    %74 = arith.mulf %69, %73 : vector<8x8xf32>
    %75 = arith.truncf %74 : vector<8x8xf32> to vector<8x8xbf16>
    %cst_20 = arith.constant dense<0.000000e+00> : vector<8x8xf32>
    %76 = tpu.matmul %75, %59, %cst_20 {dimension_numbers = #tpu.dot_dimension_numbers<[1], [0], [0], [1], [0, 0, 1, 1], [], []>} : vector<8x8xbf16>, vector<8x8xbf16>, vector<8x8xf32> -> vector<8x8xf32>
    %77 = vector.extract_strided_slice %3 {offsets = [0, 24], sizes = [8, 8], strides = [1, 1]} : vector<8x96xf32> to vector<8x8xf32>
    %78 = arith.truncf %77 : vector<8x8xf32> to vector<8x8xbf16>
    %79 = vector.extract_strided_slice %5 {offsets = [0, 56], sizes = [8, 8], strides = [1, 1]} : vector<8x96xf32> to vector<8x8xf32>
    %80 = arith.truncf %79 : vector<8x8xf32> to vector<8x8xbf16>
    %81 = vector.extract_strided_slice %5 {offsets = [0, 88], sizes = [8, 8], strides = [1, 1]} : vector<8x96xf32> to vector<8x8xf32>
    %82 = arith.truncf %81 : vector<8x8xf32> to vector<8x8xbf16>
    %cst_21 = arith.constant dense<0.000000e+00> : vector<8x8xf32>
    %83 = tpu.matmul %78, %80, %cst_21 {dimension_numbers = #tpu.dot_dimension_numbers<[1], [1], [0], [0], [0, 0, 1, 0], [], []>} : vector<8x8xbf16>, vector<8x8xbf16>, vector<8x8xf32> -> vector<8x8xf32>
    %cst_22 = arith.constant 0.353553385 : f32
    %84 = vector.broadcast %cst_22 : f32 to vector<8x8xf32>
    %85 = arith.mulf %83, %84 : vector<8x8xf32>
    %86 = vector.broadcast %7 : vector<1x8xf32> to vector<8x8xf32>
    %87 = arith.addf %85, %86 : vector<8x8xf32>
    %cst_23 = arith.constant dense<0xFF800000> : vector<8xf32>
    %88 = vector.multi_reduction <maximumf>, %87, %cst_23 [1] : vector<8x8xf32> to vector<8xf32>
    %89 = vector.shape_cast %88 : vector<8xf32> to vector<8x1xf32>
    %90 = vector.broadcast %89 : vector<8x1xf32> to vector<8x8xf32>
    %91 = arith.subf %87, %90 : vector<8x8xf32>
    %92 = math.exp %91 : vector<8x8xf32>
    %cst_24 = arith.constant dense<0.000000e+00> : vector<8xf32>
    %93 = vector.multi_reduction <add>, %92, %cst_24 [1] : vector<8x8xf32> to vector<8xf32>
    %94 = vector.shape_cast %93 : vector<8xf32> to vector<8x1xf32>
    %95 = tpu.reciprocal %94 {approx = true} : vector<8x1xf32> -> vector<8x1xf32>
    %96 = vector.broadcast %95 : vector<8x1xf32> to vector<8x8xf32>
    %97 = arith.mulf %92, %96 : vector<8x8xf32>
    %98 = arith.truncf %97 : vector<8x8xf32> to vector<8x8xbf16>
    %cst_25 = arith.constant dense<0.000000e+00> : vector<8x8xf32>
    %99 = tpu.matmul %98, %82, %cst_25 {dimension_numbers = #tpu.dot_dimension_numbers<[1], [0], [0], [1], [0, 0, 1, 1], [], []>} : vector<8x8xbf16>, vector<8x8xbf16>, vector<8x8xf32> -> vector<8x8xf32>
    %100 = tpu.concatenate %30, %53, %76, %99 in 1 : vector<8x8xf32>, vector<8x8xf32>, vector<8x8xf32>, vector<8x8xf32> -> vector<8x32xf32>
    %c0_26 = arith.constant 0 : index
    %c0_27 = arith.constant 0 : index
    %c0_28 = arith.constant 0 : index
    %101 = vector.load %arg4[%c0_26, %c0_27, %c0_28] : memref<1x8x32xf32, #tpu.memory_space<vmem>>, vector<1x8x32xf32>
    %102 = vector.shape_cast %101 : vector<1x8x32xf32> to vector<8x32xf32>
    %103 = vector.shape_cast %100 : vector<8x32xf32> to vector<1x8x32xf32>
    tpu.vector_store %arg4[%c0_26, %c0_27, %c0_28], %103 {strides = array<i32>} : memref<1x8x32xf32, #tpu.memory_space<vmem>>, vector<1x8x32xf32>,
    return
  }
  func.func @transform_0(%arg0: i32, %arg1: i32) -> (i32, i32, i32) {
    %c0_i32 = arith.constant 0 : i32
    %c0_i32_0 = arith.constant 0 : i32
    %c0_i32_1 = arith.constant 0 : i32
    return %arg0, %c0_i32, %c0_i32_0 : i32, i32, i32
  }
  func.func @transform_1(%arg0: i32, %arg1: i32) -> (i32, i32, i32) {
    %c0_i32 = arith.constant 0 : i32
    %c0_i32_0 = arith.constant 0 : i32
    %c0_i32_1 = arith.constant 0 : i32
    return %arg0, %c0_i32, %c0_i32_0 : i32, i32, i32
  }
  func.func @transform_2(%arg0: i32, %arg1: i32) -> (i32, i32, i32) {
    %c0_i32 = arith.constant 0 : i32
    %c0_i32_0 = arith.constant 0 : i32
    return %arg0, %arg1, %c0_i32 : i32, i32, i32
  }
}

module attributes {stable_mosaic.version = 11 : i64} {
  func.func @_linear_residual_kernel(%arg0: i32, %arg1: i32, %arg2: memref<48x32xf32, #tpu.memory_space<vmem>>, %arg3: memref<32x32xbf16, #tpu.memory_space<vmem>>, %arg4: memref<1x32xf32, #tpu.memory_space<vmem>>, %arg5: memref<48x32xf32, #tpu.memory_space<vmem>>, %arg6: memref<48x32xf32, #tpu.memory_space<vmem>>) attributes {dimension_semantics = [#tpu.dimension_semantics<parallel>, #tpu.dimension_semantics<parallel>], iteration_bounds = array<i64: 1, 1>, scalar_prefetch = 0 : i64, scratch_operands = 0 : i64, tpu.core_type = #tpu.core_type<tc>, window_params = [{transform_indices = @transform_0, window_bounds = array<i64: 48, 32>}, {transform_indices = @transform_1, window_bounds = array<i64: 32, 32>}, {transform_indices = @transform_2, window_bounds = array<i64: 1, 32>}, {transform_indices = @transform_3, window_bounds = array<i64: 48, 32>}, {transform_indices = @transform_4, window_bounds = array<i64: 48, 32>}]} {
    %c0 = arith.constant 0 : index
    %c0_0 = arith.constant 0 : index
    %0 = vector.load %arg2[%c0, %c0_0] : memref<48x32xf32, #tpu.memory_space<vmem>>, vector<48x32xf32>
    %1 = arith.truncf %0 : vector<48x32xf32> to vector<48x32xbf16>
    %c0_1 = arith.constant 0 : index
    %c0_2 = arith.constant 0 : index
    %2 = vector.load %arg3[%c0_1, %c0_2] : memref<32x32xbf16, #tpu.memory_space<vmem>>, vector<32x32xbf16>
    %cst = arith.constant dense<0.000000e+00> : vector<48x32xf32>
    %3 = tpu.matmul %1, %2, %cst {dimension_numbers = #tpu.dot_dimension_numbers<[1], [0], [0], [1], [0, 0, 1, 1], [], []>} : vector<48x32xbf16>, vector<32x32xbf16>, vector<48x32xf32> -> vector<48x32xf32>
    %c0_3 = arith.constant 0 : index
    %c0_4 = arith.constant 0 : index
    %4 = vector.load %arg4[%c0_3, %c0_4] : memref<1x32xf32, #tpu.memory_space<vmem>>, vector<1x32xf32>
    %5 = vector.broadcast %4 : vector<1x32xf32> to vector<48x32xf32>
    %6 = arith.addf %3, %5 : vector<48x32xf32>
    %c0_5 = arith.constant 0 : index
    %c0_6 = arith.constant 0 : index
    %7 = vector.load %arg5[%c0_5, %c0_6] : memref<48x32xf32, #tpu.memory_space<vmem>>, vector<48x32xf32>
    %8 = arith.addf %6, %7 : vector<48x32xf32>
    %c0_7 = arith.constant 0 : index
    %c0_8 = arith.constant 0 : index
    %9 = vector.load %arg6[%c0_7, %c0_8] : memref<48x32xf32, #tpu.memory_space<vmem>>, vector<48x32xf32>
    tpu.vector_store %arg6[%c0_7, %c0_8], %8 {strides = array<i32>} : memref<48x32xf32, #tpu.memory_space<vmem>>, vector<48x32xf32>,
    return
  }
  func.func @transform_0(%arg0: i32, %arg1: i32) -> (i32, i32) {
    %c0_i32 = arith.constant 0 : i32
    %c0_i32_0 = arith.constant 0 : i32
    return %arg0, %c0_i32 : i32, i32
  }
  func.func @transform_1(%arg0: i32, %arg1: i32) -> (i32, i32) {
    %c0_i32 = arith.constant 0 : i32
    %c0_i32_0 = arith.constant 0 : i32
    return %c0_i32, %arg1 : i32, i32
  }
  func.func @transform_2(%arg0: i32, %arg1: i32) -> (i32, i32) {
    %c0_i32 = arith.constant 0 : i32
    %c0_i32_0 = arith.constant 0 : i32
    return %c0_i32, %arg1 : i32, i32
  }
  func.func @transform_3(%arg0: i32, %arg1: i32) -> (i32, i32) {
    %c0_i32 = arith.constant 0 : i32
    return %arg0, %arg1 : i32, i32
  }
  func.func @transform_4(%arg0: i32, %arg1: i32) -> (i32, i32) {
    %c0_i32 = arith.constant 0 : i32
    return %arg0, %arg1 : i32, i32
  }
}

module attributes {stable_mosaic.version = 11 : i64} {
  func.func @_ln_linear_kernel(%arg0: i32, %arg1: i32, %arg2: memref<48x32xf32, #tpu.memory_space<vmem>>, %arg3: memref<1x32xf32, #tpu.memory_space<vmem>>, %arg4: memref<1x32xf32, #tpu.memory_space<vmem>>, %arg5: memref<32x32xbf16, #tpu.memory_space<vmem>>, %arg6: memref<1x32xf32, #tpu.memory_space<vmem>>, %arg7: memref<48x32xf32, #tpu.memory_space<vmem>>, %arg8: memref<48x32xf32, #tpu.memory_space<vmem>>) attributes {dimension_semantics = [#tpu.dimension_semantics<parallel>, #tpu.dimension_semantics<arbitrary>], iteration_bounds = array<i64: 1, 1>, scalar_prefetch = 0 : i64, scratch_operands = 1 : i64, tpu.core_type = #tpu.core_type<tc>, window_params = [{transform_indices = @transform_0, window_bounds = array<i64: 48, 32>}, {pipeline_mode = #tpu.pipeline_mode<synchronous>, transform_indices = @transform_1, window_bounds = array<i64: 1, 32>}, {pipeline_mode = #tpu.pipeline_mode<synchronous>, transform_indices = @transform_2, window_bounds = array<i64: 1, 32>}, {transform_indices = @transform_3, window_bounds = array<i64: 32, 32>}, {transform_indices = @transform_4, window_bounds = array<i64: 1, 32>}, {transform_indices = @transform_5, window_bounds = array<i64: 48, 32>}]} {
    %c0_i32 = arith.constant 0 : i32
    %0 = arith.cmpi eq, %arg1, %c0_i32 : i32
    %1 = arith.extui %0 : i1 to i32
    %c0_i32_0 = arith.constant 0 : i32
    %2 = arith.cmpi ne, %1, %c0_i32_0 : i32
    scf.if %2 {
      %c0_8 = arith.constant 0 : index
      %c0_9 = arith.constant 0 : index
      %11 = vector.load %arg2[%c0_8, %c0_9] : memref<48x32xf32, #tpu.memory_space<vmem>>, vector<48x32xf32>
      %cst_10 = arith.constant dense<0.000000e+00> : vector<48xf32>
      %12 = vector.multi_reduction <add>, %11, %cst_10 [1] : vector<48x32xf32> to vector<48xf32>
      %13 = vector.shape_cast %12 : vector<48xf32> to vector<48x1xf32>
      %cst_11 = arith.constant 3.200000e+01 : f32
      %14 = vector.broadcast %cst_11 : f32 to vector<48x1xf32>
      %15 = arith.divf %13, %14 : vector<48x1xf32>
      %16 = vector.broadcast %15 : vector<48x1xf32> to vector<48x32xf32>
      %17 = arith.subf %11, %16 : vector<48x32xf32>
      %18 = arith.mulf %17, %17 : vector<48x32xf32>
      %cst_12 = arith.constant dense<0.000000e+00> : vector<48xf32>
      %19 = vector.multi_reduction <add>, %18, %cst_12 [1] : vector<48x32xf32> to vector<48xf32>
      %20 = vector.shape_cast %19 : vector<48xf32> to vector<48x1xf32>
      %cst_13 = arith.constant 3.200000e+01 : f32
      %21 = vector.broadcast %cst_13 : f32 to vector<48x1xf32>
      %22 = arith.divf %20, %21 : vector<48x1xf32>
      %cst_14 = arith.constant 9.99999997E-7 : f32
      %23 = vector.broadcast %cst_14 : f32 to vector<48x1xf32>
      %24 = arith.addf %22, %23 : vector<48x1xf32>
      %25 = math.rsqrt %24 : vector<48x1xf32>
      %26 = vector.broadcast %25 : vector<48x1xf32> to vector<48x32xf32>
      %27 = arith.mulf %17, %26 : vector<48x32xf32>
      %c0_15 = arith.constant 0 : index
      %c0_16 = arith.constant 0 : index
      %28 = vector.load %arg3[%c0_15, %c0_16] : memref<1x32xf32, #tpu.memory_space<vmem>>, vector<1x32xf32>
      %29 = vector.broadcast %28 : vector<1x32xf32> to vector<48x32xf32>
      %30 = arith.mulf %27, %29 : vector<48x32xf32>
      %c0_17 = arith.constant 0 : index
      %c0_18 = arith.constant 0 : index
      %31 = vector.load %arg4[%c0_17, %c0_18] : memref<1x32xf32, #tpu.memory_space<vmem>>, vector<1x32xf32>
      %32 = vector.broadcast %31 : vector<1x32xf32> to vector<48x32xf32>
      %33 = arith.addf %30, %32 : vector<48x32xf32>
      %c0_19 = arith.constant 0 : index
      %c0_20 = arith.constant 0 : index
      %34 = vector.load %arg8[%c0_19, %c0_20] : memref<48x32xf32, #tpu.memory_space<vmem>>, vector<48x32xf32>
      tpu.vector_store %arg8[%c0_19, %c0_20], %33 {strides = array<i32>} : memref<48x32xf32, #tpu.memory_space<vmem>>, vector<48x32xf32>,
    } else {
    }
    %c0 = arith.constant 0 : index
    %c0_1 = arith.constant 0 : index
    %3 = vector.load %arg8[%c0, %c0_1] : memref<48x32xf32, #tpu.memory_space<vmem>>, vector<48x32xf32>
    %4 = arith.truncf %3 : vector<48x32xf32> to vector<48x32xbf16>
    %c0_2 = arith.constant 0 : index
    %c0_3 = arith.constant 0 : index
    %5 = vector.load %arg5[%c0_2, %c0_3] : memref<32x32xbf16, #tpu.memory_space<vmem>>, vector<32x32xbf16>
    %cst = arith.constant dense<0.000000e+00> : vector<48x32xf32>
    %6 = tpu.matmul %4, %5, %cst {dimension_numbers = #tpu.dot_dimension_numbers<[1], [0], [0], [1], [0, 0, 1, 1], [], []>} : vector<48x32xbf16>, vector<32x32xbf16>, vector<48x32xf32> -> vector<48x32xf32>
    %c0_4 = arith.constant 0 : index
    %c0_5 = arith.constant 0 : index
    %7 = vector.load %arg6[%c0_4, %c0_5] : memref<1x32xf32, #tpu.memory_space<vmem>>, vector<1x32xf32>
    %8 = vector.broadcast %7 : vector<1x32xf32> to vector<48x32xf32>
    %9 = arith.addf %6, %8 : vector<48x32xf32>
    %c0_6 = arith.constant 0 : index
    %c0_7 = arith.constant 0 : index
    %10 = vector.load %arg7[%c0_6, %c0_7] : memref<48x32xf32, #tpu.memory_space<vmem>>, vector<48x32xf32>
    tpu.vector_store %arg7[%c0_6, %c0_7], %9 {strides = array<i32>} : memref<48x32xf32, #tpu.memory_space<vmem>>, vector<48x32xf32>,
    return
  }
  func.func @transform_0(%arg0: i32, %arg1: i32) -> (i32, i32) {
    %c0_i32 = arith.constant 0 : i32
    %c0_i32_0 = arith.constant 0 : i32
    return %arg0, %c0_i32 : i32, i32
  }
  func.func @transform_1(%arg0: i32, %arg1: i32) -> (i32, i32) {
    %c0_i32 = arith.constant 0 : i32
    %c0_i32_0 = arith.constant 0 : i32
    %c0_i32_1 = arith.constant 0 : i32
    return %c0_i32, %c0_i32_0 : i32, i32
  }
  func.func @transform_2(%arg0: i32, %arg1: i32) -> (i32, i32) {
    %c0_i32 = arith.constant 0 : i32
    %c0_i32_0 = arith.constant 0 : i32
    %c0_i32_1 = arith.constant 0 : i32
    return %c0_i32, %c0_i32_0 : i32, i32
  }
  func.func @transform_3(%arg0: i32, %arg1: i32) -> (i32, i32) {
    %c0_i32 = arith.constant 0 : i32
    %c0_i32_0 = arith.constant 0 : i32
    return %c0_i32, %arg1 : i32, i32
  }
  func.func @transform_4(%arg0: i32, %arg1: i32) -> (i32, i32) {
    %c0_i32 = arith.constant 0 : i32
    %c0_i32_0 = arith.constant 0 : i32
    return %c0_i32, %arg1 : i32, i32
  }
  func.func @transform_5(%arg0: i32, %arg1: i32) -> (i32, i32) {
    %c0_i32 = arith.constant 0 : i32
    return %arg0, %arg1 : i32, i32
  }
}

module attributes {stable_mosaic.version = 11 : i64} {
  func.func @_cross_mha_kernel(%arg0: i32, %arg1: i32, %arg2: memref<1x8x32xf32, #tpu.memory_space<vmem>>, %arg3: memref<1x16x64xf32, #tpu.memory_space<vmem>>, %arg4: memref<1x1x16xf32, #tpu.memory_space<vmem>>, %arg5: memref<1x8x32xf32, #tpu.memory_space<vmem>>) attributes {dimension_semantics = [#tpu.dimension_semantics<parallel>, #tpu.dimension_semantics<parallel>], iteration_bounds = array<i64: 6, 1>, scalar_prefetch = 0 : i64, scratch_operands = 0 : i64, tpu.core_type = #tpu.core_type<tc>, window_params = [{transform_indices = @transform_0, window_bounds = array<i64: 1, 8, 32>}, {transform_indices = @transform_1, window_bounds = array<i64: 1, 16, 64>}, {transform_indices = @transform_2, window_bounds = array<i64: 1, 1, 16>}, {transform_indices = @transform_3, window_bounds = array<i64: 1, 8, 32>}]} {
    %c0 = arith.constant 0 : index
    %c0_0 = arith.constant 0 : index
    %c0_1 = arith.constant 0 : index
    %0 = vector.load %arg2[%c0, %c0_0, %c0_1] : memref<1x8x32xf32, #tpu.memory_space<vmem>>, vector<1x8x32xf32>
    %1 = vector.shape_cast %0 : vector<1x8x32xf32> to vector<8x32xf32>
    %c0_2 = arith.constant 0 : index
    %c0_3 = arith.constant 0 : index
    %c0_4 = arith.constant 0 : index
    %2 = vector.load %arg3[%c0_2, %c0_3, %c0_4] : memref<1x16x64xf32, #tpu.memory_space<vmem>>, vector<1x16x64xf32>
    %3 = vector.shape_cast %2 : vector<1x16x64xf32> to vector<16x64xf32>
    %c0_5 = arith.constant 0 : index
    %c0_6 = arith.constant 0 : index
    %c0_7 = arith.constant 0 : index
    %4 = vector.load %arg4[%c0_5, %c0_6, %c0_7] : memref<1x1x16xf32, #tpu.memory_space<vmem>>, vector<1x1x16xf32>
    %5 = vector.shape_cast %4 : vector<1x1x16xf32> to vector<1x16xf32>
    %6 = vector.extract_strided_slice %1 {offsets = [0, 0], sizes = [8, 8], strides = [1, 1]} : vector<8x32xf32> to vector<8x8xf32>
    %7 = arith.truncf %6 : vector<8x8xf32> to vector<8x8xbf16>
    %8 = vector.extract_strided_slice %3 {offsets = [0, 0], sizes = [16, 8], strides = [1, 1]} : vector<16x64xf32> to vector<16x8xf32>
    %9 = arith.truncf %8 : vector<16x8xf32> to vector<16x8xbf16>
    %10 = vector.extract_strided_slice %3 {offsets = [0, 32], sizes = [16, 8], strides = [1, 1]} : vector<16x64xf32> to vector<16x8xf32>
    %11 = arith.truncf %10 : vector<16x8xf32> to vector<16x8xbf16>
    %cst = arith.constant dense<0.000000e+00> : vector<8x16xf32>
    %12 = tpu.matmul %7, %9, %cst {dimension_numbers = #tpu.dot_dimension_numbers<[1], [1], [0], [0], [0, 0, 1, 0], [], []>} : vector<8x8xbf16>, vector<16x8xbf16>, vector<8x16xf32> -> vector<8x16xf32>
    %cst_8 = arith.constant 0.353553385 : f32
    %13 = vector.broadcast %cst_8 : f32 to vector<8x16xf32>
    %14 = arith.mulf %12, %13 : vector<8x16xf32>
    %15 = vector.broadcast %5 : vector<1x16xf32> to vector<8x16xf32>
    %16 = arith.addf %14, %15 : vector<8x16xf32>
    %cst_9 = arith.constant dense<0xFF800000> : vector<8xf32>
    %17 = vector.multi_reduction <maximumf>, %16, %cst_9 [1] : vector<8x16xf32> to vector<8xf32>
    %18 = vector.shape_cast %17 : vector<8xf32> to vector<8x1xf32>
    %19 = vector.broadcast %18 : vector<8x1xf32> to vector<8x16xf32>
    %20 = arith.subf %16, %19 : vector<8x16xf32>
    %21 = math.exp %20 : vector<8x16xf32>
    %cst_10 = arith.constant dense<0.000000e+00> : vector<8xf32>
    %22 = vector.multi_reduction <add>, %21, %cst_10 [1] : vector<8x16xf32> to vector<8xf32>
    %23 = vector.shape_cast %22 : vector<8xf32> to vector<8x1xf32>
    %24 = tpu.reciprocal %23 {approx = true} : vector<8x1xf32> -> vector<8x1xf32>
    %25 = vector.broadcast %24 : vector<8x1xf32> to vector<8x16xf32>
    %26 = arith.mulf %21, %25 : vector<8x16xf32>
    %27 = arith.truncf %26 : vector<8x16xf32> to vector<8x16xbf16>
    %cst_11 = arith.constant dense<0.000000e+00> : vector<8x8xf32>
    %28 = tpu.matmul %27, %11, %cst_11 {dimension_numbers = #tpu.dot_dimension_numbers<[1], [0], [0], [1], [0, 0, 1, 1], [], []>} : vector<8x16xbf16>, vector<16x8xbf16>, vector<8x8xf32> -> vector<8x8xf32>
    %29 = vector.extract_strided_slice %1 {offsets = [0, 8], sizes = [8, 8], strides = [1, 1]} : vector<8x32xf32> to vector<8x8xf32>
    %30 = arith.truncf %29 : vector<8x8xf32> to vector<8x8xbf16>
    %31 = vector.extract_strided_slice %3 {offsets = [0, 8], sizes = [16, 8], strides = [1, 1]} : vector<16x64xf32> to vector<16x8xf32>
    %32 = arith.truncf %31 : vector<16x8xf32> to vector<16x8xbf16>
    %33 = vector.extract_strided_slice %3 {offsets = [0, 40], sizes = [16, 8], strides = [1, 1]} : vector<16x64xf32> to vector<16x8xf32>
    %34 = arith.truncf %33 : vector<16x8xf32> to vector<16x8xbf16>
    %cst_12 = arith.constant dense<0.000000e+00> : vector<8x16xf32>
    %35 = tpu.matmul %30, %32, %cst_12 {dimension_numbers = #tpu.dot_dimension_numbers<[1], [1], [0], [0], [0, 0, 1, 0], [], []>} : vector<8x8xbf16>, vector<16x8xbf16>, vector<8x16xf32> -> vector<8x16xf32>
    %cst_13 = arith.constant 0.353553385 : f32
    %36 = vector.broadcast %cst_13 : f32 to vector<8x16xf32>
    %37 = arith.mulf %35, %36 : vector<8x16xf32>
    %38 = vector.broadcast %5 : vector<1x16xf32> to vector<8x16xf32>
    %39 = arith.addf %37, %38 : vector<8x16xf32>
    %cst_14 = arith.constant dense<0xFF800000> : vector<8xf32>
    %40 = vector.multi_reduction <maximumf>, %39, %cst_14 [1] : vector<8x16xf32> to vector<8xf32>
    %41 = vector.shape_cast %40 : vector<8xf32> to vector<8x1xf32>
    %42 = vector.broadcast %41 : vector<8x1xf32> to vector<8x16xf32>
    %43 = arith.subf %39, %42 : vector<8x16xf32>
    %44 = math.exp %43 : vector<8x16xf32>
    %cst_15 = arith.constant dense<0.000000e+00> : vector<8xf32>
    %45 = vector.multi_reduction <add>, %44, %cst_15 [1] : vector<8x16xf32> to vector<8xf32>
    %46 = vector.shape_cast %45 : vector<8xf32> to vector<8x1xf32>
    %47 = tpu.reciprocal %46 {approx = true} : vector<8x1xf32> -> vector<8x1xf32>
    %48 = vector.broadcast %47 : vector<8x1xf32> to vector<8x16xf32>
    %49 = arith.mulf %44, %48 : vector<8x16xf32>
    %50 = arith.truncf %49 : vector<8x16xf32> to vector<8x16xbf16>
    %cst_16 = arith.constant dense<0.000000e+00> : vector<8x8xf32>
    %51 = tpu.matmul %50, %34, %cst_16 {dimension_numbers = #tpu.dot_dimension_numbers<[1], [0], [0], [1], [0, 0, 1, 1], [], []>} : vector<8x16xbf16>, vector<16x8xbf16>, vector<8x8xf32> -> vector<8x8xf32>
    %52 = vector.extract_strided_slice %1 {offsets = [0, 16], sizes = [8, 8], strides = [1, 1]} : vector<8x32xf32> to vector<8x8xf32>
    %53 = arith.truncf %52 : vector<8x8xf32> to vector<8x8xbf16>
    %54 = vector.extract_strided_slice %3 {offsets = [0, 16], sizes = [16, 8], strides = [1, 1]} : vector<16x64xf32> to vector<16x8xf32>
    %55 = arith.truncf %54 : vector<16x8xf32> to vector<16x8xbf16>
    %56 = vector.extract_strided_slice %3 {offsets = [0, 48], sizes = [16, 8], strides = [1, 1]} : vector<16x64xf32> to vector<16x8xf32>
    %57 = arith.truncf %56 : vector<16x8xf32> to vector<16x8xbf16>
    %cst_17 = arith.constant dense<0.000000e+00> : vector<8x16xf32>
    %58 = tpu.matmul %53, %55, %cst_17 {dimension_numbers = #tpu.dot_dimension_numbers<[1], [1], [0], [0], [0, 0, 1, 0], [], []>} : vector<8x8xbf16>, vector<16x8xbf16>, vector<8x16xf32> -> vector<8x16xf32>
    %cst_18 = arith.constant 0.353553385 : f32
    %59 = vector.broadcast %cst_18 : f32 to vector<8x16xf32>
    %60 = arith.mulf %58, %59 : vector<8x16xf32>
    %61 = vector.broadcast %5 : vector<1x16xf32> to vector<8x16xf32>
    %62 = arith.addf %60, %61 : vector<8x16xf32>
    %cst_19 = arith.constant dense<0xFF800000> : vector<8xf32>
    %63 = vector.multi_reduction <maximumf>, %62, %cst_19 [1] : vector<8x16xf32> to vector<8xf32>
    %64 = vector.shape_cast %63 : vector<8xf32> to vector<8x1xf32>
    %65 = vector.broadcast %64 : vector<8x1xf32> to vector<8x16xf32>
    %66 = arith.subf %62, %65 : vector<8x16xf32>
    %67 = math.exp %66 : vector<8x16xf32>
    %cst_20 = arith.constant dense<0.000000e+00> : vector<8xf32>
    %68 = vector.multi_reduction <add>, %67, %cst_20 [1] : vector<8x16xf32> to vector<8xf32>
    %69 = vector.shape_cast %68 : vector<8xf32> to vector<8x1xf32>
    %70 = tpu.reciprocal %69 {approx = true} : vector<8x1xf32> -> vector<8x1xf32>
    %71 = vector.broadcast %70 : vector<8x1xf32> to vector<8x16xf32>
    %72 = arith.mulf %67, %71 : vector<8x16xf32>
    %73 = arith.truncf %72 : vector<8x16xf32> to vector<8x16xbf16>
    %cst_21 = arith.constant dense<0.000000e+00> : vector<8x8xf32>
    %74 = tpu.matmul %73, %57, %cst_21 {dimension_numbers = #tpu.dot_dimension_numbers<[1], [0], [0], [1], [0, 0, 1, 1], [], []>} : vector<8x16xbf16>, vector<16x8xbf16>, vector<8x8xf32> -> vector<8x8xf32>
    %75 = vector.extract_strided_slice %1 {offsets = [0, 24], sizes = [8, 8], strides = [1, 1]} : vector<8x32xf32> to vector<8x8xf32>
    %76 = arith.truncf %75 : vector<8x8xf32> to vector<8x8xbf16>
    %77 = vector.extract_strided_slice %3 {offsets = [0, 24], sizes = [16, 8], strides = [1, 1]} : vector<16x64xf32> to vector<16x8xf32>
    %78 = arith.truncf %77 : vector<16x8xf32> to vector<16x8xbf16>
    %79 = vector.extract_strided_slice %3 {offsets = [0, 56], sizes = [16, 8], strides = [1, 1]} : vector<16x64xf32> to vector<16x8xf32>
    %80 = arith.truncf %79 : vector<16x8xf32> to vector<16x8xbf16>
    %cst_22 = arith.constant dense<0.000000e+00> : vector<8x16xf32>
    %81 = tpu.matmul %76, %78, %cst_22 {dimension_numbers = #tpu.dot_dimension_numbers<[1], [1], [0], [0], [0, 0, 1, 0], [], []>} : vector<8x8xbf16>, vector<16x8xbf16>, vector<8x16xf32> -> vector<8x16xf32>
    %cst_23 = arith.constant 0.353553385 : f32
    %82 = vector.broadcast %cst_23 : f32 to vector<8x16xf32>
    %83 = arith.mulf %81, %82 : vector<8x16xf32>
    %84 = vector.broadcast %5 : vector<1x16xf32> to vector<8x16xf32>
    %85 = arith.addf %83, %84 : vector<8x16xf32>
    %cst_24 = arith.constant dense<0xFF800000> : vector<8xf32>
    %86 = vector.multi_reduction <maximumf>, %85, %cst_24 [1] : vector<8x16xf32> to vector<8xf32>
    %87 = vector.shape_cast %86 : vector<8xf32> to vector<8x1xf32>
    %88 = vector.broadcast %87 : vector<8x1xf32> to vector<8x16xf32>
    %89 = arith.subf %85, %88 : vector<8x16xf32>
    %90 = math.exp %89 : vector<8x16xf32>
    %cst_25 = arith.constant dense<0.000000e+00> : vector<8xf32>
    %91 = vector.multi_reduction <add>, %90, %cst_25 [1] : vector<8x16xf32> to vector<8xf32>
    %92 = vector.shape_cast %91 : vector<8xf32> to vector<8x1xf32>
    %93 = tpu.reciprocal %92 {approx = true} : vector<8x1xf32> -> vector<8x1xf32>
    %94 = vector.broadcast %93 : vector<8x1xf32> to vector<8x16xf32>
    %95 = arith.mulf %90, %94 : vector<8x16xf32>
    %96 = arith.truncf %95 : vector<8x16xf32> to vector<8x16xbf16>
    %cst_26 = arith.constant dense<0.000000e+00> : vector<8x8xf32>
    %97 = tpu.matmul %96, %80, %cst_26 {dimension_numbers = #tpu.dot_dimension_numbers<[1], [0], [0], [1], [0, 0, 1, 1], [], []>} : vector<8x16xbf16>, vector<16x8xbf16>, vector<8x8xf32> -> vector<8x8xf32>
    %98 = tpu.concatenate %28, %51, %74, %97 in 1 : vector<8x8xf32>, vector<8x8xf32>, vector<8x8xf32>, vector<8x8xf32> -> vector<8x32xf32>
    %c0_27 = arith.constant 0 : index
    %c0_28 = arith.constant 0 : index
    %c0_29 = arith.constant 0 : index
    %99 = vector.load %arg5[%c0_27, %c0_28, %c0_29] : memref<1x8x32xf32, #tpu.memory_space<vmem>>, vector<1x8x32xf32>
    %100 = vector.shape_cast %99 : vector<1x8x32xf32> to vector<8x32xf32>
    %101 = vector.shape_cast %98 : vector<8x32xf32> to vector<1x8x32xf32>
    tpu.vector_store %arg5[%c0_27, %c0_28, %c0_29], %101 {strides = array<i32>} : memref<1x8x32xf32, #tpu.memory_space<vmem>>, vector<1x8x32xf32>,
    return
  }
  func.func @transform_0(%arg0: i32, %arg1: i32) -> (i32, i32, i32) {
    %c0_i32 = arith.constant 0 : i32
    %c0_i32_0 = arith.constant 0 : i32
    return %arg0, %arg1, %c0_i32 : i32, i32, i32
  }
  func.func @transform_1(%arg0: i32, %arg1: i32) -> (i32, i32, i32) {
    %c0_i32 = arith.constant 0 : i32
    %c0_i32_0 = arith.constant 0 : i32
    %c0_i32_1 = arith.constant 0 : i32
    return %arg0, %c0_i32, %c0_i32_0 : i32, i32, i32
  }
  func.func @transform_2(%arg0: i32, %arg1: i32) -> (i32, i32, i32) {
    %c0_i32 = arith.constant 0 : i32
    %c0_i32_0 = arith.constant 0 : i32
    %c0_i32_1 = arith.constant 0 : i32
    return %arg0, %c0_i32, %c0_i32_0 : i32, i32, i32
  }
  func.func @transform_3(%arg0: i32, %arg1: i32) -> (i32, i32, i32) {
    %c0_i32 = arith.constant 0 : i32
    %c0_i32_0 = arith.constant 0 : i32
    return %arg0, %arg1, %c0_i32 : i32, i32, i32
  }
}

module attributes {stable_mosaic.version = 11 : i64} {
  func.func @_out_gate_kernel(%arg0: i32, %arg1: memref<48x32xf32, #tpu.memory_space<vmem>>, %arg2: memref<32x32xbf16, #tpu.memory_space<vmem>>, %arg3: memref<1x32xf32, #tpu.memory_space<vmem>>, %arg4: memref<48x32xf32, #tpu.memory_space<vmem>>, %arg5: memref<32x32xbf16, #tpu.memory_space<vmem>>, %arg6: memref<32x32xbf16, #tpu.memory_space<vmem>>, %arg7: memref<1x32xf32, #tpu.memory_space<vmem>>, %arg8: memref<48x32xf32, #tpu.memory_space<vmem>>) attributes {dimension_semantics = [#tpu.dimension_semantics<parallel>], iteration_bounds = array<i64: 1>, scalar_prefetch = 0 : i64, scratch_operands = 0 : i64, tpu.core_type = #tpu.core_type<tc>, window_params = [{transform_indices = @transform_0, window_bounds = array<i64: 48, 32>}, {pipeline_mode = #tpu.pipeline_mode<synchronous>, transform_indices = @transform_1, window_bounds = array<i64: 32, 32>}, {pipeline_mode = #tpu.pipeline_mode<synchronous>, transform_indices = @transform_2, window_bounds = array<i64: 1, 32>}, {transform_indices = @transform_3, window_bounds = array<i64: 48, 32>}, {pipeline_mode = #tpu.pipeline_mode<synchronous>, transform_indices = @transform_4, window_bounds = array<i64: 32, 32>}, {pipeline_mode = #tpu.pipeline_mode<synchronous>, transform_indices = @transform_5, window_bounds = array<i64: 32, 32>}, {pipeline_mode = #tpu.pipeline_mode<synchronous>, transform_indices = @transform_6, window_bounds = array<i64: 1, 32>}, {transform_indices = @transform_7, window_bounds = array<i64: 48, 32>}]} {
    %c0 = arith.constant 0 : index
    %c0_0 = arith.constant 0 : index
    %0 = vector.load %arg1[%c0, %c0_0] : memref<48x32xf32, #tpu.memory_space<vmem>>, vector<48x32xf32>
    %1 = arith.truncf %0 : vector<48x32xf32> to vector<48x32xbf16>
    %c0_1 = arith.constant 0 : index
    %c0_2 = arith.constant 0 : index
    %2 = vector.load %arg2[%c0_1, %c0_2] : memref<32x32xbf16, #tpu.memory_space<vmem>>, vector<32x32xbf16>
    %cst = arith.constant dense<0.000000e+00> : vector<48x32xf32>
    %3 = tpu.matmul %1, %2, %cst {dimension_numbers = #tpu.dot_dimension_numbers<[1], [0], [0], [1], [0, 0, 1, 1], [], []>} : vector<48x32xbf16>, vector<32x32xbf16>, vector<48x32xf32> -> vector<48x32xf32>
    %c0_3 = arith.constant 0 : index
    %c0_4 = arith.constant 0 : index
    %4 = vector.load %arg3[%c0_3, %c0_4] : memref<1x32xf32, #tpu.memory_space<vmem>>, vector<1x32xf32>
    %5 = vector.broadcast %4 : vector<1x32xf32> to vector<48x32xf32>
    %6 = arith.addf %3, %5 : vector<48x32xf32>
    %c0_5 = arith.constant 0 : index
    %c0_6 = arith.constant 0 : index
    %7 = vector.load %arg4[%c0_5, %c0_6] : memref<48x32xf32, #tpu.memory_space<vmem>>, vector<48x32xf32>
    %8 = arith.truncf %6 : vector<48x32xf32> to vector<48x32xbf16>
    %c0_7 = arith.constant 0 : index
    %c0_8 = arith.constant 0 : index
    %9 = vector.load %arg5[%c0_7, %c0_8] : memref<32x32xbf16, #tpu.memory_space<vmem>>, vector<32x32xbf16>
    %cst_9 = arith.constant dense<0.000000e+00> : vector<48x32xf32>
    %10 = tpu.matmul %8, %9, %cst_9 {dimension_numbers = #tpu.dot_dimension_numbers<[1], [0], [0], [1], [0, 0, 1, 1], [], []>} : vector<48x32xbf16>, vector<32x32xbf16>, vector<48x32xf32> -> vector<48x32xf32>
    %11 = arith.truncf %7 : vector<48x32xf32> to vector<48x32xbf16>
    %c0_10 = arith.constant 0 : index
    %c0_11 = arith.constant 0 : index
    %12 = vector.load %arg6[%c0_10, %c0_11] : memref<32x32xbf16, #tpu.memory_space<vmem>>, vector<32x32xbf16>
    %cst_12 = arith.constant dense<0.000000e+00> : vector<48x32xf32>
    %13 = tpu.matmul %11, %12, %cst_12 {dimension_numbers = #tpu.dot_dimension_numbers<[1], [0], [0], [1], [0, 0, 1, 1], [], []>} : vector<48x32xbf16>, vector<32x32xbf16>, vector<48x32xf32> -> vector<48x32xf32>
    %14 = arith.addf %10, %13 : vector<48x32xf32>
    %c0_13 = arith.constant 0 : index
    %c0_14 = arith.constant 0 : index
    %15 = vector.load %arg7[%c0_13, %c0_14] : memref<1x32xf32, #tpu.memory_space<vmem>>, vector<1x32xf32>
    %16 = vector.broadcast %15 : vector<1x32xf32> to vector<48x32xf32>
    %17 = arith.addf %14, %16 : vector<48x32xf32>
    %cst_15 = arith.constant 0.000000e+00 : f32
    %18 = vector.broadcast %cst_15 : f32 to vector<48x32xf32>
    %19 = arith.subf %18, %17 : vector<48x32xf32>
    %20 = math.exp %19 : vector<48x32xf32>
    %cst_16 = arith.constant 1.000000e+00 : f32
    %21 = vector.broadcast %cst_16 : f32 to vector<48x32xf32>
    %22 = arith.addf %21, %20 : vector<48x32xf32>
    %cst_17 = arith.constant 1.000000e+00 : f32
    %23 = vector.broadcast %cst_17 : f32 to vector<48x32xf32>
    %24 = arith.divf %23, %22 : vector<48x32xf32>
    %25 = arith.mulf %6, %24 : vector<48x32xf32>
    %cst_18 = arith.constant 1.000000e+00 : f32
    %26 = vector.broadcast %cst_18 : f32 to vector<48x32xf32>
    %27 = arith.subf %26, %24 : vector<48x32xf32>
    %28 = arith.mulf %7, %27 : vector<48x32xf32>
    %29 = arith.addf %25, %28 : vector<48x32xf32>
    %c0_19 = arith.constant 0 : index
    %c0_20 = arith.constant 0 : index
    %30 = vector.load %arg8[%c0_19, %c0_20] : memref<48x32xf32, #tpu.memory_space<vmem>>, vector<48x32xf32>
    tpu.vector_store %arg8[%c0_19, %c0_20], %29 {strides = array<i32>} : memref<48x32xf32, #tpu.memory_space<vmem>>, vector<48x32xf32>,
    return
  }
  func.func @transform_0(%arg0: i32) -> (i32, i32) {
    %c0_i32 = arith.constant 0 : i32
    %c0_i32_0 = arith.constant 0 : i32
    return %arg0, %c0_i32 : i32, i32
  }
  func.func @transform_1(%arg0: i32) -> (i32, i32) {
    %c0_i32 = arith.constant 0 : i32
    %c0_i32_0 = arith.constant 0 : i32
    %c0_i32_1 = arith.constant 0 : i32
    return %c0_i32, %c0_i32_0 : i32, i32
  }
  func.func @transform_2(%arg0: i32) -> (i32, i32) {
    %c0_i32 = arith.constant 0 : i32
    %c0_i32_0 = arith.constant 0 : i32
    %c0_i32_1 = arith.constant 0 : i32
    return %c0_i32, %c0_i32_0 : i32, i32
  }
  func.func @transform_3(%arg0: i32) -> (i32, i32) {
    %c0_i32 = arith.constant 0 : i32
    %c0_i32_0 = arith.constant 0 : i32
    return %arg0, %c0_i32 : i32, i32
  }
  func.func @transform_4(%arg0: i32) -> (i32, i32) {
    %c0_i32 = arith.constant 0 : i32
    %c0_i32_0 = arith.constant 0 : i32
    %c0_i32_1 = arith.constant 0 : i32
    return %c0_i32, %c0_i32_0 : i32, i32
  }
  func.func @transform_5(%arg0: i32) -> (i32, i32) {
    %c0_i32 = arith.constant 0 : i32
    %c0_i32_0 = arith.constant 0 : i32
    %c0_i32_1 = arith.constant 0 : i32
    return %c0_i32, %c0_i32_0 : i32, i32
  }
  func.func @transform_6(%arg0: i32) -> (i32, i32) {
    %c0_i32 = arith.constant 0 : i32
    %c0_i32_0 = arith.constant 0 : i32
    %c0_i32_1 = arith.constant 0 : i32
    return %c0_i32, %c0_i32_0 : i32, i32
  }
  func.func @transform_7(%arg0: i32) -> (i32, i32) {
    %c0_i32 = arith.constant 0 : i32
    %c0_i32_0 = arith.constant 0 : i32
    return %arg0, %c0_i32 : i32, i32
  }
}

module attributes {stable_mosaic.version = 11 : i64} {
  func.func @_ln_linear_kernel(%arg0: i32, %arg1: i32, %arg2: memref<48x32xf32, #tpu.memory_space<vmem>>, %arg3: memref<1x32xf32, #tpu.memory_space<vmem>>, %arg4: memref<1x32xf32, #tpu.memory_space<vmem>>, %arg5: memref<32x128xbf16, #tpu.memory_space<vmem>>, %arg6: memref<1x128xf32, #tpu.memory_space<vmem>>, %arg7: memref<48x128xf32, #tpu.memory_space<vmem>>, %arg8: memref<48x32xf32, #tpu.memory_space<vmem>>) attributes {dimension_semantics = [#tpu.dimension_semantics<parallel>, #tpu.dimension_semantics<arbitrary>], iteration_bounds = array<i64: 1, 1>, scalar_prefetch = 0 : i64, scratch_operands = 1 : i64, tpu.core_type = #tpu.core_type<tc>, window_params = [{transform_indices = @transform_0, window_bounds = array<i64: 48, 32>}, {pipeline_mode = #tpu.pipeline_mode<synchronous>, transform_indices = @transform_1, window_bounds = array<i64: 1, 32>}, {pipeline_mode = #tpu.pipeline_mode<synchronous>, transform_indices = @transform_2, window_bounds = array<i64: 1, 32>}, {transform_indices = @transform_3, window_bounds = array<i64: 32, 128>}, {transform_indices = @transform_4, window_bounds = array<i64: 1, 128>}, {transform_indices = @transform_5, window_bounds = array<i64: 48, 128>}]} {
    %c0_i32 = arith.constant 0 : i32
    %0 = arith.cmpi eq, %arg1, %c0_i32 : i32
    %1 = arith.extui %0 : i1 to i32
    %c0_i32_0 = arith.constant 0 : i32
    %2 = arith.cmpi ne, %1, %c0_i32_0 : i32
    scf.if %2 {
      %c0_12 = arith.constant 0 : index
      %c0_13 = arith.constant 0 : index
      %24 = vector.load %arg2[%c0_12, %c0_13] : memref<48x32xf32, #tpu.memory_space<vmem>>, vector<48x32xf32>
      %cst_14 = arith.constant dense<0.000000e+00> : vector<48xf32>
      %25 = vector.multi_reduction <add>, %24, %cst_14 [1] : vector<48x32xf32> to vector<48xf32>
      %26 = vector.shape_cast %25 : vector<48xf32> to vector<48x1xf32>
      %cst_15 = arith.constant 3.200000e+01 : f32
      %27 = vector.broadcast %cst_15 : f32 to vector<48x1xf32>
      %28 = arith.divf %26, %27 : vector<48x1xf32>
      %29 = vector.broadcast %28 : vector<48x1xf32> to vector<48x32xf32>
      %30 = arith.subf %24, %29 : vector<48x32xf32>
      %31 = arith.mulf %30, %30 : vector<48x32xf32>
      %cst_16 = arith.constant dense<0.000000e+00> : vector<48xf32>
      %32 = vector.multi_reduction <add>, %31, %cst_16 [1] : vector<48x32xf32> to vector<48xf32>
      %33 = vector.shape_cast %32 : vector<48xf32> to vector<48x1xf32>
      %cst_17 = arith.constant 3.200000e+01 : f32
      %34 = vector.broadcast %cst_17 : f32 to vector<48x1xf32>
      %35 = arith.divf %33, %34 : vector<48x1xf32>
      %cst_18 = arith.constant 9.99999997E-7 : f32
      %36 = vector.broadcast %cst_18 : f32 to vector<48x1xf32>
      %37 = arith.addf %35, %36 : vector<48x1xf32>
      %38 = math.rsqrt %37 : vector<48x1xf32>
      %39 = vector.broadcast %38 : vector<48x1xf32> to vector<48x32xf32>
      %40 = arith.mulf %30, %39 : vector<48x32xf32>
      %c0_19 = arith.constant 0 : index
      %c0_20 = arith.constant 0 : index
      %41 = vector.load %arg3[%c0_19, %c0_20] : memref<1x32xf32, #tpu.memory_space<vmem>>, vector<1x32xf32>
      %42 = vector.broadcast %41 : vector<1x32xf32> to vector<48x32xf32>
      %43 = arith.mulf %40, %42 : vector<48x32xf32>
      %c0_21 = arith.constant 0 : index
      %c0_22 = arith.constant 0 : index
      %44 = vector.load %arg4[%c0_21, %c0_22] : memref<1x32xf32, #tpu.memory_space<vmem>>, vector<1x32xf32>
      %45 = vector.broadcast %44 : vector<1x32xf32> to vector<48x32xf32>
      %46 = arith.addf %43, %45 : vector<48x32xf32>
      %c0_23 = arith.constant 0 : index
      %c0_24 = arith.constant 0 : index
      %47 = vector.load %arg8[%c0_23, %c0_24] : memref<48x32xf32, #tpu.memory_space<vmem>>, vector<48x32xf32>
      tpu.vector_store %arg8[%c0_23, %c0_24], %46 {strides = array<i32>} : memref<48x32xf32, #tpu.memory_space<vmem>>, vector<48x32xf32>,
    } else {
    }
    %c0 = arith.constant 0 : index
    %c0_1 = arith.constant 0 : index
    %3 = vector.load %arg8[%c0, %c0_1] : memref<48x32xf32, #tpu.memory_space<vmem>>, vector<48x32xf32>
    %4 = arith.truncf %3 : vector<48x32xf32> to vector<48x32xbf16>
    %c0_2 = arith.constant 0 : index
    %c0_3 = arith.constant 0 : index
    %5 = vector.load %arg5[%c0_2, %c0_3] : memref<32x128xbf16, #tpu.memory_space<vmem>>, vector<32x128xbf16>
    %cst = arith.constant dense<0.000000e+00> : vector<48x128xf32>
    %6 = tpu.matmul %4, %5, %cst {dimension_numbers = #tpu.dot_dimension_numbers<[1], [0], [0], [1], [0, 0, 1, 1], [], []>} : vector<48x32xbf16>, vector<32x128xbf16>, vector<48x128xf32> -> vector<48x128xf32>
    %c0_4 = arith.constant 0 : index
    %c0_5 = arith.constant 0 : index
    %7 = vector.load %arg6[%c0_4, %c0_5] : memref<1x128xf32, #tpu.memory_space<vmem>>, vector<1x128xf32>
    %8 = vector.broadcast %7 : vector<1x128xf32> to vector<48x128xf32>
    %9 = arith.addf %6, %8 : vector<48x128xf32>
    %cst_6 = arith.constant 5.000000e-01 : f32
    %10 = vector.broadcast %cst_6 : f32 to vector<48x128xf32>
    %11 = arith.mulf %10, %9 : vector<48x128xf32>
    %cst_7 = arith.constant 4.471500e-02 : f32
    %12 = vector.broadcast %cst_7 : f32 to vector<48x128xf32>
    %13 = arith.mulf %12, %9 : vector<48x128xf32>
    %14 = arith.mulf %13, %9 : vector<48x128xf32>
    %15 = arith.mulf %14, %9 : vector<48x128xf32>
    %16 = arith.addf %9, %15 : vector<48x128xf32>
    %cst_8 = arith.constant 0.797884583 : f32
    %17 = vector.broadcast %cst_8 : f32 to vector<48x128xf32>
    %18 = arith.mulf %17, %16 : vector<48x128xf32>
    %19 = math.tanh %18 : vector<48x128xf32>
    %cst_9 = arith.constant 1.000000e+00 : f32
    %20 = vector.broadcast %cst_9 : f32 to vector<48x128xf32>
    %21 = arith.addf %20, %19 : vector<48x128xf32>
    %22 = arith.mulf %11, %21 : vector<48x128xf32>
    %c0_10 = arith.constant 0 : index
    %c0_11 = arith.constant 0 : index
    %23 = vector.load %arg7[%c0_10, %c0_11] : memref<48x128xf32, #tpu.memory_space<vmem>>, vector<48x128xf32>
    tpu.vector_store %arg7[%c0_10, %c0_11], %22 {strides = array<i32>} : memref<48x128xf32, #tpu.memory_space<vmem>>, vector<48x128xf32>,
    return
  }
  func.func @transform_0(%arg0: i32, %arg1: i32) -> (i32, i32) {
    %c0_i32 = arith.constant 0 : i32
    %c0_i32_0 = arith.constant 0 : i32
    return %arg0, %c0_i32 : i32, i32
  }
  func.func @transform_1(%arg0: i32, %arg1: i32) -> (i32, i32) {
    %c0_i32 = arith.constant 0 : i32
    %c0_i32_0 = arith.constant 0 : i32
    %c0_i32_1 = arith.constant 0 : i32
    return %c0_i32, %c0_i32_0 : i32, i32
  }
  func.func @transform_2(%arg0: i32, %arg1: i32) -> (i32, i32) {
    %c0_i32 = arith.constant 0 : i32
    %c0_i32_0 = arith.constant 0 : i32
    %c0_i32_1 = arith.constant 0 : i32
    return %c0_i32, %c0_i32_0 : i32, i32
  }
  func.func @transform_3(%arg0: i32, %arg1: i32) -> (i32, i32) {
    %c0_i32 = arith.constant 0 : i32
    %c0_i32_0 = arith.constant 0 : i32
    return %c0_i32, %arg1 : i32, i32
  }
  func.func @transform_4(%arg0: i32, %arg1: i32) -> (i32, i32) {
    %c0_i32 = arith.constant 0 : i32
    %c0_i32_0 = arith.constant 0 : i32
    return %c0_i32, %arg1 : i32, i32
  }
  func.func @transform_5(%arg0: i32, %arg1: i32) -> (i32, i32) {
    %c0_i32 = arith.constant 0 : i32
    return %arg0, %arg1 : i32, i32
  }
}

module attributes {stable_mosaic.version = 11 : i64} {
  func.func @_linear_residual_kernel(%arg0: i32, %arg1: i32, %arg2: memref<48x128xf32, #tpu.memory_space<vmem>>, %arg3: memref<128x32xbf16, #tpu.memory_space<vmem>>, %arg4: memref<1x32xf32, #tpu.memory_space<vmem>>, %arg5: memref<48x32xf32, #tpu.memory_space<vmem>>, %arg6: memref<48x32xf32, #tpu.memory_space<vmem>>) attributes {dimension_semantics = [#tpu.dimension_semantics<parallel>, #tpu.dimension_semantics<parallel>], iteration_bounds = array<i64: 1, 1>, scalar_prefetch = 0 : i64, scratch_operands = 0 : i64, tpu.core_type = #tpu.core_type<tc>, window_params = [{transform_indices = @transform_0, window_bounds = array<i64: 48, 128>}, {transform_indices = @transform_1, window_bounds = array<i64: 128, 32>}, {transform_indices = @transform_2, window_bounds = array<i64: 1, 32>}, {transform_indices = @transform_3, window_bounds = array<i64: 48, 32>}, {transform_indices = @transform_4, window_bounds = array<i64: 48, 32>}]} {
    %c0 = arith.constant 0 : index
    %c0_0 = arith.constant 0 : index
    %0 = vector.load %arg2[%c0, %c0_0] : memref<48x128xf32, #tpu.memory_space<vmem>>, vector<48x128xf32>
    %1 = arith.truncf %0 : vector<48x128xf32> to vector<48x128xbf16>
    %c0_1 = arith.constant 0 : index
    %c0_2 = arith.constant 0 : index
    %2 = vector.load %arg3[%c0_1, %c0_2] : memref<128x32xbf16, #tpu.memory_space<vmem>>, vector<128x32xbf16>
    %cst = arith.constant dense<0.000000e+00> : vector<48x32xf32>
    %3 = tpu.matmul %1, %2, %cst {dimension_numbers = #tpu.dot_dimension_numbers<[1], [0], [0], [1], [0, 0, 1, 1], [], []>} : vector<48x128xbf16>, vector<128x32xbf16>, vector<48x32xf32> -> vector<48x32xf32>
    %c0_3 = arith.constant 0 : index
    %c0_4 = arith.constant 0 : index
    %4 = vector.load %arg4[%c0_3, %c0_4] : memref<1x32xf32, #tpu.memory_space<vmem>>, vector<1x32xf32>
    %5 = vector.broadcast %4 : vector<1x32xf32> to vector<48x32xf32>
    %6 = arith.addf %3, %5 : vector<48x32xf32>
    %c0_5 = arith.constant 0 : index
    %c0_6 = arith.constant 0 : index
    %7 = vector.load %arg5[%c0_5, %c0_6] : memref<48x32xf32, #tpu.memory_space<vmem>>, vector<48x32xf32>
    %8 = arith.addf %6, %7 : vector<48x32xf32>
    %c0_7 = arith.constant 0 : index
    %c0_8 = arith.constant 0 : index
    %9 = vector.load %arg6[%c0_7, %c0_8] : memref<48x32xf32, #tpu.memory_space<vmem>>, vector<48x32xf32>
    tpu.vector_store %arg6[%c0_7, %c0_8], %8 {strides = array<i32>} : memref<48x32xf32, #tpu.memory_space<vmem>>, vector<48x32xf32>,
    return
  }
  func.func @transform_0(%arg0: i32, %arg1: i32) -> (i32, i32) {
    %c0_i32 = arith.constant 0 : i32
    %c0_i32_0 = arith.constant 0 : i32
    return %arg0, %c0_i32 : i32, i32
  }
  func.func @transform_1(%arg0: i32, %arg1: i32) -> (i32, i32) {
    %c0_i32 = arith.constant 0 : i32
    %c0_i32_0 = arith.constant 0 : i32
    return %c0_i32, %arg1 : i32, i32
  }
  func.func @transform_2(%arg0: i32, %arg1: i32) -> (i32, i32) {
    %c0_i32 = arith.constant 0 : i32
    %c0_i32_0 = arith.constant 0 : i32
    return %c0_i32, %arg1 : i32, i32
  }
  func.func @transform_3(%arg0: i32, %arg1: i32) -> (i32, i32) {
    %c0_i32 = arith.constant 0 : i32
    return %arg0, %arg1 : i32, i32
  }
  func.func @transform_4(%arg0: i32, %arg1: i32) -> (i32, i32) {
    %c0_i32 = arith.constant 0 : i32
    return %arg0, %arg1 : i32, i32
  }
}

module attributes {stable_mosaic.version = 11 : i64} {
  func.func @_layernorm_kernel(%arg0: i32, %arg1: memref<48x32xf32, #tpu.memory_space<vmem>>, %arg2: memref<1x32xf32, #tpu.memory_space<vmem>>, %arg3: memref<1x32xf32, #tpu.memory_space<vmem>>, %arg4: memref<48x32xf32, #tpu.memory_space<vmem>>) attributes {dimension_semantics = [#tpu.dimension_semantics<parallel>], iteration_bounds = array<i64: 1>, scalar_prefetch = 0 : i64, scratch_operands = 0 : i64, tpu.core_type = #tpu.core_type<tc>, window_params = [{transform_indices = @transform_0, window_bounds = array<i64: 48, 32>}, {pipeline_mode = #tpu.pipeline_mode<synchronous>, transform_indices = @transform_1, window_bounds = array<i64: 1, 32>}, {pipeline_mode = #tpu.pipeline_mode<synchronous>, transform_indices = @transform_2, window_bounds = array<i64: 1, 32>}, {transform_indices = @transform_3, window_bounds = array<i64: 48, 32>}]} {
    %c0 = arith.constant 0 : index
    %c0_0 = arith.constant 0 : index
    %0 = vector.load %arg1[%c0, %c0_0] : memref<48x32xf32, #tpu.memory_space<vmem>>, vector<48x32xf32>
    %cst = arith.constant dense<0.000000e+00> : vector<48xf32>
    %1 = vector.multi_reduction <add>, %0, %cst [1] : vector<48x32xf32> to vector<48xf32>
    %2 = vector.shape_cast %1 : vector<48xf32> to vector<48x1xf32>
    %cst_1 = arith.constant 3.200000e+01 : f32
    %3 = vector.broadcast %cst_1 : f32 to vector<48x1xf32>
    %4 = arith.divf %2, %3 : vector<48x1xf32>
    %5 = vector.broadcast %4 : vector<48x1xf32> to vector<48x32xf32>
    %6 = arith.subf %0, %5 : vector<48x32xf32>
    %7 = arith.mulf %6, %6 : vector<48x32xf32>
    %cst_2 = arith.constant dense<0.000000e+00> : vector<48xf32>
    %8 = vector.multi_reduction <add>, %7, %cst_2 [1] : vector<48x32xf32> to vector<48xf32>
    %9 = vector.shape_cast %8 : vector<48xf32> to vector<48x1xf32>
    %cst_3 = arith.constant 3.200000e+01 : f32
    %10 = vector.broadcast %cst_3 : f32 to vector<48x1xf32>
    %11 = arith.divf %9, %10 : vector<48x1xf32>
    %cst_4 = arith.constant 9.99999997E-7 : f32
    %12 = vector.broadcast %cst_4 : f32 to vector<48x1xf32>
    %13 = arith.addf %11, %12 : vector<48x1xf32>
    %14 = math.rsqrt %13 : vector<48x1xf32>
    %15 = vector.broadcast %14 : vector<48x1xf32> to vector<48x32xf32>
    %16 = arith.mulf %6, %15 : vector<48x32xf32>
    %c0_5 = arith.constant 0 : index
    %c0_6 = arith.constant 0 : index
    %17 = vector.load %arg2[%c0_5, %c0_6] : memref<1x32xf32, #tpu.memory_space<vmem>>, vector<1x32xf32>
    %18 = vector.broadcast %17 : vector<1x32xf32> to vector<48x32xf32>
    %19 = arith.mulf %16, %18 : vector<48x32xf32>
    %c0_7 = arith.constant 0 : index
    %c0_8 = arith.constant 0 : index
    %20 = vector.load %arg3[%c0_7, %c0_8] : memref<1x32xf32, #tpu.memory_space<vmem>>, vector<1x32xf32>
    %21 = vector.broadcast %20 : vector<1x32xf32> to vector<48x32xf32>
    %22 = arith.addf %19, %21 : vector<48x32xf32>
    %c0_9 = arith.constant 0 : index
    %c0_10 = arith.constant 0 : index
    %23 = vector.load %arg4[%c0_9, %c0_10] : memref<48x32xf32, #tpu.memory_space<vmem>>, vector<48x32xf32>
    tpu.vector_store %arg4[%c0_9, %c0_10], %22 {strides = array<i32>} : memref<48x32xf32, #tpu.memory_space<vmem>>, vector<48x32xf32>,
    return
  }
  func.func @transform_0(%arg0: i32) -> (i32, i32) {
    %c0_i32 = arith.constant 0 : i32
    %c0_i32_0 = arith.constant 0 : i32
    return %arg0, %c0_i32 : i32, i32
  }
  func.func @transform_1(%arg0: i32) -> (i32, i32) {
    %c0_i32 = arith.constant 0 : i32
    %c0_i32_0 = arith.constant 0 : i32
    %c0_i32_1 = arith.constant 0 : i32
    return %c0_i32, %c0_i32_0 : i32, i32
  }
  func.func @transform_2(%arg0: i32) -> (i32, i32) {
    %c0_i32 = arith.constant 0 : i32
    %c0_i32_0 = arith.constant 0 : i32
    %c0_i32_1 = arith.constant 0 : i32
    return %c0_i32, %c0_i32_0 : i32, i32
  }
  func.func @transform_3(%arg0: i32) -> (i32, i32) {
    %c0_i32 = arith.constant 0 : i32
    %c0_i32_0 = arith.constant 0 : i32
    return %arg0, %c0_i32 : i32, i32
  }
}

</mosaic_0001>

<bundles_post_ra>
// kernel: encoder_forward.32
= control target key start
LH: loop header
LB: loop body
LE: loop exit
PB: predicated region body
PF: predicated region fallthrough
CT: control target
= control target key end

     0   :  { %vm53_vm0 = vcmask 261120   ;;  %s308_s1 = inlined_call_operand.vmem [shape: bf16[32,32], index: 1, kind: input, shape index: {}]   ;;  %s309_s0 = inlined_call_operand.vmem [shape: f32[64,32], index: 0, kind: input, shape index: {}]   ;;  %s310_s2 = inlined_call_operand.vmem [shape: f32[1,32], index: 2, kind: input, shape index: {}]   ;;  %s311_s3 = inlined_call_operand.vmem [shape: f32[64,32], index: 3, kind: input, shape index: {}]   ;;  %s312_s4 = inlined_call_operand.vmem [shape: f32[64,32], index: 4, kind: output, shape index: {}]  }
   0x1   :  { %v188_v0 = vld [vmem:[%s308_s1] sm:$0xff]   ;;  %v189_v1 = vld [vmem:[%s308_s1 + $0x8] sm:$0xff]   ;;  %v20_v7 = vld [vmem:[%s309_s0 + $0x10] sm:$0xff] }
   0x2   :  { %172 = vmatprep.subr.bf16.mxu0 %v188_v0  ;;  %184 = vmatprep.subr.bf16.mxu1 %v188_v0  ;;  %v18_v2 = vld [vmem:[%s309_s0] sm:$0xff]  ;;  %v19_v3 = vld [vmem:[%s309_s0 + $0x8] sm:$0xff]  ;;  %v21_v8 = vld [vmem:[%s309_s0 + $0x18] sm:$0xff] }
   0x3   :  { %v22_v4 = vld [vmem:[%s309_s0 + $0x20] sm:$0xff]  ;;  %173 = vmatpush3.bf16.msra.mxu0 %v188_v0  ;;  %186 = vmatpush3.bf16.msra.mxu1 %v188_v0  ;;  %v26_v5 = vpack.c.bf16 %v19_v3, %v18_v2  ;;  %v23_v6 = vld [vmem:[%s309_s0 + $0x28] sm:$0xff]  ;;  %v24_v10 = vld [vmem:[%s309_s0 + $0x30] sm:$0xff]  ;;  %v27_v12 = vpack.c.bf16 %v21_v8, %v20_v7 }
   0x4   :  { %174 = vmatprep.subr.bf16.mxu0 %v189_v1  ;;  %185 = vmatprep.subr.bf16.mxu1 %v189_v1  ;;  %v28_v9 = vpack.c.bf16 %v23_v6, %v22_v4  ;;  %v25_v11 = vld [vmem:[%s309_s0 + $0x38] sm:$0xff]  ;;  %v159_v14 = vld [vmem:[%s310_s2] ss:$0 sm:$0xff]  ;;  %v133_v16 = vld [vmem:[%s311_s3 + $0x10] sm:$0xff] }
   0x5   :  { %176 = vmatprep.mubr.msk.bf16.mxu0 %vm53_vm0, %v26_v5  ;;  %v29_v13 = vpack.c.bf16 %v25_v11, %v24_v10  ;;  %v137_v18 = vld [vmem:[%s311_s3 + $0x30] sm:$0xff]  ;;  %v131_v22 = vld [vmem:[%s311_s3] sm:$0xff]  ;;  %v134_v28 = vld [vmem:[%s311_s3 + $0x18] sm:$0xff] }
   0x6   :  { %180 = vmatprep.mubr.msk.bf16.mxu1 %vm53_vm0, %v28_v9  ;;  %v135_v24 = vld [vmem:[%s311_s3 + $0x20] sm:$0xff]  ;;  %v138_v30 = vld [vmem:[%s311_s3 + $0x38] sm:$0xff]  ;;  %v132_v36 = vld [vmem:[%s311_s3 + $0x8] sm:$0xff] }
   0x7   :  { %175 = vmatpush3.bf16.msra.mxu0 %v189_v1  ;;  %187 = vmatpush3.bf16.msra.mxu1 %v189_v1  ;;  %v136_v38 = vld [vmem:[%s311_s3 + $0x28] sm:$0xff] }
   0xa   :  { %177 = vmatmul.mubr.msk.bf16.vlgmr.msra.gmra.mrb[0].mxu0 %vm53_vm0, %v27_v12  ;;  %181 = vmatmul.mubr.msk.bf16.vlgmr.msra.gmra.mrb[0].mxu1 %vm53_vm0, %v29_v13 }
  0xdd   :  { %v178_v15 = vpop.f32.mrb[0].mxu0  ;;  %v182_v17 = vpop.f32.mrb[0].mxu1 }
  0xde   :  { %v109_v19 = vadd.f32 %v178_v15, %v159_v14  ;;  %v125_v20 = vadd.f32 %v182_v17, %v159_v14  ;;  %v100_v21 = vpop.f32.mrb[1].mxu0  ;;  %v116_v23 = vpop.f32.mrb[1].mxu1 }
  0xdf   :  { %v101_v25 = vadd.f32 %v159_v14, %v100_v21  ;;  %v117_v26 = vadd.f32 %v159_v14, %v116_v23  ;;  %v179_v27 = vpop.f32.mrb[2].mxu0  ;;  %v183_v29 = vpop.f32.mrb[2].mxu1 }
  0xe0   :  { %v141_v31 = vadd.f32 %v133_v16, %v109_v19  ;;  %v145_v32 = vadd.f32 %v137_v18, %v125_v20  ;;  %v112_v33 = vadd.f32 %v179_v27, %v159_v14  ;;  %v128_v34 = vadd.f32 %v183_v29, %v159_v14  ;;  %v103_v35 = vpop.f32.mrb[3].mxu0  ;;  %v119_v37 = vpop.f32.mrb[3].mxu1 }
  0xe1   :  { %v139_v39 = vadd.f32 %v131_v22, %v101_v25  ;;  %v143_v40 = vadd.f32 %v135_v24, %v117_v26  ;;  %v104_v41 = vadd.f32 %v159_v14, %v103_v35  ;;  %v120_v42 = vadd.f32 %v159_v14, %v119_v37 }
  0xe2   :  { %149 = vst.msk [vmem:[%s312_s4 + $0x10] sm:$0xff] %vm53_vm0, %v141_v31  ;;  %153 = vst.msk [vmem:[%s312_s4 + $0x30] sm:$0xff] %vm53_vm0, %v145_v32  ;;  %v142_v43 = vadd.f32 %v134_v28, %v112_v33  ;;  %v146_v44 = vadd.f32 %v138_v30, %v128_v34 }
  0xe3   :  { %147 = vst.msk [vmem:[%s312_s4] sm:$0xff] %vm53_vm0, %v139_v39  ;;  %151 = vst.msk [vmem:[%s312_s4 + $0x20] sm:$0xff] %vm53_vm0, %v143_v40  ;;  %v140_v45 = vadd.f32 %v132_v36, %v104_v41  ;;  %v144_v46 = vadd.f32 %v136_v38, %v120_v42 }
  0xe4   :  { %150 = vst.msk [vmem:[%s312_s4 + $0x18] sm:$0xff] %vm53_vm0, %v142_v43  ;;  %154 = vst.msk [vmem:[%s312_s4 + $0x38] sm:$0xff] %vm53_vm0, %v146_v44 }
  0xe5   :  { %148 = vst.msk [vmem:[%s312_s4 + $0x8] sm:$0xff] %vm53_vm0, %v140_v45  ;;  %152 = vst.msk [vmem:[%s312_s4 + $0x28] sm:$0xff] %vm53_vm0, %v144_v46 }

// kernel: encoder_forward.30
= control target key start
LH: loop header
LB: loop body
LE: loop exit
PB: predicated region body
PF: predicated region fallthrough
CT: control target
= control target key end

     0   :  { %vm33_vm0 = vcmask 261120   ;;  %vm290_vm1 = vcmask 785408   ;;  %s521_s0 = inlined_call_operand.vmem [shape: f32[64,32], index: 0, kind: input, shape index: {}]   ;;  %s522_s3 = inlined_call_operand.vmem [shape: bf16[32,96], index: 3, kind: input, shape index: {}]   ;;  %s523_s1 = inlined_call_operand.vmem [shape: f32[1,32], index: 1, kind: input, shape index: {}]   ;;  %s524_s2 = inlined_call_operand.vmem [shape: f32[1,32], index: 2, kind: input, shape index: {}]   ;;  %s525_s4 = inlined_call_operand.vmem [shape: f32[1,96], index: 4, kind: input, shape index: {}]   ;;  %s526_s5 = inlined_call_operand.vmem [shape: f32[64,96], index: 5, kind: output, shape index: {}]  }
   0x1   :  { %v25_v0 = vld [vmem:[%s521_s0] sm:$0xff]  ;;  %v26_v2 = vld [vmem:[%s521_s0 + $0x8] sm:$0xff]  ;;  %v27_v8 = vld [vmem:[%s521_s0 + $0x10] sm:$0xff] }
   0x2   :  { %v29_v1 = vld [vmem:[%s521_s0 + $0x20] sm:$0xff]  ;;  %v34_v3 = vsel %vm33_vm0, %v25_v0, 0.0  ;;  %v30_v5 = vld [vmem:[%s521_s0 + $0x28] sm:$0xff]  ;;  %v37_v6 = vsel %vm33_vm0, %v26_v2, 0.0  ;;  %v28_v9 = vld [vmem:[%s521_s0 + $0x18] sm:$0xff]  ;;  %v40_v10 = vsel %vm33_vm0, %v27_v8, 0.0 }
   0x3   :  { %v46_v4 = vsel %vm33_vm0, %v29_v1, 0.0  ;;  %35 = vadd.xlane.f32.xlu0 %v34_v3  ;;  %v49_v7 = vsel %vm33_vm0, %v30_v5, 0.0  ;;  %v43_v11 = vsel %vm33_vm0, %v28_v9, 0.0  ;;  %v31_v12 = vld [vmem:[%s521_s0 + $0x30] sm:$0xff]  ;;  %v32_v13 = vld [vmem:[%s521_s0 + $0x38] sm:$0xff]  ;;  %v334_v56 = vld [vmem:[%s522_s3] sm:$0xff]  }
   0x4   :  { %47 = vadd.xlane.f32.xlu1 %v46_v4  ;;  %v52_v14 = vsel %vm33_vm0, %v31_v12, 0.0  ;;  %v55_v15 = vsel %vm33_vm0, %v32_v13, 0.0  ;;  %318 = vmatprep.subr.bf16.mxu0 %v334_v56  ;;  %v335_v57 = vld [vmem:[%s522_s3 + $0x8] sm:$0xff]  }
   0x5   :  { %330 = vmatprep.subr.bf16.mxu1 %v334_v56  ;;  %319 = vmatpush3.bf16.msra.mxu0 %v334_v56 }
   0x6   :  { %332 = vmatpush3.bf16.msra.mxu1 %v334_v56  ;;  %320 = vmatprep.subr.bf16.mxu0 %v335_v57 }
   0x7   :  { %38 = vadd.xlane.f32.xlu0 %v37_v6  ;;  %331 = vmatprep.subr.bf16.mxu1 %v335_v57 }
   0x8   :  { %50 = vadd.xlane.f32.xlu1 %v49_v7 }
   0x9   :  { %321 = vmatpush3.bf16.msra.mxu0 %v335_v57 }
   0xa   :  { %333 = vmatpush3.bf16.msra.mxu1 %v335_v57 }
   0xb   :  { %41 = vadd.xlane.f32.xlu0 %v40_v10 }
   0xc   :  { %44 = vadd.xlane.f32.xlu1 %v43_v11 }
   0xf   :  { %53 = vadd.xlane.f32.xlu0 %v52_v14  ;;  %v303_v14 = vld [vmem:[%s523_s1] ss:$0 sm:$0xff] }
  0x10   :  { %56 = vadd.xlane.f32.xlu1 %v55_v15 }
  0x90   :  { %v36_v16 = vpop.xlane.xlu0 %35 }
  0x91   :  { %v48_v17 = vpop.xlane.xlu1 %47  ;;  %v59_v18 = vmul.f32 0.03125, %v36_v16 }
  0x92   :  { %v63_v19 = vmul.f32 0.03125, %v48_v17 }
  0x93   :  { %v414_v20 = vsub.f32 %v25_v0, %v59_v18 }
  0x94   :  { %v416_v21 = vsub.f32 %v29_v1, %v63_v19  ;;  %v39_v22 = vpop.xlane.xlu0 %38  ;;  %v304_v19 = vld [vmem:[%s524_s2] ss:$0 sm:$0xff] }
  0x95   :  { %v51_v23 = vpop.xlane.xlu1 %50  ;;  %v60_v24 = vmul.f32 0.03125, %v39_v22  ;;  %v75_v26 = vmul.f32 %v414_v20, %v414_v20 }
  0x96   :  { %v64_v25 = vmul.f32 0.03125, %v51_v23  ;;  %v79_v27 = vmul.f32 %v416_v21, %v416_v21 }
  0x97   :  { %v422_v28 = vsub.f32 %v26_v2, %v60_v24  ;;  %v83_v30 = vsel %vm33_vm0, %v75_v26, 0.0 }
  0x98   :  { %v424_v29 = vsub.f32 %v30_v5, %v64_v25  ;;  %84 = vadd.xlane.f32.xlu0 %v83_v30  ;;  %v42_v31 = vpop.xlane.xlu0 %41  ;;  %v95_v33 = vsel %vm33_vm0, %v79_v27, 0.0 }
  0x99   :  { %v45_v32 = vpop.xlane.xlu1 %44  ;;  %v61_v34 = vmul.f32 0.03125, %v42_v31  ;;  %v76_v36 = vmul.f32 %v422_v28, %v422_v28 }
  0x9a   :  { %v62_v35 = vmul.f32 0.03125, %v45_v32  ;;  %v80_v37 = vmul.f32 %v424_v29, %v424_v29 }
  0x9b   :  { %v432_v38 = vsub.f32 %v27_v8, %v61_v34  ;;  %v86_v40 = vsel %vm33_vm0, %v76_v36, 0.0 }
  0x9c   :  { %v434_v39 = vsub.f32 %v28_v9, %v62_v35  ;;  %96 = vadd.xlane.f32.xlu0 %v95_v33  ;;  %87 = vadd.xlane.f32.xlu1 %v86_v40  ;;  %v54_v41 = vpop.xlane.xlu0 %53  ;;  %v98_v43 = vsel %vm33_vm0, %v80_v37, 0.0 }
  0x9d   :  { %v57_v42 = vpop.xlane.xlu1 %56  ;;  %v65_v44 = vmul.f32 0.03125, %v54_v41  ;;  %v77_v46 = vmul.f32 %v432_v38, %v432_v38 }
  0x9e   :  { %v66_v45 = vmul.f32 0.03125, %v57_v42  ;;  %v78_v47 = vmul.f32 %v434_v39, %v434_v39 }
  0x9f   :  { %v442_v48 = vsub.f32 %v31_v12, %v65_v44  ;;  %v89_v50 = vsel %vm33_vm0, %v77_v46, 0.0 }
  0xa0   :  { %v444_v49 = vsub.f32 %v32_v13, %v66_v45  ;;  %99 = vadd.xlane.f32.xlu1 %v98_v43  ;;  %90 = vadd.xlane.f32.xlu0 %v89_v50  ;;  %v92_v51 = vsel %vm33_vm0, %v78_v47, 0.0 }
  0xa1   :  { %v81_v52 = vmul.f32 %v442_v48, %v442_v48 }
  0xa2   :  { %v82_v53 = vmul.f32 %v444_v49, %v444_v49 }
  0xa3   :  { %v101_v54 = vsel %vm33_vm0, %v81_v52, 0.0 }
  0xa4   :  { %93 = vadd.xlane.f32.xlu1 %v92_v51  ;;  %102 = vadd.xlane.f32.xlu0 %v101_v54  ;;  %v104_v55 = vsel %vm33_vm0, %v82_v53, 0.0 }
  0xa8   :  { %105 = vadd.xlane.f32.xlu1 %v104_v55 }
 0x125   :  { %v85_v58 = vpop.xlane.xlu0 %84 }
 0x126   :  { %v107_v59 = vmul.f32 0.03125, %v85_v58 }
 0x128   :  { %v115_v60 = vadd.f32 1e-06, %v107_v59 }
 0x129   :  { %v88_v61 = vpop.xlane.xlu1 %87  ;;  %v97_v62 = vpop.xlane.xlu0 %96 }
 0x12a   :  { %336 = vrsqrt.f32 %v115_v60  ;;  %v108_v63 = vmul.f32 0.03125, %v88_v61  ;;  %v111_v0 = vmul.f32 0.03125, %v97_v62 }
 0x12c   :  { %v116_v1 = vadd.f32 1e-06, %v108_v63  ;;  %v119_v2 = vadd.f32 1e-06, %v111_v0  ;;  %v305_v0 = vld [vmem:[%s525_s4] ss:$0 sm:$0xff] }
 0x12d   :  { %v100_v3 = vpop.xlane.xlu1 %99  ;;  %v91_v4 = vpop.xlane.xlu0 %90 }
 0x12e   :  { %338 = vrsqrt.f32 %v116_v1  ;;  %v112_v5 = vmul.f32 0.03125, %v100_v3  ;;  %v109_v6 = vmul.f32 0.03125, %v91_v4 }
 0x12f   :  { %340 = vrsqrt.f32 %v119_v2 }
 0x130   :  { %v120_v7 = vadd.f32 1e-06, %v112_v5  ;;  %v117_v8 = vadd.f32 1e-06, %v109_v6 }
 0x131   :  { %v94_v9 = vpop.xlane.xlu1 %93  ;;  %v103_v10 = vpop.xlane.xlu0 %102 }
 0x132   :  { %342 = vrsqrt.f32 %v120_v7  ;;  %v110_v11 = vmul.f32 0.03125, %v94_v9  ;;  %v113_v12 = vmul.f32 0.03125, %v103_v10 }
 0x133   :  { %344 = vrsqrt.f32 %v117_v8 }
 0x134   :  { %v337_v13 = vpop.eup %336  ;;  %v118_v15 = vadd.f32 1e-06, %v110_v11  ;;  %v121_v16 = vadd.f32 1e-06, %v113_v12 }
 0x135   :  { %v131_v17 = vmul.f32 %v337_v13, %v414_v20  ;;  %v106_v18 = vpop.xlane.xlu1 %105 }
 0x136   :  { %346 = vrsqrt.f32 %v118_v15  ;;  %v114_v22 = vmul.f32 0.03125, %v106_v18 }
 0x137   :  { %v146_v23 = vmul.f32 %v303_v14, %v131_v17  ;;  %348 = vrsqrt.f32 %v121_v16 }
 0x138   :  { %v339_v24 = vpop.eup %338  ;;  %v122_v25 = vadd.f32 1e-06, %v114_v22 }
 0x139   :  { %v341_v26 = vpop.eup %340  ;;  %v161_v27 = vadd.f32 %v304_v19, %v146_v23  ;;  %v132_v30 = vmul.f32 %v339_v24, %v422_v28 }
 0x13a   :  { %v135_v31 = vmul.f32 %v341_v26, %v416_v21  ;;  %350 = vrsqrt.f32 %v122_v25 }
 0x13b   :  { %169 = vst.msk [vmem:[#allocation2] sm:$0xff] %vm33_vm0, %v161_v27  ;;  %v147_v20 = vmul.f32 %v303_v14, %v132_v30 }
 0x13c   :  { %v343_v32 = vpop.eup %342  ;;  %v150_v33 = vmul.f32 %v303_v14, %v135_v31 }
 0x13d   :  { %v345_v34 = vpop.eup %344  ;;  %v162_v35 = vadd.f32 %v304_v19, %v147_v20  ;;  %v136_v36 = vmul.f32 %v343_v32, %v424_v29 }
 0x13e   :  { %v165_v37 = vadd.f32 %v304_v19, %v150_v33  ;;  %v133_v40 = vmul.f32 %v345_v34, %v432_v38 }
 0x13f   :  { %170 = vst.msk [vmem:[#allocation2 + $0x8] sm:$0xff] %vm33_vm0, %v162_v35  ;;  %v151_v41 = vmul.f32 %v303_v14, %v136_v36 }
 0x140   :  { %v347_v42 = vpop.eup %346  ;;  %173 = vst.msk [vmem:[#allocation2 + $0x20] sm:$0xff] %vm33_vm0, %v165_v37  ;;  %v148_v21 = vmul.f32 %v303_v14, %v133_v40 }
 0x141   :  { %v349_v28 = vpop.eup %348  ;;  %v166_v43 = vadd.f32 %v304_v19, %v151_v41  ;;  %v134_v44 = vmul.f32 %v347_v42, %v434_v39 }
 0x142   :  { %v163_v45 = vadd.f32 %v304_v19, %v148_v21  ;;  %v137_v46 = vmul.f32 %v349_v28, %v442_v48  ;;  %v177_v53 = vld [vmem:[#allocation2] sm:$0xff] }
 0x143   :  { %174 = vst.msk [vmem:[#allocation2 + $0x28] sm:$0xff] %vm33_vm0, %v166_v43  ;;  %v149_v29 = vmul.f32 %v303_v14, %v134_v44 }
 0x144   :  { %v351_v47 = vpop.eup %350  ;;  %171 = vst.msk [vmem:[#allocation2 + $0x10] sm:$0xff] %vm33_vm0, %v163_v45  ;;  %v152_v38 = vmul.f32 %v303_v14, %v137_v46 }
 0x145   :  { %v164_v50 = vadd.f32 %v304_v19, %v149_v29  ;;  %v138_v51 = vmul.f32 %v351_v47, %v444_v49 }
 0x146   :  { %v167_v52 = vadd.f32 %v304_v19, %v152_v38  ;;  %v178_v54 = vld [vmem:[#allocation2 + $0x8] sm:$0xff] }
 0x147   :  { %172 = vst.msk [vmem:[#allocation2 + $0x18] sm:$0xff] %vm33_vm0, %v164_v50  ;;  %v153_v55 = vmul.f32 %v303_v14, %v138_v51  ;;  %v185_v39 = vpack.c.bf16 %v178_v54, %v177_v53  ;;  %v181_v56 = vld [vmem:[#allocation2 + $0x20] sm:$0xff] }
 0x148   :  { %175 = vst.msk [vmem:[#allocation2 + $0x30] sm:$0xff] %vm33_vm0, %v167_v52 }
 0x149   :  { %v168_v48 = vadd.f32 %v304_v19, %v153_v55  ;;  %322 = vmatprep.mubr.msk.bf16.mxu0 %vm33_vm0, %v185_v39 }
 0x14a   :  { %v182_v57 = vld [vmem:[#allocation2 + $0x28] sm:$0xff] }
 0x14b   :  { %176 = vst.msk [vmem:[#allocation2 + $0x38] sm:$0xff] %vm33_vm0, %v168_v48  ;;  %v187_v58 = vpack.c.bf16 %v182_v57, %v181_v56  ;;  %v179_v49 = vld [vmem:[#allocation2 + $0x10] sm:$0xff] }
 0x14d   :  { %326 = vmatprep.mubr.msk.bf16.mxu1 %vm33_vm0, %v187_v58 }
 0x14e   :  { %v180_v59 = vld [vmem:[#allocation2 + $0x18] sm:$0xff] }
 0x14f   :  { %v186_v60 = vpack.c.bf16 %v180_v59, %v179_v49  ;;  %v183_v61 = vld [vmem:[#allocation2 + $0x30] sm:$0xff] }
 0x151   :  { %323 = vmatmul.mubr.msk.bf16.vlgmr.msra.gmra.mrb[0].mxu0 %vm33_vm0, %v186_v60 }
 0x152   :  { %v184_v62 = vld [vmem:[#allocation2 + $0x38] sm:$0xff] }
 0x153   :  { %v188_v63 = vpack.c.bf16 %v184_v62, %v183_v61 }
 0x155   :  { %327 = vmatmul.mubr.msk.bf16.vlgmr.msra.gmra.mrb[0].mxu1 %vm33_vm0, %v188_v63 }
 0x224   :  { %v324_v1 = vpop.f32.mrb[0].mxu0 }
 0x225   :  { %v268_v2 = vadd.f32 %v324_v1, %v305_v0  ;;  %v259_v3 = vpop.f32.mrb[1].mxu0 }
 0x226   :  { %v260_v4 = vadd.f32 %v305_v0, %v259_v3  ;;  %v325_v5 = vpop.f32.mrb[2].mxu0 }
 0x227   :  { %293 = vst.msk [vmem:[%s526_s5 + $0x10] sm:$0xff] %vm290_vm1, %v268_v2  ;;  %v271_v6 = vadd.f32 %v325_v5, %v305_v0  ;;  %v262_v7 = vpop.f32.mrb[3].mxu0 }
 0x228   :  { %291 = vst.msk [vmem:[%s526_s5] sm:$0xff] %vm290_vm1, %v260_v4  ;;  %v263_v8 = vadd.f32 %v305_v0, %v262_v7  ;;  %v328_v9 = vpop.f32.mrb[0].mxu1 }
 0x229   :  { %294 = vst.msk [vmem:[%s526_s5 + $0x18] sm:$0xff] %vm290_vm1, %v271_v6  ;;  %v284_v10 = vadd.f32 %v328_v9, %v305_v0  ;;  %v275_v11 = vpop.f32.mrb[1].mxu1 }
 0x22a   :  { %292 = vst.msk [vmem:[%s526_s5 + $0x8] sm:$0xff] %vm290_vm1, %v263_v8  ;;  %v276_v12 = vadd.f32 %v305_v0, %v275_v11  ;;  %v329_v13 = vpop.f32.mrb[2].mxu1 }
 0x22b   :  { %297 = vst.msk [vmem:[%s526_s5 + $0x30] sm:$0xff] %vm290_vm1, %v284_v10  ;;  %v287_v14 = vadd.f32 %v329_v13, %v305_v0  ;;  %v278_v15 = vpop.f32.mrb[3].mxu1 }
 0x22c   :  { %295 = vst.msk [vmem:[%s526_s5 + $0x20] sm:$0xff] %vm290_vm1, %v276_v12  ;;  %v279_v16 = vadd.f32 %v305_v0, %v278_v15 }
 0x22d   :  { %298 = vst.msk [vmem:[%s526_s5 + $0x38] sm:$0xff] %vm290_vm1, %v287_v14 }
 0x22e   :  { %296 = vst.msk [vmem:[%s526_s5 + $0x28] sm:$0xff] %vm290_vm1, %v279_v16 }

// kernel: encoder_forward.33
= control target key start
LH: loop header
LB: loop body
LE: loop exit
PB: predicated region body
PF: predicated region fallthrough
CT: control target
= control target key end

     0   :  { %vm33_vm0 = vcmask 261120   ;;  %s656_s0 = inlined_call_operand.vmem [shape: f32[64,32], index: 0, kind: input, shape index: {}]   ;;  %s657_s3 = inlined_call_operand.vmem [shape: bf16[32,128], index: 3, kind: input, shape index: {}]   ;;  %s658_s1 = inlined_call_operand.vmem [shape: f32[1,32], index: 1, kind: input, shape index: {}]   ;;  %s659_s2 = inlined_call_operand.vmem [shape: f32[1,32], index: 2, kind: input, shape index: {}]   ;;  %s660_s4 = inlined_call_operand.vmem [shape: f32[1,128], index: 4, kind: input, shape index: {}]   ;;  %s661_s5 = inlined_call_operand.vmem [shape: f32[64,128], index: 5, kind: output, shape index: {}]  }
   0x1   :  { %v25_v0 = vld [vmem:[%s656_s0] sm:$0xff]  ;;  %v26_v2 = vld [vmem:[%s656_s0 + $0x8] sm:$0xff]  ;;  %v27_v8 = vld [vmem:[%s656_s0 + $0x10] sm:$0xff] }
   0x2   :  { %v29_v1 = vld [vmem:[%s656_s0 + $0x20] sm:$0xff]  ;;  %v34_v3 = vsel %vm33_vm0, %v25_v0, 0.0  ;;  %v30_v5 = vld [vmem:[%s656_s0 + $0x28] sm:$0xff]  ;;  %v37_v6 = vsel %vm33_vm0, %v26_v2, 0.0  ;;  %v28_v9 = vld [vmem:[%s656_s0 + $0x18] sm:$0xff]  ;;  %v40_v10 = vsel %vm33_vm0, %v27_v8, 0.0 }
   0x3   :  { %v46_v4 = vsel %vm33_vm0, %v29_v1, 0.0  ;;  %35 = vadd.xlane.f32.xlu0 %v34_v3  ;;  %v49_v7 = vsel %vm33_vm0, %v30_v5, 0.0  ;;  %v43_v11 = vsel %vm33_vm0, %v28_v9, 0.0  ;;  %v31_v12 = vld [vmem:[%s656_s0 + $0x30] sm:$0xff]  ;;  %v32_v13 = vld [vmem:[%s656_s0 + $0x38] sm:$0xff]  ;;  %v405_v56 = vld [vmem:[%s657_s3] sm:$0xff]  }
   0x4   :  { %47 = vadd.xlane.f32.xlu1 %v46_v4  ;;  %v52_v14 = vsel %vm33_vm0, %v31_v12, 0.0  ;;  %v55_v15 = vsel %vm33_vm0, %v32_v13, 0.0  ;;  %389 = vmatprep.subr.bf16.mxu0 %v405_v56  ;;  %v406_v57 = vld [vmem:[%s657_s3 + $0x8] sm:$0xff]  }
   0x5   :  { %401 = vmatprep.subr.bf16.mxu1 %v405_v56  ;;  %390 = vmatpush3.bf16.msra.mxu0 %v405_v56 }
   0x6   :  { %403 = vmatpush3.bf16.msra.mxu1 %v405_v56  ;;  %391 = vmatprep.subr.bf16.mxu0 %v406_v57 }
   0x7   :  { %38 = vadd.xlane.f32.xlu0 %v37_v6  ;;  %402 = vmatprep.subr.bf16.mxu1 %v406_v57 }
   0x8   :  { %50 = vadd.xlane.f32.xlu1 %v49_v7 }
   0x9   :  { %392 = vmatpush3.bf16.msra.mxu0 %v406_v57 }
   0xa   :  { %404 = vmatpush3.bf16.msra.mxu1 %v406_v57 }
   0xb   :  { %41 = vadd.xlane.f32.xlu0 %v40_v10 }
   0xc   :  { %44 = vadd.xlane.f32.xlu1 %v43_v11 }
   0xf   :  { %53 = vadd.xlane.f32.xlu0 %v52_v14  ;;  %v374_v14 = vld [vmem:[%s658_s1] ss:$0 sm:$0xff] }
  0x10   :  { %56 = vadd.xlane.f32.xlu1 %v55_v15 }
  0x90   :  { %v36_v16 = vpop.xlane.xlu0 %35 }
  0x91   :  { %v48_v17 = vpop.xlane.xlu1 %47  ;;  %v59_v18 = vmul.f32 0.03125, %v36_v16 }
  0x92   :  { %v63_v19 = vmul.f32 0.03125, %v48_v17 }
  0x93   :  { %v501_v20 = vsub.f32 %v25_v0, %v59_v18 }
  0x94   :  { %v503_v21 = vsub.f32 %v29_v1, %v63_v19  ;;  %v39_v22 = vpop.xlane.xlu0 %38  ;;  %v375_v19 = vld [vmem:[%s659_s2] ss:$0 sm:$0xff] }
  0x95   :  { %v51_v23 = vpop.xlane.xlu1 %50  ;;  %v60_v24 = vmul.f32 0.03125, %v39_v22  ;;  %v75_v26 = vmul.f32 %v501_v20, %v501_v20 }
  0x96   :  { %v64_v25 = vmul.f32 0.03125, %v51_v23  ;;  %v79_v27 = vmul.f32 %v503_v21, %v503_v21 }
  0x97   :  { %v509_v28 = vsub.f32 %v26_v2, %v60_v24  ;;  %v83_v30 = vsel %vm33_vm0, %v75_v26, 0.0 }
  0x98   :  { %v511_v29 = vsub.f32 %v30_v5, %v64_v25  ;;  %84 = vadd.xlane.f32.xlu0 %v83_v30  ;;  %v42_v31 = vpop.xlane.xlu0 %41  ;;  %v95_v33 = vsel %vm33_vm0, %v79_v27, 0.0 }
  0x99   :  { %v45_v32 = vpop.xlane.xlu1 %44  ;;  %v61_v34 = vmul.f32 0.03125, %v42_v31  ;;  %v76_v36 = vmul.f32 %v509_v28, %v509_v28 }
  0x9a   :  { %v62_v35 = vmul.f32 0.03125, %v45_v32  ;;  %v80_v37 = vmul.f32 %v511_v29, %v511_v29 }
  0x9b   :  { %v519_v38 = vsub.f32 %v27_v8, %v61_v34  ;;  %v86_v40 = vsel %vm33_vm0, %v76_v36, 0.0 }
  0x9c   :  { %v521_v39 = vsub.f32 %v28_v9, %v62_v35  ;;  %96 = vadd.xlane.f32.xlu0 %v95_v33  ;;  %87 = vadd.xlane.f32.xlu1 %v86_v40  ;;  %v54_v41 = vpop.xlane.xlu0 %53  ;;  %v98_v43 = vsel %vm33_vm0, %v80_v37, 0.0 }
  0x9d   :  { %v57_v42 = vpop.xlane.xlu1 %56  ;;  %v65_v44 = vmul.f32 0.03125, %v54_v41  ;;  %v77_v46 = vmul.f32 %v519_v38, %v519_v38 }
  0x9e   :  { %v66_v45 = vmul.f32 0.03125, %v57_v42  ;;  %v78_v47 = vmul.f32 %v521_v39, %v521_v39 }
  0x9f   :  { %v529_v48 = vsub.f32 %v31_v12, %v65_v44  ;;  %v89_v50 = vsel %vm33_vm0, %v77_v46, 0.0 }
  0xa0   :  { %v531_v49 = vsub.f32 %v32_v13, %v66_v45  ;;  %99 = vadd.xlane.f32.xlu1 %v98_v43  ;;  %90 = vadd.xlane.f32.xlu0 %v89_v50  ;;  %v92_v51 = vsel %vm33_vm0, %v78_v47, 0.0 }
  0xa1   :  { %v81_v52 = vmul.f32 %v529_v48, %v529_v48 }
  0xa2   :  { %v82_v53 = vmul.f32 %v531_v49, %v531_v49 }
  0xa3   :  { %v101_v54 = vsel %vm33_vm0, %v81_v52, 0.0 }
  0xa4   :  { %93 = vadd.xlane.f32.xlu1 %v92_v51  ;;  %102 = vadd.xlane.f32.xlu0 %v101_v54  ;;  %v104_v55 = vsel %vm33_vm0, %v82_v53, 0.0 }
  0xa8   :  { %105 = vadd.xlane.f32.xlu1 %v104_v55 }
 0x125   :  { %v85_v58 = vpop.xlane.xlu0 %84 }
 0x126   :  { %v107_v59 = vmul.f32 0.03125, %v85_v58 }
 0x128   :  { %v115_v60 = vadd.f32 1e-06, %v107_v59 }
 0x129   :  { %v88_v61 = vpop.xlane.xlu1 %87  ;;  %v97_v62 = vpop.xlane.xlu0 %96 }
 0x12a   :  { %407 = vrsqrt.f32 %v115_v60  ;;  %v108_v63 = vmul.f32 0.03125, %v88_v61  ;;  %v111_v0 = vmul.f32 0.03125, %v97_v62 }
 0x12c   :  { %v116_v1 = vadd.f32 1e-06, %v108_v63  ;;  %v119_v2 = vadd.f32 1e-06, %v111_v0  ;;  %v376_v0 = vld [vmem:[%s660_s4] ss:$0 sm:$0xff] }
 0x12d   :  { %v100_v3 = vpop.xlane.xlu1 %99  ;;  %v91_v4 = vpop.xlane.xlu0 %90 }
 0x12e   :  { %409 = vrsqrt.f32 %v116_v1  ;;  %v112_v5 = vmul.f32 0.03125, %v100_v3  ;;  %v109_v6 = vmul.f32 0.03125, %v91_v4 }
 0x12f   :  { %411 = vrsqrt.f32 %v119_v2 }
 0x130   :  { %v120_v7 = vadd.f32 1e-06, %v112_v5  ;;  %v117_v8 = vadd.f32 1e-06, %v109_v6 }
 0x131   :  { %v94_v9 = vpop.xlane.xlu1 %93  ;;  %v103_v10 = vpop.xlane.xlu0 %102 }
 0x132   :  { %413 = vrsqrt.f32 %v120_v7  ;;  %v110_v11 = vmul.f32 0.03125, %v94_v9  ;;  %v113_v12 = vmul.f32 0.03125, %v103_v10 }
 0x133   :  { %415 = vrsqrt.f32 %v117_v8 }
 0x134   :  { %v408_v13 = vpop.eup %407  ;;  %v118_v15 = vadd.f32 1e-06, %v110_v11  ;;  %v121_v16 = vadd.f32 1e-06, %v113_v12 }
 0x135   :  { %v131_v17 = vmul.f32 %v408_v13, %v501_v20  ;;  %v106_v18 = vpop.xlane.xlu1 %105 }
 0x136   :  { %417 = vrsqrt.f32 %v118_v15  ;;  %v114_v22 = vmul.f32 0.03125, %v106_v18 }
 0x137   :  { %v146_v23 = vmul.f32 %v374_v14, %v131_v17  ;;  %419 = vrsqrt.f32 %v121_v16 }
 0x138   :  { %v410_v24 = vpop.eup %409  ;;  %v122_v25 = vadd.f32 1e-06, %v114_v22 }
 0x139   :  { %v412_v26 = vpop.eup %411  ;;  %v161_v27 = vadd.f32 %v375_v19, %v146_v23  ;;  %v132_v30 = vmul.f32 %v410_v24, %v509_v28 }
 0x13a   :  { %v135_v31 = vmul.f32 %v412_v26, %v503_v21  ;;  %421 = vrsqrt.f32 %v122_v25 }
 0x13b   :  { %169 = vst.msk [vmem:[#allocation2] sm:$0xff] %vm33_vm0, %v161_v27  ;;  %v147_v20 = vmul.f32 %v374_v14, %v132_v30 }
 0x13c   :  { %v414_v32 = vpop.eup %413  ;;  %v150_v33 = vmul.f32 %v374_v14, %v135_v31 }
 0x13d   :  { %v416_v34 = vpop.eup %415  ;;  %v162_v35 = vadd.f32 %v375_v19, %v147_v20  ;;  %v136_v36 = vmul.f32 %v414_v32, %v511_v29 }
 0x13e   :  { %v165_v37 = vadd.f32 %v375_v19, %v150_v33  ;;  %v133_v40 = vmul.f32 %v416_v34, %v519_v38 }
 0x13f   :  { %170 = vst.msk [vmem:[#allocation2 + $0x8] sm:$0xff] %vm33_vm0, %v162_v35  ;;  %v151_v41 = vmul.f32 %v374_v14, %v136_v36 }
 0x140   :  { %v418_v42 = vpop.eup %417  ;;  %173 = vst.msk [vmem:[#allocation2 + $0x20] sm:$0xff] %vm33_vm0, %v165_v37  ;;  %v148_v21 = vmul.f32 %v374_v14, %v133_v40 }
 0x141   :  { %v420_v28 = vpop.eup %419  ;;  %v166_v43 = vadd.f32 %v375_v19, %v151_v41  ;;  %v134_v44 = vmul.f32 %v418_v42, %v521_v39 }
 0x142   :  { %v163_v45 = vadd.f32 %v375_v19, %v148_v21  ;;  %v137_v46 = vmul.f32 %v420_v28, %v529_v48  ;;  %v177_v53 = vld [vmem:[#allocation2] sm:$0xff] }
 0x143   :  { %174 = vst.msk [vmem:[#allocation2 + $0x28] sm:$0xff] %vm33_vm0, %v166_v43  ;;  %v149_v29 = vmul.f32 %v374_v14, %v134_v44 }
 0x144   :  { %v422_v47 = vpop.eup %421  ;;  %171 = vst.msk [vmem:[#allocation2 + $0x10] sm:$0xff] %vm33_vm0, %v163_v45  ;;  %v152_v38 = vmul.f32 %v374_v14, %v137_v46 }
 0x145   :  { %v164_v50 = vadd.f32 %v375_v19, %v149_v29  ;;  %v138_v51 = vmul.f32 %v422_v47, %v531_v49 }
 0x146   :  { %v167_v52 = vadd.f32 %v375_v19, %v152_v38  ;;  %v178_v54 = vld [vmem:[#allocation2 + $0x8] sm:$0xff] }
 0x147   :  { %172 = vst.msk [vmem:[#allocation2 + $0x18] sm:$0xff] %vm33_vm0, %v164_v50  ;;  %v153_v55 = vmul.f32 %v374_v14, %v138_v51  ;;  %v185_v39 = vpack.c.bf16 %v178_v54, %v177_v53  ;;  %v181_v56 = vld [vmem:[#allocation2 + $0x20] sm:$0xff] }
 0x148   :  { %175 = vst.msk [vmem:[#allocation2 + $0x30] sm:$0xff] %vm33_vm0, %v167_v52 }
 0x149   :  { %v168_v48 = vadd.f32 %v375_v19, %v153_v55  ;;  %393 = vmatprep.mubr.msk.bf16.mxu0 %vm33_vm0, %v185_v39 }
 0x14a   :  { %v182_v57 = vld [vmem:[#allocation2 + $0x28] sm:$0xff] }
 0x14b   :  { %176 = vst.msk [vmem:[#allocation2 + $0x38] sm:$0xff] %vm33_vm0, %v168_v48  ;;  %v187_v58 = vpack.c.bf16 %v182_v57, %v181_v56  ;;  %v179_v49 = vld [vmem:[#allocation2 + $0x10] sm:$0xff] }
 0x14d   :  { %397 = vmatprep.mubr.msk.bf16.mxu1 %vm33_vm0, %v187_v58 }
 0x14e   :  { %v180_v59 = vld [vmem:[#allocation2 + $0x18] sm:$0xff] }
 0x14f   :  { %v186_v60 = vpack.c.bf16 %v180_v59, %v179_v49  ;;  %v183_v61 = vld [vmem:[#allocation2 + $0x30] sm:$0xff] }
 0x151   :  { %394 = vmatmul.mubr.msk.bf16.vlgmr.msra.gmra.mrb[0].mxu0 %vm33_vm0, %v186_v60 }
 0x152   :  { %v184_v62 = vld [vmem:[#allocation2 + $0x38] sm:$0xff] }
 0x153   :  { %v188_v63 = vpack.c.bf16 %v184_v62, %v183_v61 }
 0x155   :  { %398 = vmatmul.mubr.msk.bf16.vlgmr.msra.gmra.mrb[0].mxu1 %vm33_vm0, %v188_v63 }
 0x224   :  { %v395_v1 = vpop.f32.mrb[0].mxu0 }
 0x225   :  { %v576_v2 = vadd.f32 %v395_v1, %v376_v0  ;;  %v259_v3 = vpop.f32.mrb[1].mxu0 }
 0x226   :  { %v578_v4 = vadd.f32 %v376_v0, %v259_v3  ;;  %v396_v5 = vpop.f32.mrb[2].mxu0 }
 0x227   :  { %v300_v6 = vmul.f32 0.044715, %v576_v2  ;;  %v581_v7 = vadd.f32 %v396_v5, %v376_v0  ;;  %v262_v8 = vpop.f32.mrb[3].mxu0  ;;  %v292_v59 = vmul.f32 0.5, %v576_v2 }
 0x228   :  { %v298_v9 = vmul.f32 0.044715, %v578_v4  ;;  %v584_v10 = vadd.f32 %v376_v0, %v262_v8  ;;  %v399_v11 = vpop.f32.mrb[0].mxu1  ;;  %v290_v62 = vmul.f32 0.5, %v578_v4 }
 0x229   :  { %v308_v12 = vmul.f32 %v300_v6, %v576_v2  ;;  %v301_v13 = vmul.f32 0.044715, %v581_v7  ;;  %v588_v14 = vadd.f32 %v399_v11, %v376_v0  ;;  %v275_v15 = vpop.f32.mrb[1].mxu1  ;;  %v293_v3 = vmul.f32 0.5, %v581_v7 }
 0x22a   :  { %v306_v16 = vmul.f32 %v298_v9, %v578_v4  ;;  %v299_v17 = vmul.f32 0.044715, %v584_v10  ;;  %v592_v18 = vadd.f32 %v376_v0, %v275_v15  ;;  %v400_v19 = vpop.f32.mrb[2].mxu1  ;;  %v291_v9 = vmul.f32 0.5, %v584_v10 }
 0x22b   :  { %v316_v22 = vmul.f32 %v308_v12, %v576_v2  ;;  %v309_v23 = vmul.f32 %v301_v13, %v581_v7  ;;  %v304_v24 = vmul.f32 0.044715, %v588_v14  ;;  %v278_v25 = vpop.f32.mrb[3].mxu1  ;;  %v603_v33 = vadd.f32 %v400_v19, %v376_v0 }
 0x22c   :  { %v314_v26 = vmul.f32 %v306_v16, %v578_v4  ;;  %v307_v27 = vmul.f32 %v299_v17, %v584_v10  ;;  %v302_v30 = vmul.f32 0.044715, %v592_v18  ;;  %v610_v42 = vadd.f32 %v376_v0, %v278_v25 }
 0x22d   :  { %v324_v31 = vadd.f32 %v316_v22, %v576_v2  ;;  %v317_v20 = vmul.f32 %v309_v23, %v581_v7  ;;  %v312_v32 = vmul.f32 %v304_v24, %v588_v14  ;;  %v305_v44 = vmul.f32 0.044715, %v603_v33 }
 0x22e   :  { %v322_v34 = vadd.f32 %v314_v26, %v578_v4  ;;  %v315_v35 = vmul.f32 %v307_v27, %v584_v10  ;;  %v310_v36 = vmul.f32 %v302_v30, %v592_v18  ;;  %v303_v51 = vmul.f32 0.044715, %v610_v42 }
 0x22f   :  { %v332_v37 = vmul.f32 0.7978846, %v324_v31  ;;  %v325_v40 = vadd.f32 %v317_v20, %v581_v7  ;;  %v320_v41 = vmul.f32 %v312_v32, %v588_v14  ;;  %v313_v38 = vmul.f32 %v305_v44, %v603_v33 }
 0x230   :  { %v330_v21 = vmul.f32 0.7978846, %v322_v34  ;;  %v323_v28 = vadd.f32 %v315_v35, %v584_v10  ;;  %v318_v43 = vmul.f32 %v310_v36, %v592_v18  ;;  %v311_v54 = vmul.f32 %v303_v51, %v610_v42 }
 0x231   :  { %423 = vtanh.f32 %v332_v37  ;;  %v333_v45 = vmul.f32 0.7978846, %v325_v40  ;;  %v328_v46 = vadd.f32 %v320_v41, %v588_v14  ;;  %v321_v53 = vmul.f32 %v313_v38, %v603_v33 }
 0x232   :  { %425 = vtanh.f32 %v330_v21  ;;  %v331_v29 = vmul.f32 0.7978846, %v323_v28  ;;  %v326_v47 = vadd.f32 %v318_v43, %v592_v18  ;;  %v319_v39 = vmul.f32 %v311_v54, %v610_v42 }
 0x233   :  { %427 = vtanh.f32 %v333_v45  ;;  %v336_v50 = vmul.f32 0.7978846, %v328_v46  ;;  %v329_v55 = vadd.f32 %v321_v53, %v603_v33  ;;  %v296_v4 = vmul.f32 0.5, %v588_v14 }
 0x234   :  { %429 = vtanh.f32 %v331_v29  ;;  %v334_v52 = vmul.f32 0.7978846, %v326_v47  ;;  %v327_v56 = vadd.f32 %v319_v39, %v610_v42  ;;  %v294_v15 = vmul.f32 0.5, %v592_v18 }
 0x235   :  { %431 = vtanh.f32 %v336_v50  ;;  %v337_v48 = vmul.f32 0.7978846, %v329_v55  ;;  %v297_v18 = vmul.f32 0.5, %v603_v33  ;;  %v295_v24 = vmul.f32 0.5, %v610_v42 }
 0x236   :  { %433 = vtanh.f32 %v334_v52  ;;  %v335_v58 = vmul.f32 0.7978846, %v327_v56 }
 0x237   :  { %435 = vtanh.f32 %v337_v48 }
 0x238   :  { %437 = vtanh.f32 %v335_v58 }
 0x23b   :  { %v424_v57 = vpop.eup %423 }
 0x23c   :  { %v426_v49 = vpop.eup %425  ;;  %v348_v60 = vadd.f32 1.0, %v424_v57 }
 0x23d   :  { %v428_v61 = vpop.eup %427  ;;  %v346_v63 = vadd.f32 1.0, %v426_v49 }
 0x23e   :  { %v430_v0 = vpop.eup %429  ;;  %v356_v1 = vmul.f32 %v348_v60, %v292_v59  ;;  %v349_v5 = vadd.f32 1.0, %v428_v61 }
 0x23f   :  { %v432_v6 = vpop.eup %431  ;;  %v354_v8 = vmul.f32 %v346_v63, %v290_v62  ;;  %v347_v11 = vadd.f32 1.0, %v430_v0 }
 0x240   :  { %v434_v12 = vpop.eup %433  ;;  %364 = vst [vmem:[%s661_s5 + $0x10] sm:$0xff] %v356_v1  ;;  %v357_v2 = vmul.f32 %v349_v5, %v293_v3  ;;  %v352_v13 = vadd.f32 1.0, %v432_v6 }
 0x241   :  { %362 = vst [vmem:[%s661_s5] sm:$0xff] %v354_v8  ;;  %v355_v7 = vmul.f32 %v347_v11, %v291_v9  ;;  %v350_v16 = vadd.f32 1.0, %v434_v12  ;;  %v436_v14 = vpop.eup %435 }
 0x242   :  { %365 = vst [vmem:[%s661_s5 + $0x18] sm:$0xff] %v357_v2  ;;  %v360_v10 = vmul.f32 %v352_v13, %v296_v4  ;;  %v353_v19 = vadd.f32 1.0, %v436_v14  ;;  %v438_v22 = vpop.eup %437 }
 0x243   :  { %363 = vst [vmem:[%s661_s5 + $0x8] sm:$0xff] %v355_v7  ;;  %v358_v17 = vmul.f32 %v350_v16, %v294_v15  ;;  %v351_v25 = vadd.f32 1.0, %v438_v22 }
 0x244   :  { %368 = vst [vmem:[%s661_s5 + $0x30] sm:$0xff] %v360_v10  ;;  %v361_v23 = vmul.f32 %v353_v19, %v297_v18 }
 0x245   :  { %366 = vst [vmem:[%s661_s5 + $0x20] sm:$0xff] %v358_v17  ;;  %v359_v26 = vmul.f32 %v351_v25, %v295_v24 }
 0x246   :  { %369 = vst [vmem:[%s661_s5 + $0x38] sm:$0xff] %v361_v23 }
 0x247   :  { %367 = vst [vmem:[%s661_s5 + $0x28] sm:$0xff] %v359_v26 }

// kernel: encoder_forward.31
= control target key start
LH: loop header
LB: loop body
LE: loop exit
PB: predicated region body
PF: predicated region fallthrough
CT: control target
= control target key end

     0   :  { %s931_s9 = smov 0   ;;  %s933_s10 = smov 0   ;;  %s1047_s0 = inlined_call_operand.vmem [shape: f32[8,8,96], index: 0, kind: input, shape index: {}]   ;;  %s1048_s1 = inlined_call_operand.vmem [shape: f32[8,1,8], index: 1, kind: input, shape index: {}]   ;;  %s1049_s2 = inlined_call_operand.vmem [shape: f32[8,8,32], index: 2, kind: output, shape index: {}]  }
   0x1   :  { %s935_s11 = smov 0  }
   0x2 LB: > { %s24_s12 = sadd.s32 1, %s894_s10  ;;  %p742_p0 = scmp.ge.s32.totalorder %s898_s11, 1  ;;  %s898_s11 = sphi %s935_s11, %s12_s11   ;;  %s894_s10 = sphi %s933_s10, %s1051_s10   ;;  %s890_s9 = sphi %s931_s9, %s1050_s9  }
   0x3   : > { %p26_p1 = scmp.ge.s32.totalorder %s24_s12, 8  ;;  %p133_p2 = scmp.lt.s32.totalorder %s898_s11, 9 }
   0x5   : > { %s1053_s12 = smov (%p26_p1, %s24_s12), 0  ;;  %p134_p3 = pnand %p742_p0, %p133_p2 }
   0x6   : > { %p159_p4 = scmp.lt.s32.totalorder (!%p134_p3), %s890_s9, 7  ;;  %v900_v0 = vmov (!%p134_p3), 0.0   ;;  %vm901_vm0 = vmmov (!%p134_p3), 0   ;;  %s902_s17 = smov (!%p134_p3), 96   ;;  %vm184_vm1 = vcmask (!%p134_p3), 64512   ;;  %vm256_vm2 = vcmask (!%p134_p3), 1043456  }
   0x7   : > { %137 = sbr.rel (%p134_p3) target bundleno = 1605 (0x645), region = 28  ;;  %772 = vmatprep.subr.bf16.mxu0 (!%p134_p3), %v900_v0  ;;  %774 = vmatprep.mubr.msk.bf16.mxu0 (!%p134_p3), %vm901_vm0, %v900_v0  ;;  %s903_s18 = smov (!%p134_p3), 64   ;;  %vm650_vm3 = vcmask (!%p134_p3), 130048   ;;  %vm652_vm4 = vcmask (!%p134_p3), 195584   ;;  %vm654_vm5 = vcmask (!%p134_p3), 261120  }
   0x8   : > { %778 = vmatprep.subr.bf16.mxu1 (!%p134_p3), %v900_v0  ;;  %780 = vmatprep.mubr.msk.bf16.mxu1 (!%p134_p3), %vm901_vm0, %v900_v0  ;;  %s904_s19 = smov (!%p134_p3), 88   ;;  %s905_s23 = smov (!%p134_p3), 72  }
   0x9   : > { %s906_s24 = smov (!%p134_p3), 120   ;;  %s907_s25 = smov (!%p134_p3), 80  }
   0xa   : > { %s908_s26 = smov (!%p134_p3), 112   ;;  %s909_s27 = smov (!%p134_p3), 104  }
   0xb   : > { %s910_s28 = smov (!%p134_p3), 56   ;;  %s911_s29 = smov (!%p134_p3), 48  }
   0xc   : > { %s912_s30 = smov (!%p134_p3), 40   ;;  %s913_s3 = smov (!%p134_p3), 8  }
   0xd   : > { %s914_s4 = smov (!%p134_p3), 16   ;;  %s915_s5 = smov (!%p134_p3), 24  }
   0xe   : > { %s1055_s9 = smov (!%p159_p4, %s890_s9), 7 }
   0xf   : > { %s743_s13 = sshll.u32 %s1055_s9, 3  ;;  %s165_s22 = scalar_lea.vmem %s1048_s1, %s1055_s9 }
  0x10   : > { %s162_s16 = scalar_lea.vmem %s1047_s0, %s743_s13  ;;  %v978_v6 = vld [vmem:[%s165_s22] ss:$0 sm:$0xff]  ;;  %s172_s8 = scalar_lea.vmem %s1049_s2, %s743_s13 }
  0x11   : > { %v177_v1 = vld [vmem:[%s162_s16] sm:$0xff] }
  0x12   : > { %v963_v2 = vpack.c.bf16 %v177_v1, %v177_v1 }
  0x14   : > { %182 = vrot.lane.b32.xlu0 %v963_v2, %s902_s17  ;;  %251 = vrot.lane.b32.xlu1 %v963_v2, %s903_s18 }
  0x18   : > { %303 = vrot.lane.b32.xlu1 %v963_v2, %s904_s19 }
  0x86   : > { %v183_v3 = vpop.permute.xlu0 %182  ;;  %v252_v13 = vpop.permute.xlu1 %251 }
  0x87   : > { %v189_v4 = vsel %vm184_vm1, %v183_v3, 0  ;;  %v258_v14 = vsel %vm256_vm2, %v252_v13, 0 }
  0x88   : > { %773 = vmatpush3.bf16.xpose.msra.mxu0 %v189_v4  ;;  %779 = vmatpush3.bf16.msra.mxu1 %v258_v14 }
  0x89   : > { %790 = vmatprep.subr.bf16.mxu0 %v900_v0  ;;  %784 = vmatprep.subr.bf16.mxu1 %v900_v0 }
  0x8a   : > { %v304_v20 = vpop.permute.xlu1 %303 }
  0x8b   : > { %v309_v26 = vsel %vm184_vm1, %v304_v20, 0 }
  0x8f   : > { %775 = vmatmul.mubr.msk.bf16.vlgmr.msra.gmra.mrb[0].mxu0 %vm184_vm1, %v963_v2 }
  0x90   : > { %792 = vmatprep.mubr.msk.bf16.mxu0 %vm901_vm0, %v900_v0 }
 0x162   : > { %v225_v5 = vpop.f32.mrb[0].mxu0 }
 0x163   : > { %v231_v7 = vmul.f32 0.35355338, %v225_v5  ;;  %v776_v8 = vpop.f32.mrb[1].mxu0 }
 0x164   : > { %v228_v9 = vpop.f32.mrb[2].mxu0 }
 0x165   : > { %v777_v10 = vpop.f32.mrb[3].mxu0  ;;  %v238_v11 = vadd.f32 %v978_v6, %v231_v7 }
 0x167   : > { %v239_v12 = vsel %vm184_vm1, %v238_v11, -inf }
 0x168   : > { %240 = vmax.xlane.f32.xlu0 %v239_v12 }
 0x17e   : > { %527 = vrot.lane.b32.xlu0 %v963_v2, %s905_s23 }
 0x1f5   : > { %v241_v15 = vpop.xlane.xlu0 %240 }
 0x1f6   : > { %v242_v16 = vsub.f32 %v238_v11, %v241_v15 }
 0x1f8   : > { %v243_v17 = vmul.f32 1.442695, %v242_v16 }
 0x1f9   : > { %v528_v29 = vpop.permute.xlu0 %527 }
 0x1fa   : > { %860 = vpow2.f32 %v243_v17  ;;  %v533_v31 = vsel %vm184_vm1, %v528_v29, 0 }
 0x204   : > { %v861_v18 = vpop.eup %860 }
 0x205   : > { %v245_v19 = vsel %vm184_vm1, %v861_v18, 0.0 }
 0x206   : > { %246 = vadd.xlane.f32.xlu1 %v245_v19 }
 0x217   : > { %301 = vrot.lane.b32.xlu1 %v963_v2, %s906_s24 }
 0x21b   : > { %415 = vrot.lane.b32.xlu1 %v963_v2, %s907_s25 }
 0x21f   : > { %413 = vrot.lane.b32.xlu1 %v963_v2, %s908_s26 }
 0x223   : > { %525 = vrot.lane.b32.xlu1 %v963_v2, %s909_s27 }
 0x293   : > { %v247_v21 = vpop.xlane.xlu1 %246 }
 0x294   : > { %862 = vrcp.f32 %v247_v21 }
 0x297   : > { %v302_v24 = vpop.permute.xlu1 %301 }
 0x29b   : > { %v416_v27 = vpop.permute.xlu1 %415 }
 0x29c   : > { %v421_v28 = vsel %vm184_vm1, %v416_v27, 0 }
 0x29e   : > { %v863_v22 = vpop.eup %862 }
 0x29f   : > { %v249_v23 = vmul.f32 %v863_v22, %v861_v18  ;;  %v414_v30 = vpop.permute.xlu1 %413 }
 0x2a1   : > { %v250_v25 = vpack.c.bf16 %v249_v23, %v249_v23 }
 0x2a3   : > { %781 = vmatmul.mubr.msk.bf16.vlgmr.msra.gmra.mrb[0].mxu1 %vm184_vm1, %v250_v25  ;;  %v526_v32 = vpop.permute.xlu1 %525 }
 0x2a4   : > { %785 = vmatpush3.bf16.xpose.msra.mxu1 %v309_v26  ;;  %786 = vmatprep.mubr.msk.bf16.mxu1 %vm901_vm0, %v900_v0 }
 0x2a5   : > { %796 = vmatprep.subr.bf16.mxu1 %v900_v0 }
 0x2ab   : > { %787 = vmatmul.mubr.msk.bf16.vlgmr.msra.gmra.mrb[4].mxu1 %vm184_vm1, %v302_v24 }
 0x2ac   : > { %797 = vmatpush3.bf16.xpose.msra.mxu1 %v421_v28  ;;  %798 = vmatprep.mubr.msk.bf16.mxu1 %vm901_vm0, %v900_v0 }
 0x2ad   : > { %808 = vmatprep.subr.bf16.mxu1 %v900_v0 }
 0x2b3   : > { %799 = vmatmul.mubr.msk.bf16.vlgmr.msra.gmra.mrb[8].mxu1 %vm184_vm1, %v414_v30 }
 0x2b4   : > { %809 = vmatpush3.bf16.xpose.msra.mxu1 %v533_v31  ;;  %810 = vmatprep.mubr.msk.bf16.mxu1 %vm901_vm0, %v900_v0 }
 0x2bb   : > { %811 = vmatmul.mubr.msk.bf16.vlgmr.msra.gmra.mrb[12].mxu1 %vm184_vm1, %v526_v32 }
 0x376   : > { %v1005_v33 = vpop.f32.mrb[0].mxu1 }
 0x377   : > { %v782_v34 = vpop.f32.mrb[1].mxu1 }
 0x378   : > { %v297_v35 = vpop.f32.mrb[2].mxu1 }
 0x379   : > { %v783_v36 = vpop.f32.mrb[3].mxu1 }
 0x37e   : > { %v345_v37 = vpop.f32.mrb[4].mxu1 }
 0x37f   : > { %v351_v38 = vmul.f32 0.35355338, %v345_v37  ;;  %v788_v39 = vpop.f32.mrb[5].mxu1 }
 0x380   : > { %v348_v40 = vpop.f32.mrb[6].mxu1 }
 0x381   : > { %v789_v41 = vpop.f32.mrb[7].mxu1  ;;  %v352_v42 = vadd.f32 %v978_v6, %v351_v38 }
 0x383   : > { %v353_v43 = vsel %vm184_vm1, %v352_v42, -inf }
 0x384   : > { %354 = vmax.xlane.f32.xlu1 %v353_v43 }
 0x386   : > { %v457_v44 = vpop.f32.mrb[8].mxu1 }
 0x387   : > { %v463_v45 = vmul.f32 0.35355338, %v457_v44  ;;  %v800_v46 = vpop.f32.mrb[9].mxu1 }
 0x388   : > { %v460_v47 = vpop.f32.mrb[10].mxu1 }
 0x389   : > { %v464_v48 = vadd.f32 %v978_v6, %v463_v45  ;;  %v801_v49 = vpop.f32.mrb[11].mxu1 }
 0x38b   : > { %v465_v50 = vsel %vm184_vm1, %v464_v48, -inf }
 0x38c   : > { %466 = vmax.xlane.f32.xlu0 %v465_v50 }
 0x38e   : > { %v569_v51 = vpop.f32.mrb[12].mxu1 }
 0x38f   : > { %v575_v52 = vmul.f32 0.35355338, %v569_v51  ;;  %v812_v53 = vpop.f32.mrb[13].mxu1 }
 0x390   : > { %v572_v54 = vpop.f32.mrb[14].mxu1 }
 0x391   : > { %v576_v55 = vadd.f32 %v978_v6, %v575_v52  ;;  %v813_v56 = vpop.f32.mrb[15].mxu1 }
 0x393   : > { %v577_v57 = vsel %vm184_vm1, %v576_v55, -inf }
 0x394   : > { %578 = vmax.xlane.f32.xlu1 %v577_v57 }
 0x411   : > { %v355_v58 = vpop.xlane.xlu1 %354 }
 0x412   : > { %v356_v59 = vsub.f32 %v352_v42, %v355_v58 }
 0x414   : > { %v357_v60 = vmul.f32 1.442695, %v356_v59 }
 0x416   : > { %864 = vpow2.f32 %v357_v60 }
 0x419   : > { %v467_v6 = vpop.xlane.xlu0 %466 }
 0x41a   : > { %v468_v7 = vsub.f32 %v464_v48, %v467_v6 }
 0x41c   : > { %v469_v8 = vmul.f32 1.442695, %v468_v7 }
 0x420   : > { %v865_v61 = vpop.eup %864 }
 0x421   : > { %v579_v62 = vpop.xlane.xlu1 %578  ;;  %v359_v63 = vsel %vm184_vm1, %v865_v61, 0.0 }
 0x422   : > { %v580_v1 = vsub.f32 %v576_v55, %v579_v62  ;;  %360 = vadd.xlane.f32.xlu1 %v359_v63 }
 0x424   : > { %v581_v3 = vmul.f32 1.442695, %v580_v1 }
 0x426   : > { %866 = vpow2.f32 %v581_v3 }
 0x427   : > { %868 = vpow2.f32 %v469_v8 }
 0x430   : > { %v867_v4 = vpop.eup %866 }
 0x431   : > { %v583_v5 = vsel %vm184_vm1, %v867_v4, 0.0  ;;  %v869_v9 = vpop.eup %868 }
 0x432   : > { %584 = vadd.xlane.f32.xlu0 %v583_v5  ;;  %v471_v10 = vsel %vm184_vm1, %v869_v9, 0.0 }
 0x433   : > { %365 = vrot.lane.b32.xlu1 %v963_v2, %s910_s28 }
 0x448   : > { %477 = vrot.lane.b32.xlu0 %v963_v2, %s911_s29 }
 0x457   : > { %472 = vadd.xlane.f32.xlu1 %v471_v10 }
 0x468   : > { %589 = vrot.lane.b32.xlu1 %v963_v2, %s912_s30 }
 0x4af   : > { %v361_v11 = vpop.xlane.xlu1 %360 }
 0x4b0   : > { %870 = vrcp.f32 %v361_v11 }
 0x4b3   : > { %v366_v12 = vpop.permute.xlu1 %365 }
 0x4b4   : > { %v371_v13 = vsel %vm256_vm2, %v366_v12, 0 }
 0x4b5   : > { %791 = vmatpush3.bf16.msra.mxu0 %v371_v13 }
 0x4b6   : > { %802 = vmatprep.subr.bf16.mxu0 %v900_v0 }
 0x4ba   : > { %v871_v14 = vpop.eup %870 }
 0x4bb   : > { %v363_v15 = vmul.f32 %v871_v14, %v865_v61 }
 0x4bd   : > { %v364_v16 = vpack.c.bf16 %v363_v15, %v363_v15 }
 0x4bf   : > { %793 = vmatmul.mubr.msk.bf16.vlgmr.msra.gmra.mrb[4].mxu0 %vm184_vm1, %v364_v16  ;;  %v585_v17 = vpop.xlane.xlu0 %584 }
 0x4c0   : > { %804 = vmatprep.mubr.msk.bf16.mxu0 %vm901_vm0, %v900_v0 }
 0x4c3   : > { %v478_v18 = vpop.permute.xlu0 %477 }
 0x4c4   : > { %v483_v2 = vsel %vm256_vm2, %v478_v18, 0 }
 0x4c5   : > { %803 = vmatpush3.bf16.msra.mxu0 %v483_v2 }
 0x4c6   : > { %814 = vmatprep.subr.bf16.mxu0 %v900_v0 }
 0x4e4   : > { %v473_v19 = vpop.xlane.xlu1 %472 }
 0x4e5   : > { %872 = vrcp.f32 %v473_v19 }
 0x4e6   : > { %874 = vrcp.f32 %v585_v17 }
 0x4e8   : > { %v590_v21 = vpop.permute.xlu1 %589 }
 0x4e9   : > { %v595_v23 = vsel %vm256_vm2, %v590_v21, 0 }
 0x4ef   : > { %v873_v20 = vpop.eup %872 }
 0x4f0   : > { %v475_v22 = vmul.f32 %v873_v20, %v869_v9  ;;  %v875_v25 = vpop.eup %874 }
 0x4f1   : > { %v587_v26 = vmul.f32 %v875_v25, %v867_v4 }
 0x4f2   : > { %v476_v24 = vpack.c.bf16 %v475_v22, %v475_v22 }
 0x4f3   : > { %v588_v27 = vpack.c.bf16 %v587_v26, %v587_v26 }
 0x4f4   : > { %805 = vmatmul.mubr.msk.bf16.vlgmr.msra.gmra.mrb[8].mxu0 %vm184_vm1, %v476_v24 }
 0x4f5   : > { %815 = vmatpush3.bf16.msra.mxu0 %v595_v23  ;;  %816 = vmatprep.mubr.msk.bf16.mxu0 %vm901_vm0, %v900_v0 }
 0x4fc   : > { %817 = vmatmul.mubr.msk.bf16.vlgmr.msra.gmra.mrb[12].mxu0 %vm184_vm1, %v588_v27 }
 0x592   : > { %v407_v28 = vpop.f32.mrb[4].mxu0 }
 0x593   : > { %638 = vrot.lane.b32.xlu1 %v407_v28, %s913_s3  ;;  %v794_v29 = vpop.f32.mrb[5].mxu0 }
 0x594   : > { %v410_v30 = vpop.f32.mrb[6].mxu0 }
 0x595   : > { %v795_v31 = vpop.f32.mrb[7].mxu0 }
 0x5c7   : > { %v519_v32 = vpop.f32.mrb[8].mxu0 }
 0x5c8   : > { %642 = vrot.lane.b32.xlu0 %v519_v32, %s914_s4  ;;  %v806_v34 = vpop.f32.mrb[9].mxu0 }
 0x5c9   : > { %v522_v35 = vpop.f32.mrb[10].mxu0 }
 0x5ca   : > { %v807_v36 = vpop.f32.mrb[11].mxu0 }
 0x5cf   : > { %v631_v37 = vpop.f32.mrb[12].mxu0 }
 0x5d0   : > { %646 = vrot.lane.b32.xlu1 %v631_v37, %s915_s5  ;;  %v818_v0 = vpop.f32.mrb[13].mxu0 }
 0x5d1   : > { %v634_v38 = vpop.f32.mrb[14].mxu0 }
 0x5d2   : > { %v819_v39 = vpop.f32.mrb[15].mxu0 }
 0x605   : > { %v639_v40 = vpop.permute.xlu1 %638 }
 0x606   : > { %v649_v42 = vsel %vm184_vm1, %v1005_v33, %v639_v40 }
 0x63a   : > { %v643_v41 = vpop.permute.xlu0 %642 }
 0x63b   : > { %v651_v43 = vsel %vm650_vm3, %v649_v42, %v643_v41 }
 0x642   : > { %v647_v44 = vpop.permute.xlu1 %646 }
 0x643   : > { %v653_v45 = vsel %vm652_vm4, %v651_v43, %v647_v44 }
 0x644   : > { %655 = vst.msk [vmem:[%s172_s8] sm:$0xff] %vm654_vm5, %v653_v45 }
 0x645 PF: > { %s12_s11 = sadd.s32 1, %s898_s11   ;;  %s1050_s9 = smov %s894_s10 }
 0x646   : > { %p9_p5 = scmp.ge.s32.totalorder %s12_s11, 10   ;;  %s1051_s10 = smov %s1053_s12 }
 0x648   :  { %11 = sbr.rel (!%p9_p5) target bundleno = 2 (0x2), region = 62 }

// kernel: encoder_forward.34
= control target key start
LH: loop header
LB: loop body
LE: loop exit
PB: predicated region body
PF: predicated region fallthrough
CT: control target
= control target key end

     0   :  { %vm182_vm0 = vcmask 261120   ;;  %s396_s1 = inlined_call_operand.vmem [shape: bf16[128,32], index: 1, kind: input, shape index: {}]   ;;  %s397_s0 = inlined_call_operand.vmem [shape: f32[64,128], index: 0, kind: input, shape index: {}]   ;;  %s398_s2 = inlined_call_operand.vmem [shape: f32[1,32], index: 2, kind: input, shape index: {}]   ;;  %s399_s3 = inlined_call_operand.vmem [shape: f32[64,32], index: 3, kind: input, shape index: {}]   ;;  %s400_s4 = inlined_call_operand.vmem [shape: f32[64,32], index: 4, kind: output, shape index: {}]  }
   0x1   :  { %v256_v0 = vld [vmem:[%s396_s1] sm:$0xff]   ;;  %v257_v1 = vld [vmem:[%s396_s1 + $0x8] sm:$0xff]   ;;  %v258_v2 = vld [vmem:[%s396_s1 + $0x10] sm:$0xff]  }
   0x2   :  { %216 = vmatprep.subr.bf16.mxu0 %v256_v0  ;;  %240 = vmatprep.subr.bf16.mxu1 %v256_v0  ;;  %v259_v3 = vld [vmem:[%s396_s1 + $0x18] sm:$0xff]   ;;  %v18_v4 = vld [vmem:[%s397_s0] sm:$0xff]  ;;  %v19_v5 = vld [vmem:[%s397_s0 + $0x8] sm:$0xff] }
   0x3   :  { %217 = vmatpush3.bf16.msra.mxu0 %v256_v0  ;;  %248 = vmatpush3.bf16.msra.mxu1 %v256_v0  ;;  %v22_v6 = vld [vmem:[%s397_s0 + $0x20] sm:$0xff]  ;;  %v26_v7 = vpack.c.bf16 %v19_v5, %v18_v4  ;;  %v23_v8 = vld [vmem:[%s397_s0 + $0x28] sm:$0xff]  ;;  %v262_v12 = vld [vmem:[%s396_s1 + $0x30] sm:$0xff]  }
   0x4   :  { %218 = vmatprep.subr.bf16.mxu0 %v257_v1  ;;  %241 = vmatprep.subr.bf16.mxu1 %v257_v1  ;;  %v28_v9 = vpack.c.bf16 %v23_v8, %v22_v6  ;;  %v260_v10 = vld [vmem:[%s396_s1 + $0x20] sm:$0xff]   ;;  %v261_v11 = vld [vmem:[%s396_s1 + $0x28] sm:$0xff]   ;;  %v263_v13 = vld [vmem:[%s396_s1 + $0x38] sm:$0xff]  }
   0x5   :  { %232 = vmatprep.mubr.bf16.mxu0 %v26_v7  ;;  %v20_v14 = vld [vmem:[%s397_s0 + $0x10] sm:$0xff]  ;;  %v21_v15 = vld [vmem:[%s397_s0 + $0x18] sm:$0xff]  ;;  %v195_v20 = vld [vmem:[%s398_s2] ss:$0 sm:$0xff] }
   0x6   :  { %236 = vmatprep.mubr.bf16.mxu1 %v28_v9  ;;  %v24_v16 = vld [vmem:[%s397_s0 + $0x30] sm:$0xff]  ;;  %v25_v17 = vld [vmem:[%s397_s0 + $0x38] sm:$0xff]  ;;  %v27_v18 = vpack.c.bf16 %v21_v15, %v20_v14  ;;  %v166_v28 = vld [vmem:[%s399_s3] sm:$0xff] }
   0x7   :  { %219 = vmatpush3.bf16.msra.mxu0 %v257_v1  ;;  %249 = vmatpush3.bf16.msra.mxu1 %v257_v1  ;;  %v29_v19 = vpack.c.bf16 %v25_v17, %v24_v16  ;;  %v168_v22 = vld [vmem:[%s399_s3 + $0x10] sm:$0xff]  ;;  %v170_v30 = vld [vmem:[%s399_s3 + $0x20] sm:$0xff]  ;;  %v169_v34 = vld [vmem:[%s399_s3 + $0x18] sm:$0xff] }
   0x8   :  { %220 = vmatprep.subr.bf16.mxu0 %v258_v2  ;;  %242 = vmatprep.subr.bf16.mxu1 %v258_v2  ;;  %v172_v24 = vld [vmem:[%s399_s3 + $0x30] sm:$0xff]  ;;  %v173_v36 = vld [vmem:[%s399_s3 + $0x38] sm:$0xff]  ;;  %v167_v42 = vld [vmem:[%s399_s3 + $0x8] sm:$0xff] }
   0x9   :  { %v171_v44 = vld [vmem:[%s399_s3 + $0x28] sm:$0xff] }
   0xb   :  { %221 = vmatpush3.bf16.msra.mxu0 %v258_v2  ;;  %250 = vmatpush3.bf16.msra.mxu1 %v258_v2 }
   0xc   :  { %222 = vmatprep.subr.bf16.mxu0 %v259_v3  ;;  %243 = vmatprep.subr.bf16.mxu1 %v259_v3 }
   0xf   :  { %223 = vmatpush3.bf16.msra.mxu0 %v259_v3  ;;  %251 = vmatpush3.bf16.msra.mxu1 %v259_v3 }
  0x10   :  { %224 = vmatprep.subr.bf16.mxu0 %v260_v10  ;;  %244 = vmatprep.subr.bf16.mxu1 %v260_v10 }
  0x13   :  { %225 = vmatpush3.bf16.msra.mxu0 %v260_v10  ;;  %252 = vmatpush3.bf16.msra.mxu1 %v260_v10 }
  0x14   :  { %226 = vmatprep.subr.bf16.mxu0 %v261_v11  ;;  %245 = vmatprep.subr.bf16.mxu1 %v261_v11 }
  0x17   :  { %227 = vmatpush3.bf16.msra.mxu0 %v261_v11  ;;  %253 = vmatpush3.bf16.msra.mxu1 %v261_v11 }
  0x18   :  { %228 = vmatprep.subr.bf16.mxu0 %v262_v12  ;;  %246 = vmatprep.subr.bf16.mxu1 %v262_v12 }
  0x1b   :  { %229 = vmatpush3.bf16.msra.mxu0 %v262_v12  ;;  %254 = vmatpush3.bf16.msra.mxu1 %v262_v12 }
  0x1c   :  { %230 = vmatprep.subr.bf16.mxu0 %v263_v13  ;;  %247 = vmatprep.subr.bf16.mxu1 %v263_v13 }
  0x1f   :  { %231 = vmatpush3.bf16.msra.mxu0 %v263_v13  ;;  %255 = vmatpush3.bf16.msra.mxu1 %v263_v13 }
  0x22   :  { %233 = vmatmul.mubr.bf16.vlgmr.msra.gmra.mrb[0].mxu0 %v27_v18  ;;  %237 = vmatmul.mubr.bf16.vlgmr.msra.gmra.mrb[0].mxu1 %v29_v19 }
  0xf5   :  { %v234_v21 = vpop.f32.mrb[0].mxu0  ;;  %v238_v23 = vpop.f32.mrb[0].mxu1 }
  0xf6   :  { %v144_v25 = vadd.f32 %v234_v21, %v195_v20  ;;  %v160_v26 = vadd.f32 %v238_v23, %v195_v20  ;;  %v135_v27 = vpop.f32.mrb[1].mxu0  ;;  %v151_v29 = vpop.f32.mrb[1].mxu1 }
  0xf7   :  { %v136_v31 = vadd.f32 %v195_v20, %v135_v27  ;;  %v152_v32 = vadd.f32 %v195_v20, %v151_v29  ;;  %v235_v33 = vpop.f32.mrb[2].mxu0  ;;  %v239_v35 = vpop.f32.mrb[2].mxu1 }
  0xf8   :  { %v176_v37 = vadd.f32 %v168_v22, %v144_v25  ;;  %v180_v38 = vadd.f32 %v172_v24, %v160_v26  ;;  %v147_v39 = vadd.f32 %v235_v33, %v195_v20  ;;  %v163_v40 = vadd.f32 %v239_v35, %v195_v20  ;;  %v138_v41 = vpop.f32.mrb[3].mxu0  ;;  %v154_v43 = vpop.f32.mrb[3].mxu1 }
  0xf9   :  { %v174_v45 = vadd.f32 %v166_v28, %v136_v31  ;;  %v178_v46 = vadd.f32 %v170_v30, %v152_v32  ;;  %v139_v47 = vadd.f32 %v195_v20, %v138_v41  ;;  %v155_v48 = vadd.f32 %v195_v20, %v154_v43 }
  0xfa   :  { %185 = vst.msk [vmem:[%s400_s4 + $0x10] sm:$0xff] %vm182_vm0, %v176_v37  ;;  %189 = vst.msk [vmem:[%s400_s4 + $0x30] sm:$0xff] %vm182_vm0, %v180_v38  ;;  %v177_v49 = vadd.f32 %v169_v34, %v147_v39  ;;  %v181_v50 = vadd.f32 %v173_v36, %v163_v40 }
  0xfb   :  { %183 = vst.msk [vmem:[%s400_s4] sm:$0xff] %vm182_vm0, %v174_v45  ;;  %187 = vst.msk [vmem:[%s400_s4 + $0x20] sm:$0xff] %vm182_vm0, %v178_v46  ;;  %v175_v51 = vadd.f32 %v167_v42, %v139_v47  ;;  %v179_v52 = vadd.f32 %v171_v44, %v155_v48 }
  0xfc   :  { %186 = vst.msk [vmem:[%s400_s4 + $0x18] sm:$0xff] %vm182_vm0, %v177_v49  ;;  %190 = vst.msk [vmem:[%s400_s4 + $0x38] sm:$0xff] %vm182_vm0, %v181_v50 }
  0xfd   :  { %184 = vst.msk [vmem:[%s400_s4 + $0x8] sm:$0xff] %vm182_vm0, %v175_v51  ;;  %188 = vst.msk [vmem:[%s400_s4 + $0x28] sm:$0xff] %vm182_vm0, %v179_v52 }

// kernel: encoder_forward.40
= control target key start
LH: loop header
LB: loop body
LE: loop exit
PB: predicated region body
PF: predicated region fallthrough
CT: control target
= control target key end

     0   :  { %vm22_vm0 = vcmask 261120   ;;  %s326_s0 = inlined_call_operand.vmem [shape: f32[64,32], index: 0, kind: input, shape index: {}]   ;;  %s327_s1 = inlined_call_operand.vmem [shape: f32[1,32], index: 1, kind: input, shape index: {}]   ;;  %s328_s2 = inlined_call_operand.vmem [shape: f32[1,32], index: 2, kind: input, shape index: {}]   ;;  %s329_s3 = inlined_call_operand.vmem [shape: f32[64,32], index: 3, kind: output, shape index: {}]  }
   0x1   :  { %v14_v0 = vld [vmem:[%s326_s0] sm:$0xff]  ;;  %v16_v1 = vld [vmem:[%s326_s0 + $0x10] sm:$0xff]  ;;  %v15_v2 = vld [vmem:[%s326_s0 + $0x8] sm:$0xff] }
   0x2   :  { %v23_v3 = vsel %vm22_vm0, %v14_v0, 0.0  ;;  %v29_v4 = vsel %vm22_vm0, %v16_v1, 0.0  ;;  %v17_v5 = vld [vmem:[%s326_s0 + $0x18] sm:$0xff]  ;;  %v26_v6 = vsel %vm22_vm0, %v15_v2, 0.0  ;;  %v18_v8 = vld [vmem:[%s326_s0 + $0x20] sm:$0xff]  ;;  %v19_v9 = vld [vmem:[%s326_s0 + $0x28] sm:$0xff] }
   0x3   :  { %24 = vadd.xlane.f32.xlu0 %v23_v3  ;;  %30 = vadd.xlane.f32.xlu1 %v29_v4  ;;  %v32_v7 = vsel %vm22_vm0, %v17_v5, 0.0  ;;  %v35_v10 = vsel %vm22_vm0, %v18_v8, 0.0  ;;  %v38_v11 = vsel %vm22_vm0, %v19_v9, 0.0  ;;  %v20_v12 = vld [vmem:[%s326_s0 + $0x30] sm:$0xff]  ;;  %v21_v13 = vld [vmem:[%s326_s0 + $0x38] sm:$0xff] }
   0x4   :  { %v41_v14 = vsel %vm22_vm0, %v20_v12, 0.0  ;;  %v44_v15 = vsel %vm22_vm0, %v21_v13, 0.0 }
   0x7   :  { %27 = vadd.xlane.f32.xlu0 %v26_v6  ;;  %33 = vadd.xlane.f32.xlu1 %v32_v7 }
   0xb   :  { %36 = vadd.xlane.f32.xlu0 %v35_v10  ;;  %39 = vadd.xlane.f32.xlu1 %v38_v11 }
   0xf   :  { %42 = vadd.xlane.f32.xlu0 %v41_v14  ;;  %45 = vadd.xlane.f32.xlu1 %v44_v15 }
  0x90   :  { %v25_v16 = vpop.xlane.xlu0 %24  ;;  %v31_v17 = vpop.xlane.xlu1 %30 }
  0x91   :  { %v48_v18 = vmul.f32 0.03125, %v25_v16  ;;  %v50_v19 = vmul.f32 0.03125, %v31_v17  ;;  %v171_v17 = vld [vmem:[%s328_s2] ss:$0 sm:$0xff] }
  0x93   :  { %v240_v20 = vsub.f32 %v14_v0, %v48_v18  ;;  %v242_v21 = vsub.f32 %v16_v1, %v50_v19 }
  0x94   :  { %v28_v22 = vpop.xlane.xlu0 %27  ;;  %v34_v23 = vpop.xlane.xlu1 %33 }
  0x95   :  { %v49_v24 = vmul.f32 0.03125, %v28_v22  ;;  %v51_v25 = vmul.f32 0.03125, %v34_v23  ;;  %v64_v26 = vmul.f32 %v240_v20, %v240_v20  ;;  %v66_v27 = vmul.f32 %v242_v21, %v242_v21 }
  0x97   :  { %v248_v28 = vsub.f32 %v15_v2, %v49_v24  ;;  %v250_v29 = vsub.f32 %v17_v5, %v51_v25  ;;  %v72_v30 = vsel %vm22_vm0, %v64_v26, 0.0  ;;  %v78_v33 = vsel %vm22_vm0, %v66_v27, 0.0 }
  0x98   :  { %73 = vadd.xlane.f32.xlu0 %v72_v30  ;;  %v37_v31 = vpop.xlane.xlu0 %36  ;;  %v40_v32 = vpop.xlane.xlu1 %39 }
  0x99   :  { %v52_v34 = vmul.f32 0.03125, %v37_v31  ;;  %v53_v35 = vmul.f32 0.03125, %v40_v32  ;;  %v65_v36 = vmul.f32 %v248_v28, %v248_v28  ;;  %v67_v37 = vmul.f32 %v250_v29, %v250_v29 }
  0x9b   :  { %v258_v38 = vsub.f32 %v18_v8, %v52_v34  ;;  %v260_v39 = vsub.f32 %v19_v9, %v53_v35  ;;  %v75_v40 = vsel %vm22_vm0, %v65_v36, 0.0  ;;  %v81_v43 = vsel %vm22_vm0, %v67_v37, 0.0 }
  0x9c   :  { %79 = vadd.xlane.f32.xlu0 %v78_v33  ;;  %76 = vadd.xlane.f32.xlu1 %v75_v40  ;;  %v43_v41 = vpop.xlane.xlu0 %42  ;;  %v46_v42 = vpop.xlane.xlu1 %45 }
  0x9d   :  { %v54_v44 = vmul.f32 0.03125, %v43_v41  ;;  %v55_v45 = vmul.f32 0.03125, %v46_v42  ;;  %v68_v46 = vmul.f32 %v258_v38, %v258_v38  ;;  %v69_v47 = vmul.f32 %v260_v39, %v260_v39 }
  0x9f   :  { %v268_v48 = vsub.f32 %v20_v12, %v54_v44  ;;  %v270_v49 = vsub.f32 %v21_v13, %v55_v45  ;;  %v84_v50 = vsel %vm22_vm0, %v68_v46, 0.0  ;;  %v87_v51 = vsel %vm22_vm0, %v69_v47, 0.0  ;;  %v170_v12 = vld [vmem:[%s327_s1] ss:$0 sm:$0xff] }
  0xa0   :  { %82 = vadd.xlane.f32.xlu1 %v81_v43  ;;  %85 = vadd.xlane.f32.xlu0 %v84_v50 }
  0xa1   :  { %v70_v52 = vmul.f32 %v268_v48, %v268_v48  ;;  %v71_v53 = vmul.f32 %v270_v49, %v270_v49 }
  0xa3   :  { %v90_v54 = vsel %vm22_vm0, %v70_v52, 0.0  ;;  %v93_v55 = vsel %vm22_vm0, %v71_v53, 0.0 }
  0xa4   :  { %88 = vadd.xlane.f32.xlu1 %v87_v51  ;;  %91 = vadd.xlane.f32.xlu0 %v90_v54 }
  0xa8   :  { %94 = vadd.xlane.f32.xlu1 %v93_v55 }
 0x125   :  { %v74_v56 = vpop.xlane.xlu0 %73 }
 0x126   :  { %v96_v57 = vmul.f32 0.03125, %v74_v56 }
 0x128   :  { %v104_v58 = vadd.f32 1e-06, %v96_v57 }
 0x129   :  { %v77_v59 = vpop.xlane.xlu1 %76  ;;  %v80_v60 = vpop.xlane.xlu0 %79 }
 0x12a   :  { %172 = vrsqrt.f32 %v104_v58  ;;  %v97_v61 = vmul.f32 0.03125, %v77_v59  ;;  %v98_v62 = vmul.f32 0.03125, %v80_v60 }
 0x12c   :  { %v105_v63 = vadd.f32 1e-06, %v97_v61  ;;  %v106_v0 = vadd.f32 1e-06, %v98_v62 }
 0x12d   :  { %v83_v1 = vpop.xlane.xlu1 %82  ;;  %v86_v2 = vpop.xlane.xlu0 %85 }
 0x12e   :  { %174 = vrsqrt.f32 %v105_v63  ;;  %v99_v3 = vmul.f32 0.03125, %v83_v1  ;;  %v100_v4 = vmul.f32 0.03125, %v86_v2 }
 0x12f   :  { %176 = vrsqrt.f32 %v106_v0 }
 0x130   :  { %v107_v5 = vadd.f32 1e-06, %v99_v3  ;;  %v108_v6 = vadd.f32 1e-06, %v100_v4 }
 0x131   :  { %v89_v7 = vpop.xlane.xlu1 %88  ;;  %v92_v8 = vpop.xlane.xlu0 %91 }
 0x132   :  { %178 = vrsqrt.f32 %v107_v5  ;;  %v101_v9 = vmul.f32 0.03125, %v89_v7  ;;  %v102_v10 = vmul.f32 0.03125, %v92_v8 }
 0x133   :  { %180 = vrsqrt.f32 %v108_v6 }
 0x134   :  { %v173_v11 = vpop.eup %172  ;;  %v109_v13 = vadd.f32 1e-06, %v101_v9  ;;  %v110_v14 = vadd.f32 1e-06, %v102_v10 }
 0x135   :  { %v120_v15 = vmul.f32 %v173_v11, %v240_v20  ;;  %v95_v16 = vpop.xlane.xlu1 %94 }
 0x136   :  { %182 = vrsqrt.f32 %v109_v13  ;;  %v103_v18 = vmul.f32 0.03125, %v95_v16 }
 0x137   :  { %v135_v19 = vmul.f32 %v170_v12, %v120_v15  ;;  %184 = vrsqrt.f32 %v110_v14 }
 0x138   :  { %v175_v22 = vpop.eup %174  ;;  %v111_v23 = vadd.f32 1e-06, %v103_v18 }
 0x139   :  { %v177_v24 = vpop.eup %176  ;;  %v150_v25 = vadd.f32 %v171_v17, %v135_v19  ;;  %v121_v26 = vmul.f32 %v175_v22, %v248_v28 }
 0x13a   :  { %v122_v27 = vmul.f32 %v177_v24, %v242_v21  ;;  %186 = vrsqrt.f32 %v111_v23 }
 0x13b   :  { %158 = vst.msk [vmem:[%s329_s3] sm:$0xff] %vm22_vm0, %v150_v25  ;;  %v136_v20 = vmul.f32 %v170_v12, %v121_v26 }
 0x13c   :  { %v179_v30 = vpop.eup %178  ;;  %v137_v31 = vmul.f32 %v170_v12, %v122_v27 }
 0x13d   :  { %v181_v32 = vpop.eup %180  ;;  %v151_v33 = vadd.f32 %v171_v17, %v136_v20  ;;  %v123_v34 = vmul.f32 %v179_v30, %v250_v29 }
 0x13e   :  { %v152_v35 = vadd.f32 %v171_v17, %v137_v31  ;;  %v124_v36 = vmul.f32 %v181_v32, %v258_v38 }
 0x13f   :  { %159 = vst.msk [vmem:[%s329_s3 + $0x8] sm:$0xff] %vm22_vm0, %v151_v33  ;;  %v138_v21 = vmul.f32 %v170_v12, %v123_v34 }
 0x140   :  { %v183_v28 = vpop.eup %182  ;;  %160 = vst.msk [vmem:[%s329_s3 + $0x10] sm:$0xff] %vm22_vm0, %v152_v35  ;;  %v139_v37 = vmul.f32 %v170_v12, %v124_v36 }
 0x141   :  { %v185_v40 = vpop.eup %184  ;;  %v153_v41 = vadd.f32 %v171_v17, %v138_v21  ;;  %v125_v29 = vmul.f32 %v183_v28, %v260_v39 }
 0x142   :  { %v154_v42 = vadd.f32 %v171_v17, %v139_v37  ;;  %v126_v38 = vmul.f32 %v185_v40, %v268_v48 }
 0x143   :  { %161 = vst.msk [vmem:[%s329_s3 + $0x18] sm:$0xff] %vm22_vm0, %v153_v41  ;;  %v140_v43 = vmul.f32 %v170_v12, %v125_v29 }
 0x144   :  { %v187_v44 = vpop.eup %186  ;;  %162 = vst.msk [vmem:[%s329_s3 + $0x20] sm:$0xff] %vm22_vm0, %v154_v42  ;;  %v141_v45 = vmul.f32 %v170_v12, %v126_v38 }
 0x145   :  { %v155_v46 = vadd.f32 %v171_v17, %v140_v43  ;;  %v127_v47 = vmul.f32 %v187_v44, %v270_v49 }
 0x146   :  { %v156_v39 = vadd.f32 %v171_v17, %v141_v45 }
 0x147   :  { %163 = vst.msk [vmem:[%s329_s3 + $0x28] sm:$0xff] %vm22_vm0, %v155_v46  ;;  %v142_v48 = vmul.f32 %v170_v12, %v127_v47 }
 0x148   :  { %164 = vst.msk [vmem:[%s329_s3 + $0x30] sm:$0xff] %vm22_vm0, %v156_v39 }
 0x149   :  { %v157_v50 = vadd.f32 %v171_v17, %v142_v48 }
 0x14b   :  { %165 = vst.msk [vmem:[%s329_s3 + $0x38] sm:$0xff] %vm22_vm0, %v157_v50 }

// kernel: encoder_forward.41
= control target key start
LH: loop header
LB: loop body
LE: loop exit
PB: predicated region body
PF: predicated region fallthrough
CT: control target
= control target key end

     0   :  { %vm35_vm0 = vcmask 261120   ;;  %vm423_vm1 = vmmov 0   ;;  %vm338_vm2 = vcmask 785408   ;;  %s662_s0 = inlined_call_operand.vmem [shape: f32[80,32], index: 0, kind: input, shape index: {}]   ;;  %s663_s3 = inlined_call_operand.vmem [shape: bf16[32,96], index: 3, kind: input, shape index: {}]   ;;  %s664_s1 = inlined_call_operand.vmem [shape: f32[1,32], index: 1, kind: input, shape index: {}]   ;;  %s665_s2 = inlined_call_operand.vmem [shape: f32[1,32], index: 2, kind: input, shape index: {}]   ;;  %s666_s4 = inlined_call_operand.vmem [shape: f32[1,96], index: 4, kind: input, shape index: {}]   ;;  %s667_s5 = inlined_call_operand.vmem [shape: f32[80,96], index: 5, kind: output, shape index: {}]  }
   0x1   :  { %v25_v0 = vld [vmem:[%s662_s0] sm:$0xff]  ;;  %v27_v1 = vld [vmem:[%s662_s0 + $0x10] sm:$0xff]  ;;  %v26_v2 = vld [vmem:[%s662_s0 + $0x8] sm:$0xff] }
   0x2   :  { %v36_v3 = vsel %vm35_vm0, %v25_v0, 0.0  ;;  %v42_v4 = vsel %vm35_vm0, %v27_v1, 0.0  ;;  %v28_v5 = vld [vmem:[%s662_s0 + $0x18] sm:$0xff]  ;;  %v39_v6 = vsel %vm35_vm0, %v26_v2, 0.0  ;;  %v31_v8 = vld [vmem:[%s662_s0 + $0x30] sm:$0xff]  ;;  %v29_v12 = vld [vmem:[%s662_s0 + $0x20] sm:$0xff] }
   0x3   :  { %37 = vadd.xlane.f32.xlu0 %v36_v3  ;;  %43 = vadd.xlane.f32.xlu1 %v42_v4  ;;  %v45_v7 = vsel %vm35_vm0, %v28_v5, 0.0  ;;  %v32_v9 = vld [vmem:[%s662_s0 + $0x38] sm:$0xff]  ;;  %v54_v10 = vsel %vm35_vm0, %v31_v8, 0.0  ;;  %v30_v13 = vld [vmem:[%s662_s0 + $0x28] sm:$0xff]  ;;  %v48_v14 = vsel %vm35_vm0, %v29_v12, 0.0  ;;  %v33_v16 = vld [vmem:[%s662_s0 + $0x40] sm:$0xff] }
   0x4   :  { %v57_v11 = vsel %vm35_vm0, %v32_v9, 0.0  ;;  %v51_v15 = vsel %vm35_vm0, %v30_v13, 0.0  ;;  %v34_v17 = vld [vmem:[%s662_s0 + $0x48] sm:$0xff]  ;;  %v60_v18 = vsel %vm35_vm0, %v33_v16, 0.0 }
   0x5   :  { %v63_v19 = vsel %vm35_vm0, %v34_v17, 0.0 }
   0x7   :  { %40 = vadd.xlane.f32.xlu0 %v39_v6  ;;  %46 = vadd.xlane.f32.xlu1 %v45_v7  ;;  %v400_v6 = vld [vmem:[%s663_s3] sm:$0xff]   ;;  %v422_v7 = vmov 0.0  }
   0x8   :  { %370 = vmatprep.subr.bf16.mxu0 %v422_v7  ;;  %394 = vmatprep.subr.bf16.mxu1 %v422_v7 }
   0x9   :  { %371 = vmatpush3.bf16.msra.mxu0 %v400_v6  ;;  %396 = vmatpush3.bf16.msra.mxu1 %v400_v6 }
   0xa   :  { %372 = vmatprep.subr.bf16.mxu0 %v422_v7  ;;  %395 = vmatprep.subr.bf16.mxu1 %v422_v7 }
   0xb   :  { %55 = vadd.xlane.f32.xlu0 %v54_v10  ;;  %58 = vadd.xlane.f32.xlu1 %v57_v11 }
   0xc   :  { %374 = vmatprep.mubr.msk.bf16.mxu0 %vm423_vm1, %v422_v7  ;;  %386 = vmatprep.mubr.msk.bf16.mxu1 %vm423_vm1, %v422_v7 }
   0xf   :  { %49 = vadd.xlane.f32.xlu0 %v48_v14  ;;  %52 = vadd.xlane.f32.xlu1 %v51_v15 }
  0x13   :  { %61 = vadd.xlane.f32.xlu0 %v60_v18  ;;  %64 = vadd.xlane.f32.xlu1 %v63_v19 }
  0x90   :  { %v38_v20 = vpop.xlane.xlu0 %37  ;;  %v44_v21 = vpop.xlane.xlu1 %43 }
  0x91   :  { %v67_v22 = vmul.f32 0.03125, %v38_v20  ;;  %v69_v23 = vmul.f32 0.03125, %v44_v21 }
  0x93   :  { %v494_v24 = vsub.f32 %v25_v0, %v67_v22  ;;  %v496_v25 = vsub.f32 %v27_v1, %v69_v23 }
  0x94   :  { %v41_v26 = vpop.xlane.xlu0 %40  ;;  %v47_v27 = vpop.xlane.xlu1 %46 }
  0x95   :  { %v68_v28 = vmul.f32 0.03125, %v41_v26  ;;  %v70_v29 = vmul.f32 0.03125, %v47_v27  ;;  %v87_v30 = vmul.f32 %v494_v24, %v494_v24  ;;  %v89_v31 = vmul.f32 %v496_v25, %v496_v25 }
  0x97   :  { %v502_v32 = vsub.f32 %v26_v2, %v68_v28  ;;  %v504_v33 = vsub.f32 %v28_v5, %v70_v29  ;;  %v97_v34 = vsel %vm35_vm0, %v87_v30, 0.0  ;;  %v103_v37 = vsel %vm35_vm0, %v89_v31, 0.0  ;;  %v561_v31 = vld [vmem:[%s664_s1] ss:$0 sm:$0xff] }
  0x98   :  { %98 = vadd.xlane.f32.xlu0 %v97_v34  ;;  %v56_v35 = vpop.xlane.xlu0 %55  ;;  %v59_v36 = vpop.xlane.xlu1 %58 }
  0x99   :  { %v73_v38 = vmul.f32 0.03125, %v56_v35  ;;  %v74_v39 = vmul.f32 0.03125, %v59_v36  ;;  %v88_v40 = vmul.f32 %v502_v32, %v502_v32  ;;  %v90_v41 = vmul.f32 %v504_v33, %v504_v33 }
  0x9b   :  { %v512_v42 = vsub.f32 %v31_v8, %v73_v38  ;;  %v514_v43 = vsub.f32 %v32_v9, %v74_v39  ;;  %v100_v44 = vsel %vm35_vm0, %v88_v40, 0.0  ;;  %v106_v47 = vsel %vm35_vm0, %v90_v41, 0.0  ;;  %v401_v8 = vld [vmem:[%s663_s3 + $0x8] sm:$0xff]   ;;  %v567_v39 = vld [vmem:[%s665_s2] ss:$0 sm:$0xff] }
  0x9c   :  { %104 = vadd.xlane.f32.xlu0 %v103_v37  ;;  %101 = vadd.xlane.f32.xlu1 %v100_v44  ;;  %v50_v45 = vpop.xlane.xlu0 %49  ;;  %v53_v46 = vpop.xlane.xlu1 %52 }
  0x9d   :  { %v71_v48 = vmul.f32 0.03125, %v50_v45  ;;  %v72_v49 = vmul.f32 0.03125, %v53_v46  ;;  %v93_v50 = vmul.f32 %v512_v42, %v512_v42  ;;  %v94_v51 = vmul.f32 %v514_v43, %v514_v43  ;;  %373 = vmatpush3.bf16.msra.mxu0 %v401_v8  ;;  %397 = vmatpush3.bf16.msra.mxu1 %v401_v8 }
  0x9f   :  { %v522_v52 = vsub.f32 %v29_v12, %v71_v48  ;;  %v524_v53 = vsub.f32 %v30_v13, %v72_v49  ;;  %v115_v54 = vsel %vm35_vm0, %v93_v50, 0.0  ;;  %v118_v57 = vsel %vm35_vm0, %v94_v51, 0.0 }
  0xa0   :  { %107 = vadd.xlane.f32.xlu1 %v106_v47  ;;  %116 = vadd.xlane.f32.xlu0 %v115_v54  ;;  %v62_v55 = vpop.xlane.xlu0 %61  ;;  %v65_v56 = vpop.xlane.xlu1 %64 }
  0xa1   :  { %v75_v58 = vmul.f32 0.03125, %v62_v55  ;;  %v76_v59 = vmul.f32 0.03125, %v65_v56  ;;  %v91_v60 = vmul.f32 %v522_v52, %v522_v52  ;;  %v92_v61 = vmul.f32 %v524_v53, %v524_v53 }
  0xa3   :  { %v532_v62 = vsub.f32 %v33_v16, %v75_v58  ;;  %v534_v63 = vsub.f32 %v34_v17, %v76_v59  ;;  %v109_v0 = vsel %vm35_vm0, %v91_v60, 0.0  ;;  %v112_v1 = vsel %vm35_vm0, %v92_v61, 0.0 }
  0xa4   :  { %119 = vadd.xlane.f32.xlu1 %v118_v57  ;;  %110 = vadd.xlane.f32.xlu0 %v109_v0 }
  0xa5   :  { %v95_v2 = vmul.f32 %v532_v62, %v532_v62  ;;  %v96_v3 = vmul.f32 %v534_v63, %v534_v63 }
  0xa7   :  { %v121_v4 = vsel %vm35_vm0, %v95_v2, 0.0  ;;  %v124_v5 = vsel %vm35_vm0, %v96_v3, 0.0 }
  0xa8   :  { %113 = vadd.xlane.f32.xlu1 %v112_v1  ;;  %122 = vadd.xlane.f32.xlu0 %v121_v4 }
  0xac   :  { %125 = vadd.xlane.f32.xlu1 %v124_v5 }
 0x125   :  { %v99_v9 = vpop.xlane.xlu0 %98 }
 0x126   :  { %v127_v10 = vmul.f32 0.03125, %v99_v9 }
 0x128   :  { %v137_v11 = vadd.f32 1e-06, %v127_v10 }
 0x129   :  { %v102_v12 = vpop.xlane.xlu1 %101  ;;  %v105_v13 = vpop.xlane.xlu0 %104 }
 0x12a   :  { %402 = vrsqrt.f32 %v137_v11  ;;  %v128_v14 = vmul.f32 0.03125, %v102_v12  ;;  %v129_v15 = vmul.f32 0.03125, %v105_v13 }
 0x12c   :  { %v138_v16 = vadd.f32 1e-06, %v128_v14  ;;  %v139_v17 = vadd.f32 1e-06, %v129_v15 }
 0x12d   :  { %v108_v18 = vpop.xlane.xlu1 %107  ;;  %v117_v19 = vpop.xlane.xlu0 %116 }
 0x12e   :  { %404 = vrsqrt.f32 %v138_v16  ;;  %v130_v20 = vmul.f32 0.03125, %v108_v18  ;;  %v133_v21 = vmul.f32 0.03125, %v117_v19 }
 0x12f   :  { %406 = vrsqrt.f32 %v139_v17 }
 0x130   :  { %v140_v22 = vadd.f32 1e-06, %v130_v20  ;;  %v143_v23 = vadd.f32 1e-06, %v133_v21 }
 0x131   :  { %v120_v26 = vpop.xlane.xlu1 %119  ;;  %v111_v27 = vpop.xlane.xlu0 %110 }
 0x132   :  { %408 = vrsqrt.f32 %v140_v22  ;;  %v134_v28 = vmul.f32 0.03125, %v120_v26  ;;  %v131_v29 = vmul.f32 0.03125, %v111_v27 }
 0x133   :  { %410 = vrsqrt.f32 %v143_v23 }
 0x134   :  { %v403_v30 = vpop.eup %402  ;;  %v144_v34 = vadd.f32 1e-06, %v134_v28  ;;  %v141_v35 = vadd.f32 1e-06, %v131_v29 }
 0x135   :  { %v157_v36 = vmul.f32 %v403_v30, %v494_v24  ;;  %v114_v37 = vpop.xlane.xlu1 %113  ;;  %v123_v38 = vpop.xlane.xlu0 %122 }
 0x136   :  { %412 = vrsqrt.f32 %v144_v34  ;;  %v132_v40 = vmul.f32 0.03125, %v114_v37  ;;  %v135_v41 = vmul.f32 0.03125, %v123_v38  ;;  %v355_v37 = vld [vmem:[%s666_s4] ss:$0 sm:$0xff] }
 0x137   :  { %v174_v44 = vmul.f32 %v561_v31, %v157_v36  ;;  %414 = vrsqrt.f32 %v141_v35 }
 0x138   :  { %v405_v45 = vpop.eup %404  ;;  %v142_v46 = vadd.f32 1e-06, %v132_v40  ;;  %v145_v47 = vadd.f32 1e-06, %v135_v41 }
 0x139   :  { %v407_v48 = vpop.eup %406  ;;  %v191_v49 = vadd.f32 %v567_v39, %v174_v44  ;;  %v158_v24 = vmul.f32 %v405_v45, %v502_v32  ;;  %v126_v50 = vpop.xlane.xlu1 %125 }
 0x13a   :  { %v159_v51 = vmul.f32 %v407_v48, %v496_v25  ;;  %416 = vrsqrt.f32 %v142_v46  ;;  %v136_v54 = vmul.f32 0.03125, %v126_v50 }
 0x13b   :  { %201 = vst.msk [vmem:[#allocation2] sm:$0xff] %vm35_vm0, %v191_v49  ;;  %v175_v55 = vmul.f32 %v561_v31, %v158_v24  ;;  %418 = vrsqrt.f32 %v145_v47 }
 0x13c   :  { %v409_v56 = vpop.eup %408  ;;  %v176_v57 = vmul.f32 %v561_v31, %v159_v51  ;;  %v146_v58 = vadd.f32 1e-06, %v136_v54 }
 0x13d   :  { %v411_v59 = vpop.eup %410  ;;  %v192_v60 = vadd.f32 %v567_v39, %v175_v55  ;;  %v160_v61 = vmul.f32 %v409_v56, %v504_v33 }
 0x13e   :  { %v193_v32 = vadd.f32 %v567_v39, %v176_v57  ;;  %v163_v25 = vmul.f32 %v411_v59, %v512_v42  ;;  %420 = vrsqrt.f32 %v146_v58 }
 0x13f   :  { %202 = vst.msk [vmem:[#allocation2 + $0x8] sm:$0xff] %vm35_vm0, %v192_v60  ;;  %v177_v0 = vmul.f32 %v561_v31, %v160_v61 }
 0x140   :  { %v413_v1 = vpop.eup %412  ;;  %203 = vst.msk [vmem:[#allocation2 + $0x10] sm:$0xff] %vm35_vm0, %v193_v32  ;;  %v180_v2 = vmul.f32 %v561_v31, %v163_v25 }
 0x141   :  { %v415_v3 = vpop.eup %414  ;;  %v194_v4 = vadd.f32 %v567_v39, %v177_v0  ;;  %v164_v5 = vmul.f32 %v413_v1, %v514_v43 }
 0x142   :  { %v197_v33 = vadd.f32 %v567_v39, %v180_v2  ;;  %v161_v6 = vmul.f32 %v415_v3, %v522_v52  ;;  %v211_v14 = vld [vmem:[#allocation2] sm:$0xff] }
 0x143   :  { %204 = vst.msk [vmem:[#allocation2 + $0x18] sm:$0xff] %vm35_vm0, %v194_v4  ;;  %v181_v42 = vmul.f32 %v561_v31, %v164_v5 }
 0x144   :  { %v417_v8 = vpop.eup %416  ;;  %207 = vst.msk [vmem:[#allocation2 + $0x30] sm:$0xff] %vm35_vm0, %v197_v33  ;;  %v178_v9 = vmul.f32 %v561_v31, %v161_v6 }
 0x145   :  { %v419_v10 = vpop.eup %418  ;;  %v198_v11 = vadd.f32 %v567_v39, %v181_v42  ;;  %v162_v12 = vmul.f32 %v417_v8, %v524_v53 }
 0x146   :  { %v195_v43 = vadd.f32 %v567_v39, %v178_v9  ;;  %v165_v13 = vmul.f32 %v419_v10, %v532_v62  ;;  %v212_v52 = vld [vmem:[#allocation2 + $0x8] sm:$0xff] }
 0x147   :  { %208 = vst.msk [vmem:[#allocation2 + $0x38] sm:$0xff] %vm35_vm0, %v198_v11  ;;  %v179_v15 = vmul.f32 %v561_v31, %v162_v12  ;;  %v221_v16 = vpack.c.bf16 %v212_v52, %v211_v14  ;;  %v213_v23 = vld [vmem:[#allocation2 + $0x10] sm:$0xff] }
 0x148   :  { %v421_v17 = vpop.eup %420  ;;  %205 = vst.msk [vmem:[#allocation2 + $0x20] sm:$0xff] %vm35_vm0, %v195_v43  ;;  %v182_v18 = vmul.f32 %v561_v31, %v165_v13 }
 0x149   :  { %v196_v19 = vadd.f32 %v567_v39, %v179_v15  ;;  %v166_v53 = vmul.f32 %v421_v17, %v534_v63  ;;  %375 = vmatmul.mubr.msk.bf16.vlgmr.msra.gmra.mrb[0].mxu0 %vm35_vm0, %v221_v16 }
 0x14a   :  { %v199_v62 = vadd.f32 %v567_v39, %v182_v18  ;;  %378 = vmatprep.mubr.msk.bf16.mxu0 %vm423_vm1, %v422_v7  ;;  %v214_v21 = vld [vmem:[#allocation2 + $0x18] sm:$0xff] }
 0x14b   :  { %206 = vst.msk [vmem:[#allocation2 + $0x28] sm:$0xff] %vm35_vm0, %v196_v19  ;;  %v183_v20 = vmul.f32 %v561_v31, %v166_v53  ;;  %v217_v26 = vld [vmem:[#allocation2 + $0x30] sm:$0xff]  ;;  %v222_v63 = vpack.c.bf16 %v214_v21, %v213_v23 }
 0x14c   :  { %209 = vst.msk [vmem:[#allocation2 + $0x40] sm:$0xff] %vm35_vm0, %v199_v62 }
 0x14d   :  { %v200_v22 = vadd.f32 %v567_v39, %v183_v20 }
 0x14e   :  { %v218_v27 = vld [vmem:[#allocation2 + $0x38] sm:$0xff] }
 0x14f   :  { %210 = vst.msk [vmem:[#allocation2 + $0x48] sm:$0xff] %vm35_vm0, %v200_v22  ;;  %v224_v28 = vpack.c.bf16 %v218_v27, %v217_v26  ;;  %v215_v30 = vld [vmem:[#allocation2 + $0x20] sm:$0xff] }
 0x151   :  { %379 = vmatmul.mubr.msk.bf16.gmra.mrb[4].mxu0 %vm35_vm0, %v222_v63  ;;  %387 = vmatmul.mubr.msk.bf16.vlgmr.msra.gmra.mrb[0].mxu1 %vm35_vm0, %v224_v28 }
 0x152   :  { %382 = vmatprep.mubr.msk.bf16.mxu0 %vm423_vm1, %v422_v7  ;;  %390 = vmatprep.mubr.msk.bf16.mxu1 %vm423_vm1, %v422_v7  ;;  %v216_v29 = vld [vmem:[#allocation2 + $0x28] sm:$0xff] }
 0x153   :  { %v219_v31 = vld [vmem:[#allocation2 + $0x40] sm:$0xff]  ;;  %v223_v35 = vpack.c.bf16 %v216_v29, %v215_v30 }
 0x156   :  { %v220_v34 = vld [vmem:[#allocation2 + $0x48] sm:$0xff] }
 0x157   :  { %v225_v36 = vpack.c.bf16 %v220_v34, %v219_v31 }
 0x159   :  { %383 = vmatmul.mubr.msk.bf16.gmra.mrb[8].mxu0 %vm35_vm0, %v223_v35  ;;  %391 = vmatmul.mubr.msk.bf16.gmra.mrb[4].mxu1 %vm35_vm0, %v225_v36 }
 0x21c   :  { %v299_v38 = vpop.f32.mrb[0].mxu0 }
 0x21d   :  { %v300_v39 = vadd.f32 %v355_v37, %v299_v38  ;;  %v376_v40 = vpop.f32.mrb[1].mxu0 }
 0x21e   :  { %v302_v41 = vpop.f32.mrb[2].mxu0 }
 0x21f   :  { %339 = vst.msk [vmem:[%s667_s5] sm:$0xff] %vm338_vm2, %v300_v39  ;;  %v303_v7 = vadd.f32 %v355_v37, %v302_v41  ;;  %v377_v44 = vpop.f32.mrb[3].mxu0 }
 0x221   :  { %340 = vst.msk [vmem:[%s667_s5 + $0x8] sm:$0xff] %vm338_vm2, %v303_v7 }
 0x224   :  { %v307_v45 = vpop.f32.mrb[4].mxu0  ;;  %v323_v46 = vpop.f32.mrb[0].mxu1 }
 0x225   :  { %v308_v47 = vadd.f32 %v355_v37, %v307_v45  ;;  %v324_v48 = vadd.f32 %v355_v37, %v323_v46  ;;  %v380_v49 = vpop.f32.mrb[5].mxu0  ;;  %v388_v24 = vpop.f32.mrb[1].mxu1 }
 0x226   :  { %v310_v50 = vpop.f32.mrb[6].mxu0  ;;  %v326_v51 = vpop.f32.mrb[2].mxu1 }
 0x227   :  { %341 = vst.msk [vmem:[%s667_s5 + $0x10] sm:$0xff] %vm338_vm2, %v308_v47  ;;  %345 = vst.msk [vmem:[%s667_s5 + $0x30] sm:$0xff] %vm338_vm2, %v324_v48  ;;  %v311_v54 = vadd.f32 %v355_v37, %v310_v50  ;;  %v327_v55 = vadd.f32 %v355_v37, %v326_v51  ;;  %v381_v56 = vpop.f32.mrb[7].mxu0  ;;  %v389_v57 = vpop.f32.mrb[3].mxu1 }
 0x229   :  { %342 = vst.msk [vmem:[%s667_s5 + $0x18] sm:$0xff] %vm338_vm2, %v311_v54  ;;  %346 = vst.msk [vmem:[%s667_s5 + $0x38] sm:$0xff] %vm338_vm2, %v327_v55 }
 0x22c   :  { %v315_v58 = vpop.f32.mrb[8].mxu0  ;;  %v331_v59 = vpop.f32.mrb[4].mxu1 }
 0x22d   :  { %v316_v60 = vadd.f32 %v355_v37, %v315_v58  ;;  %v332_v61 = vadd.f32 %v355_v37, %v331_v59  ;;  %v384_v32 = vpop.f32.mrb[9].mxu0  ;;  %v392_v25 = vpop.f32.mrb[5].mxu1 }
 0x22e   :  { %v318_v0 = vpop.f32.mrb[10].mxu0  ;;  %v334_v1 = vpop.f32.mrb[6].mxu1 }
 0x22f   :  { %343 = vst.msk [vmem:[%s667_s5 + $0x20] sm:$0xff] %vm338_vm2, %v316_v60  ;;  %347 = vst.msk [vmem:[%s667_s5 + $0x40] sm:$0xff] %vm338_vm2, %v332_v61  ;;  %v319_v2 = vadd.f32 %v355_v37, %v318_v0  ;;  %v335_v3 = vadd.f32 %v355_v37, %v334_v1  ;;  %v385_v4 = vpop.f32.mrb[11].mxu0  ;;  %v393_v5 = vpop.f32.mrb[7].mxu1 }
 0x231   :  { %344 = vst.msk [vmem:[%s667_s5 + $0x28] sm:$0xff] %vm338_vm2, %v319_v2  ;;  %348 = vst.msk [vmem:[%s667_s5 + $0x48] sm:$0xff] %vm338_vm2, %v335_v3 }

// kernel: encoder_forward.42
= control target key start
LH: loop header
LB: loop body
LE: loop exit
PB: predicated region body
PF: predicated region fallthrough
CT: control target
= control target key end

     0   :  { %s931_s9 = smov 0   ;;  %s933_s10 = smov 0   ;;  %s1047_s0 = inlined_call_operand.vmem [shape: f32[10,8,96], index: 0, kind: input, shape index: {}]   ;;  %s1048_s1 = inlined_call_operand.vmem [shape: f32[10,1,8], index: 1, kind: input, shape index: {}]   ;;  %s1049_s2 = inlined_call_operand.vmem [shape: f32[10,8,32], index: 2, kind: output, shape index: {}]  }
   0x1   :  { %s935_s11 = smov 0  }
   0x2 LB: > { %s24_s12 = sadd.s32 1, %s894_s10  ;;  %p742_p0 = scmp.ge.s32.totalorder %s898_s11, 1  ;;  %s898_s11 = sphi %s935_s11, %s12_s11   ;;  %s894_s10 = sphi %s933_s10, %s1051_s10   ;;  %s890_s9 = sphi %s931_s9, %s1050_s9  }
   0x3   : > { %p26_p1 = scmp.ge.s32.totalorder %s24_s12, 10  ;;  %p133_p2 = scmp.lt.s32.totalorder %s898_s11, 11 }
   0x5   : > { %s1053_s12 = smov (%p26_p1, %s24_s12), 0  ;;  %p134_p3 = pnand %p742_p0, %p133_p2 }
   0x6   : > { %p159_p4 = scmp.lt.s32.totalorder (!%p134_p3), %s890_s9, 9  ;;  %v900_v0 = vmov (!%p134_p3), 0.0   ;;  %vm901_vm0 = vmmov (!%p134_p3), 0   ;;  %s902_s17 = smov (!%p134_p3), 96   ;;  %vm184_vm1 = vcmask (!%p134_p3), 64512   ;;  %vm256_vm2 = vcmask (!%p134_p3), 1043456  }
   0x7   : > { %137 = sbr.rel (%p134_p3) target bundleno = 1605 (0x645), region = 28  ;;  %772 = vmatprep.subr.bf16.mxu0 (!%p134_p3), %v900_v0  ;;  %774 = vmatprep.mubr.msk.bf16.mxu0 (!%p134_p3), %vm901_vm0, %v900_v0  ;;  %s903_s18 = smov (!%p134_p3), 64   ;;  %vm650_vm3 = vcmask (!%p134_p3), 130048   ;;  %vm652_vm4 = vcmask (!%p134_p3), 195584   ;;  %vm654_vm5 = vcmask (!%p134_p3), 261120  }
   0x8   : > { %778 = vmatprep.subr.bf16.mxu1 (!%p134_p3), %v900_v0  ;;  %780 = vmatprep.mubr.msk.bf16.mxu1 (!%p134_p3), %vm901_vm0, %v900_v0  ;;  %s904_s19 = smov (!%p134_p3), 88   ;;  %s905_s23 = smov (!%p134_p3), 72  }
   0x9   : > { %s906_s24 = smov (!%p134_p3), 120   ;;  %s907_s25 = smov (!%p134_p3), 80  }
   0xa   : > { %s908_s26 = smov (!%p134_p3), 112   ;;  %s909_s27 = smov (!%p134_p3), 104  }
   0xb   : > { %s910_s28 = smov (!%p134_p3), 56   ;;  %s911_s29 = smov (!%p134_p3), 48  }
   0xc   : > { %s912_s30 = smov (!%p134_p3), 40   ;;  %s913_s3 = smov (!%p134_p3), 8  }
   0xd   : > { %s914_s4 = smov (!%p134_p3), 16   ;;  %s915_s5 = smov (!%p134_p3), 24  }
   0xe   : > { %s1055_s9 = smov (!%p159_p4, %s890_s9), 9 }
   0xf   : > { %s743_s13 = sshll.u32 %s1055_s9, 3  ;;  %s165_s22 = scalar_lea.vmem %s1048_s1, %s1055_s9 }
  0x10   : > { %s162_s16 = scalar_lea.vmem %s1047_s0, %s743_s13  ;;  %v978_v6 = vld [vmem:[%s165_s22] ss:$0 sm:$0xff]  ;;  %s172_s8 = scalar_lea.vmem %s1049_s2, %s743_s13 }
  0x11   : > { %v177_v1 = vld [vmem:[%s162_s16] sm:$0xff] }
  0x12   : > { %v963_v2 = vpack.c.bf16 %v177_v1, %v177_v1 }
  0x14   : > { %182 = vrot.lane.b32.xlu0 %v963_v2, %s902_s17  ;;  %251 = vrot.lane.b32.xlu1 %v963_v2, %s903_s18 }
  0x18   : > { %303 = vrot.lane.b32.xlu1 %v963_v2, %s904_s19 }
  0x86   : > { %v183_v3 = vpop.permute.xlu0 %182  ;;  %v252_v13 = vpop.permute.xlu1 %251 }
  0x87   : > { %v189_v4 = vsel %vm184_vm1, %v183_v3, 0  ;;  %v258_v14 = vsel %vm256_vm2, %v252_v13, 0 }
  0x88   : > { %773 = vmatpush3.bf16.xpose.msra.mxu0 %v189_v4  ;;  %779 = vmatpush3.bf16.msra.mxu1 %v258_v14 }
  0x89   : > { %790 = vmatprep.subr.bf16.mxu0 %v900_v0  ;;  %784 = vmatprep.subr.bf16.mxu1 %v900_v0 }
  0x8a   : > { %v304_v20 = vpop.permute.xlu1 %303 }
  0x8b   : > { %v309_v26 = vsel %vm184_vm1, %v304_v20, 0 }
  0x8f   : > { %775 = vmatmul.mubr.msk.bf16.vlgmr.msra.gmra.mrb[0].mxu0 %vm184_vm1, %v963_v2 }
  0x90   : > { %792 = vmatprep.mubr.msk.bf16.mxu0 %vm901_vm0, %v900_v0 }
 0x162   : > { %v225_v5 = vpop.f32.mrb[0].mxu0 }
 0x163   : > { %v231_v7 = vmul.f32 0.35355338, %v225_v5  ;;  %v776_v8 = vpop.f32.mrb[1].mxu0 }
 0x164   : > { %v228_v9 = vpop.f32.mrb[2].mxu0 }
 0x165   : > { %v777_v10 = vpop.f32.mrb[3].mxu0  ;;  %v238_v11 = vadd.f32 %v978_v6, %v231_v7 }
 0x167   : > { %v239_v12 = vsel %vm184_vm1, %v238_v11, -inf }
 0x168   : > { %240 = vmax.xlane.f32.xlu0 %v239_v12 }
 0x17e   : > { %527 = vrot.lane.b32.xlu0 %v963_v2, %s905_s23 }
 0x1f5   : > { %v241_v15 = vpop.xlane.xlu0 %240 }
 0x1f6   : > { %v242_v16 = vsub.f32 %v238_v11, %v241_v15 }
 0x1f8   : > { %v243_v17 = vmul.f32 1.442695, %v242_v16 }
 0x1f9   : > { %v528_v29 = vpop.permute.xlu0 %527 }
 0x1fa   : > { %860 = vpow2.f32 %v243_v17  ;;  %v533_v31 = vsel %vm184_vm1, %v528_v29, 0 }
 0x204   : > { %v861_v18 = vpop.eup %860 }
 0x205   : > { %v245_v19 = vsel %vm184_vm1, %v861_v18, 0.0 }
 0x206   : > { %246 = vadd.xlane.f32.xlu1 %v245_v19 }
 0x217   : > { %301 = vrot.lane.b32.xlu1 %v963_v2, %s906_s24 }
 0x21b   : > { %415 = vrot.lane.b32.xlu1 %v963_v2, %s907_s25 }
 0x21f   : > { %413 = vrot.lane.b32.xlu1 %v963_v2, %s908_s26 }
 0x223   : > { %525 = vrot.lane.b32.xlu1 %v963_v2, %s909_s27 }
 0x293   : > { %v247_v21 = vpop.xlane.xlu1 %246 }
 0x294   : > { %862 = vrcp.f32 %v247_v21 }
 0x297   : > { %v302_v24 = vpop.permute.xlu1 %301 }
 0x29b   : > { %v416_v27 = vpop.permute.xlu1 %415 }
 0x29c   : > { %v421_v28 = vsel %vm184_vm1, %v416_v27, 0 }
 0x29e   : > { %v863_v22 = vpop.eup %862 }
 0x29f   : > { %v249_v23 = vmul.f32 %v863_v22, %v861_v18  ;;  %v414_v30 = vpop.permute.xlu1 %413 }
 0x2a1   : > { %v250_v25 = vpack.c.bf16 %v249_v23, %v249_v23 }
 0x2a3   : > { %781 = vmatmul.mubr.msk.bf16.vlgmr.msra.gmra.mrb[0].mxu1 %vm184_vm1, %v250_v25  ;;  %v526_v32 = vpop.permute.xlu1 %525 }
 0x2a4   : > { %785 = vmatpush3.bf16.xpose.msra.mxu1 %v309_v26  ;;  %786 = vmatprep.mubr.msk.bf16.mxu1 %vm901_vm0, %v900_v0 }
 0x2a5   : > { %796 = vmatprep.subr.bf16.mxu1 %v900_v0 }
 0x2ab   : > { %787 = vmatmul.mubr.msk.bf16.vlgmr.msra.gmra.mrb[4].mxu1 %vm184_vm1, %v302_v24 }
 0x2ac   : > { %797 = vmatpush3.bf16.xpose.msra.mxu1 %v421_v28  ;;  %798 = vmatprep.mubr.msk.bf16.mxu1 %vm901_vm0, %v900_v0 }
 0x2ad   : > { %808 = vmatprep.subr.bf16.mxu1 %v900_v0 }
 0x2b3   : > { %799 = vmatmul.mubr.msk.bf16.vlgmr.msra.gmra.mrb[8].mxu1 %vm184_vm1, %v414_v30 }
 0x2b4   : > { %809 = vmatpush3.bf16.xpose.msra.mxu1 %v533_v31  ;;  %810 = vmatprep.mubr.msk.bf16.mxu1 %vm901_vm0, %v900_v0 }
 0x2bb   : > { %811 = vmatmul.mubr.msk.bf16.vlgmr.msra.gmra.mrb[12].mxu1 %vm184_vm1, %v526_v32 }
 0x376   : > { %v1005_v33 = vpop.f32.mrb[0].mxu1 }
 0x377   : > { %v782_v34 = vpop.f32.mrb[1].mxu1 }
 0x378   : > { %v297_v35 = vpop.f32.mrb[2].mxu1 }
 0x379   : > { %v783_v36 = vpop.f32.mrb[3].mxu1 }
 0x37e   : > { %v345_v37 = vpop.f32.mrb[4].mxu1 }
 0x37f   : > { %v351_v38 = vmul.f32 0.35355338, %v345_v37  ;;  %v788_v39 = vpop.f32.mrb[5].mxu1 }
 0x380   : > { %v348_v40 = vpop.f32.mrb[6].mxu1 }
 0x381   : > { %v789_v41 = vpop.f32.mrb[7].mxu1  ;;  %v352_v42 = vadd.f32 %v978_v6, %v351_v38 }
 0x383   : > { %v353_v43 = vsel %vm184_vm1, %v352_v42, -inf }
 0x384   : > { %354 = vmax.xlane.f32.xlu1 %v353_v43 }
 0x386   : > { %v457_v44 = vpop.f32.mrb[8].mxu1 }
 0x387   : > { %v463_v45 = vmul.f32 0.35355338, %v457_v44  ;;  %v800_v46 = vpop.f32.mrb[9].mxu1 }
 0x388   : > { %v460_v47 = vpop.f32.mrb[10].mxu1 }
 0x389   : > { %v464_v48 = vadd.f32 %v978_v6, %v463_v45  ;;  %v801_v49 = vpop.f32.mrb[11].mxu1 }
 0x38b   : > { %v465_v50 = vsel %vm184_vm1, %v464_v48, -inf }
 0x38c   : > { %466 = vmax.xlane.f32.xlu0 %v465_v50 }
 0x38e   : > { %v569_v51 = vpop.f32.mrb[12].mxu1 }
 0x38f   : > { %v575_v52 = vmul.f32 0.35355338, %v569_v51  ;;  %v812_v53 = vpop.f32.mrb[13].mxu1 }
 0x390   : > { %v572_v54 = vpop.f32.mrb[14].mxu1 }
 0x391   : > { %v576_v55 = vadd.f32 %v978_v6, %v575_v52  ;;  %v813_v56 = vpop.f32.mrb[15].mxu1 }
 0x393   : > { %v577_v57 = vsel %vm184_vm1, %v576_v55, -inf }
 0x394   : > { %578 = vmax.xlane.f32.xlu1 %v577_v57 }
 0x411   : > { %v355_v58 = vpop.xlane.xlu1 %354 }
 0x412   : > { %v356_v59 = vsub.f32 %v352_v42, %v355_v58 }
 0x414   : > { %v357_v60 = vmul.f32 1.442695, %v356_v59 }
 0x416   : > { %864 = vpow2.f32 %v357_v60 }
 0x419   : > { %v467_v6 = vpop.xlane.xlu0 %466 }
 0x41a   : > { %v468_v7 = vsub.f32 %v464_v48, %v467_v6 }
 0x41c   : > { %v469_v8 = vmul.f32 1.442695, %v468_v7 }
 0x420   : > { %v865_v61 = vpop.eup %864 }
 0x421   : > { %v579_v62 = vpop.xlane.xlu1 %578  ;;  %v359_v63 = vsel %vm184_vm1, %v865_v61, 0.0 }
 0x422   : > { %v580_v1 = vsub.f32 %v576_v55, %v579_v62  ;;  %360 = vadd.xlane.f32.xlu1 %v359_v63 }
 0x424   : > { %v581_v3 = vmul.f32 1.442695, %v580_v1 }
 0x426   : > { %866 = vpow2.f32 %v581_v3 }
 0x427   : > { %868 = vpow2.f32 %v469_v8 }
 0x430   : > { %v867_v4 = vpop.eup %866 }
 0x431   : > { %v583_v5 = vsel %vm184_vm1, %v867_v4, 0.0  ;;  %v869_v9 = vpop.eup %868 }
 0x432   : > { %584 = vadd.xlane.f32.xlu0 %v583_v5  ;;  %v471_v10 = vsel %vm184_vm1, %v869_v9, 0.0 }
 0x433   : > { %365 = vrot.lane.b32.xlu1 %v963_v2, %s910_s28 }
 0x448   : > { %477 = vrot.lane.b32.xlu0 %v963_v2, %s911_s29 }
 0x457   : > { %472 = vadd.xlane.f32.xlu1 %v471_v10 }
 0x468   : > { %589 = vrot.lane.b32.xlu1 %v963_v2, %s912_s30 }
 0x4af   : > { %v361_v11 = vpop.xlane.xlu1 %360 }
 0x4b0   : > { %870 = vrcp.f32 %v361_v11 }
 0x4b3   : > { %v366_v12 = vpop.permute.xlu1 %365 }
 0x4b4   : > { %v371_v13 = vsel %vm256_vm2, %v366_v12, 0 }
 0x4b5   : > { %791 = vmatpush3.bf16.msra.mxu0 %v371_v13 }
 0x4b6   : > { %802 = vmatprep.subr.bf16.mxu0 %v900_v0 }
 0x4ba   : > { %v871_v14 = vpop.eup %870 }
 0x4bb   : > { %v363_v15 = vmul.f32 %v871_v14, %v865_v61 }
 0x4bd   : > { %v364_v16 = vpack.c.bf16 %v363_v15, %v363_v15 }
 0x4bf   : > { %793 = vmatmul.mubr.msk.bf16.vlgmr.msra.gmra.mrb[4].mxu0 %vm184_vm1, %v364_v16  ;;  %v585_v17 = vpop.xlane.xlu0 %584 }
 0x4c0   : > { %804 = vmatprep.mubr.msk.bf16.mxu0 %vm901_vm0, %v900_v0 }
 0x4c3   : > { %v478_v18 = vpop.permute.xlu0 %477 }
 0x4c4   : > { %v483_v2 = vsel %vm256_vm2, %v478_v18, 0 }
 0x4c5   : > { %803 = vmatpush3.bf16.msra.mxu0 %v483_v2 }
 0x4c6   : > { %814 = vmatprep.subr.bf16.mxu0 %v900_v0 }
 0x4e4   : > { %v473_v19 = vpop.xlane.xlu1 %472 }
 0x4e5   : > { %872 = vrcp.f32 %v473_v19 }
 0x4e6   : > { %874 = vrcp.f32 %v585_v17 }
 0x4e8   : > { %v590_v21 = vpop.permute.xlu1 %589 }
 0x4e9   : > { %v595_v23 = vsel %vm256_vm2, %v590_v21, 0 }
 0x4ef   : > { %v873_v20 = vpop.eup %872 }
 0x4f0   : > { %v475_v22 = vmul.f32 %v873_v20, %v869_v9  ;;  %v875_v25 = vpop.eup %874 }
 0x4f1   : > { %v587_v26 = vmul.f32 %v875_v25, %v867_v4 }
 0x4f2   : > { %v476_v24 = vpack.c.bf16 %v475_v22, %v475_v22 }
 0x4f3   : > { %v588_v27 = vpack.c.bf16 %v587_v26, %v587_v26 }
 0x4f4   : > { %805 = vmatmul.mubr.msk.bf16.vlgmr.msra.gmra.mrb[8].mxu0 %vm184_vm1, %v476_v24 }
 0x4f5   : > { %815 = vmatpush3.bf16.msra.mxu0 %v595_v23  ;;  %816 = vmatprep.mubr.msk.bf16.mxu0 %vm901_vm0, %v900_v0 }
 0x4fc   : > { %817 = vmatmul.mubr.msk.bf16.vlgmr.msra.gmra.mrb[12].mxu0 %vm184_vm1, %v588_v27 }
 0x592   : > { %v407_v28 = vpop.f32.mrb[4].mxu0 }
 0x593   : > { %638 = vrot.lane.b32.xlu1 %v407_v28, %s913_s3  ;;  %v794_v29 = vpop.f32.mrb[5].mxu0 }
 0x594   : > { %v410_v30 = vpop.f32.mrb[6].mxu0 }
 0x595   : > { %v795_v31 = vpop.f32.mrb[7].mxu0 }
 0x5c7   : > { %v519_v32 = vpop.f32.mrb[8].mxu0 }
 0x5c8   : > { %642 = vrot.lane.b32.xlu0 %v519_v32, %s914_s4  ;;  %v806_v34 = vpop.f32.mrb[9].mxu0 }
 0x5c9   : > { %v522_v35 = vpop.f32.mrb[10].mxu0 }
 0x5ca   : > { %v807_v36 = vpop.f32.mrb[11].mxu0 }
 0x5cf   : > { %v631_v37 = vpop.f32.mrb[12].mxu0 }
 0x5d0   : > { %646 = vrot.lane.b32.xlu1 %v631_v37, %s915_s5  ;;  %v818_v0 = vpop.f32.mrb[13].mxu0 }
 0x5d1   : > { %v634_v38 = vpop.f32.mrb[14].mxu0 }
 0x5d2   : > { %v819_v39 = vpop.f32.mrb[15].mxu0 }
 0x605   : > { %v639_v40 = vpop.permute.xlu1 %638 }
 0x606   : > { %v649_v42 = vsel %vm184_vm1, %v1005_v33, %v639_v40 }
 0x63a   : > { %v643_v41 = vpop.permute.xlu0 %642 }
 0x63b   : > { %v651_v43 = vsel %vm650_vm3, %v649_v42, %v643_v41 }
 0x642   : > { %v647_v44 = vpop.permute.xlu1 %646 }
 0x643   : > { %v653_v45 = vsel %vm652_vm4, %v651_v43, %v647_v44 }
 0x644   : > { %655 = vst.msk [vmem:[%s172_s8] sm:$0xff] %vm654_vm5, %v653_v45 }
 0x645 PF: > { %s12_s11 = sadd.s32 1, %s898_s11   ;;  %s1050_s9 = smov %s894_s10 }
 0x646   : > { %p9_p5 = scmp.ge.s32.totalorder %s12_s11, 12   ;;  %s1051_s10 = smov %s1053_s12 }
 0x648   :  { %11 = sbr.rel (!%p9_p5) target bundleno = 2 (0x2), region = 62 }

// kernel: encoder_forward.43
= control target key start
LH: loop header
LB: loop body
LE: loop exit
PB: predicated region body
PF: predicated region fallthrough
CT: control target
= control target key end

     0   :  { %v226_v0 = vmov 0.0   ;;  %vm227_vm0 = vmmov 0   ;;  %vm56_vm1 = vcmask 261120   ;;  %s372_s1 = inlined_call_operand.vmem [shape: bf16[32,32], index: 1, kind: input, shape index: {}]   ;;  %s373_s0 = inlined_call_operand.vmem [shape: f32[80,32], index: 0, kind: input, shape index: {}]   ;;  %s374_s2 = inlined_call_operand.vmem [shape: f32[1,32], index: 2, kind: input, shape index: {}]   ;;  %s375_s3 = inlined_call_operand.vmem [shape: f32[80,32], index: 3, kind: input, shape index: {}]   ;;  %s376_s4 = inlined_call_operand.vmem [shape: f32[80,32], index: 4, kind: output, shape index: {}]  }
   0x1   :  { %194 = vmatprep.subr.bf16.mxu0 %v226_v0  ;;  %v224_v1 = vld [vmem:[%s372_s1] sm:$0xff]   ;;  %218 = vmatprep.subr.bf16.mxu1 %v226_v0  ;;  %v225_v2 = vld [vmem:[%s372_s1 + $0x8] sm:$0xff]   ;;  %v24_v5 = vld [vmem:[%s373_s0 + $0x30] sm:$0xff] }
   0x2   :  { %198 = vmatprep.mubr.msk.bf16.mxu0 %vm227_vm0, %v226_v0  ;;  %210 = vmatprep.mubr.msk.bf16.mxu1 %vm227_vm0, %v226_v0  ;;  %v18_v3 = vld [vmem:[%s373_s0] sm:$0xff]  ;;  %v19_v4 = vld [vmem:[%s373_s0 + $0x8] sm:$0xff]  ;;  %v25_v6 = vld [vmem:[%s373_s0 + $0x38] sm:$0xff] }
   0x3   :  { %195 = vmatpush3.bf16.msra.mxu0 %v224_v1  ;;  %220 = vmatpush3.bf16.msra.mxu1 %v224_v1  ;;  %v28_v7 = vpack.c.bf16 %v19_v4, %v18_v3  ;;  %v31_v8 = vpack.c.bf16 %v25_v6, %v24_v5  ;;  %v20_v9 = vld [vmem:[%s373_s0 + $0x10] sm:$0xff]  ;;  %v21_v10 = vld [vmem:[%s373_s0 + $0x18] sm:$0xff]  ;;  %v26_v11 = vld [vmem:[%s373_s0 + $0x40] sm:$0xff] }
   0x4   :  { %196 = vmatprep.subr.bf16.mxu0 %v226_v0  ;;  %219 = vmatprep.subr.bf16.mxu1 %v226_v0  ;;  %v27_v12 = vld [vmem:[%s373_s0 + $0x48] sm:$0xff]  ;;  %v29_v13 = vpack.c.bf16 %v21_v10, %v20_v9  ;;  %v22_v15 = vld [vmem:[%s373_s0 + $0x20] sm:$0xff]  ;;  %v151_v22 = vld [vmem:[%s375_s3 + $0x30] sm:$0xff] }
   0x5   :  { %v32_v14 = vpack.c.bf16 %v27_v12, %v26_v11  ;;  %v23_v16 = vld [vmem:[%s373_s0 + $0x28] sm:$0xff]  ;;  %v179_v18 = vld [vmem:[%s374_s2] ss:$0 sm:$0xff]  ;;  %v152_v30 = vld [vmem:[%s375_s3 + $0x38] sm:$0xff] }
   0x6   :  { %v30_v17 = vpack.c.bf16 %v23_v16, %v22_v15  ;;  %v145_v20 = vld [vmem:[%s375_s3] sm:$0xff]  ;;  %v146_v28 = vld [vmem:[%s375_s3 + $0x8] sm:$0xff]  ;;  %v147_v40 = vld [vmem:[%s375_s3 + $0x10] sm:$0xff] }
   0x7   :  { %197 = vmatpush3.bf16.msra.mxu0 %v225_v2  ;;  %221 = vmatpush3.bf16.msra.mxu1 %v225_v2  ;;  %v153_v42 = vld [vmem:[%s375_s3 + $0x40] sm:$0xff]  ;;  %v148_v48 = vld [vmem:[%s375_s3 + $0x18] sm:$0xff]  ;;  %v154_v50 = vld [vmem:[%s375_s3 + $0x48] sm:$0xff] }
   0x8   :  { %v149_v60 = vld [vmem:[%s375_s3 + $0x20] sm:$0xff] }
   0xa   :  { %199 = vmatmul.mubr.msk.bf16.vlgmr.msra.gmra.mrb[0].mxu0 %vm56_vm1, %v28_v7  ;;  %211 = vmatmul.mubr.msk.bf16.vlgmr.msra.gmra.mrb[0].mxu1 %vm56_vm1, %v31_v8 }
   0xb   :  { %202 = vmatprep.mubr.msk.bf16.mxu0 %vm227_vm0, %v226_v0  ;;  %214 = vmatprep.mubr.msk.bf16.mxu1 %vm227_vm0, %v226_v0 }
  0x12   :  { %203 = vmatmul.mubr.msk.bf16.gmra.mrb[4].mxu0 %vm56_vm1, %v29_v13  ;;  %215 = vmatmul.mubr.msk.bf16.gmra.mrb[4].mxu1 %vm56_vm1, %v32_v14 }
  0x13   :  { %206 = vmatprep.mubr.msk.bf16.mxu0 %vm227_vm0, %v226_v0  ;;  %v150_v0 = vld [vmem:[%s375_s3 + $0x28] sm:$0xff] }
  0x1a   :  { %207 = vmatmul.mubr.msk.bf16.gmra.mrb[8].mxu0 %vm56_vm1, %v30_v17 }
  0xdd   :  { %v106_v19 = vpop.f32.mrb[0].mxu0  ;;  %v130_v21 = vpop.f32.mrb[0].mxu1 }
  0xde   :  { %v107_v23 = vadd.f32 %v179_v18, %v106_v19  ;;  %v200_v24 = vpop.f32.mrb[1].mxu0  ;;  %v131_v25 = vadd.f32 %v179_v18, %v130_v21  ;;  %v212_v26 = vpop.f32.mrb[1].mxu1 }
  0xdf   :  { %v109_v27 = vpop.f32.mrb[2].mxu0  ;;  %v133_v29 = vpop.f32.mrb[2].mxu1 }
  0xe0   :  { %v155_v31 = vadd.f32 %v145_v20, %v107_v23  ;;  %v110_v32 = vadd.f32 %v179_v18, %v109_v27  ;;  %v201_v33 = vpop.f32.mrb[3].mxu0  ;;  %v161_v34 = vadd.f32 %v151_v22, %v131_v25  ;;  %v134_v35 = vadd.f32 %v179_v18, %v133_v29  ;;  %v213_v36 = vpop.f32.mrb[3].mxu1 }
  0xe2   :  { %165 = vst.msk [vmem:[%s376_s4] sm:$0xff] %vm56_vm1, %v155_v31  ;;  %v156_v37 = vadd.f32 %v146_v28, %v110_v32  ;;  %171 = vst.msk [vmem:[%s376_s4 + $0x30] sm:$0xff] %vm56_vm1, %v161_v34  ;;  %v162_v38 = vadd.f32 %v152_v30, %v134_v35 }
  0xe4   :  { %166 = vst.msk [vmem:[%s376_s4 + $0x8] sm:$0xff] %vm56_vm1, %v156_v37  ;;  %172 = vst.msk [vmem:[%s376_s4 + $0x38] sm:$0xff] %vm56_vm1, %v162_v38 }
  0xe5   :  { %v114_v39 = vpop.f32.mrb[4].mxu0  ;;  %v138_v41 = vpop.f32.mrb[4].mxu1 }
  0xe6   :  { %v115_v43 = vadd.f32 %v179_v18, %v114_v39  ;;  %v204_v44 = vpop.f32.mrb[5].mxu0  ;;  %v139_v45 = vadd.f32 %v179_v18, %v138_v41  ;;  %v216_v46 = vpop.f32.mrb[5].mxu1 }
  0xe7   :  { %v117_v47 = vpop.f32.mrb[6].mxu0  ;;  %v141_v49 = vpop.f32.mrb[6].mxu1 }
  0xe8   :  { %v157_v51 = vadd.f32 %v147_v40, %v115_v43  ;;  %v118_v52 = vadd.f32 %v179_v18, %v117_v47  ;;  %v205_v53 = vpop.f32.mrb[7].mxu0  ;;  %v163_v54 = vadd.f32 %v153_v42, %v139_v45  ;;  %v142_v55 = vadd.f32 %v179_v18, %v141_v49  ;;  %v217_v56 = vpop.f32.mrb[7].mxu1 }
  0xea   :  { %167 = vst.msk [vmem:[%s376_s4 + $0x10] sm:$0xff] %vm56_vm1, %v157_v51  ;;  %v158_v57 = vadd.f32 %v148_v48, %v118_v52  ;;  %173 = vst.msk [vmem:[%s376_s4 + $0x40] sm:$0xff] %vm56_vm1, %v163_v54  ;;  %v164_v58 = vadd.f32 %v154_v50, %v142_v55 }
  0xec   :  { %168 = vst.msk [vmem:[%s376_s4 + $0x18] sm:$0xff] %vm56_vm1, %v158_v57  ;;  %174 = vst.msk [vmem:[%s376_s4 + $0x48] sm:$0xff] %vm56_vm1, %v164_v58 }
  0xed   :  { %v122_v59 = vpop.f32.mrb[8].mxu0 }
  0xee   :  { %v123_v61 = vadd.f32 %v179_v18, %v122_v59  ;;  %v208_v62 = vpop.f32.mrb[9].mxu0 }
  0xef   :  { %v125_v63 = vpop.f32.mrb[10].mxu0 }
  0xf0   :  { %v159_v1 = vadd.f32 %v149_v60, %v123_v61  ;;  %v126_v2 = vadd.f32 %v179_v18, %v125_v63  ;;  %v209_v3 = vpop.f32.mrb[11].mxu0 }
  0xf2   :  { %169 = vst.msk [vmem:[%s376_s4 + $0x20] sm:$0xff] %vm56_vm1, %v159_v1  ;;  %v160_v4 = vadd.f32 %v150_v0, %v126_v2 }
  0xf4   :  { %170 = vst.msk [vmem:[%s376_s4 + $0x28] sm:$0xff] %vm56_vm1, %v160_v4 }

// kernel: encoder_forward.44
= control target key start
LH: loop header
LB: loop body
LE: loop exit
PB: predicated region body
PF: predicated region fallthrough
CT: control target
= control target key end

     0   :  { %vm35_vm0 = vcmask 261120   ;;  %vm422_vm1 = vmmov 0   ;;  %s661_s0 = inlined_call_operand.vmem [shape: f32[80,32], index: 0, kind: input, shape index: {}]   ;;  %s662_s3 = inlined_call_operand.vmem [shape: bf16[32,32], index: 3, kind: input, shape index: {}]   ;;  %s663_s1 = inlined_call_operand.vmem [shape: f32[1,32], index: 1, kind: input, shape index: {}]   ;;  %s664_s2 = inlined_call_operand.vmem [shape: f32[1,32], index: 2, kind: input, shape index: {}]   ;;  %s665_s4 = inlined_call_operand.vmem [shape: f32[1,32], index: 4, kind: input, shape index: {}]   ;;  %s666_s5 = inlined_call_operand.vmem [shape: f32[80,32], index: 5, kind: output, shape index: {}]  }
   0x1   :  { %v25_v0 = vld [vmem:[%s661_s0] sm:$0xff]  ;;  %v27_v1 = vld [vmem:[%s661_s0 + $0x10] sm:$0xff]  ;;  %v26_v2 = vld [vmem:[%s661_s0 + $0x8] sm:$0xff] }
   0x2   :  { %v36_v3 = vsel %vm35_vm0, %v25_v0, 0.0  ;;  %v42_v4 = vsel %vm35_vm0, %v27_v1, 0.0  ;;  %v28_v5 = vld [vmem:[%s661_s0 + $0x18] sm:$0xff]  ;;  %v39_v6 = vsel %vm35_vm0, %v26_v2, 0.0  ;;  %v31_v8 = vld [vmem:[%s661_s0 + $0x30] sm:$0xff]  ;;  %v29_v12 = vld [vmem:[%s661_s0 + $0x20] sm:$0xff] }
   0x3   :  { %37 = vadd.xlane.f32.xlu0 %v36_v3  ;;  %43 = vadd.xlane.f32.xlu1 %v42_v4  ;;  %v45_v7 = vsel %vm35_vm0, %v28_v5, 0.0  ;;  %v32_v9 = vld [vmem:[%s661_s0 + $0x38] sm:$0xff]  ;;  %v54_v10 = vsel %vm35_vm0, %v31_v8, 0.0  ;;  %v30_v13 = vld [vmem:[%s661_s0 + $0x28] sm:$0xff]  ;;  %v48_v14 = vsel %vm35_vm0, %v29_v12, 0.0  ;;  %v33_v16 = vld [vmem:[%s661_s0 + $0x40] sm:$0xff] }
   0x4   :  { %v57_v11 = vsel %vm35_vm0, %v32_v9, 0.0  ;;  %v51_v15 = vsel %vm35_vm0, %v30_v13, 0.0  ;;  %v34_v17 = vld [vmem:[%s661_s0 + $0x48] sm:$0xff]  ;;  %v60_v18 = vsel %vm35_vm0, %v33_v16, 0.0 }
   0x5   :  { %v63_v19 = vsel %vm35_vm0, %v34_v17, 0.0 }
   0x7   :  { %40 = vadd.xlane.f32.xlu0 %v39_v6  ;;  %46 = vadd.xlane.f32.xlu1 %v45_v7  ;;  %v399_v6 = vld [vmem:[%s662_s3] sm:$0xff]   ;;  %v421_v7 = vmov 0.0  }
   0x8   :  { %369 = vmatprep.subr.bf16.mxu0 %v421_v7  ;;  %393 = vmatprep.subr.bf16.mxu1 %v421_v7 }
   0x9   :  { %370 = vmatpush3.bf16.msra.mxu0 %v399_v6  ;;  %395 = vmatpush3.bf16.msra.mxu1 %v399_v6 }
   0xa   :  { %371 = vmatprep.subr.bf16.mxu0 %v421_v7  ;;  %394 = vmatprep.subr.bf16.mxu1 %v421_v7 }
   0xb   :  { %55 = vadd.xlane.f32.xlu0 %v54_v10  ;;  %58 = vadd.xlane.f32.xlu1 %v57_v11 }
   0xc   :  { %373 = vmatprep.mubr.msk.bf16.mxu0 %vm422_vm1, %v421_v7  ;;  %385 = vmatprep.mubr.msk.bf16.mxu1 %vm422_vm1, %v421_v7 }
   0xf   :  { %49 = vadd.xlane.f32.xlu0 %v48_v14  ;;  %52 = vadd.xlane.f32.xlu1 %v51_v15 }
  0x13   :  { %61 = vadd.xlane.f32.xlu0 %v60_v18  ;;  %64 = vadd.xlane.f32.xlu1 %v63_v19 }
  0x90   :  { %v38_v20 = vpop.xlane.xlu0 %37  ;;  %v44_v21 = vpop.xlane.xlu1 %43 }
  0x91   :  { %v67_v22 = vmul.f32 0.03125, %v38_v20  ;;  %v69_v23 = vmul.f32 0.03125, %v44_v21 }
  0x93   :  { %v493_v24 = vsub.f32 %v25_v0, %v67_v22  ;;  %v495_v25 = vsub.f32 %v27_v1, %v69_v23 }
  0x94   :  { %v41_v26 = vpop.xlane.xlu0 %40  ;;  %v47_v27 = vpop.xlane.xlu1 %46 }
  0x95   :  { %v68_v28 = vmul.f32 0.03125, %v41_v26  ;;  %v70_v29 = vmul.f32 0.03125, %v47_v27  ;;  %v87_v30 = vmul.f32 %v493_v24, %v493_v24  ;;  %v89_v31 = vmul.f32 %v495_v25, %v495_v25 }
  0x97   :  { %v501_v32 = vsub.f32 %v26_v2, %v68_v28  ;;  %v503_v33 = vsub.f32 %v28_v5, %v70_v29  ;;  %v97_v34 = vsel %vm35_vm0, %v87_v30, 0.0  ;;  %v103_v37 = vsel %vm35_vm0, %v89_v31, 0.0  ;;  %v560_v31 = vld [vmem:[%s663_s1] ss:$0 sm:$0xff] }
  0x98   :  { %98 = vadd.xlane.f32.xlu0 %v97_v34  ;;  %v56_v35 = vpop.xlane.xlu0 %55  ;;  %v59_v36 = vpop.xlane.xlu1 %58 }
  0x99   :  { %v73_v38 = vmul.f32 0.03125, %v56_v35  ;;  %v74_v39 = vmul.f32 0.03125, %v59_v36  ;;  %v88_v40 = vmul.f32 %v501_v32, %v501_v32  ;;  %v90_v41 = vmul.f32 %v503_v33, %v503_v33 }
  0x9b   :  { %v511_v42 = vsub.f32 %v31_v8, %v73_v38  ;;  %v513_v43 = vsub.f32 %v32_v9, %v74_v39  ;;  %v100_v44 = vsel %vm35_vm0, %v88_v40, 0.0  ;;  %v106_v47 = vsel %vm35_vm0, %v90_v41, 0.0  ;;  %v400_v8 = vld [vmem:[%s662_s3 + $0x8] sm:$0xff]   ;;  %v566_v39 = vld [vmem:[%s664_s2] ss:$0 sm:$0xff] }
  0x9c   :  { %104 = vadd.xlane.f32.xlu0 %v103_v37  ;;  %101 = vadd.xlane.f32.xlu1 %v100_v44  ;;  %v50_v45 = vpop.xlane.xlu0 %49  ;;  %v53_v46 = vpop.xlane.xlu1 %52 }
  0x9d   :  { %v71_v48 = vmul.f32 0.03125, %v50_v45  ;;  %v72_v49 = vmul.f32 0.03125, %v53_v46  ;;  %v93_v50 = vmul.f32 %v511_v42, %v511_v42  ;;  %v94_v51 = vmul.f32 %v513_v43, %v513_v43  ;;  %372 = vmatpush3.bf16.msra.mxu0 %v400_v8  ;;  %396 = vmatpush3.bf16.msra.mxu1 %v400_v8 }
  0x9f   :  { %v521_v52 = vsub.f32 %v29_v12, %v71_v48  ;;  %v523_v53 = vsub.f32 %v30_v13, %v72_v49  ;;  %v115_v54 = vsel %vm35_vm0, %v93_v50, 0.0  ;;  %v118_v57 = vsel %vm35_vm0, %v94_v51, 0.0 }
  0xa0   :  { %107 = vadd.xlane.f32.xlu1 %v106_v47  ;;  %116 = vadd.xlane.f32.xlu0 %v115_v54  ;;  %v62_v55 = vpop.xlane.xlu0 %61  ;;  %v65_v56 = vpop.xlane.xlu1 %64 }
  0xa1   :  { %v75_v58 = vmul.f32 0.03125, %v62_v55  ;;  %v76_v59 = vmul.f32 0.03125, %v65_v56  ;;  %v91_v60 = vmul.f32 %v521_v52, %v521_v52  ;;  %v92_v61 = vmul.f32 %v523_v53, %v523_v53 }
  0xa3   :  { %v531_v62 = vsub.f32 %v33_v16, %v75_v58  ;;  %v533_v63 = vsub.f32 %v34_v17, %v76_v59  ;;  %v109_v0 = vsel %vm35_vm0, %v91_v60, 0.0  ;;  %v112_v1 = vsel %vm35_vm0, %v92_v61, 0.0 }
  0xa4   :  { %119 = vadd.xlane.f32.xlu1 %v118_v57  ;;  %110 = vadd.xlane.f32.xlu0 %v109_v0 }
  0xa5   :  { %v95_v2 = vmul.f32 %v531_v62, %v531_v62  ;;  %v96_v3 = vmul.f32 %v533_v63, %v533_v63 }
  0xa7   :  { %v121_v4 = vsel %vm35_vm0, %v95_v2, 0.0  ;;  %v124_v5 = vsel %vm35_vm0, %v96_v3, 0.0 }
  0xa8   :  { %113 = vadd.xlane.f32.xlu1 %v112_v1  ;;  %122 = vadd.xlane.f32.xlu0 %v121_v4 }
  0xac   :  { %125 = vadd.xlane.f32.xlu1 %v124_v5 }
 0x125   :  { %v99_v9 = vpop.xlane.xlu0 %98 }
 0x126   :  { %v127_v10 = vmul.f32 0.03125, %v99_v9 }
 0x128   :  { %v137_v11 = vadd.f32 1e-06, %v127_v10 }
 0x129   :  { %v102_v12 = vpop.xlane.xlu1 %101  ;;  %v105_v13 = vpop.xlane.xlu0 %104 }
 0x12a   :  { %401 = vrsqrt.f32 %v137_v11  ;;  %v128_v14 = vmul.f32 0.03125, %v102_v12  ;;  %v129_v15 = vmul.f32 0.03125, %v105_v13 }
 0x12c   :  { %v138_v16 = vadd.f32 1e-06, %v128_v14  ;;  %v139_v17 = vadd.f32 1e-06, %v129_v15 }
 0x12d   :  { %v108_v18 = vpop.xlane.xlu1 %107  ;;  %v117_v19 = vpop.xlane.xlu0 %116 }
 0x12e   :  { %403 = vrsqrt.f32 %v138_v16  ;;  %v130_v20 = vmul.f32 0.03125, %v108_v18  ;;  %v133_v21 = vmul.f32 0.03125, %v117_v19 }
 0x12f   :  { %405 = vrsqrt.f32 %v139_v17 }
 0x130   :  { %v140_v22 = vadd.f32 1e-06, %v130_v20  ;;  %v143_v23 = vadd.f32 1e-06, %v133_v21 }
 0x131   :  { %v120_v26 = vpop.xlane.xlu1 %119  ;;  %v111_v27 = vpop.xlane.xlu0 %110 }
 0x132   :  { %407 = vrsqrt.f32 %v140_v22  ;;  %v134_v28 = vmul.f32 0.03125, %v120_v26  ;;  %v131_v29 = vmul.f32 0.03125, %v111_v27 }
 0x133   :  { %409 = vrsqrt.f32 %v143_v23 }
 0x134   :  { %v402_v30 = vpop.eup %401  ;;  %v144_v34 = vadd.f32 1e-06, %v134_v28  ;;  %v141_v35 = vadd.f32 1e-06, %v131_v29 }
 0x135   :  { %v157_v36 = vmul.f32 %v402_v30, %v493_v24  ;;  %v114_v37 = vpop.xlane.xlu1 %113  ;;  %v123_v38 = vpop.xlane.xlu0 %122 }
 0x136   :  { %411 = vrsqrt.f32 %v144_v34  ;;  %v132_v40 = vmul.f32 0.03125, %v114_v37  ;;  %v135_v41 = vmul.f32 0.03125, %v123_v38  ;;  %v354_v37 = vld [vmem:[%s665_s4] ss:$0 sm:$0xff] }
 0x137   :  { %v174_v44 = vmul.f32 %v560_v31, %v157_v36  ;;  %413 = vrsqrt.f32 %v141_v35 }
 0x138   :  { %v404_v45 = vpop.eup %403  ;;  %v142_v46 = vadd.f32 1e-06, %v132_v40  ;;  %v145_v47 = vadd.f32 1e-06, %v135_v41 }
 0x139   :  { %v406_v48 = vpop.eup %405  ;;  %v191_v49 = vadd.f32 %v566_v39, %v174_v44  ;;  %v158_v24 = vmul.f32 %v404_v45, %v501_v32  ;;  %v126_v50 = vpop.xlane.xlu1 %125 }
 0x13a   :  { %v159_v51 = vmul.f32 %v406_v48, %v495_v25  ;;  %415 = vrsqrt.f32 %v142_v46  ;;  %v136_v54 = vmul.f32 0.03125, %v126_v50 }
 0x13b   :  { %201 = vst.msk [vmem:[#allocation2] sm:$0xff] %vm35_vm0, %v191_v49  ;;  %v175_v55 = vmul.f32 %v560_v31, %v158_v24  ;;  %417 = vrsqrt.f32 %v145_v47 }
 0x13c   :  { %v408_v56 = vpop.eup %407  ;;  %v176_v57 = vmul.f32 %v560_v31, %v159_v51  ;;  %v146_v58 = vadd.f32 1e-06, %v136_v54 }
 0x13d   :  { %v410_v59 = vpop.eup %409  ;;  %v192_v60 = vadd.f32 %v566_v39, %v175_v55  ;;  %v160_v61 = vmul.f32 %v408_v56, %v503_v33 }
 0x13e   :  { %v193_v32 = vadd.f32 %v566_v39, %v176_v57  ;;  %v163_v25 = vmul.f32 %v410_v59, %v511_v42  ;;  %419 = vrsqrt.f32 %v146_v58 }
 0x13f   :  { %202 = vst.msk [vmem:[#allocation2 + $0x8] sm:$0xff] %vm35_vm0, %v192_v60  ;;  %v177_v0 = vmul.f32 %v560_v31, %v160_v61 }
 0x140   :  { %v412_v1 = vpop.eup %411  ;;  %203 = vst.msk [vmem:[#allocation2 + $0x10] sm:$0xff] %vm35_vm0, %v193_v32  ;;  %v180_v2 = vmul.f32 %v560_v31, %v163_v25 }
 0x141   :  { %v414_v3 = vpop.eup %413  ;;  %v194_v4 = vadd.f32 %v566_v39, %v177_v0  ;;  %v164_v5 = vmul.f32 %v412_v1, %v513_v43 }
 0x142   :  { %v197_v33 = vadd.f32 %v566_v39, %v180_v2  ;;  %v161_v6 = vmul.f32 %v414_v3, %v521_v52  ;;  %v211_v14 = vld [vmem:[#allocation2] sm:$0xff] }
 0x143   :  { %204 = vst.msk [vmem:[#allocation2 + $0x18] sm:$0xff] %vm35_vm0, %v194_v4  ;;  %v181_v42 = vmul.f32 %v560_v31, %v164_v5 }
 0x144   :  { %v416_v8 = vpop.eup %415  ;;  %207 = vst.msk [vmem:[#allocation2 + $0x30] sm:$0xff] %vm35_vm0, %v197_v33  ;;  %v178_v9 = vmul.f32 %v560_v31, %v161_v6 }
 0x145   :  { %v418_v10 = vpop.eup %417  ;;  %v198_v11 = vadd.f32 %v566_v39, %v181_v42  ;;  %v162_v12 = vmul.f32 %v416_v8, %v523_v53 }
 0x146   :  { %v195_v43 = vadd.f32 %v566_v39, %v178_v9  ;;  %v165_v13 = vmul.f32 %v418_v10, %v531_v62  ;;  %v212_v52 = vld [vmem:[#allocation2 + $0x8] sm:$0xff] }
 0x147   :  { %208 = vst.msk [vmem:[#allocation2 + $0x38] sm:$0xff] %vm35_vm0, %v198_v11  ;;  %v179_v15 = vmul.f32 %v560_v31, %v162_v12  ;;  %v221_v16 = vpack.c.bf16 %v212_v52, %v211_v14  ;;  %v213_v23 = vld [vmem:[#allocation2 + $0x10] sm:$0xff] }
 0x148   :  { %v420_v17 = vpop.eup %419  ;;  %205 = vst.msk [vmem:[#allocation2 + $0x20] sm:$0xff] %vm35_vm0, %v195_v43  ;;  %v182_v18 = vmul.f32 %v560_v31, %v165_v13 }
 0x149   :  { %v196_v19 = vadd.f32 %v566_v39, %v179_v15  ;;  %v166_v53 = vmul.f32 %v420_v17, %v533_v63  ;;  %374 = vmatmul.mubr.msk.bf16.vlgmr.msra.gmra.mrb[0].mxu0 %vm35_vm0, %v221_v16 }
 0x14a   :  { %v199_v62 = vadd.f32 %v566_v39, %v182_v18  ;;  %377 = vmatprep.mubr.msk.bf16.mxu0 %vm422_vm1, %v421_v7  ;;  %v214_v21 = vld [vmem:[#allocation2 + $0x18] sm:$0xff] }
 0x14b   :  { %206 = vst.msk [vmem:[#allocation2 + $0x28] sm:$0xff] %vm35_vm0, %v196_v19  ;;  %v183_v20 = vmul.f32 %v560_v31, %v166_v53  ;;  %v217_v26 = vld [vmem:[#allocation2 + $0x30] sm:$0xff]  ;;  %v222_v63 = vpack.c.bf16 %v214_v21, %v213_v23 }
 0x14c   :  { %209 = vst.msk [vmem:[#allocation2 + $0x40] sm:$0xff] %vm35_vm0, %v199_v62 }
 0x14d   :  { %v200_v22 = vadd.f32 %v566_v39, %v183_v20 }
 0x14e   :  { %v218_v27 = vld [vmem:[#allocation2 + $0x38] sm:$0xff] }
 0x14f   :  { %210 = vst.msk [vmem:[#allocation2 + $0x48] sm:$0xff] %vm35_vm0, %v200_v22  ;;  %v224_v28 = vpack.c.bf16 %v218_v27, %v217_v26  ;;  %v215_v30 = vld [vmem:[#allocation2 + $0x20] sm:$0xff] }
 0x151   :  { %378 = vmatmul.mubr.msk.bf16.gmra.mrb[4].mxu0 %vm35_vm0, %v222_v63  ;;  %386 = vmatmul.mubr.msk.bf16.vlgmr.msra.gmra.mrb[0].mxu1 %vm35_vm0, %v224_v28 }
 0x152   :  { %381 = vmatprep.mubr.msk.bf16.mxu0 %vm422_vm1, %v421_v7  ;;  %389 = vmatprep.mubr.msk.bf16.mxu1 %vm422_vm1, %v421_v7  ;;  %v216_v29 = vld [vmem:[#allocation2 + $0x28] sm:$0xff] }
 0x153   :  { %v219_v31 = vld [vmem:[#allocation2 + $0x40] sm:$0xff]  ;;  %v223_v35 = vpack.c.bf16 %v216_v29, %v215_v30 }
 0x156   :  { %v220_v34 = vld [vmem:[#allocation2 + $0x48] sm:$0xff] }
 0x157   :  { %v225_v36 = vpack.c.bf16 %v220_v34, %v219_v31 }
 0x159   :  { %382 = vmatmul.mubr.msk.bf16.gmra.mrb[8].mxu0 %vm35_vm0, %v223_v35  ;;  %390 = vmatmul.mubr.msk.bf16.gmra.mrb[4].mxu1 %vm35_vm0, %v225_v36 }
 0x21c   :  { %v299_v38 = vpop.f32.mrb[0].mxu0 }
 0x21d   :  { %v300_v39 = vadd.f32 %v354_v37, %v299_v38  ;;  %v375_v40 = vpop.f32.mrb[1].mxu0 }
 0x21e   :  { %v302_v41 = vpop.f32.mrb[2].mxu0 }
 0x21f   :  { %338 = vst.msk [vmem:[%s666_s5] sm:$0xff] %vm35_vm0, %v300_v39  ;;  %v303_v7 = vadd.f32 %v354_v37, %v302_v41  ;;  %v376_v44 = vpop.f32.mrb[3].mxu0 }
 0x221   :  { %339 = vst.msk [vmem:[%s666_s5 + $0x8] sm:$0xff] %vm35_vm0, %v303_v7 }
 0x224   :  { %v307_v45 = vpop.f32.mrb[4].mxu0  ;;  %v323_v46 = vpop.f32.mrb[0].mxu1 }
 0x225   :  { %v308_v47 = vadd.f32 %v354_v37, %v307_v45  ;;  %v324_v48 = vadd.f32 %v354_v37, %v323_v46  ;;  %v379_v49 = vpop.f32.mrb[5].mxu0  ;;  %v387_v24 = vpop.f32.mrb[1].mxu1 }
 0x226   :  { %v310_v50 = vpop.f32.mrb[6].mxu0  ;;  %v326_v51 = vpop.f32.mrb[2].mxu1 }
 0x227   :  { %340 = vst.msk [vmem:[%s666_s5 + $0x10] sm:$0xff] %vm35_vm0, %v308_v47  ;;  %344 = vst.msk [vmem:[%s666_s5 + $0x30] sm:$0xff] %vm35_vm0, %v324_v48  ;;  %v311_v54 = vadd.f32 %v354_v37, %v310_v50  ;;  %v327_v55 = vadd.f32 %v354_v37, %v326_v51  ;;  %v380_v56 = vpop.f32.mrb[7].mxu0  ;;  %v388_v57 = vpop.f32.mrb[3].mxu1 }
 0x229   :  { %341 = vst.msk [vmem:[%s666_s5 + $0x18] sm:$0xff] %vm35_vm0, %v311_v54  ;;  %345 = vst.msk [vmem:[%s666_s5 + $0x38] sm:$0xff] %vm35_vm0, %v327_v55 }
 0x22c   :  { %v315_v58 = vpop.f32.mrb[8].mxu0  ;;  %v331_v59 = vpop.f32.mrb[4].mxu1 }
 0x22d   :  { %v316_v60 = vadd.f32 %v354_v37, %v315_v58  ;;  %v332_v61 = vadd.f32 %v354_v37, %v331_v59  ;;  %v383_v32 = vpop.f32.mrb[9].mxu0  ;;  %v391_v25 = vpop.f32.mrb[5].mxu1 }
 0x22e   :  { %v318_v0 = vpop.f32.mrb[10].mxu0  ;;  %v334_v1 = vpop.f32.mrb[6].mxu1 }
 0x22f   :  { %342 = vst.msk [vmem:[%s666_s5 + $0x20] sm:$0xff] %vm35_vm0, %v316_v60  ;;  %346 = vst.msk [vmem:[%s666_s5 + $0x40] sm:$0xff] %vm35_vm0, %v332_v61  ;;  %v319_v2 = vadd.f32 %v354_v37, %v318_v0  ;;  %v335_v3 = vadd.f32 %v354_v37, %v334_v1  ;;  %v384_v4 = vpop.f32.mrb[11].mxu0  ;;  %v392_v5 = vpop.f32.mrb[7].mxu1 }
 0x231   :  { %343 = vst.msk [vmem:[%s666_s5 + $0x28] sm:$0xff] %vm35_vm0, %v319_v2  ;;  %347 = vst.msk [vmem:[%s666_s5 + $0x48] sm:$0xff] %vm35_vm0, %v335_v3 }

// kernel: encoder_forward.45
= control target key start
LH: loop header
LB: loop body
LE: loop exit
PB: predicated region body
PF: predicated region fallthrough
CT: control target
= control target key end

     0   :  { %v204_v0 = vmov 0.0   ;;  %vm205_vm0 = vmmov 0   ;;  %vm53_vm1 = vcmask 261120   ;;  %vm142_vm2 = vcmask 523264   ;;  %s315_s1 = inlined_call_operand.vmem [shape: bf16[32,64], index: 1, kind: input, shape index: {}]   ;;  %s316_s0 = inlined_call_operand.vmem [shape: f32[80,32], index: 0, kind: input, shape index: {}]   ;;  %s317_s2 = inlined_call_operand.vmem [shape: f32[1,64], index: 2, kind: input, shape index: {}]   ;;  %s318_s3 = inlined_call_operand.vmem [shape: f32[80,64], index: 3, kind: output, shape index: {}]  }
   0x1   :  { %172 = vmatprep.subr.bf16.mxu0 %v204_v0  ;;  %v202_v1 = vld [vmem:[%s315_s1] sm:$0xff]   ;;  %196 = vmatprep.subr.bf16.mxu1 %v204_v0  ;;  %v203_v2 = vld [vmem:[%s315_s1 + $0x8] sm:$0xff]   ;;  %v21_v5 = vld [vmem:[%s316_s0 + $0x30] sm:$0xff] }
   0x2   :  { %176 = vmatprep.mubr.msk.bf16.mxu0 %vm205_vm0, %v204_v0  ;;  %188 = vmatprep.mubr.msk.bf16.mxu1 %vm205_vm0, %v204_v0  ;;  %v15_v3 = vld [vmem:[%s316_s0] sm:$0xff]  ;;  %v16_v4 = vld [vmem:[%s316_s0 + $0x8] sm:$0xff]  ;;  %v22_v6 = vld [vmem:[%s316_s0 + $0x38] sm:$0xff] }
   0x3   :  { %173 = vmatpush3.bf16.msra.mxu0 %v202_v1  ;;  %198 = vmatpush3.bf16.msra.mxu1 %v202_v1  ;;  %v25_v7 = vpack.c.bf16 %v16_v4, %v15_v3  ;;  %v28_v8 = vpack.c.bf16 %v22_v6, %v21_v5  ;;  %v17_v9 = vld [vmem:[%s316_s0 + $0x10] sm:$0xff]  ;;  %v18_v10 = vld [vmem:[%s316_s0 + $0x18] sm:$0xff]  ;;  %v23_v11 = vld [vmem:[%s316_s0 + $0x40] sm:$0xff] }
   0x4   :  { %174 = vmatprep.subr.bf16.mxu0 %v204_v0  ;;  %197 = vmatprep.subr.bf16.mxu1 %v204_v0  ;;  %v24_v12 = vld [vmem:[%s316_s0 + $0x48] sm:$0xff]  ;;  %v26_v13 = vpack.c.bf16 %v18_v10, %v17_v9  ;;  %v19_v15 = vld [vmem:[%s316_s0 + $0x20] sm:$0xff] }
   0x5   :  { %v29_v14 = vpack.c.bf16 %v24_v12, %v23_v11  ;;  %v20_v16 = vld [vmem:[%s316_s0 + $0x28] sm:$0xff]  ;;  %v157_v18 = vld [vmem:[%s317_s2] ss:$0 sm:$0xff] }
   0x6   :  { %v27_v17 = vpack.c.bf16 %v20_v16, %v19_v15 }
   0x7   :  { %175 = vmatpush3.bf16.msra.mxu0 %v203_v2  ;;  %199 = vmatpush3.bf16.msra.mxu1 %v203_v2 }
   0xa   :  { %177 = vmatmul.mubr.msk.bf16.vlgmr.msra.gmra.mrb[0].mxu0 %vm53_vm1, %v25_v7  ;;  %189 = vmatmul.mubr.msk.bf16.vlgmr.msra.gmra.mrb[0].mxu1 %vm53_vm1, %v28_v8 }
   0xb   :  { %180 = vmatprep.mubr.msk.bf16.mxu0 %vm205_vm0, %v204_v0  ;;  %192 = vmatprep.mubr.msk.bf16.mxu1 %vm205_vm0, %v204_v0 }
  0x12   :  { %181 = vmatmul.mubr.msk.bf16.gmra.mrb[4].mxu0 %vm53_vm1, %v26_v13  ;;  %193 = vmatmul.mubr.msk.bf16.gmra.mrb[4].mxu1 %vm53_vm1, %v29_v14 }
  0x13   :  { %184 = vmatprep.mubr.msk.bf16.mxu0 %vm205_vm0, %v204_v0 }
  0x1a   :  { %185 = vmatmul.mubr.msk.bf16.gmra.mrb[8].mxu0 %vm53_vm1, %v27_v17 }
  0xdd   :  { %v103_v19 = vpop.f32.mrb[0].mxu0  ;;  %v127_v20 = vpop.f32.mrb[0].mxu1 }
  0xde   :  { %v104_v21 = vadd.f32 %v157_v18, %v103_v19  ;;  %v178_v22 = vpop.f32.mrb[1].mxu0  ;;  %v128_v23 = vadd.f32 %v157_v18, %v127_v20  ;;  %v190_v24 = vpop.f32.mrb[1].mxu1 }
  0xdf   :  { %v106_v25 = vpop.f32.mrb[2].mxu0  ;;  %v130_v26 = vpop.f32.mrb[2].mxu1 }
  0xe0   :  { %143 = vst.msk [vmem:[%s318_s3] sm:$0xff] %vm142_vm2, %v104_v21  ;;  %v107_v27 = vadd.f32 %v157_v18, %v106_v25  ;;  %v179_v28 = vpop.f32.mrb[3].mxu0  ;;  %149 = vst.msk [vmem:[%s318_s3 + $0x30] sm:$0xff] %vm142_vm2, %v128_v23  ;;  %v131_v29 = vadd.f32 %v157_v18, %v130_v26  ;;  %v191_v30 = vpop.f32.mrb[3].mxu1 }
  0xe2   :  { %144 = vst.msk [vmem:[%s318_s3 + $0x8] sm:$0xff] %vm142_vm2, %v107_v27  ;;  %150 = vst.msk [vmem:[%s318_s3 + $0x38] sm:$0xff] %vm142_vm2, %v131_v29 }
  0xe5   :  { %v111_v31 = vpop.f32.mrb[4].mxu0  ;;  %v135_v32 = vpop.f32.mrb[4].mxu1 }
  0xe6   :  { %v112_v33 = vadd.f32 %v157_v18, %v111_v31  ;;  %v182_v34 = vpop.f32.mrb[5].mxu0  ;;  %v136_v35 = vadd.f32 %v157_v18, %v135_v32  ;;  %v194_v36 = vpop.f32.mrb[5].mxu1 }
  0xe7   :  { %v114_v37 = vpop.f32.mrb[6].mxu0  ;;  %v138_v38 = vpop.f32.mrb[6].mxu1 }
  0xe8   :  { %145 = vst.msk [vmem:[%s318_s3 + $0x10] sm:$0xff] %vm142_vm2, %v112_v33  ;;  %v115_v39 = vadd.f32 %v157_v18, %v114_v37  ;;  %v183_v40 = vpop.f32.mrb[7].mxu0  ;;  %151 = vst.msk [vmem:[%s318_s3 + $0x40] sm:$0xff] %vm142_vm2, %v136_v35  ;;  %v139_v41 = vadd.f32 %v157_v18, %v138_v38  ;;  %v195_v42 = vpop.f32.mrb[7].mxu1 }
  0xea   :  { %146 = vst.msk [vmem:[%s318_s3 + $0x18] sm:$0xff] %vm142_vm2, %v115_v39  ;;  %152 = vst.msk [vmem:[%s318_s3 + $0x48] sm:$0xff] %vm142_vm2, %v139_v41 }
  0xed   :  { %v119_v43 = vpop.f32.mrb[8].mxu0 }
  0xee   :  { %v120_v44 = vadd.f32 %v157_v18, %v119_v43  ;;  %v186_v45 = vpop.f32.mrb[9].mxu0 }
  0xef   :  { %v122_v46 = vpop.f32.mrb[10].mxu0 }
  0xf0   :  { %147 = vst.msk [vmem:[%s318_s3 + $0x20] sm:$0xff] %vm142_vm2, %v120_v44  ;;  %v123_v47 = vadd.f32 %v157_v18, %v122_v46  ;;  %v187_v48 = vpop.f32.mrb[11].mxu0 }
  0xf2   :  { %148 = vst.msk [vmem:[%s318_s3 + $0x28] sm:$0xff] %vm142_vm2, %v123_v47 }

// kernel: encoder_forward.46
= control target key start
LH: loop header
LB: loop body
LE: loop exit
PB: predicated region body
PF: predicated region fallthrough
CT: control target
= control target key end

     0   :  { %s993_s12 = smov 0   ;;  %s995_s13 = smov 0   ;;  %s1105_s0 = inlined_call_operand.vmem [shape: f32[10,8,32], index: 0, kind: input, shape index: {}]   ;;  %s1106_s1 = inlined_call_operand.vmem [shape: f32[10,8,64], index: 1, kind: input, shape index: {}]   ;;  %s1107_s2 = inlined_call_operand.vmem [shape: f32[10,1,8], index: 2, kind: input, shape index: {}]   ;;  %s1108_s3 = inlined_call_operand.vmem [shape: f32[10,8,32], index: 3, kind: output, shape index: {}]  }
   0x1   :  { %s997_s14 = smov 0  }
   0x2 LB: > { %s25_s15 = sadd.s32 1, %s955_s13  ;;  %p806_p0 = scmp.ge.s32.totalorder %s959_s14, 1  ;;  %s959_s14 = sphi %s997_s14, %s13_s14   ;;  %s955_s13 = sphi %s995_s13, %s1110_s13   ;;  %s951_s12 = sphi %s993_s12, %s1109_s12  }
   0x3   : > { %p27_p1 = scmp.ge.s32.totalorder %s25_s15, 10  ;;  %p172_p2 = scmp.lt.s32.totalorder %s959_s14, 11 }
   0x5   : > { %s1112_s15 = smov (%p27_p1, %s25_s15), 0  ;;  %p173_p3 = pnand %p806_p0, %p172_p2 }
   0x6   : > { %p207_p4 = scmp.lt.s32.totalorder (!%p173_p3), %s951_s12, 9  ;;  %v961_v0 = vmov (!%p173_p3), 0.0   ;;  %vm962_vm0 = vmmov (!%p173_p3), 0   ;;  %vm234_vm1 = vcmask (!%p173_p3), 64512   ;;  %s963_s26 = smov (!%p173_p3), 96   ;;  %vm307_vm2 = vcmask (!%p173_p3), 1043456  }
   0x7   : > { %176 = sbr.rel (%p173_p3) target bundleno = 1446 (0x5a6), region = 32  ;;  %837 = vmatprep.subr.bf16.mxu0 (!%p173_p3), %v961_v0  ;;  %839 = vmatprep.mubr.msk.bf16.mxu0 (!%p173_p3), %vm962_vm0, %v961_v0  ;;  %s964_s27 = smov (!%p173_p3), 120   ;;  %vm701_vm3 = vcmask (!%p173_p3), 130048   ;;  %vm703_vm4 = vcmask (!%p173_p3), 195584   ;;  %vm705_vm5 = vcmask (!%p173_p3), 261120  }
   0x8   : > { %843 = vmatprep.subr.bf16.mxu1 (!%p173_p3), %v961_v0  ;;  %845 = vmatprep.mubr.msk.bf16.mxu1 (!%p173_p3), %vm962_vm0, %v961_v0  ;;  %s965_s28 = smov (!%p173_p3), 112   ;;  %s966_s29 = smov (!%p173_p3), 104  }
   0x9   : > { %s967_s30 = smov (!%p173_p3), 88   ;;  %s968_s4 = smov (!%p173_p3), 72  }
   0xa   : > { %s969_s5 = smov (!%p173_p3), 80   ;;  %s970_s6 = smov (!%p173_p3), 8  }
   0xb   : > { %s971_s7 = smov (!%p173_p3), 16   ;;  %s972_s8 = smov (!%p173_p3), 24  }
   0xe   : > { %s1114_s12 = smov (!%p207_p4, %s951_s12), 9 }
   0xf   : > { %s1017_s16 = sshll.u32 %s1114_s12, 3  ;;  %s220_s25 = scalar_lea.vmem %s1107_s2, %s1114_s12 }
  0x10   : > { %s217_s19 = scalar_lea.vmem %s1106_s1, %s1017_s16  ;;  %s213_s22 = scalar_lea.vmem %s1105_s0, %s1017_s16  ;;  %v1038_v7 = vld [vmem:[%s220_s25] ss:$0 sm:$0xff] }
  0x11   : > { %v230_v1 = vld [vmem:[%s217_s19] sm:$0xff]  ;;  %s227_s11 = scalar_lea.vmem %s1108_s3, %s1017_s16 }
  0x12   : > { %v1023_v2 = vpack.c.bf16 %v230_v1, %v230_v1  ;;  %v229_v4 = vld [vmem:[%s213_s22] sm:$0xff] }
  0x13   : > { %v232_v5 = vpack.c.bf16 %v229_v4, %v229_v4 }
  0x14   : > { %v239_v3 = vsel %vm234_vm1, %v1023_v2, 0  ;;  %302 = vrot.lane.b32.xlu1 %v1023_v2, %s963_s26 }
  0x15   : > { %838 = vmatpush3.bf16.xpose.msra.mxu0 %v239_v3 }
  0x16   : > { %855 = vmatprep.subr.bf16.mxu0 %v961_v0 }
  0x18   : > { %354 = vrot.lane.b32.xlu1 %v1023_v2, %s964_s27 }
  0x1c   : > { %840 = vmatmul.mubr.msk.bf16.vlgmr.msra.gmra.mrb[0].mxu0 %vm234_vm1, %v232_v5  ;;  %466 = vrot.lane.b32.xlu1 %v1023_v2, %s965_s28 }
  0x1d   : > { %857 = vmatprep.mubr.msk.bf16.mxu0 %vm962_vm0, %v961_v0 }
  0x20   : > { %464 = vrot.lane.b32.xlu1 %v232_v5, %s965_s28 }
  0x24   : > { %578 = vrot.lane.b32.xlu1 %v1023_v2, %s966_s29 }
  0x28   : > { %576 = vrot.lane.b32.xlu1 %v232_v5, %s966_s29 }
  0x86   : > { %v303_v19 = vpop.permute.xlu1 %302 }
  0x87   : > { %v309_v20 = vsel %vm307_vm2, %v303_v19, 0 }
  0x88   : > { %844 = vmatpush3.bf16.msra.mxu1 %v309_v20 }
  0x89   : > { %849 = vmatprep.subr.bf16.mxu1 %v961_v0 }
  0x8a   : > { %v355_v23 = vpop.permute.xlu1 %354 }
  0x8b   : > { %v360_v25 = vsel %vm234_vm1, %v355_v23, 0 }
  0x8e   : > { %v467_v27 = vpop.permute.xlu1 %466 }
  0x8f   : > { %v472_v30 = vsel %vm234_vm1, %v467_v27, 0 }
  0x92   : > { %v465_v29 = vpop.permute.xlu1 %464 }
  0x96   : > { %v579_v31 = vpop.permute.xlu1 %578 }
  0x97   : > { %v584_v32 = vsel %vm234_vm1, %v579_v31, 0 }
  0x9a   : > { %v577_v33 = vpop.permute.xlu1 %576 }
  0xef   : > { %v275_v6 = vpop.f32.mrb[0].mxu0 }
  0xf0   : > { %v281_v8 = vmul.f32 0.35355338, %v275_v6  ;;  %v841_v9 = vpop.f32.mrb[1].mxu0 }
  0xf1   : > { %v278_v10 = vpop.f32.mrb[2].mxu0 }
  0xf2   : > { %v842_v11 = vpop.f32.mrb[3].mxu0  ;;  %v288_v12 = vadd.f32 %v1038_v7, %v281_v8 }
  0xf4   : > { %v289_v13 = vsel %vm234_vm1, %v288_v12, -inf }
  0xf5   : > { %290 = vmax.xlane.f32.xlu0 %v289_v13 }
 0x182   : > { %v291_v14 = vpop.xlane.xlu0 %290 }
 0x183   : > { %v292_v15 = vsub.f32 %v288_v12, %v291_v14 }
 0x185   : > { %v293_v16 = vmul.f32 1.442695, %v292_v15 }
 0x187   : > { %921 = vpow2.f32 %v293_v16 }
 0x191   : > { %v922_v17 = vpop.eup %921 }
 0x192   : > { %v295_v18 = vsel %vm234_vm1, %v922_v17, 0.0 }
 0x193   : > { %296 = vadd.xlane.f32.xlu0 %v295_v18 }
 0x1a9   : > { %352 = vrot.lane.b32.xlu0 %v232_v5, %s964_s27 }
 0x220   : > { %v297_v21 = vpop.xlane.xlu0 %296 }
 0x221   : > { %923 = vrcp.f32 %v297_v21 }
 0x224   : > { %v353_v28 = vpop.permute.xlu0 %352 }
 0x22b   : > { %v924_v22 = vpop.eup %923 }
 0x22c   : > { %v299_v24 = vmul.f32 %v924_v22, %v922_v17 }
 0x22e   : > { %v300_v26 = vpack.c.bf16 %v299_v24, %v299_v24 }
 0x230   : > { %846 = vmatmul.mubr.msk.bf16.vlgmr.msra.gmra.mrb[0].mxu1 %vm234_vm1, %v300_v26 }
 0x231   : > { %850 = vmatpush3.bf16.xpose.msra.mxu1 %v360_v25  ;;  %851 = vmatprep.mubr.msk.bf16.mxu1 %vm962_vm0, %v961_v0 }
 0x232   : > { %861 = vmatprep.subr.bf16.mxu1 %v961_v0 }
 0x238   : > { %852 = vmatmul.mubr.msk.bf16.vlgmr.msra.gmra.mrb[4].mxu1 %vm234_vm1, %v353_v28 }
 0x239   : > { %862 = vmatpush3.bf16.xpose.msra.mxu1 %v472_v30  ;;  %863 = vmatprep.mubr.msk.bf16.mxu1 %vm962_vm0, %v961_v0 }
 0x23a   : > { %873 = vmatprep.subr.bf16.mxu1 %v961_v0 }
 0x240   : > { %864 = vmatmul.mubr.msk.bf16.vlgmr.msra.gmra.mrb[8].mxu1 %vm234_vm1, %v465_v29 }
 0x241   : > { %874 = vmatpush3.bf16.xpose.msra.mxu1 %v584_v32  ;;  %875 = vmatprep.mubr.msk.bf16.mxu1 %vm962_vm0, %v961_v0 }
 0x248   : > { %876 = vmatmul.mubr.msk.bf16.vlgmr.msra.gmra.mrb[12].mxu1 %vm234_vm1, %v577_v33 }
 0x303   : > { %v1064_v34 = vpop.f32.mrb[0].mxu1 }
 0x304   : > { %v847_v35 = vpop.f32.mrb[1].mxu1 }
 0x305   : > { %v348_v36 = vpop.f32.mrb[2].mxu1 }
 0x306   : > { %v848_v37 = vpop.f32.mrb[3].mxu1 }
 0x30b   : > { %v396_v38 = vpop.f32.mrb[4].mxu1 }
 0x30c   : > { %v402_v39 = vmul.f32 0.35355338, %v396_v38  ;;  %v853_v40 = vpop.f32.mrb[5].mxu1 }
 0x30d   : > { %v399_v41 = vpop.f32.mrb[6].mxu1 }
 0x30e   : > { %v854_v42 = vpop.f32.mrb[7].mxu1  ;;  %v403_v43 = vadd.f32 %v1038_v7, %v402_v39 }
 0x310   : > { %v404_v44 = vsel %vm234_vm1, %v403_v43, -inf }
 0x311   : > { %405 = vmax.xlane.f32.xlu1 %v404_v44 }
 0x313   : > { %v508_v45 = vpop.f32.mrb[8].mxu1 }
 0x314   : > { %v514_v46 = vmul.f32 0.35355338, %v508_v45  ;;  %v865_v47 = vpop.f32.mrb[9].mxu1 }
 0x315   : > { %v511_v48 = vpop.f32.mrb[10].mxu1 }
 0x316   : > { %v866_v49 = vpop.f32.mrb[11].mxu1  ;;  %v515_v50 = vadd.f32 %v1038_v7, %v514_v46 }
 0x318   : > { %v516_v51 = vsel %vm234_vm1, %v515_v50, -inf }
 0x319   : > { %517 = vmax.xlane.f32.xlu0 %v516_v51 }
 0x31b   : > { %v620_v52 = vpop.f32.mrb[12].mxu1 }
 0x31c   : > { %v626_v53 = vmul.f32 0.35355338, %v620_v52  ;;  %v877_v54 = vpop.f32.mrb[13].mxu1 }
 0x31d   : > { %v623_v55 = vpop.f32.mrb[14].mxu1 }
 0x31e   : > { %v878_v56 = vpop.f32.mrb[15].mxu1  ;;  %v627_v57 = vadd.f32 %v1038_v7, %v626_v53 }
 0x320   : > { %v628_v58 = vsel %vm234_vm1, %v627_v57, -inf }
 0x321   : > { %629 = vmax.xlane.f32.xlu1 %v628_v58 }
 0x332   : > { %416 = vrot.lane.b32.xlu1 %v1023_v2, %s967_s30 }
 0x39e   : > { %v406_v59 = vpop.xlane.xlu1 %405 }
 0x39f   : > { %v407_v60 = vsub.f32 %v403_v43, %v406_v59 }
 0x3a1   : > { %v408_v61 = vmul.f32 1.442695, %v407_v60 }
 0x3a3   : > { %925 = vpow2.f32 %v408_v61 }
 0x3a6   : > { %v518_v62 = vpop.xlane.xlu0 %517 }
 0x3a7   : > { %v519_v63 = vsub.f32 %v515_v50, %v518_v62 }
 0x3a9   : > { %v520_v1 = vmul.f32 1.442695, %v519_v63 }
 0x3ab   : > { %927 = vpow2.f32 %v520_v1 }
 0x3ad   : > { %v926_v3 = vpop.eup %925 }
 0x3ae   : > { %v630_v4 = vpop.xlane.xlu1 %629  ;;  %v410_v5 = vsel %vm234_vm1, %v926_v3, 0.0 }
 0x3af   : > { %v631_v6 = vsub.f32 %v627_v57, %v630_v4  ;;  %411 = vadd.xlane.f32.xlu0 %v410_v5 }
 0x3b1   : > { %v632_v7 = vmul.f32 1.442695, %v631_v6 }
 0x3b2   : > { %v417_v8 = vpop.permute.xlu1 %416 }
 0x3b3   : > { %929 = vpow2.f32 %v632_v7  ;;  %v422_v9 = vsel %vm307_vm2, %v417_v8, 0 }
 0x3b4   : > { %856 = vmatpush3.bf16.msra.mxu0 %v422_v9 }
 0x3b5   : > { %v928_v10 = vpop.eup %927  ;;  %867 = vmatprep.subr.bf16.mxu0 %v961_v0 }
 0x3b6   : > { %v522_v11 = vsel %vm234_vm1, %v928_v10, 0.0 }
 0x3b7   : > { %523 = vadd.xlane.f32.xlu1 %v522_v11 }
 0x3bd   : > { %v930_v12 = vpop.eup %929 }
 0x3be   : > { %v634_v13 = vsel %vm234_vm1, %v930_v12, 0.0 }
 0x3bf   : > { %635 = vadd.xlane.f32.xlu0 %v634_v13 }
 0x3c8   : > { %640 = vrot.lane.b32.xlu1 %v1023_v2, %s968_s4 }
 0x3d5   : > { %528 = vrot.lane.b32.xlu0 %v1023_v2, %s969_s5 }
 0x43c   : > { %v412_v14 = vpop.xlane.xlu0 %411 }
 0x43d   : > { %931 = vrcp.f32 %v412_v14 }
 0x444   : > { %v524_v15 = vpop.xlane.xlu1 %523 }
 0x445   : > { %933 = vrcp.f32 %v524_v15 }
 0x447   : > { %v932_v16 = vpop.eup %931 }
 0x448   : > { %v414_v17 = vmul.f32 %v932_v16, %v926_v3  ;;  %v641_v23 = vpop.permute.xlu1 %640 }
 0x449   : > { %v646_v25 = vsel %vm307_vm2, %v641_v23, 0 }
 0x44a   : > { %v415_v18 = vpack.c.bf16 %v414_v17, %v414_v17 }
 0x44c   : > { %v636_v19 = vpop.xlane.xlu0 %635  ;;  %858 = vmatmul.mubr.msk.bf16.vlgmr.msra.gmra.mrb[4].mxu0 %vm234_vm1, %v415_v18 }
 0x44d   : > { %935 = vrcp.f32 %v636_v19  ;;  %869 = vmatprep.mubr.msk.bf16.mxu0 %vm962_vm0, %v961_v0 }
 0x44f   : > { %v934_v20 = vpop.eup %933 }
 0x450   : > { %v526_v21 = vmul.f32 %v934_v20, %v928_v10  ;;  %v529_v22 = vpop.permute.xlu0 %528 }
 0x451   : > { %v534_v2 = vsel %vm307_vm2, %v529_v22, 0 }
 0x452   : > { %868 = vmatpush3.bf16.msra.mxu0 %v534_v2  ;;  %v527_v24 = vpack.c.bf16 %v526_v21, %v526_v21 }
 0x453   : > { %879 = vmatprep.subr.bf16.mxu0 %v961_v0 }
 0x455   : > { %870 = vmatmul.mubr.msk.bf16.vlgmr.msra.gmra.mrb[8].mxu0 %vm234_vm1, %v527_v24 }
 0x456   : > { %880 = vmatpush3.bf16.msra.mxu0 %v646_v25  ;;  %881 = vmatprep.mubr.msk.bf16.mxu0 %vm962_vm0, %v961_v0 }
 0x457   : > { %v936_v26 = vpop.eup %935 }
 0x458   : > { %v638_v27 = vmul.f32 %v936_v26, %v930_v12 }
 0x45a   : > { %v639_v28 = vpack.c.bf16 %v638_v27, %v638_v27 }
 0x45d   : > { %882 = vmatmul.mubr.msk.bf16.vlgmr.msra.gmra.mrb[12].mxu0 %vm234_vm1, %v639_v28 }
 0x51f   : > { %v458_v29 = vpop.f32.mrb[4].mxu0 }
 0x520   : > { %689 = vrot.lane.b32.xlu1 %v458_v29, %s970_s6  ;;  %v859_v30 = vpop.f32.mrb[5].mxu0 }
 0x521   : > { %v461_v31 = vpop.f32.mrb[6].mxu0 }
 0x522   : > { %v860_v32 = vpop.f32.mrb[7].mxu0 }
 0x528   : > { %v570_v33 = vpop.f32.mrb[8].mxu0 }
 0x529   : > { %693 = vrot.lane.b32.xlu0 %v570_v33, %s971_s7  ;;  %v871_v35 = vpop.f32.mrb[9].mxu0 }
 0x52a   : > { %v573_v36 = vpop.f32.mrb[10].mxu0 }
 0x52b   : > { %v872_v37 = vpop.f32.mrb[11].mxu0 }
 0x530   : > { %v682_v38 = vpop.f32.mrb[12].mxu0 }
 0x531   : > { %697 = vrot.lane.b32.xlu1 %v682_v38, %s972_s8  ;;  %v883_v0 = vpop.f32.mrb[13].mxu0 }
 0x532   : > { %v685_v39 = vpop.f32.mrb[14].mxu0 }
 0x533   : > { %v884_v40 = vpop.f32.mrb[15].mxu0 }
 0x592   : > { %v690_v41 = vpop.permute.xlu1 %689 }
 0x593   : > { %v700_v43 = vsel %vm234_vm1, %v1064_v34, %v690_v41 }
 0x59b   : > { %v694_v42 = vpop.permute.xlu0 %693 }
 0x59c   : > { %v702_v44 = vsel %vm701_vm3, %v700_v43, %v694_v42 }
 0x5a3   : > { %v698_v45 = vpop.permute.xlu1 %697 }
 0x5a4   : > { %v704_v46 = vsel %vm703_vm4, %v702_v44, %v698_v45 }
 0x5a5   : > { %706 = vst.msk [vmem:[%s227_s11] sm:$0xff] %vm705_vm5, %v704_v46 }
 0x5a6 PF: > { %s13_s14 = sadd.s32 1, %s959_s14   ;;  %s1109_s12 = smov %s955_s13 }
 0x5a7   : > { %p10_p5 = scmp.ge.s32.totalorder %s13_s14, 12   ;;  %s1110_s13 = smov %s1112_s15 }
 0x5a9   :  { %12 = sbr.rel (!%p10_p5) target bundleno = 2 (0x2), region = 68 }

// kernel: encoder_forward.49
= control target key start
LH: loop header
LB: loop body
LE: loop exit
PB: predicated region body
PF: predicated region fallthrough
CT: control target
= control target key end

     0   :  { %v296_v0 = vmov 0.0   ;;  %vm297_vm0 = vmmov 0   ;;  %vm197_vm1 = vcmask 261120   ;;  %s476_s1 = inlined_call_operand.vmem [shape: bf16[128,32], index: 1, kind: input, shape index: {}]   ;;  %s477_s0 = inlined_call_operand.vmem [shape: f32[80,128], index: 0, kind: input, shape index: {}]   ;;  %s478_s2 = inlined_call_operand.vmem [shape: f32[1,32], index: 2, kind: input, shape index: {}]   ;;  %s479_s3 = inlined_call_operand.vmem [shape: f32[80,32], index: 3, kind: input, shape index: {}]   ;;  %s480_s4 = inlined_call_operand.vmem [shape: f32[80,32], index: 4, kind: output, shape index: {}]  }
   0x1   :  { %234 = vmatprep.subr.bf16.mxu0 %v296_v0  ;;  %v288_v1 = vld [vmem:[%s476_s1] sm:$0xff]   ;;  %270 = vmatprep.subr.bf16.mxu1 %v296_v0  ;;  %v289_v2 = vld [vmem:[%s476_s1 + $0x8] sm:$0xff]   ;;  %v290_v3 = vld [vmem:[%s476_s1 + $0x10] sm:$0xff]  }
   0x2   :  { %250 = vmatprep.mubr.msk.bf16.mxu0 %vm297_vm0, %v296_v0  ;;  %262 = vmatprep.mubr.msk.bf16.mxu1 %vm297_vm0, %v296_v0  ;;  %v291_v4 = vld [vmem:[%s476_s1 + $0x18] sm:$0xff]   ;;  %v292_v5 = vld [vmem:[%s476_s1 + $0x20] sm:$0xff]   ;;  %v293_v6 = vld [vmem:[%s476_s1 + $0x28] sm:$0xff]  }
   0x3   :  { %235 = vmatpush3.bf16.msra.mxu0 %v288_v1  ;;  %278 = vmatpush3.bf16.msra.mxu1 %v288_v1  ;;  %v294_v7 = vld [vmem:[%s476_s1 + $0x30] sm:$0xff]   ;;  %v295_v8 = vld [vmem:[%s476_s1 + $0x38] sm:$0xff]   ;;  %v18_v9 = vld [vmem:[%s477_s0] sm:$0xff] }
   0x4   :  { %236 = vmatprep.subr.bf16.mxu0 %v296_v0  ;;  %271 = vmatprep.subr.bf16.mxu1 %v296_v0  ;;  %v19_v10 = vld [vmem:[%s477_s0 + $0x8] sm:$0xff]  ;;  %v24_v11 = vld [vmem:[%s477_s0 + $0x30] sm:$0xff]  ;;  %v25_v12 = vld [vmem:[%s477_s0 + $0x38] sm:$0xff] }
   0x5   :  { %v28_v13 = vpack.c.bf16 %v19_v10, %v18_v9  ;;  %v31_v14 = vpack.c.bf16 %v25_v12, %v24_v11  ;;  %v20_v15 = vld [vmem:[%s477_s0 + $0x10] sm:$0xff]  ;;  %v21_v16 = vld [vmem:[%s477_s0 + $0x18] sm:$0xff]  ;;  %v26_v17 = vld [vmem:[%s477_s0 + $0x40] sm:$0xff] }
   0x6   :  { %v27_v18 = vld [vmem:[%s477_s0 + $0x48] sm:$0xff]  ;;  %v29_v19 = vpack.c.bf16 %v21_v16, %v20_v15  ;;  %v22_v21 = vld [vmem:[%s477_s0 + $0x20] sm:$0xff]  ;;  %v183_v28 = vld [vmem:[%s479_s3 + $0x30] sm:$0xff] }
   0x7   :  { %237 = vmatpush3.bf16.msra.mxu0 %v289_v2  ;;  %279 = vmatpush3.bf16.msra.mxu1 %v289_v2  ;;  %v32_v20 = vpack.c.bf16 %v27_v18, %v26_v17  ;;  %v23_v22 = vld [vmem:[%s477_s0 + $0x28] sm:$0xff]  ;;  %v212_v24 = vld [vmem:[%s478_s2] ss:$0 sm:$0xff]  ;;  %v184_v36 = vld [vmem:[%s479_s3 + $0x38] sm:$0xff] }
   0x8   :  { %238 = vmatprep.subr.bf16.mxu0 %v296_v0  ;;  %272 = vmatprep.subr.bf16.mxu1 %v296_v0  ;;  %v30_v23 = vpack.c.bf16 %v23_v22, %v22_v21  ;;  %v177_v26 = vld [vmem:[%s479_s3] sm:$0xff]  ;;  %v178_v34 = vld [vmem:[%s479_s3 + $0x8] sm:$0xff]  ;;  %v179_v46 = vld [vmem:[%s479_s3 + $0x10] sm:$0xff] }
   0x9   :  { %v185_v48 = vld [vmem:[%s479_s3 + $0x40] sm:$0xff]  ;;  %v180_v54 = vld [vmem:[%s479_s3 + $0x18] sm:$0xff]  ;;  %v186_v56 = vld [vmem:[%s479_s3 + $0x48] sm:$0xff] }
   0xa   :  { %v181_v2 = vld [vmem:[%s479_s3 + $0x20] sm:$0xff] }
   0xb   :  { %239 = vmatpush3.bf16.msra.mxu0 %v290_v3  ;;  %280 = vmatpush3.bf16.msra.mxu1 %v290_v3 }
   0xc   :  { %240 = vmatprep.subr.bf16.mxu0 %v296_v0  ;;  %273 = vmatprep.subr.bf16.mxu1 %v296_v0 }
   0xf   :  { %241 = vmatpush3.bf16.msra.mxu0 %v291_v4  ;;  %281 = vmatpush3.bf16.msra.mxu1 %v291_v4 }
  0x10   :  { %242 = vmatprep.subr.bf16.mxu0 %v296_v0  ;;  %274 = vmatprep.subr.bf16.mxu1 %v296_v0 }
  0x13   :  { %243 = vmatpush3.bf16.msra.mxu0 %v292_v5  ;;  %282 = vmatpush3.bf16.msra.mxu1 %v292_v5 }
  0x14   :  { %244 = vmatprep.subr.bf16.mxu0 %v296_v0  ;;  %275 = vmatprep.subr.bf16.mxu1 %v296_v0 }
  0x17   :  { %245 = vmatpush3.bf16.msra.mxu0 %v293_v6  ;;  %283 = vmatpush3.bf16.msra.mxu1 %v293_v6  ;;  %v182_v6 = vld [vmem:[%s479_s3 + $0x28] sm:$0xff] }
  0x18   :  { %246 = vmatprep.subr.bf16.mxu0 %v296_v0  ;;  %276 = vmatprep.subr.bf16.mxu1 %v296_v0 }
  0x1b   :  { %247 = vmatpush3.bf16.msra.mxu0 %v294_v7  ;;  %284 = vmatpush3.bf16.msra.mxu1 %v294_v7 }
  0x1c   :  { %248 = vmatprep.subr.bf16.mxu0 %v296_v0  ;;  %277 = vmatprep.subr.bf16.mxu1 %v296_v0 }
  0x1f   :  { %249 = vmatpush3.bf16.msra.mxu0 %v295_v8  ;;  %285 = vmatpush3.bf16.msra.mxu1 %v295_v8 }
  0x22   :  { %251 = vmatmul.mubr.bf16.vlgmr.msra.gmra.mrb[0].mxu0 %v28_v13  ;;  %263 = vmatmul.mubr.bf16.vlgmr.msra.gmra.mrb[0].mxu1 %v31_v14 }
  0x23   :  { %254 = vmatprep.mubr.msk.bf16.mxu0 %vm297_vm0, %v296_v0  ;;  %266 = vmatprep.mubr.msk.bf16.mxu1 %vm297_vm0, %v296_v0 }
  0x2a   :  { %255 = vmatmul.mubr.bf16.gmra.mrb[4].mxu0 %v29_v19  ;;  %267 = vmatmul.mubr.bf16.gmra.mrb[4].mxu1 %v32_v20 }
  0x2b   :  { %258 = vmatprep.mubr.msk.bf16.mxu0 %vm297_vm0, %v296_v0 }
  0x32   :  { %259 = vmatmul.mubr.bf16.gmra.mrb[8].mxu0 %v30_v23 }
  0xf5   :  { %v138_v25 = vpop.f32.mrb[0].mxu0  ;;  %v162_v27 = vpop.f32.mrb[0].mxu1 }
  0xf6   :  { %v139_v29 = vadd.f32 %v212_v24, %v138_v25  ;;  %v252_v30 = vpop.f32.mrb[1].mxu0  ;;  %v163_v31 = vadd.f32 %v212_v24, %v162_v27  ;;  %v264_v32 = vpop.f32.mrb[1].mxu1 }
  0xf7   :  { %v141_v33 = vpop.f32.mrb[2].mxu0  ;;  %v165_v35 = vpop.f32.mrb[2].mxu1 }
  0xf8   :  { %v187_v37 = vadd.f32 %v177_v26, %v139_v29  ;;  %v142_v38 = vadd.f32 %v212_v24, %v141_v33  ;;  %v253_v39 = vpop.f32.mrb[3].mxu0  ;;  %v193_v40 = vadd.f32 %v183_v28, %v163_v31  ;;  %v166_v41 = vadd.f32 %v212_v24, %v165_v35  ;;  %v265_v42 = vpop.f32.mrb[3].mxu1 }
  0xfa   :  { %198 = vst.msk [vmem:[%s480_s4] sm:$0xff] %vm197_vm1, %v187_v37  ;;  %v188_v43 = vadd.f32 %v178_v34, %v142_v38  ;;  %204 = vst.msk [vmem:[%s480_s4 + $0x30] sm:$0xff] %vm197_vm1, %v193_v40  ;;  %v194_v44 = vadd.f32 %v184_v36, %v166_v41 }
  0xfc   :  { %199 = vst.msk [vmem:[%s480_s4 + $0x8] sm:$0xff] %vm197_vm1, %v188_v43  ;;  %205 = vst.msk [vmem:[%s480_s4 + $0x38] sm:$0xff] %vm197_vm1, %v194_v44 }
  0xfd   :  { %v146_v45 = vpop.f32.mrb[4].mxu0  ;;  %v170_v47 = vpop.f32.mrb[4].mxu1 }
  0xfe   :  { %v147_v49 = vadd.f32 %v212_v24, %v146_v45  ;;  %v256_v50 = vpop.f32.mrb[5].mxu0  ;;  %v171_v51 = vadd.f32 %v212_v24, %v170_v47  ;;  %v268_v52 = vpop.f32.mrb[5].mxu1 }
  0xff   :  { %v149_v53 = vpop.f32.mrb[6].mxu0  ;;  %v173_v55 = vpop.f32.mrb[6].mxu1 }
 0x100   :  { %v189_v57 = vadd.f32 %v179_v46, %v147_v49  ;;  %v150_v58 = vadd.f32 %v212_v24, %v149_v53  ;;  %v257_v59 = vpop.f32.mrb[7].mxu0  ;;  %v195_v60 = vadd.f32 %v185_v48, %v171_v51  ;;  %v174_v61 = vadd.f32 %v212_v24, %v173_v55  ;;  %v269_v62 = vpop.f32.mrb[7].mxu1 }
 0x102   :  { %200 = vst.msk [vmem:[%s480_s4 + $0x10] sm:$0xff] %vm197_vm1, %v189_v57  ;;  %v190_v63 = vadd.f32 %v180_v54, %v150_v58  ;;  %206 = vst.msk [vmem:[%s480_s4 + $0x40] sm:$0xff] %vm197_vm1, %v195_v60  ;;  %v196_v0 = vadd.f32 %v186_v56, %v174_v61 }
 0x104   :  { %201 = vst.msk [vmem:[%s480_s4 + $0x18] sm:$0xff] %vm197_vm1, %v190_v63  ;;  %207 = vst.msk [vmem:[%s480_s4 + $0x48] sm:$0xff] %vm197_vm1, %v196_v0 }
 0x105   :  { %v154_v1 = vpop.f32.mrb[8].mxu0 }
 0x106   :  { %v155_v3 = vadd.f32 %v212_v24, %v154_v1  ;;  %v260_v4 = vpop.f32.mrb[9].mxu0 }
 0x107   :  { %v157_v5 = vpop.f32.mrb[10].mxu0 }
 0x108   :  { %v191_v7 = vadd.f32 %v181_v2, %v155_v3  ;;  %v158_v8 = vadd.f32 %v212_v24, %v157_v5  ;;  %v261_v9 = vpop.f32.mrb[11].mxu0 }
 0x10a   :  { %202 = vst.msk [vmem:[%s480_s4 + $0x20] sm:$0xff] %vm197_vm1, %v191_v7  ;;  %v192_v10 = vadd.f32 %v182_v6, %v158_v8 }
 0x10c   :  { %203 = vst.msk [vmem:[%s480_s4 + $0x28] sm:$0xff] %vm197_vm1, %v192_v10 }

// kernel: encoder_forward.47
= control target key start
LH: loop header
LB: loop body
LE: loop exit
PB: predicated region body
PF: predicated region fallthrough
CT: control target
= control target key end

     0   :  { %v661_v0 = vmov 0.0   ;;  %vm662_vm0 = vmmov 0   ;;  %vm65_vm1 = vcmask 261120   ;;  %s978_s1 = inlined_call_operand.vmem [shape: bf16[32,32], index: 1, kind: input, shape index: {}]   ;;  %s979_s0 = inlined_call_operand.vmem [shape: f32[80,32], index: 0, kind: input, shape index: {}]   ;;  %s980_s4 = inlined_call_operand.vmem [shape: bf16[32,32], index: 4, kind: input, shape index: {}]   ;;  %s981_s5 = inlined_call_operand.vmem [shape: bf16[32,32], index: 5, kind: input, shape index: {}]   ;;  %s982_s3 = inlined_call_operand.vmem [shape: f32[80,32], index: 3, kind: input, shape index: {}]   ;;  %s983_s2 = inlined_call_operand.vmem [shape: f32[1,32], index: 2, kind: input, shape index: {}]   ;;  %s984_s6 = inlined_call_operand.vmem [shape: f32[1,32], index: 6, kind: input, shape index: {}]   ;;  %s985_s7 = inlined_call_operand.vmem [shape: f32[80,32], index: 7, kind: output, shape index: {}]  }
   0x1   :  { %537 = vmatprep.subr.bf16.mxu0 %v661_v0  ;;  %v615_v1 = vld [vmem:[%s978_s1] sm:$0xff]   ;;  %541 = vmatprep.mubr.msk.bf16.mxu0 %vm662_vm0, %v661_v0  ;;  %v616_v2 = vld [vmem:[%s978_s1 + $0x8] sm:$0xff]   ;;  %v33_v5 = vld [vmem:[%s979_s0 + $0x30] sm:$0xff] }
   0x2   :  { %609 = vmatprep.subr.bf16.mxu1 %v661_v0  ;;  %553 = vmatprep.mubr.msk.bf16.mxu1 %vm662_vm0, %v661_v0  ;;  %v27_v3 = vld [vmem:[%s979_s0] sm:$0xff]  ;;  %v28_v4 = vld [vmem:[%s979_s0 + $0x8] sm:$0xff]  ;;  %v34_v6 = vld [vmem:[%s979_s0 + $0x38] sm:$0xff] }
   0x3   :  { %538 = vmatpush3.bf16.msra.mxu0 %v615_v1  ;;  %611 = vmatpush3.bf16.msra.mxu1 %v615_v1  ;;  %v37_v7 = vpack.c.bf16 %v28_v4, %v27_v3  ;;  %v40_v8 = vpack.c.bf16 %v34_v6, %v33_v5  ;;  %v617_v9 = vld [vmem:[%s980_s4] sm:$0xff]   ;;  %v29_v11 = vld [vmem:[%s979_s0 + $0x10] sm:$0xff]  ;;  %v30_v12 = vld [vmem:[%s979_s0 + $0x18] sm:$0xff] }
   0x4   :  { %539 = vmatprep.subr.bf16.mxu0 %v661_v0  ;;  %610 = vmatprep.subr.bf16.mxu1 %v661_v0  ;;  %v618_v10 = vld [vmem:[%s981_s5] sm:$0xff]   ;;  %v36_v14 = vld [vmem:[%s979_s0 + $0x48] sm:$0xff]  ;;  %v38_v17 = vpack.c.bf16 %v30_v12, %v29_v11  ;;  %v796_v25 = vld [vmem:[%s982_s3 + $0x10] sm:$0xff] }
   0x5   :  { %v35_v13 = vld [vmem:[%s979_s0 + $0x40] sm:$0xff]  ;;  %v619_v15 = vld [vmem:[%s980_s4 + $0x8] sm:$0xff]   ;;  %v801_v26 = vld [vmem:[%s982_s3 + $0x18] sm:$0xff] }
   0x6   :  { %v620_v16 = vld [vmem:[%s981_s5 + $0x8] sm:$0xff]   ;;  %v41_v18 = vpack.c.bf16 %v36_v14, %v35_v13  ;;  %v31_v19 = vld [vmem:[%s979_s0 + $0x20] sm:$0xff]  ;;  %v174_v27 = vpack.c.bf16 %v801_v26, %v796_v25  ;;  %v826_v31 = vld [vmem:[%s982_s3 + $0x30] sm:$0xff] }
   0x7   :  { %540 = vmatpush3.bf16.msra.mxu0 %v616_v2  ;;  %612 = vmatpush3.bf16.msra.mxu1 %v616_v2  ;;  %v32_v20 = vld [vmem:[%s979_s0 + $0x28] sm:$0xff]  ;;  %v781_v22 = vld [vmem:[%s982_s3] sm:$0xff]  ;;  %v831_v32 = vld [vmem:[%s982_s3 + $0x38] sm:$0xff] }
   0x8   :  { %585 = vmatprep.subr.bf16.mxu0 %v661_v0  ;;  %561 = vmatprep.subr.bf16.mxu1 %v661_v0  ;;  %v39_v21 = vpack.c.bf16 %v32_v20, %v31_v19  ;;  %v786_v23 = vld [vmem:[%s982_s3 + $0x8] sm:$0xff]  ;;  %v811_v28 = vld [vmem:[%s982_s3 + $0x20] sm:$0xff]  ;;  %v176_v33 = vpack.c.bf16 %v831_v32, %v826_v31 }
   0x9   :  { %v173_v24 = vpack.c.bf16 %v786_v23, %v781_v22  ;;  %v816_v29 = vld [vmem:[%s982_s3 + $0x28] sm:$0xff]  ;;  %v841_v34 = vld [vmem:[%s982_s3 + $0x40] sm:$0xff] }
   0xa   :  { %542 = vmatmul.mubr.msk.bf16.vlgmr.msra.gmra.mrb[0].mxu0 %vm65_vm1, %v37_v7  ;;  %554 = vmatmul.mubr.msk.bf16.vlgmr.msra.gmra.mrb[0].mxu1 %vm65_vm1, %v40_v8  ;;  %v175_v30 = vpack.c.bf16 %v816_v29, %v811_v28  ;;  %v846_v35 = vld [vmem:[%s982_s3 + $0x48] sm:$0xff]  ;;  %v493_v37 = vld [vmem:[%s983_s2] ss:$0 sm:$0xff] }
   0xb   :  { %545 = vmatprep.mubr.msk.bf16.mxu0 %vm662_vm0, %v661_v0  ;;  %557 = vmatprep.mubr.msk.bf16.mxu1 %vm662_vm0, %v661_v0  ;;  %v177_v36 = vpack.c.bf16 %v846_v35, %v841_v34 }
   0xc   :  { %586 = vmatpush3.bf16.msra.mxu0 %v617_v9  ;;  %562 = vmatpush3.bf16.msra.mxu1 %v618_v10 }
   0xd   :  { %587 = vmatprep.subr.bf16.mxu0 %v661_v0  ;;  %563 = vmatprep.subr.bf16.mxu1 %v661_v0 }
  0x10   :  { %588 = vmatpush3.bf16.msra.mxu0 %v619_v15  ;;  %564 = vmatpush3.bf16.msra.mxu1 %v620_v16 }
  0x12   :  { %546 = vmatmul.mubr.msk.bf16.gmra.mrb[4].mxu0 %vm65_vm1, %v38_v17  ;;  %558 = vmatmul.mubr.msk.bf16.gmra.mrb[4].mxu1 %vm65_vm1, %v41_v18 }
  0x13   :  { %549 = vmatprep.mubr.msk.bf16.mxu0 %vm662_vm0, %v661_v0  ;;  %565 = vmatprep.mubr.msk.bf16.mxu1 %vm662_vm0, %v661_v0 }
  0x1a   :  { %550 = vmatmul.mubr.msk.bf16.gmra.mrb[8].mxu0 %vm65_vm1, %v39_v21  ;;  %566 = vmatmul.mubr.msk.bf16.vlgmr.msra.gmra.mrb[8].mxu1 %vm65_vm1, %v173_v24 }
  0x1b   :  { %589 = vmatprep.mubr.msk.bf16.mxu0 %vm662_vm0, %v661_v0  ;;  %569 = vmatprep.mubr.msk.bf16.mxu1 %vm662_vm0, %v661_v0 }
  0x22   :  { %570 = vmatmul.mubr.msk.bf16.gmra.mrb[12].mxu1 %vm65_vm1, %v174_v27 }
  0x23   :  { %573 = vmatprep.mubr.msk.bf16.mxu1 %vm662_vm0, %v661_v0 }
  0x2a   :  { %574 = vmatmul.mubr.msk.bf16.gmra.mrb[16].mxu1 %vm65_vm1, %v175_v30 }
  0x2b   :  { %577 = vmatprep.mubr.msk.bf16.mxu1 %vm662_vm0, %v661_v0 }
  0x32   :  { %578 = vmatmul.mubr.msk.bf16.gmra.mrb[20].mxu1 %vm65_vm1, %v176_v33 }
  0x33   :  { %581 = vmatprep.mubr.msk.bf16.mxu1 %vm662_vm0, %v661_v0 }
  0x3a   :  { %582 = vmatmul.mubr.msk.bf16.gmra.mrb[24].mxu1 %vm65_vm1, %v177_v36 }
  0xdd   :  { %v115_v38 = vpop.f32.mrb[0].mxu0  ;;  %v139_v39 = vpop.f32.mrb[0].mxu1 }
  0xde   :  { %v543_v40 = vpop.f32.mrb[1].mxu0  ;;  %v555_v41 = vpop.f32.mrb[1].mxu1  ;;  %v854_v44 = vadd.f32 %v493_v37, %v115_v38  ;;  %v881_v4 = vadd.f32 %v493_v37, %v139_v39 }
  0xdf   :  { %v118_v42 = vpop.f32.mrb[2].mxu0  ;;  %v142_v43 = vpop.f32.mrb[2].mxu1  ;;  %v904_v40 = vld [vmem:[%s984_s6] ss:$0 sm:$0xff] }
  0xe0   :  { %v856_v45 = vadd.f32 %v493_v37, %v118_v42  ;;  %v544_v46 = vpop.f32.mrb[3].mxu0  ;;  %v556_v47 = vpop.f32.mrb[3].mxu1  ;;  %v883_v5 = vadd.f32 %v493_v37, %v142_v43 }
  0xe2   :  { %v164_v48 = vpack.c.bf16 %v856_v45, %v854_v44  ;;  %v167_v6 = vpack.c.bf16 %v883_v5, %v881_v4 }
  0xe4   :  { %590 = vmatmul.mubr.msk.bf16.vlgmr.msra.gmra.mrb[12].mxu0 %vm65_vm1, %v164_v48 }
  0xe5   :  { %v123_v49 = vpop.f32.mrb[4].mxu0  ;;  %593 = vmatprep.mubr.msk.bf16.mxu0 %vm662_vm0, %v661_v0  ;;  %v147_v50 = vpop.f32.mrb[4].mxu1 }
  0xe6   :  { %v547_v51 = vpop.f32.mrb[5].mxu0  ;;  %v559_v52 = vpop.f32.mrb[5].mxu1  ;;  %v863_v55 = vadd.f32 %v493_v37, %v123_v49  ;;  %v890_v7 = vadd.f32 %v493_v37, %v147_v50 }
  0xe7   :  { %v126_v53 = vpop.f32.mrb[6].mxu0  ;;  %v150_v54 = vpop.f32.mrb[6].mxu1 }
  0xe8   :  { %v865_v56 = vadd.f32 %v493_v37, %v126_v53  ;;  %v548_v57 = vpop.f32.mrb[7].mxu0  ;;  %v560_v58 = vpop.f32.mrb[7].mxu1  ;;  %v892_v8 = vadd.f32 %v493_v37, %v150_v54 }
  0xea   :  { %v165_v59 = vpack.c.bf16 %v865_v56, %v863_v55  ;;  %v168_v9 = vpack.c.bf16 %v892_v8, %v890_v7 }
  0xec   :  { %594 = vmatmul.mubr.msk.bf16.gmra.mrb[16].mxu0 %vm65_vm1, %v165_v59 }
  0xed   :  { %v131_v60 = vpop.f32.mrb[8].mxu0  ;;  %597 = vmatprep.mubr.msk.bf16.mxu0 %vm662_vm0, %v661_v0  ;;  %v243_v10 = vpop.f32.mrb[8].mxu1 }
  0xee   :  { %v551_v61 = vpop.f32.mrb[9].mxu0  ;;  %v872_v63 = vadd.f32 %v493_v37, %v131_v60  ;;  %v567_v11 = vpop.f32.mrb[9].mxu1 }
  0xef   :  { %v134_v62 = vpop.f32.mrb[10].mxu0  ;;  %v246_v12 = vpop.f32.mrb[10].mxu1 }
  0xf0   :  { %v874_v1 = vadd.f32 %v493_v37, %v134_v62  ;;  %v552_v2 = vpop.f32.mrb[11].mxu0  ;;  %v568_v13 = vpop.f32.mrb[11].mxu1 }
  0xf2   :  { %v166_v3 = vpack.c.bf16 %v874_v1, %v872_v63 }
  0xf4   :  { %598 = vmatmul.mubr.msk.bf16.gmra.mrb[20].mxu0 %vm65_vm1, %v166_v3 }
  0xf5   :  { %601 = vmatprep.mubr.msk.bf16.mxu0 %vm662_vm0, %v661_v0  ;;  %v251_v14 = vpop.f32.mrb[12].mxu1 }
  0xf6   :  { %v571_v15 = vpop.f32.mrb[13].mxu1 }
  0xf7   :  { %v254_v16 = vpop.f32.mrb[14].mxu1 }
  0xf8   :  { %v572_v17 = vpop.f32.mrb[15].mxu1 }
  0xfc   :  { %602 = vmatmul.mubr.msk.bf16.gmra.mrb[24].mxu0 %vm65_vm1, %v167_v6 }
  0xfd   :  { %605 = vmatprep.mubr.msk.bf16.mxu0 %vm662_vm0, %v661_v0  ;;  %v259_v18 = vpop.f32.mrb[16].mxu1 }
  0xfe   :  { %v575_v19 = vpop.f32.mrb[17].mxu1 }
  0xff   :  { %v262_v0 = vpop.f32.mrb[18].mxu1 }
 0x100   :  { %v576_v20 = vpop.f32.mrb[19].mxu1 }
 0x104   :  { %606 = vmatmul.mubr.msk.bf16.gmra.mrb[28].mxu0 %vm65_vm1, %v168_v9 }
 0x105   :  { %v267_v21 = vpop.f32.mrb[20].mxu1 }
 0x106   :  { %v579_v24 = vpop.f32.mrb[21].mxu1 }
 0x107   :  { %v270_v27 = vpop.f32.mrb[22].mxu1 }
 0x108   :  { %v580_v30 = vpop.f32.mrb[23].mxu1 }
 0x10d   :  { %v897_v33 = vpop.f32.mrb[24].mxu1 }
 0x10e   :  { %v583_v36 = vpop.f32.mrb[25].mxu1 }
 0x10f   :  { %v899_v37 = vpop.f32.mrb[26].mxu1 }
 0x110   :  { %v584_v38 = vpop.f32.mrb[27].mxu1 }
 0x1b7   :  { %v343_v39 = vpop.f32.mrb[12].mxu0 }
 0x1b8   :  { %v344_v41 = vadd.f32 %v343_v39, %v243_v10  ;;  %v591_v42 = vpop.f32.mrb[13].mxu0 }
 0x1b9   :  { %v346_v43 = vpop.f32.mrb[14].mxu0 }
 0x1ba   :  { %v389_v46 = vadd.f32 %v904_v40, %v344_v41  ;;  %v347_v47 = vadd.f32 %v346_v43, %v246_v12  ;;  %v592_v48 = vpop.f32.mrb[15].mxu0 }
 0x1bc   :  { %v399_v49 = vsub.f32 0.0, %v389_v46  ;;  %v390_v50 = vadd.f32 %v904_v40, %v347_v47 }
 0x1be   :  { %v409_v51 = vmul.f32 1.442695, %v399_v49  ;;  %v400_v52 = vsub.f32 0.0, %v390_v50 }
 0x1bf   :  { %v351_v53 = vpop.f32.mrb[16].mxu0 }
 0x1c0   :  { %621 = vpow2.f32 %v409_v51  ;;  %v411_v54 = vmul.f32 1.442695, %v400_v52  ;;  %v352_v57 = vadd.f32 %v351_v53, %v251_v14  ;;  %v595_v58 = vpop.f32.mrb[17].mxu0 }
 0x1c1   :  { %v354_v59 = vpop.f32.mrb[18].mxu0 }
 0x1c2   :  { %623 = vpow2.f32 %v411_v54  ;;  %v391_v60 = vadd.f32 %v904_v40, %v352_v57  ;;  %v355_v61 = vadd.f32 %v354_v59, %v254_v16  ;;  %v596_v62 = vpop.f32.mrb[19].mxu0 }
 0x1c4   :  { %v401_v2 = vsub.f32 0.0, %v391_v60  ;;  %v392_v3 = vadd.f32 %v904_v40, %v355_v61 }
 0x1c6   :  { %v413_v6 = vmul.f32 1.442695, %v401_v2  ;;  %v402_v9 = vsub.f32 0.0, %v392_v3 }
 0x1c7   :  { %v359_v10 = vpop.f32.mrb[20].mxu0 }
 0x1c8   :  { %625 = vpow2.f32 %v413_v6  ;;  %v415_v11 = vmul.f32 1.442695, %v402_v9  ;;  %v360_v12 = vadd.f32 %v359_v10, %v259_v18  ;;  %v599_v13 = vpop.f32.mrb[21].mxu0 }
 0x1c9   :  { %v362_v15 = vpop.f32.mrb[22].mxu0 }
 0x1ca   :  { %v622_v17 = vpop.eup %621  ;;  %627 = vpow2.f32 %v415_v11  ;;  %v393_v14 = vadd.f32 %v904_v40, %v360_v12  ;;  %v363_v19 = vadd.f32 %v362_v15, %v262_v0  ;;  %v600_v20 = vpop.f32.mrb[23].mxu0 }
 0x1cb   :  { %v429_v24 = vadd.f32 1.0, %v622_v17 }
 0x1cc   :  { %v624_v16 = vpop.eup %623  ;;  %v403_v30 = vsub.f32 0.0, %v393_v14  ;;  %v394_v36 = vadd.f32 %v904_v40, %v363_v19 }
 0x1cd   :  { %629 = vrcp.f32 %v429_v24  ;;  %v430_v38 = vadd.f32 1.0, %v624_v16 }
 0x1ce   :  { %v417_v39 = vmul.f32 1.442695, %v403_v30  ;;  %v404_v41 = vsub.f32 0.0, %v394_v36 }
 0x1cf   :  { %631 = vrcp.f32 %v430_v38  ;;  %v367_v42 = vpop.f32.mrb[24].mxu0 }
 0x1d0   :  { %633 = vpow2.f32 %v417_v39  ;;  %v419_v18 = vmul.f32 1.442695, %v404_v41  ;;  %v368_v43 = vadd.f32 %v367_v42, %v267_v21  ;;  %v603_v46 = vpop.f32.mrb[25].mxu0 }
 0x1d1   :  { %v370_v47 = vpop.f32.mrb[26].mxu0 }
 0x1d2   :  { %v626_v48 = vpop.eup %625  ;;  %635 = vpow2.f32 %v419_v18  ;;  %v395_v0 = vadd.f32 %v904_v40, %v368_v43  ;;  %v371_v49 = vadd.f32 %v370_v47, %v270_v27  ;;  %v604_v50 = vpop.f32.mrb[27].mxu0 }
 0x1d3   :  { %v431_v51 = vadd.f32 1.0, %v626_v48 }
 0x1d4   :  { %v628_v52 = vpop.eup %627  ;;  %v405_v53 = vsub.f32 0.0, %v395_v0  ;;  %v396_v54 = vadd.f32 %v904_v40, %v371_v49 }
 0x1d5   :  { %637 = vrcp.f32 %v431_v51  ;;  %v432_v57 = vadd.f32 1.0, %v628_v52 }
 0x1d6   :  { %v421_v58 = vmul.f32 1.442695, %v405_v53  ;;  %v406_v59 = vsub.f32 0.0, %v396_v54 }
 0x1d7   :  { %v630_v60 = vpop.eup %629  ;;  %639 = vrcp.f32 %v432_v57  ;;  %v375_v21 = vpop.f32.mrb[28].mxu0 }
 0x1d8   :  { %v459_v61 = vmul.f32 %v630_v60, %v854_v44  ;;  %641 = vpow2.f32 %v421_v58  ;;  %v423_v62 = vmul.f32 1.442695, %v406_v59  ;;  %v376_v2 = vadd.f32 %v375_v21, %v897_v33  ;;  %v607_v27 = vpop.f32.mrb[29].mxu0 }
 0x1d9   :  { %v632_v3 = vpop.eup %631  ;;  %v378_v6 = vpop.f32.mrb[30].mxu0 }
 0x1da   :  { %v634_v9 = vpop.eup %633  ;;  %v469_v10 = vadd.f32 %v459_v61, %v781_v22  ;;  %v460_v11 = vmul.f32 %v632_v3, %v856_v45  ;;  %643 = vpow2.f32 %v423_v62  ;;  %v397_v12 = vadd.f32 %v904_v40, %v376_v2  ;;  %v608_v13 = vpop.f32.mrb[31].mxu0 }
 0x1db   :  { %v433_v15 = vadd.f32 1.0, %v634_v9  ;;  %v379_v17 = vadd.f32 %v378_v6, %v899_v37 }
 0x1dc   :  { %v636_v44 = vpop.eup %635  ;;  %479 = vst.msk [vmem:[%s985_s7] sm:$0xff] %vm65_vm1, %v469_v10  ;;  %v470_v33 = vadd.f32 %v460_v11, %v786_v23  ;;  %v407_v14 = vsub.f32 0.0, %v397_v12 }
 0x1dd   :  { %645 = vrcp.f32 %v433_v15  ;;  %v434_v22 = vadd.f32 1.0, %v636_v44  ;;  %v398_v45 = vadd.f32 %v904_v40, %v379_v17 }
 0x1de   :  { %480 = vst.msk [vmem:[%s985_s7 + $0x8] sm:$0xff] %vm65_vm1, %v470_v33  ;;  %v425_v19 = vmul.f32 1.442695, %v407_v14 }
 0x1df   :  { %v638_v37 = vpop.eup %637  ;;  %647 = vrcp.f32 %v434_v22  ;;  %v408_v20 = vsub.f32 0.0, %v398_v45 }
 0x1e0   :  { %v461_v24 = vmul.f32 %v638_v37, %v863_v55  ;;  %649 = vpow2.f32 %v425_v19 }
 0x1e1   :  { %v640_v16 = vpop.eup %639  ;;  %v427_v30 = vmul.f32 1.442695, %v408_v20 }
 0x1e2   :  { %v642_v23 = vpop.eup %641  ;;  %v471_v36 = vadd.f32 %v461_v24, %v796_v25  ;;  %v462_v38 = vmul.f32 %v640_v16, %v865_v56 }
 0x1e3   :  { %v435_v40 = vadd.f32 1.0, %v642_v23  ;;  %651 = vpow2.f32 %v427_v30 }
 0x1e4   :  { %v644_v39 = vpop.eup %643  ;;  %481 = vst.msk [vmem:[%s985_s7 + $0x10] sm:$0xff] %vm65_vm1, %v471_v36  ;;  %v472_v41 = vadd.f32 %v462_v38, %v801_v26 }
 0x1e5   :  { %653 = vrcp.f32 %v435_v40  ;;  %v436_v55 = vadd.f32 1.0, %v644_v39 }
 0x1e6   :  { %482 = vst.msk [vmem:[%s985_s7 + $0x18] sm:$0xff] %vm65_vm1, %v472_v41 }
 0x1e7   :  { %v646_v25 = vpop.eup %645  ;;  %655 = vrcp.f32 %v436_v55 }
 0x1e8   :  { %v463_v56 = vmul.f32 %v646_v25, %v872_v63 }
 0x1e9   :  { %v648_v42 = vpop.eup %647 }
 0x1ea   :  { %v650_v18 = vpop.eup %649  ;;  %v473_v43 = vadd.f32 %v463_v56, %v811_v28  ;;  %v464_v46 = vmul.f32 %v648_v42, %v874_v1 }
 0x1eb   :  { %v437_v47 = vadd.f32 1.0, %v650_v18 }
 0x1ec   :  { %483 = vst.msk [vmem:[%s985_s7 + $0x20] sm:$0xff] %vm65_vm1, %v473_v43  ;;  %v474_v26 = vadd.f32 %v464_v46, %v816_v29 }
 0x1ed   :  { %v652_v48 = vpop.eup %651  ;;  %657 = vrcp.f32 %v437_v47 }
 0x1ee   :  { %484 = vst.msk [vmem:[%s985_s7 + $0x28] sm:$0xff] %vm65_vm1, %v474_v26  ;;  %v438_v63 = vadd.f32 1.0, %v652_v48 }
 0x1ef   :  { %v654_v0 = vpop.eup %653 }
 0x1f0   :  { %v465_v28 = vmul.f32 %v654_v0, %v881_v4  ;;  %659 = vrcp.f32 %v438_v63 }
 0x1f1   :  { %v656_v1 = vpop.eup %655 }
 0x1f2   :  { %v475_v49 = vadd.f32 %v465_v28, %v826_v31  ;;  %v466_v50 = vmul.f32 %v656_v1, %v883_v5 }
 0x1f4   :  { %485 = vst.msk [vmem:[%s985_s7 + $0x30] sm:$0xff] %vm65_vm1, %v475_v49  ;;  %v476_v29 = vadd.f32 %v466_v50, %v831_v32 }
 0x1f6   :  { %486 = vst.msk [vmem:[%s985_s7 + $0x38] sm:$0xff] %vm65_vm1, %v476_v29 }
 0x1f7   :  { %v658_v51 = vpop.eup %657 }
 0x1f8   :  { %v467_v4 = vmul.f32 %v658_v51, %v890_v7 }
 0x1fa   :  { %v660_v52 = vpop.eup %659  ;;  %v477_v31 = vadd.f32 %v467_v4, %v841_v34 }
 0x1fb   :  { %v468_v5 = vmul.f32 %v660_v52, %v892_v8 }
 0x1fc   :  { %487 = vst.msk [vmem:[%s985_s7 + $0x40] sm:$0xff] %vm65_vm1, %v477_v31 }
 0x1fd   :  { %v478_v32 = vadd.f32 %v468_v5, %v846_v35 }
 0x1ff   :  { %488 = vst.msk [vmem:[%s985_s7 + $0x48] sm:$0xff] %vm65_vm1, %v478_v32 }

// kernel: encoder_forward.48
= control target key start
LH: loop header
LB: loop body
LE: loop exit
PB: predicated region body
PF: predicated region fallthrough
CT: control target
= control target key end

     0   :  { %vm35_vm0 = vcmask 261120   ;;  %vm532_vm1 = vmmov 0   ;;  %s843_s0 = inlined_call_operand.vmem [shape: f32[80,32], index: 0, kind: input, shape index: {}]   ;;  %s844_s3 = inlined_call_operand.vmem [shape: bf16[32,128], index: 3, kind: input, shape index: {}]   ;;  %s845_s1 = inlined_call_operand.vmem [shape: f32[1,32], index: 1, kind: input, shape index: {}]   ;;  %s846_s2 = inlined_call_operand.vmem [shape: f32[1,32], index: 2, kind: input, shape index: {}]   ;;  %s847_s4 = inlined_call_operand.vmem [shape: f32[1,128], index: 4, kind: input, shape index: {}]   ;;  %s848_s5 = inlined_call_operand.vmem [shape: f32[80,128], index: 5, kind: output, shape index: {}]  }
   0x1   :  { %v25_v0 = vld [vmem:[%s843_s0] sm:$0xff]  ;;  %v27_v1 = vld [vmem:[%s843_s0 + $0x10] sm:$0xff]  ;;  %v26_v2 = vld [vmem:[%s843_s0 + $0x8] sm:$0xff] }
   0x2   :  { %v36_v3 = vsel %vm35_vm0, %v25_v0, 0.0  ;;  %v42_v4 = vsel %vm35_vm0, %v27_v1, 0.0  ;;  %v28_v5 = vld [vmem:[%s843_s0 + $0x18] sm:$0xff]  ;;  %v39_v6 = vsel %vm35_vm0, %v26_v2, 0.0  ;;  %v31_v8 = vld [vmem:[%s843_s0 + $0x30] sm:$0xff]  ;;  %v29_v12 = vld [vmem:[%s843_s0 + $0x20] sm:$0xff] }
   0x3   :  { %37 = vadd.xlane.f32.xlu0 %v36_v3  ;;  %43 = vadd.xlane.f32.xlu1 %v42_v4  ;;  %v45_v7 = vsel %vm35_vm0, %v28_v5, 0.0  ;;  %v32_v9 = vld [vmem:[%s843_s0 + $0x38] sm:$0xff]  ;;  %v54_v10 = vsel %vm35_vm0, %v31_v8, 0.0  ;;  %v30_v13 = vld [vmem:[%s843_s0 + $0x28] sm:$0xff]  ;;  %v48_v14 = vsel %vm35_vm0, %v29_v12, 0.0  ;;  %v33_v16 = vld [vmem:[%s843_s0 + $0x40] sm:$0xff] }
   0x4   :  { %v57_v11 = vsel %vm35_vm0, %v32_v9, 0.0  ;;  %v51_v15 = vsel %vm35_vm0, %v30_v13, 0.0  ;;  %v34_v17 = vld [vmem:[%s843_s0 + $0x48] sm:$0xff]  ;;  %v60_v18 = vsel %vm35_vm0, %v33_v16, 0.0 }
   0x5   :  { %v63_v19 = vsel %vm35_vm0, %v34_v17, 0.0 }
   0x7   :  { %40 = vadd.xlane.f32.xlu0 %v39_v6  ;;  %46 = vadd.xlane.f32.xlu1 %v45_v7  ;;  %v489_v6 = vld [vmem:[%s844_s3] sm:$0xff]   ;;  %v531_v7 = vmov 0.0  }
   0x8   :  { %459 = vmatprep.subr.bf16.mxu0 %v531_v7  ;;  %483 = vmatprep.subr.bf16.mxu1 %v531_v7 }
   0x9   :  { %460 = vmatpush3.bf16.msra.mxu0 %v489_v6  ;;  %485 = vmatpush3.bf16.msra.mxu1 %v489_v6 }
   0xa   :  { %461 = vmatprep.subr.bf16.mxu0 %v531_v7  ;;  %484 = vmatprep.subr.bf16.mxu1 %v531_v7 }
   0xb   :  { %55 = vadd.xlane.f32.xlu0 %v54_v10  ;;  %58 = vadd.xlane.f32.xlu1 %v57_v11 }
   0xc   :  { %463 = vmatprep.mubr.msk.bf16.mxu0 %vm532_vm1, %v531_v7  ;;  %475 = vmatprep.mubr.msk.bf16.mxu1 %vm532_vm1, %v531_v7 }
   0xf   :  { %49 = vadd.xlane.f32.xlu0 %v48_v14  ;;  %52 = vadd.xlane.f32.xlu1 %v51_v15 }
  0x13   :  { %61 = vadd.xlane.f32.xlu0 %v60_v18  ;;  %64 = vadd.xlane.f32.xlu1 %v63_v19 }
  0x90   :  { %v38_v20 = vpop.xlane.xlu0 %37  ;;  %v44_v21 = vpop.xlane.xlu1 %43 }
  0x91   :  { %v67_v22 = vmul.f32 0.03125, %v38_v20  ;;  %v69_v23 = vmul.f32 0.03125, %v44_v21 }
  0x93   :  { %v603_v24 = vsub.f32 %v25_v0, %v67_v22  ;;  %v605_v25 = vsub.f32 %v27_v1, %v69_v23 }
  0x94   :  { %v41_v26 = vpop.xlane.xlu0 %40  ;;  %v47_v27 = vpop.xlane.xlu1 %46 }
  0x95   :  { %v68_v28 = vmul.f32 0.03125, %v41_v26  ;;  %v70_v29 = vmul.f32 0.03125, %v47_v27  ;;  %v87_v30 = vmul.f32 %v603_v24, %v603_v24  ;;  %v89_v31 = vmul.f32 %v605_v25, %v605_v25 }
  0x97   :  { %v611_v32 = vsub.f32 %v26_v2, %v68_v28  ;;  %v613_v33 = vsub.f32 %v28_v5, %v70_v29  ;;  %v97_v34 = vsel %vm35_vm0, %v87_v30, 0.0  ;;  %v103_v37 = vsel %vm35_vm0, %v89_v31, 0.0  ;;  %v670_v31 = vld [vmem:[%s845_s1] ss:$0 sm:$0xff] }
  0x98   :  { %98 = vadd.xlane.f32.xlu0 %v97_v34  ;;  %v56_v35 = vpop.xlane.xlu0 %55  ;;  %v59_v36 = vpop.xlane.xlu1 %58 }
  0x99   :  { %v73_v38 = vmul.f32 0.03125, %v56_v35  ;;  %v74_v39 = vmul.f32 0.03125, %v59_v36  ;;  %v88_v40 = vmul.f32 %v611_v32, %v611_v32  ;;  %v90_v41 = vmul.f32 %v613_v33, %v613_v33 }
  0x9b   :  { %v621_v42 = vsub.f32 %v31_v8, %v73_v38  ;;  %v623_v43 = vsub.f32 %v32_v9, %v74_v39  ;;  %v100_v44 = vsel %vm35_vm0, %v88_v40, 0.0  ;;  %v106_v47 = vsel %vm35_vm0, %v90_v41, 0.0  ;;  %v490_v8 = vld [vmem:[%s844_s3 + $0x8] sm:$0xff]   ;;  %v676_v39 = vld [vmem:[%s846_s2] ss:$0 sm:$0xff] }
  0x9c   :  { %104 = vadd.xlane.f32.xlu0 %v103_v37  ;;  %101 = vadd.xlane.f32.xlu1 %v100_v44  ;;  %v50_v45 = vpop.xlane.xlu0 %49  ;;  %v53_v46 = vpop.xlane.xlu1 %52 }
  0x9d   :  { %v71_v48 = vmul.f32 0.03125, %v50_v45  ;;  %v72_v49 = vmul.f32 0.03125, %v53_v46  ;;  %v93_v50 = vmul.f32 %v621_v42, %v621_v42  ;;  %v94_v51 = vmul.f32 %v623_v43, %v623_v43  ;;  %462 = vmatpush3.bf16.msra.mxu0 %v490_v8  ;;  %486 = vmatpush3.bf16.msra.mxu1 %v490_v8 }
  0x9f   :  { %v631_v52 = vsub.f32 %v29_v12, %v71_v48  ;;  %v633_v53 = vsub.f32 %v30_v13, %v72_v49  ;;  %v115_v54 = vsel %vm35_vm0, %v93_v50, 0.0  ;;  %v118_v57 = vsel %vm35_vm0, %v94_v51, 0.0 }
  0xa0   :  { %107 = vadd.xlane.f32.xlu1 %v106_v47  ;;  %116 = vadd.xlane.f32.xlu0 %v115_v54  ;;  %v62_v55 = vpop.xlane.xlu0 %61  ;;  %v65_v56 = vpop.xlane.xlu1 %64 }
  0xa1   :  { %v75_v58 = vmul.f32 0.03125, %v62_v55  ;;  %v76_v59 = vmul.f32 0.03125, %v65_v56  ;;  %v91_v60 = vmul.f32 %v631_v52, %v631_v52  ;;  %v92_v61 = vmul.f32 %v633_v53, %v633_v53 }
  0xa3   :  { %v641_v62 = vsub.f32 %v33_v16, %v75_v58  ;;  %v643_v63 = vsub.f32 %v34_v17, %v76_v59  ;;  %v109_v0 = vsel %vm35_vm0, %v91_v60, 0.0  ;;  %v112_v1 = vsel %vm35_vm0, %v92_v61, 0.0 }
  0xa4   :  { %119 = vadd.xlane.f32.xlu1 %v118_v57  ;;  %110 = vadd.xlane.f32.xlu0 %v109_v0 }
  0xa5   :  { %v95_v2 = vmul.f32 %v641_v62, %v641_v62  ;;  %v96_v3 = vmul.f32 %v643_v63, %v643_v63 }
  0xa7   :  { %v121_v4 = vsel %vm35_vm0, %v95_v2, 0.0  ;;  %v124_v5 = vsel %vm35_vm0, %v96_v3, 0.0 }
  0xa8   :  { %113 = vadd.xlane.f32.xlu1 %v112_v1  ;;  %122 = vadd.xlane.f32.xlu0 %v121_v4 }
  0xac   :  { %125 = vadd.xlane.f32.xlu1 %v124_v5 }
 0x125   :  { %v99_v9 = vpop.xlane.xlu0 %98 }
 0x126   :  { %v127_v10 = vmul.f32 0.03125, %v99_v9 }
 0x128   :  { %v137_v11 = vadd.f32 1e-06, %v127_v10 }
 0x129   :  { %v102_v12 = vpop.xlane.xlu1 %101  ;;  %v105_v13 = vpop.xlane.xlu0 %104 }
 0x12a   :  { %491 = vrsqrt.f32 %v137_v11  ;;  %v128_v14 = vmul.f32 0.03125, %v102_v12  ;;  %v129_v15 = vmul.f32 0.03125, %v105_v13 }
 0x12c   :  { %v138_v16 = vadd.f32 1e-06, %v128_v14  ;;  %v139_v17 = vadd.f32 1e-06, %v129_v15 }
 0x12d   :  { %v108_v18 = vpop.xlane.xlu1 %107  ;;  %v117_v19 = vpop.xlane.xlu0 %116 }
 0x12e   :  { %493 = vrsqrt.f32 %v138_v16  ;;  %v130_v20 = vmul.f32 0.03125, %v108_v18  ;;  %v133_v21 = vmul.f32 0.03125, %v117_v19 }
 0x12f   :  { %495 = vrsqrt.f32 %v139_v17 }
 0x130   :  { %v140_v22 = vadd.f32 1e-06, %v130_v20  ;;  %v143_v23 = vadd.f32 1e-06, %v133_v21 }
 0x131   :  { %v120_v26 = vpop.xlane.xlu1 %119  ;;  %v111_v27 = vpop.xlane.xlu0 %110 }
 0x132   :  { %497 = vrsqrt.f32 %v140_v22  ;;  %v134_v28 = vmul.f32 0.03125, %v120_v26  ;;  %v131_v29 = vmul.f32 0.03125, %v111_v27 }
 0x133   :  { %499 = vrsqrt.f32 %v143_v23 }
 0x134   :  { %v492_v30 = vpop.eup %491  ;;  %v144_v34 = vadd.f32 1e-06, %v134_v28  ;;  %v141_v35 = vadd.f32 1e-06, %v131_v29 }
 0x135   :  { %v157_v36 = vmul.f32 %v492_v30, %v603_v24  ;;  %v114_v37 = vpop.xlane.xlu1 %113  ;;  %v123_v38 = vpop.xlane.xlu0 %122 }
 0x136   :  { %501 = vrsqrt.f32 %v144_v34  ;;  %v132_v40 = vmul.f32 0.03125, %v114_v37  ;;  %v135_v41 = vmul.f32 0.03125, %v123_v38  ;;  %v731_v37 = vld [vmem:[%s847_s4] ss:$0 sm:$0xff] }
 0x137   :  { %v174_v44 = vmul.f32 %v670_v31, %v157_v36  ;;  %503 = vrsqrt.f32 %v141_v35 }
 0x138   :  { %v494_v45 = vpop.eup %493  ;;  %v142_v46 = vadd.f32 1e-06, %v132_v40  ;;  %v145_v47 = vadd.f32 1e-06, %v135_v41 }
 0x139   :  { %v496_v48 = vpop.eup %495  ;;  %v191_v49 = vadd.f32 %v676_v39, %v174_v44  ;;  %v158_v24 = vmul.f32 %v494_v45, %v611_v32  ;;  %v126_v50 = vpop.xlane.xlu1 %125 }
 0x13a   :  { %v159_v51 = vmul.f32 %v496_v48, %v605_v25  ;;  %505 = vrsqrt.f32 %v142_v46  ;;  %v136_v54 = vmul.f32 0.03125, %v126_v50 }
 0x13b   :  { %201 = vst.msk [vmem:[#allocation2] sm:$0xff] %vm35_vm0, %v191_v49  ;;  %v175_v55 = vmul.f32 %v670_v31, %v158_v24  ;;  %507 = vrsqrt.f32 %v145_v47 }
 0x13c   :  { %v498_v56 = vpop.eup %497  ;;  %v176_v57 = vmul.f32 %v670_v31, %v159_v51  ;;  %v146_v58 = vadd.f32 1e-06, %v136_v54 }
 0x13d   :  { %v500_v59 = vpop.eup %499  ;;  %v192_v60 = vadd.f32 %v676_v39, %v175_v55  ;;  %v160_v61 = vmul.f32 %v498_v56, %v613_v33 }
 0x13e   :  { %v193_v32 = vadd.f32 %v676_v39, %v176_v57  ;;  %v163_v25 = vmul.f32 %v500_v59, %v621_v42  ;;  %509 = vrsqrt.f32 %v146_v58 }
 0x13f   :  { %202 = vst.msk [vmem:[#allocation2 + $0x8] sm:$0xff] %vm35_vm0, %v192_v60  ;;  %v177_v0 = vmul.f32 %v670_v31, %v160_v61 }
 0x140   :  { %v502_v1 = vpop.eup %501  ;;  %203 = vst.msk [vmem:[#allocation2 + $0x10] sm:$0xff] %vm35_vm0, %v193_v32  ;;  %v180_v2 = vmul.f32 %v670_v31, %v163_v25 }
 0x141   :  { %v504_v3 = vpop.eup %503  ;;  %v194_v4 = vadd.f32 %v676_v39, %v177_v0  ;;  %v164_v5 = vmul.f32 %v502_v1, %v623_v43 }
 0x142   :  { %v197_v33 = vadd.f32 %v676_v39, %v180_v2  ;;  %v161_v6 = vmul.f32 %v504_v3, %v631_v52  ;;  %v211_v14 = vld [vmem:[#allocation2] sm:$0xff] }
 0x143   :  { %204 = vst.msk [vmem:[#allocation2 + $0x18] sm:$0xff] %vm35_vm0, %v194_v4  ;;  %v181_v42 = vmul.f32 %v670_v31, %v164_v5 }
 0x144   :  { %v506_v8 = vpop.eup %505  ;;  %207 = vst.msk [vmem:[#allocation2 + $0x30] sm:$0xff] %vm35_vm0, %v197_v33  ;;  %v178_v9 = vmul.f32 %v670_v31, %v161_v6 }
 0x145   :  { %v508_v10 = vpop.eup %507  ;;  %v198_v11 = vadd.f32 %v676_v39, %v181_v42  ;;  %v162_v12 = vmul.f32 %v506_v8, %v633_v53 }
 0x146   :  { %v195_v43 = vadd.f32 %v676_v39, %v178_v9  ;;  %v165_v13 = vmul.f32 %v508_v10, %v641_v62  ;;  %v212_v52 = vld [vmem:[#allocation2 + $0x8] sm:$0xff] }
 0x147   :  { %208 = vst.msk [vmem:[#allocation2 + $0x38] sm:$0xff] %vm35_vm0, %v198_v11  ;;  %v179_v15 = vmul.f32 %v670_v31, %v162_v12  ;;  %v221_v16 = vpack.c.bf16 %v212_v52, %v211_v14  ;;  %v213_v23 = vld [vmem:[#allocation2 + $0x10] sm:$0xff] }
 0x148   :  { %v510_v17 = vpop.eup %509  ;;  %205 = vst.msk [vmem:[#allocation2 + $0x20] sm:$0xff] %vm35_vm0, %v195_v43  ;;  %v182_v18 = vmul.f32 %v670_v31, %v165_v13 }
 0x149   :  { %v196_v19 = vadd.f32 %v676_v39, %v179_v15  ;;  %v166_v53 = vmul.f32 %v510_v17, %v643_v63  ;;  %464 = vmatmul.mubr.msk.bf16.vlgmr.msra.gmra.mrb[0].mxu0 %vm35_vm0, %v221_v16 }
 0x14a   :  { %v199_v62 = vadd.f32 %v676_v39, %v182_v18  ;;  %467 = vmatprep.mubr.msk.bf16.mxu0 %vm532_vm1, %v531_v7  ;;  %v214_v21 = vld [vmem:[#allocation2 + $0x18] sm:$0xff] }
 0x14b   :  { %206 = vst.msk [vmem:[#allocation2 + $0x28] sm:$0xff] %vm35_vm0, %v196_v19  ;;  %v183_v20 = vmul.f32 %v670_v31, %v166_v53  ;;  %v217_v26 = vld [vmem:[#allocation2 + $0x30] sm:$0xff]  ;;  %v222_v63 = vpack.c.bf16 %v214_v21, %v213_v23 }
 0x14c   :  { %209 = vst.msk [vmem:[#allocation2 + $0x40] sm:$0xff] %vm35_vm0, %v199_v62 }
 0x14d   :  { %v200_v22 = vadd.f32 %v676_v39, %v183_v20 }
 0x14e   :  { %v218_v27 = vld [vmem:[#allocation2 + $0x38] sm:$0xff] }
 0x14f   :  { %210 = vst.msk [vmem:[#allocation2 + $0x48] sm:$0xff] %vm35_vm0, %v200_v22  ;;  %v224_v28 = vpack.c.bf16 %v218_v27, %v217_v26  ;;  %v215_v30 = vld [vmem:[#allocation2 + $0x20] sm:$0xff] }
 0x151   :  { %468 = vmatmul.mubr.msk.bf16.gmra.mrb[4].mxu0 %vm35_vm0, %v222_v63  ;;  %476 = vmatmul.mubr.msk.bf16.vlgmr.msra.gmra.mrb[0].mxu1 %vm35_vm0, %v224_v28 }
 0x152   :  { %471 = vmatprep.mubr.msk.bf16.mxu0 %vm532_vm1, %v531_v7  ;;  %479 = vmatprep.mubr.msk.bf16.mxu1 %vm532_vm1, %v531_v7  ;;  %v216_v29 = vld [vmem:[#allocation2 + $0x28] sm:$0xff] }
 0x153   :  { %v219_v31 = vld [vmem:[#allocation2 + $0x40] sm:$0xff]  ;;  %v223_v35 = vpack.c.bf16 %v216_v29, %v215_v30 }
 0x156   :  { %v220_v34 = vld [vmem:[#allocation2 + $0x48] sm:$0xff] }
 0x157   :  { %v225_v36 = vpack.c.bf16 %v220_v34, %v219_v31 }
 0x159   :  { %472 = vmatmul.mubr.msk.bf16.gmra.mrb[8].mxu0 %vm35_vm0, %v223_v35  ;;  %480 = vmatmul.mubr.msk.bf16.gmra.mrb[4].mxu1 %vm35_vm0, %v225_v36 }
 0x21c   :  { %v299_v38 = vpop.f32.mrb[0].mxu0 }
 0x21d   :  { %v734_v39 = vadd.f32 %v731_v37, %v299_v38  ;;  %v465_v7 = vpop.f32.mrb[1].mxu0 }
 0x21e   :  { %v302_v40 = vpop.f32.mrb[2].mxu0 }
 0x21f   :  { %v348_v41 = vmul.f32 0.044715, %v734_v39  ;;  %v738_v44 = vadd.f32 %v731_v37, %v302_v40  ;;  %v466_v45 = vpop.f32.mrb[3].mxu0 }
 0x220   :  { %v338_v45 = vmul.f32 0.5, %v734_v39 }
 0x221   :  { %v358_v46 = vmul.f32 %v348_v41, %v734_v39  ;;  %v349_v47 = vmul.f32 0.044715, %v738_v44 }
 0x223   :  { %v368_v48 = vmul.f32 %v358_v46, %v734_v39  ;;  %v359_v49 = vmul.f32 %v349_v47, %v738_v44 }
 0x224   :  { %v307_v24 = vpop.f32.mrb[4].mxu0  ;;  %v323_v50 = vpop.f32.mrb[0].mxu1 }
 0x225   :  { %v378_v51 = vadd.f32 %v368_v48, %v734_v39  ;;  %v369_v54 = vmul.f32 %v359_v49, %v738_v44  ;;  %v747_v55 = vadd.f32 %v731_v37, %v307_v24  ;;  %v750_v56 = vadd.f32 %v731_v37, %v323_v50  ;;  %v469_v57 = vpop.f32.mrb[5].mxu0  ;;  %v477_v58 = vpop.f32.mrb[1].mxu1 }
 0x226   :  { %v310_v59 = vpop.f32.mrb[6].mxu0  ;;  %v326_v60 = vpop.f32.mrb[2].mxu1 }
 0x227   :  { %v388_v61 = vmul.f32 0.7978846, %v378_v51  ;;  %v379_v32 = vadd.f32 %v369_v54, %v738_v44  ;;  %v350_v25 = vmul.f32 0.044715, %v747_v55  ;;  %v470_v0 = vpop.f32.mrb[7].mxu0  ;;  %v756_v2 = vadd.f32 %v731_v37, %v310_v59  ;;  %v478_v4 = vpop.f32.mrb[3].mxu1 }
 0x228   :  { %v354_v1 = vmul.f32 0.044715, %v750_v56  ;;  %v759_v3 = vadd.f32 %v731_v37, %v326_v60  ;;  %v339_v51 = vmul.f32 0.5, %v738_v44 }
 0x229   :  { %511 = vtanh.f32 %v388_v61  ;;  %v389_v5 = vmul.f32 0.7978846, %v379_v32  ;;  %v360_v33 = vmul.f32 %v350_v25, %v747_v55  ;;  %v351_v42 = vmul.f32 0.044715, %v756_v2 }
 0x22a   :  { %v364_v6 = vmul.f32 %v354_v1, %v750_v56  ;;  %v355_v9 = vmul.f32 0.044715, %v759_v3 }
 0x22b   :  { %513 = vtanh.f32 %v389_v5  ;;  %v370_v8 = vmul.f32 %v360_v33, %v747_v55  ;;  %v361_v11 = vmul.f32 %v351_v42, %v756_v2  ;;  %v340_v5 = vmul.f32 0.5, %v747_v55 }
 0x22c   :  { %v374_v10 = vmul.f32 %v364_v6, %v750_v56  ;;  %v315_v12 = vpop.f32.mrb[8].mxu0  ;;  %v331_v43 = vpop.f32.mrb[4].mxu1  ;;  %v365_v14 = vmul.f32 %v355_v9, %v759_v3  ;;  %v344_v6 = vmul.f32 0.5, %v750_v56 }
 0x22d   :  { %v380_v13 = vadd.f32 %v370_v8, %v747_v55  ;;  %v771_v52 = vadd.f32 %v731_v37, %v315_v12  ;;  %v774_v15 = vadd.f32 %v731_v37, %v331_v43  ;;  %v473_v16 = vpop.f32.mrb[9].mxu0  ;;  %v481_v17 = vpop.f32.mrb[5].mxu1  ;;  %v371_v19 = vmul.f32 %v361_v11, %v756_v2 }
 0x22e   :  { %v384_v18 = vadd.f32 %v374_v10, %v750_v56  ;;  %v318_v53 = vpop.f32.mrb[10].mxu0  ;;  %v334_v62 = vpop.f32.mrb[6].mxu1  ;;  %v375_v21 = vmul.f32 %v365_v14, %v759_v3  ;;  %v341_v43 = vmul.f32 0.5, %v756_v2  ;;  %v345_v55 = vmul.f32 0.5, %v759_v3 }
 0x22f   :  { %v390_v20 = vmul.f32 0.7978846, %v380_v13  ;;  %v352_v22 = vmul.f32 0.044715, %v771_v52  ;;  %v474_v23 = vpop.f32.mrb[11].mxu0  ;;  %v381_v27 = vadd.f32 %v371_v19, %v756_v2  ;;  %v482_v28 = vpop.f32.mrb[7].mxu1  ;;  %v785_v31 = vadd.f32 %v731_v37, %v318_v53 }
 0x230   :  { %v394_v26 = vmul.f32 0.7978846, %v384_v18  ;;  %v356_v63 = vmul.f32 0.044715, %v774_v15  ;;  %v385_v29 = vadd.f32 %v375_v21, %v759_v3  ;;  %v789_v36 = vadd.f32 %v731_v37, %v334_v62 }
 0x231   :  { %515 = vtanh.f32 %v390_v20  ;;  %v362_v30 = vmul.f32 %v352_v22, %v771_v52  ;;  %v391_v34 = vmul.f32 0.7978846, %v381_v27  ;;  %v353_v41 = vmul.f32 0.044715, %v785_v31 }
 0x232   :  { %517 = vtanh.f32 %v394_v26  ;;  %v366_v35 = vmul.f32 %v356_v63, %v774_v15  ;;  %v395_v7 = vmul.f32 0.7978846, %v385_v29  ;;  %v357_v37 = vmul.f32 0.044715, %v789_v36 }
 0x233   :  { %v512_v38 = vpop.eup %511  ;;  %v372_v40 = vmul.f32 %v362_v30, %v771_v52  ;;  %519 = vtanh.f32 %v391_v34  ;;  %v363_v24 = vmul.f32 %v353_v41, %v785_v31  ;;  %v342_v18 = vmul.f32 0.5, %v771_v52 }
 0x234   :  { %v408_v46 = vadd.f32 1.0, %v512_v38  ;;  %v376_v47 = vmul.f32 %v366_v35, %v774_v15  ;;  %521 = vtanh.f32 %v395_v7  ;;  %v367_v59 = vmul.f32 %v357_v37, %v789_v36 }
 0x235   :  { %v514_v48 = vpop.eup %513  ;;  %v382_v49 = vadd.f32 %v372_v40, %v771_v52  ;;  %v373_v39 = vmul.f32 %v363_v24, %v785_v31  ;;  %v346_v19 = vmul.f32 0.5, %v774_v15  ;;  %v343_v22 = vmul.f32 0.5, %v785_v31 }
 0x236   :  { %v418_v50 = vmul.f32 %v408_v46, %v338_v45  ;;  %v409_v54 = vadd.f32 1.0, %v514_v48  ;;  %v386_v57 = vadd.f32 %v376_v47, %v774_v15  ;;  %v377_v25 = vmul.f32 %v367_v59, %v789_v36 }
 0x237   :  { %v392_v58 = vmul.f32 0.7978846, %v382_v49  ;;  %v383_v32 = vadd.f32 %v373_v39, %v785_v31  ;;  %v347_v27 = vmul.f32 0.5, %v789_v36 }
 0x238   :  { %428 = vst [vmem:[%s848_s5] sm:$0xff] %v418_v50  ;;  %v419_v60 = vmul.f32 %v409_v54, %v339_v51  ;;  %v396_v61 = vmul.f32 0.7978846, %v386_v57  ;;  %v387_v1 = vadd.f32 %v377_v25, %v789_v36 }
 0x239   :  { %523 = vtanh.f32 %v392_v58  ;;  %v393_v0 = vmul.f32 0.7978846, %v383_v32 }
 0x23a   :  { %429 = vst [vmem:[%s848_s5 + $0x8] sm:$0xff] %v419_v60  ;;  %525 = vtanh.f32 %v396_v61  ;;  %v397_v8 = vmul.f32 0.7978846, %v387_v1 }
 0x23b   :  { %v516_v44 = vpop.eup %515  ;;  %527 = vtanh.f32 %v393_v0 }
 0x23c   :  { %v518_v4 = vpop.eup %517  ;;  %v410_v33 = vadd.f32 1.0, %v516_v44  ;;  %529 = vtanh.f32 %v397_v8 }
 0x23d   :  { %v414_v42 = vadd.f32 1.0, %v518_v4  ;;  %v520_v9 = vpop.eup %519 }
 0x23e   :  { %v420_v10 = vmul.f32 %v410_v33, %v340_v5  ;;  %v522_v11 = vpop.eup %521  ;;  %v411_v13 = vadd.f32 1.0, %v520_v9 }
 0x23f   :  { %v424_v12 = vmul.f32 %v414_v42, %v344_v6  ;;  %v415_v14 = vadd.f32 1.0, %v522_v11 }
 0x240   :  { %430 = vst [vmem:[%s848_s5 + $0x10] sm:$0xff] %v420_v10  ;;  %v421_v56 = vmul.f32 %v411_v13, %v341_v43 }
 0x241   :  { %434 = vst [vmem:[%s848_s5 + $0x30] sm:$0xff] %v424_v12  ;;  %v425_v16 = vmul.f32 %v415_v14, %v345_v55 }
 0x242   :  { %431 = vst [vmem:[%s848_s5 + $0x18] sm:$0xff] %v421_v56 }
 0x243   :  { %v524_v17 = vpop.eup %523  ;;  %435 = vst [vmem:[%s848_s5 + $0x38] sm:$0xff] %v425_v16 }
 0x244   :  { %v526_v2 = vpop.eup %525  ;;  %v412_v3 = vadd.f32 1.0, %v524_v17 }
 0x245   :  { %v416_v53 = vadd.f32 1.0, %v526_v2  ;;  %v528_v20 = vpop.eup %527 }
 0x246   :  { %v422_v62 = vmul.f32 %v412_v3, %v342_v18  ;;  %v413_v23 = vadd.f32 1.0, %v528_v20  ;;  %v530_v26 = vpop.eup %529 }
 0x247   :  { %v426_v21 = vmul.f32 %v416_v53, %v346_v19  ;;  %v417_v15 = vadd.f32 1.0, %v530_v26 }
 0x248   :  { %432 = vst [vmem:[%s848_s5 + $0x20] sm:$0xff] %v422_v62  ;;  %v423_v52 = vmul.f32 %v413_v23, %v343_v22 }
 0x249   :  { %436 = vst [vmem:[%s848_s5 + $0x40] sm:$0xff] %v426_v21  ;;  %v427_v63 = vmul.f32 %v417_v15, %v347_v27 }
 0x24a   :  { %433 = vst [vmem:[%s848_s5 + $0x28] sm:$0xff] %v423_v52 }
 0x24b   :  { %437 = vst [vmem:[%s848_s5 + $0x48] sm:$0xff] %v427_v63 }

// kernel: encoder_forward.54
= control target key start
LH: loop header
LB: loop body
LE: loop exit
PB: predicated region body
PF: predicated region fallthrough
CT: control target
= control target key end

     0   :  { %vm56_vm0 = vcmask 261120   ;;  %vm156_vm1 = vcmask 523264   ;;  %s331_s1 = inlined_call_operand.vmem [shape: bf16[32,64], index: 1, kind: input, shape index: {}]   ;;  %s332_s0 = inlined_call_operand.vmem [shape: f32[96,32], index: 0, kind: input, shape index: {}]   ;;  %s333_s2 = inlined_call_operand.vmem [shape: f32[1,64], index: 2, kind: input, shape index: {}]   ;;  %s334_s3 = inlined_call_operand.vmem [shape: f32[96,64], index: 3, kind: output, shape index: {}]  }
   0x1   :  { %v210_v0 = vld [vmem:[%s331_s1] sm:$0xff]   ;;  %v211_v1 = vld [vmem:[%s331_s1 + $0x8] sm:$0xff]   ;;  %v21_v4 = vld [vmem:[%s332_s0 + $0x30] sm:$0xff] }
   0x2   :  { %206 = vmatprep.subr.bf16.mxu1 %v210_v0  ;;  %190 = vmatprep.subr.bf16.mxu0 %v210_v0  ;;  %v19_v2 = vld [vmem:[%s332_s0 + $0x20] sm:$0xff]  ;;  %v20_v3 = vld [vmem:[%s332_s0 + $0x28] sm:$0xff]  ;;  %v22_v6 = vld [vmem:[%s332_s0 + $0x38] sm:$0xff] }
   0x3   :  { %208 = vmatpush3.bf16.msra.mxu1 %v210_v0  ;;  %191 = vmatpush3.bf16.msra.mxu0 %v210_v0  ;;  %v29_v5 = vpack.c.bf16 %v20_v3, %v19_v2  ;;  %v15_v7 = vld [vmem:[%s332_s0] sm:$0xff]  ;;  %v16_v8 = vld [vmem:[%s332_s0 + $0x8] sm:$0xff]  ;;  %v17_v10 = vld [vmem:[%s332_s0 + $0x10] sm:$0xff]  ;;  %v30_v14 = vpack.c.bf16 %v22_v6, %v21_v4 }
   0x4   :  { %207 = vmatprep.subr.bf16.mxu1 %v211_v1  ;;  %192 = vmatprep.subr.bf16.mxu0 %v211_v1  ;;  %v27_v9 = vpack.c.bf16 %v16_v8, %v15_v7  ;;  %v18_v11 = vld [vmem:[%s332_s0 + $0x18] sm:$0xff]  ;;  %v23_v12 = vld [vmem:[%s332_s0 + $0x40] sm:$0xff]  ;;  %v24_v13 = vld [vmem:[%s332_s0 + $0x48] sm:$0xff] }
   0x5   :  { %198 = vmatprep.mubr.msk.bf16.mxu1 %vm56_vm0, %v29_v5  ;;  %v28_v15 = vpack.c.bf16 %v18_v11, %v17_v10  ;;  %v31_v16 = vpack.c.bf16 %v24_v13, %v23_v12  ;;  %v25_v17 = vld [vmem:[%s332_s0 + $0x50] sm:$0xff]  ;;  %v26_v18 = vld [vmem:[%s332_s0 + $0x58] sm:$0xff]  ;;  %v173_v20 = vld [vmem:[%s333_s2] ss:$0 sm:$0xff] }
   0x6   :  { %194 = vmatprep.mubr.msk.bf16.mxu0 %vm56_vm0, %v27_v9  ;;  %v32_v19 = vpack.c.bf16 %v26_v18, %v25_v17 }
   0x7   :  { %209 = vmatpush3.bf16.msra.mxu1 %v211_v1  ;;  %193 = vmatpush3.bf16.msra.mxu0 %v211_v1 }
   0xa   :  { %199 = vmatmul.mubr.msk.bf16.vlgmr.msra.gmra.mrb[0].mxu1 %vm56_vm0, %v30_v14  ;;  %195 = vmatmul.mubr.msk.bf16.vlgmr.msra.gmra.mrb[0].mxu0 %vm56_vm0, %v28_v15 }
   0xb   :  { %202 = vmatprep.mubr.msk.bf16.mxu1 %vm56_vm0, %v31_v16 }
  0x12   :  { %203 = vmatmul.mubr.msk.bf16.gmra.mrb[4].mxu1 %vm56_vm0, %v32_v19 }
  0xdd   :  { %v200_v21 = vpop.f32.mrb[0].mxu1  ;;  %v196_v22 = vpop.f32.mrb[0].mxu0 }
  0xde   :  { %v134_v23 = vadd.f32 %v200_v21, %v173_v20  ;;  %v125_v24 = vpop.f32.mrb[1].mxu1  ;;  %v118_v25 = vadd.f32 %v196_v22, %v173_v20  ;;  %v109_v26 = vpop.f32.mrb[1].mxu0 }
  0xdf   :  { %v126_v27 = vadd.f32 %v173_v20, %v125_v24  ;;  %v201_v28 = vpop.f32.mrb[2].mxu1  ;;  %v110_v29 = vadd.f32 %v173_v20, %v109_v26  ;;  %v197_v30 = vpop.f32.mrb[2].mxu0 }
  0xe0   :  { %163 = vst.msk [vmem:[%s334_s3 + $0x30] sm:$0xff] %vm156_vm1, %v134_v23  ;;  %v137_v31 = vadd.f32 %v201_v28, %v173_v20  ;;  %v128_v32 = vpop.f32.mrb[3].mxu1  ;;  %159 = vst.msk [vmem:[%s334_s3 + $0x10] sm:$0xff] %vm156_vm1, %v118_v25  ;;  %v121_v33 = vadd.f32 %v197_v30, %v173_v20  ;;  %v112_v34 = vpop.f32.mrb[3].mxu0 }
  0xe1   :  { %161 = vst.msk [vmem:[%s334_s3 + $0x20] sm:$0xff] %vm156_vm1, %v126_v27  ;;  %v129_v35 = vadd.f32 %v173_v20, %v128_v32  ;;  %157 = vst.msk [vmem:[%s334_s3] sm:$0xff] %vm156_vm1, %v110_v29  ;;  %v113_v36 = vadd.f32 %v173_v20, %v112_v34 }
  0xe2   :  { %164 = vst.msk [vmem:[%s334_s3 + $0x38] sm:$0xff] %vm156_vm1, %v137_v31  ;;  %160 = vst.msk [vmem:[%s334_s3 + $0x18] sm:$0xff] %vm156_vm1, %v121_v33 }
  0xe3   :  { %162 = vst.msk [vmem:[%s334_s3 + $0x28] sm:$0xff] %vm156_vm1, %v129_v35  ;;  %158 = vst.msk [vmem:[%s334_s3 + $0x8] sm:$0xff] %vm156_vm1, %v113_v36 }
  0xe5   :  { %v204_v37 = vpop.f32.mrb[4].mxu1 }
  0xe6   :  { %v150_v38 = vadd.f32 %v204_v37, %v173_v20  ;;  %v141_v39 = vpop.f32.mrb[5].mxu1 }
  0xe7   :  { %v142_v40 = vadd.f32 %v173_v20, %v141_v39  ;;  %v205_v41 = vpop.f32.mrb[6].mxu1 }
  0xe8   :  { %167 = vst.msk [vmem:[%s334_s3 + $0x50] sm:$0xff] %vm156_vm1, %v150_v38  ;;  %v153_v42 = vadd.f32 %v205_v41, %v173_v20  ;;  %v144_v43 = vpop.f32.mrb[7].mxu1 }
  0xe9   :  { %165 = vst.msk [vmem:[%s334_s3 + $0x40] sm:$0xff] %vm156_vm1, %v142_v40  ;;  %v145_v44 = vadd.f32 %v173_v20, %v144_v43 }
  0xea   :  { %168 = vst.msk [vmem:[%s334_s3 + $0x58] sm:$0xff] %vm156_vm1, %v153_v42 }
  0xeb   :  { %166 = vst.msk [vmem:[%s334_s3 + $0x48] sm:$0xff] %vm156_vm1, %v145_v44 }

// kernel: encoder_forward.50
= control target key start
LH: loop header
LB: loop body
LE: loop exit
PB: predicated region body
PF: predicated region fallthrough
CT: control target
= control target key end

     0   :  { %vm31_vm0 = vcmask 261120   ;;  %v302_v43 = vmov 0.0   ;;  %vm303_vm1 = vmmov 0   ;;  %vm242_vm2 = vcmask 785408   ;;  %s452_s0 = inlined_call_operand.vmem [shape: f32[48,32], index: 0, kind: input, shape index: {}]   ;;  %s453_s3 = inlined_call_operand.vmem [shape: bf16[32,96], index: 3, kind: input, shape index: {}]   ;;  %s454_s1 = inlined_call_operand.vmem [shape: f32[1,32], index: 1, kind: input, shape index: {}]   ;;  %s455_s2 = inlined_call_operand.vmem [shape: f32[1,32], index: 2, kind: input, shape index: {}]   ;;  %s456_s4 = inlined_call_operand.vmem [shape: f32[1,96], index: 4, kind: input, shape index: {}]   ;;  %s457_s5 = inlined_call_operand.vmem [shape: f32[48,96], index: 5, kind: output, shape index: {}]  }
   0x1   :  { %v27_v0 = vld [vmem:[%s452_s0 + $0x10] sm:$0xff]  ;;  %v28_v1 = vld [vmem:[%s452_s0 + $0x18] sm:$0xff]  ;;  %v25_v2 = vld [vmem:[%s452_s0] sm:$0xff]  ;;  %282 = vmatprep.subr.bf16.mxu1 %v302_v43  ;;  %266 = vmatprep.subr.bf16.mxu0 %v302_v43 }
   0x2   :  { %v38_v3 = vsel %vm31_vm0, %v27_v0, 0.0  ;;  %v32_v4 = vsel %vm31_vm0, %v25_v2, 0.0  ;;  %v26_v5 = vld [vmem:[%s452_s0 + $0x8] sm:$0xff]  ;;  %v41_v6 = vsel %vm31_vm0, %v28_v1, 0.0  ;;  %v29_v8 = vld [vmem:[%s452_s0 + $0x20] sm:$0xff]  ;;  %274 = vmatprep.mubr.msk.bf16.mxu1 %vm303_vm1, %v302_v43  ;;  %270 = vmatprep.mubr.msk.bf16.mxu0 %vm303_vm1, %v302_v43 }
   0x3   :  { %39 = vadd.xlane.f32.xlu0 %v38_v3  ;;  %33 = vadd.xlane.f32.xlu1 %v32_v4  ;;  %v35_v7 = vsel %vm31_vm0, %v26_v5, 0.0  ;;  %v30_v9 = vld [vmem:[%s452_s0 + $0x28] sm:$0xff]  ;;  %v44_v10 = vsel %vm31_vm0, %v29_v8, 0.0  ;;  %v288_v42 = vld [vmem:[%s453_s3] sm:$0xff]  }
   0x4   :  { %v47_v11 = vsel %vm31_vm0, %v30_v9, 0.0  ;;  %284 = vmatpush3.bf16.msra.mxu1 %v288_v42  ;;  %267 = vmatpush3.bf16.msra.mxu0 %v288_v42  ;;  %v289_v44 = vld [vmem:[%s453_s3 + $0x8] sm:$0xff]   ;;  %v253_v63 = vld [vmem:[%s454_s1] ss:$0 sm:$0xff] }
   0x5   :  { %283 = vmatprep.subr.bf16.mxu1 %v302_v43  ;;  %268 = vmatprep.subr.bf16.mxu0 %v302_v43 }
   0x7   :  { %42 = vadd.xlane.f32.xlu0 %v41_v6  ;;  %36 = vadd.xlane.f32.xlu1 %v35_v7 }
   0x8   :  { %285 = vmatpush3.bf16.msra.mxu1 %v289_v44  ;;  %269 = vmatpush3.bf16.msra.mxu0 %v289_v44 }
   0xb   :  { %45 = vadd.xlane.f32.xlu0 %v44_v10  ;;  %48 = vadd.xlane.f32.xlu1 %v47_v11 }
  0x90   :  { %v40_v12 = vpop.xlane.xlu0 %39  ;;  %v34_v13 = vpop.xlane.xlu1 %33 }
  0x91   :  { %v53_v14 = vmul.f32 0.03125, %v40_v12  ;;  %v51_v15 = vmul.f32 0.03125, %v34_v13 }
  0x93   :  { %v358_v16 = vsub.f32 %v27_v0, %v53_v14  ;;  %v360_v17 = vsub.f32 %v25_v2, %v51_v15  ;;  %v254_v2 = vld [vmem:[%s455_s2] ss:$0 sm:$0xff] }
  0x94   :  { %v43_v18 = vpop.xlane.xlu0 %42  ;;  %v37_v19 = vpop.xlane.xlu1 %36 }
  0x95   :  { %v54_v20 = vmul.f32 0.03125, %v43_v18  ;;  %v65_v21 = vmul.f32 %v358_v16, %v358_v16  ;;  %v52_v22 = vmul.f32 0.03125, %v37_v19  ;;  %v63_v23 = vmul.f32 %v360_v17, %v360_v17 }
  0x97   :  { %v366_v24 = vsub.f32 %v28_v1, %v54_v20  ;;  %v75_v25 = vsel %vm31_vm0, %v65_v21, 0.0  ;;  %v369_v26 = vsub.f32 %v26_v5, %v52_v22  ;;  %v69_v28 = vsel %vm31_vm0, %v63_v23, 0.0 }
  0x98   :  { %76 = vadd.xlane.f32.xlu0 %v75_v25  ;;  %v46_v27 = vpop.xlane.xlu0 %45  ;;  %v49_v29 = vpop.xlane.xlu1 %48 }
  0x99   :  { %v55_v30 = vmul.f32 0.03125, %v46_v27  ;;  %v66_v31 = vmul.f32 %v366_v24, %v366_v24  ;;  %v56_v32 = vmul.f32 0.03125, %v49_v29  ;;  %v64_v33 = vmul.f32 %v369_v26, %v369_v26 }
  0x9b   :  { %v376_v34 = vsub.f32 %v29_v8, %v55_v30  ;;  %v78_v35 = vsel %vm31_vm0, %v66_v31, 0.0  ;;  %v379_v36 = vsub.f32 %v30_v9, %v56_v32  ;;  %v72_v38 = vsel %vm31_vm0, %v64_v33, 0.0 }
  0x9c   :  { %79 = vadd.xlane.f32.xlu1 %v78_v35  ;;  %70 = vadd.xlane.f32.xlu0 %v69_v28 }
  0x9d   :  { %v67_v37 = vmul.f32 %v376_v34, %v376_v34  ;;  %v68_v39 = vmul.f32 %v379_v36, %v379_v36 }
  0x9f   :  { %v81_v40 = vsel %vm31_vm0, %v67_v37, 0.0  ;;  %v84_v41 = vsel %vm31_vm0, %v68_v39, 0.0 }
  0xa0   :  { %82 = vadd.xlane.f32.xlu0 %v81_v40  ;;  %73 = vadd.xlane.f32.xlu1 %v72_v38 }
  0xa4   :  { %85 = vadd.xlane.f32.xlu1 %v84_v41 }
 0x125   :  { %v77_v45 = vpop.xlane.xlu0 %76 }
 0x126   :  { %v89_v46 = vmul.f32 0.03125, %v77_v45 }
 0x128   :  { %v95_v47 = vadd.f32 1e-06, %v89_v46 }
 0x129   :  { %v71_v48 = vpop.xlane.xlu0 %70  ;;  %v80_v49 = vpop.xlane.xlu1 %79 }
 0x12a   :  { %290 = vrsqrt.f32 %v95_v47  ;;  %v87_v50 = vmul.f32 0.03125, %v71_v48  ;;  %v90_v51 = vmul.f32 0.03125, %v80_v49 }
 0x12c   :  { %v93_v52 = vadd.f32 1e-06, %v87_v50  ;;  %v96_v53 = vadd.f32 1e-06, %v90_v51 }
 0x12d   :  { %v83_v54 = vpop.xlane.xlu0 %82  ;;  %v74_v55 = vpop.xlane.xlu1 %73 }
 0x12e   :  { %292 = vrsqrt.f32 %v93_v52  ;;  %v91_v56 = vmul.f32 0.03125, %v83_v54  ;;  %v88_v57 = vmul.f32 0.03125, %v74_v55 }
 0x12f   :  { %294 = vrsqrt.f32 %v96_v53 }
 0x130   :  { %v97_v58 = vadd.f32 1e-06, %v91_v56  ;;  %v94_v59 = vadd.f32 1e-06, %v88_v57 }
 0x131   :  { %v86_v60 = vpop.xlane.xlu1 %85 }
 0x132   :  { %296 = vrsqrt.f32 %v97_v58  ;;  %v92_v61 = vmul.f32 0.03125, %v86_v60 }
 0x133   :  { %298 = vrsqrt.f32 %v94_v59 }
 0x134   :  { %v291_v62 = vpop.eup %290  ;;  %v98_v0 = vadd.f32 1e-06, %v92_v61 }
 0x135   :  { %v107_v1 = vmul.f32 %v291_v62, %v358_v16 }
 0x136   :  { %300 = vrsqrt.f32 %v98_v0 }
 0x137   :  { %v120_v3 = vmul.f32 %v253_v63, %v107_v1 }
 0x138   :  { %v293_v4 = vpop.eup %292 }
 0x139   :  { %v295_v5 = vpop.eup %294  ;;  %v133_v6 = vadd.f32 %v254_v2, %v120_v3  ;;  %v105_v7 = vmul.f32 %v293_v4, %v360_v17 }
 0x13a   :  { %v108_v8 = vmul.f32 %v295_v5, %v366_v24 }
 0x13b   :  { %139 = vst.msk [vmem:[#allocation2 + $0x10] sm:$0xff] %vm31_vm0, %v133_v6  ;;  %v118_v9 = vmul.f32 %v253_v63, %v105_v7 }
 0x13c   :  { %v297_v10 = vpop.eup %296  ;;  %v121_v11 = vmul.f32 %v253_v63, %v108_v8 }
 0x13d   :  { %v299_v12 = vpop.eup %298  ;;  %v131_v13 = vadd.f32 %v254_v2, %v118_v9  ;;  %v109_v14 = vmul.f32 %v297_v10, %v376_v34  ;;  %v255_v34 = vld [vmem:[%s456_s4] ss:$0 sm:$0xff] }
 0x13e   :  { %v134_v15 = vadd.f32 %v254_v2, %v121_v11  ;;  %v106_v16 = vmul.f32 %v299_v12, %v369_v26 }
 0x13f   :  { %137 = vst.msk [vmem:[#allocation2] sm:$0xff] %vm31_vm0, %v131_v13  ;;  %v122_v18 = vmul.f32 %v253_v63, %v109_v14 }
 0x140   :  { %v301_v19 = vpop.eup %300  ;;  %140 = vst.msk [vmem:[#allocation2 + $0x18] sm:$0xff] %vm31_vm0, %v134_v15  ;;  %v119_v17 = vmul.f32 %v253_v63, %v106_v16 }
 0x141   :  { %v135_v20 = vadd.f32 %v254_v2, %v122_v18  ;;  %v110_v21 = vmul.f32 %v301_v19, %v379_v36 }
 0x142   :  { %v132_v22 = vadd.f32 %v254_v2, %v119_v17  ;;  %v145_v25 = vld [vmem:[#allocation2 + $0x10] sm:$0xff] }
 0x143   :  { %141 = vst.msk [vmem:[#allocation2 + $0x20] sm:$0xff] %vm31_vm0, %v135_v20  ;;  %v123_v23 = vmul.f32 %v253_v63, %v110_v21 }
 0x144   :  { %138 = vst.msk [vmem:[#allocation2 + $0x8] sm:$0xff] %vm31_vm0, %v132_v22 }
 0x145   :  { %v136_v24 = vadd.f32 %v254_v2, %v123_v23 }
 0x146   :  { %v143_v28 = vld [vmem:[#allocation2] sm:$0xff] }
 0x147   :  { %142 = vst.msk [vmem:[#allocation2 + $0x28] sm:$0xff] %vm31_vm0, %v136_v24  ;;  %v146_v26 = vld [vmem:[#allocation2 + $0x18] sm:$0xff] }
 0x148   :  { %v150_v27 = vpack.c.bf16 %v146_v26, %v145_v25 }
 0x14a   :  { %275 = vmatmul.mubr.msk.bf16.vlgmr.msra.gmra.mrb[0].mxu1 %vm31_vm0, %v150_v27  ;;  %v147_v31 = vld [vmem:[#allocation2 + $0x20] sm:$0xff] }
 0x14b   :  { %v144_v29 = vld [vmem:[#allocation2 + $0x8] sm:$0xff]  ;;  %278 = vmatprep.mubr.msk.bf16.mxu1 %vm303_vm1, %v302_v43 }
 0x14c   :  { %v149_v30 = vpack.c.bf16 %v144_v29, %v143_v28 }
 0x14e   :  { %271 = vmatmul.mubr.msk.bf16.vlgmr.msra.gmra.mrb[0].mxu0 %vm31_vm0, %v149_v30  ;;  %v148_v32 = vld [vmem:[#allocation2 + $0x28] sm:$0xff] }
 0x14f   :  { %v151_v33 = vpack.c.bf16 %v148_v32, %v147_v31 }
 0x152   :  { %279 = vmatmul.mubr.msk.bf16.gmra.mrb[4].mxu1 %vm31_vm0, %v151_v33 }
 0x21d   :  { %v227_v35 = vpop.f32.mrb[0].mxu1 }
 0x21e   :  { %v228_v36 = vadd.f32 %v255_v34, %v227_v35  ;;  %v276_v37 = vpop.f32.mrb[1].mxu1 }
 0x21f   :  { %v230_v38 = vpop.f32.mrb[2].mxu1 }
 0x220   :  { %245 = vst.msk [vmem:[%s457_s5 + $0x10] sm:$0xff] %vm242_vm2, %v228_v36  ;;  %v231_v39 = vadd.f32 %v255_v34, %v230_v38  ;;  %v277_v40 = vpop.f32.mrb[3].mxu1 }
 0x221   :  { %v219_v41 = vpop.f32.mrb[0].mxu0 }
 0x222   :  { %246 = vst.msk [vmem:[%s457_s5 + $0x18] sm:$0xff] %vm242_vm2, %v231_v39  ;;  %v220_v42 = vadd.f32 %v255_v34, %v219_v41  ;;  %v272_v43 = vpop.f32.mrb[1].mxu0 }
 0x223   :  { %v222_v44 = vpop.f32.mrb[2].mxu0 }
 0x224   :  { %243 = vst.msk [vmem:[%s457_s5] sm:$0xff] %vm242_vm2, %v220_v42  ;;  %v223_v45 = vadd.f32 %v255_v34, %v222_v44  ;;  %v273_v46 = vpop.f32.mrb[3].mxu0 }
 0x225   :  { %v235_v47 = vpop.f32.mrb[4].mxu1 }
 0x226   :  { %244 = vst.msk [vmem:[%s457_s5 + $0x8] sm:$0xff] %vm242_vm2, %v223_v45  ;;  %v236_v48 = vadd.f32 %v255_v34, %v235_v47  ;;  %v280_v49 = vpop.f32.mrb[5].mxu1 }
 0x227   :  { %v238_v50 = vpop.f32.mrb[6].mxu1 }
 0x228   :  { %247 = vst.msk [vmem:[%s457_s5 + $0x20] sm:$0xff] %vm242_vm2, %v236_v48  ;;  %v239_v51 = vadd.f32 %v255_v34, %v238_v50  ;;  %v281_v52 = vpop.f32.mrb[7].mxu1 }
 0x22a   :  { %248 = vst.msk [vmem:[%s457_s5 + $0x28] sm:$0xff] %vm242_vm2, %v239_v51 }

// kernel: encoder_forward.52
= control target key start
LH: loop header
LB: loop body
LE: loop exit
PB: predicated region body
PF: predicated region fallthrough
CT: control target
= control target key end

     0   :  { %v174_v0 = vmov 0.0   ;;  %vm175_vm0 = vmmov 0   ;;  %vm50_vm1 = vcmask 261120   ;;  %s276_s1 = inlined_call_operand.vmem [shape: bf16[32,32], index: 1, kind: input, shape index: {}]   ;;  %s277_s0 = inlined_call_operand.vmem [shape: f32[48,32], index: 0, kind: input, shape index: {}]   ;;  %s278_s2 = inlined_call_operand.vmem [shape: f32[1,32], index: 2, kind: input, shape index: {}]   ;;  %s279_s3 = inlined_call_operand.vmem [shape: f32[48,32], index: 3, kind: input, shape index: {}]   ;;  %s280_s4 = inlined_call_operand.vmem [shape: f32[48,32], index: 4, kind: output, shape index: {}]  }
   0x1   :  { %166 = vmatprep.subr.bf16.mxu1 %v174_v0  ;;  %v172_v1 = vld [vmem:[%s276_s1] sm:$0xff]   ;;  %150 = vmatprep.subr.bf16.mxu0 %v174_v0  ;;  %v173_v2 = vld [vmem:[%s276_s1 + $0x8] sm:$0xff]   ;;  %v20_v3 = vld [vmem:[%s277_s0 + $0x10] sm:$0xff] }
   0x2   :  { %158 = vmatprep.mubr.msk.bf16.mxu1 %vm175_vm0, %v174_v0  ;;  %154 = vmatprep.mubr.msk.bf16.mxu0 %vm175_vm0, %v174_v0  ;;  %v21_v4 = vld [vmem:[%s277_s0 + $0x18] sm:$0xff]  ;;  %v18_v5 = vld [vmem:[%s277_s0] sm:$0xff]  ;;  %v19_v6 = vld [vmem:[%s277_s0 + $0x8] sm:$0xff] }
   0x3   :  { %168 = vmatpush3.bf16.msra.mxu1 %v172_v1  ;;  %151 = vmatpush3.bf16.msra.mxu0 %v172_v1  ;;  %v25_v7 = vpack.c.bf16 %v21_v4, %v20_v3  ;;  %v24_v8 = vpack.c.bf16 %v19_v6, %v18_v5  ;;  %v22_v9 = vld [vmem:[%s277_s0 + $0x20] sm:$0xff]  ;;  %v23_v10 = vld [vmem:[%s277_s0 + $0x28] sm:$0xff]  ;;  %v119_v14 = vld [vmem:[%s279_s3 + $0x10] sm:$0xff] }
   0x4   :  { %167 = vmatprep.subr.bf16.mxu1 %v174_v0  ;;  %152 = vmatprep.subr.bf16.mxu0 %v174_v0  ;;  %v26_v11 = vpack.c.bf16 %v23_v10, %v22_v9  ;;  %v139_v12 = vld [vmem:[%s278_s2] ss:$0 sm:$0xff]  ;;  %v120_v22 = vld [vmem:[%s279_s3 + $0x18] sm:$0xff]  ;;  %v118_v24 = vld [vmem:[%s279_s3 + $0x8] sm:$0xff] }
   0x5   :  { %v117_v16 = vld [vmem:[%s279_s3] sm:$0xff]  ;;  %v122_v38 = vld [vmem:[%s279_s3 + $0x28] sm:$0xff] }
   0x6   :  { %v121_v34 = vld [vmem:[%s279_s3 + $0x20] sm:$0xff] }
   0x7   :  { %169 = vmatpush3.bf16.msra.mxu1 %v173_v2  ;;  %153 = vmatpush3.bf16.msra.mxu0 %v173_v2 }
   0xa   :  { %159 = vmatmul.mubr.msk.bf16.vlgmr.msra.gmra.mrb[0].mxu1 %vm50_vm1, %v25_v7  ;;  %155 = vmatmul.mubr.msk.bf16.vlgmr.msra.gmra.mrb[0].mxu0 %vm50_vm1, %v24_v8 }
   0xb   :  { %162 = vmatprep.mubr.msk.bf16.mxu1 %vm175_vm0, %v174_v0 }
  0x12   :  { %163 = vmatmul.mubr.msk.bf16.gmra.mrb[4].mxu1 %vm50_vm1, %v26_v11 }
  0xdd   :  { %v102_v13 = vpop.f32.mrb[0].mxu1  ;;  %v94_v15 = vpop.f32.mrb[0].mxu0 }
  0xde   :  { %v103_v17 = vadd.f32 %v139_v12, %v102_v13  ;;  %v160_v18 = vpop.f32.mrb[1].mxu1  ;;  %v95_v19 = vadd.f32 %v139_v12, %v94_v15  ;;  %v156_v20 = vpop.f32.mrb[1].mxu0 }
  0xdf   :  { %v105_v21 = vpop.f32.mrb[2].mxu1  ;;  %v97_v23 = vpop.f32.mrb[2].mxu0 }
  0xe0   :  { %v125_v25 = vadd.f32 %v119_v14, %v103_v17  ;;  %v106_v26 = vadd.f32 %v139_v12, %v105_v21  ;;  %v161_v27 = vpop.f32.mrb[3].mxu1  ;;  %v123_v28 = vadd.f32 %v117_v16, %v95_v19  ;;  %v98_v29 = vadd.f32 %v139_v12, %v97_v23  ;;  %v157_v30 = vpop.f32.mrb[3].mxu0 }
  0xe2   :  { %131 = vst.msk [vmem:[%s280_s4 + $0x10] sm:$0xff] %vm50_vm1, %v125_v25  ;;  %v126_v31 = vadd.f32 %v120_v22, %v106_v26  ;;  %129 = vst.msk [vmem:[%s280_s4] sm:$0xff] %vm50_vm1, %v123_v28  ;;  %v124_v32 = vadd.f32 %v118_v24, %v98_v29 }
  0xe4   :  { %132 = vst.msk [vmem:[%s280_s4 + $0x18] sm:$0xff] %vm50_vm1, %v126_v31  ;;  %130 = vst.msk [vmem:[%s280_s4 + $0x8] sm:$0xff] %vm50_vm1, %v124_v32 }
  0xe5   :  { %v110_v33 = vpop.f32.mrb[4].mxu1 }
  0xe6   :  { %v111_v35 = vadd.f32 %v139_v12, %v110_v33  ;;  %v164_v36 = vpop.f32.mrb[5].mxu1 }
  0xe7   :  { %v113_v37 = vpop.f32.mrb[6].mxu1 }
  0xe8   :  { %v127_v39 = vadd.f32 %v121_v34, %v111_v35  ;;  %v114_v40 = vadd.f32 %v139_v12, %v113_v37  ;;  %v165_v41 = vpop.f32.mrb[7].mxu1 }
  0xea   :  { %133 = vst.msk [vmem:[%s280_s4 + $0x20] sm:$0xff] %vm50_vm1, %v127_v39  ;;  %v128_v42 = vadd.f32 %v122_v38, %v114_v40 }
  0xec   :  { %134 = vst.msk [vmem:[%s280_s4 + $0x28] sm:$0xff] %vm50_vm1, %v128_v42 }

// kernel: encoder_forward.51
= control target key start
LH: loop header
LB: loop body
LE: loop exit
PB: predicated region body
PF: predicated region fallthrough
CT: control target
= control target key end

     0   :  { %s931_s9 = smov 0   ;;  %s933_s10 = smov 0   ;;  %s1047_s0 = inlined_call_operand.vmem [shape: f32[6,8,96], index: 0, kind: input, shape index: {}]   ;;  %s1048_s1 = inlined_call_operand.vmem [shape: f32[6,1,8], index: 1, kind: input, shape index: {}]   ;;  %s1049_s2 = inlined_call_operand.vmem [shape: f32[6,8,32], index: 2, kind: output, shape index: {}]  }
   0x1   :  { %s935_s11 = smov 0  }
   0x2 LB: > { %s24_s12 = sadd.s32 1, %s894_s10  ;;  %p742_p0 = scmp.ge.s32.totalorder %s898_s11, 1  ;;  %s898_s11 = sphi %s935_s11, %s12_s11   ;;  %s894_s10 = sphi %s933_s10, %s1051_s10   ;;  %s890_s9 = sphi %s931_s9, %s1050_s9  }
   0x3   : > { %p26_p1 = scmp.ge.s32.totalorder %s24_s12, 6  ;;  %p133_p2 = scmp.lt.s32.totalorder %s898_s11, 7 }
   0x5   : > { %s1053_s12 = smov (%p26_p1, %s24_s12), 0  ;;  %p134_p3 = pnand %p742_p0, %p133_p2 }
   0x6   : > { %p159_p4 = scmp.lt.s32.totalorder (!%p134_p3), %s890_s9, 5  ;;  %v900_v0 = vmov (!%p134_p3), 0.0   ;;  %vm901_vm0 = vmmov (!%p134_p3), 0   ;;  %s902_s17 = smov (!%p134_p3), 96   ;;  %vm184_vm1 = vcmask (!%p134_p3), 64512   ;;  %vm256_vm2 = vcmask (!%p134_p3), 1043456  }
   0x7   : > { %137 = sbr.rel (%p134_p3) target bundleno = 1605 (0x645), region = 28  ;;  %772 = vmatprep.subr.bf16.mxu0 (!%p134_p3), %v900_v0  ;;  %774 = vmatprep.mubr.msk.bf16.mxu0 (!%p134_p3), %vm901_vm0, %v900_v0  ;;  %s903_s18 = smov (!%p134_p3), 64   ;;  %vm650_vm3 = vcmask (!%p134_p3), 130048   ;;  %vm652_vm4 = vcmask (!%p134_p3), 195584   ;;  %vm654_vm5 = vcmask (!%p134_p3), 261120  }
   0x8   : > { %778 = vmatprep.subr.bf16.mxu1 (!%p134_p3), %v900_v0  ;;  %780 = vmatprep.mubr.msk.bf16.mxu1 (!%p134_p3), %vm901_vm0, %v900_v0  ;;  %s904_s19 = smov (!%p134_p3), 88   ;;  %s905_s23 = smov (!%p134_p3), 72  }
   0x9   : > { %s906_s24 = smov (!%p134_p3), 120   ;;  %s907_s25 = smov (!%p134_p3), 80  }
   0xa   : > { %s908_s26 = smov (!%p134_p3), 112   ;;  %s909_s27 = smov (!%p134_p3), 104  }
   0xb   : > { %s910_s28 = smov (!%p134_p3), 56   ;;  %s911_s29 = smov (!%p134_p3), 48  }
   0xc   : > { %s912_s30 = smov (!%p134_p3), 40   ;;  %s913_s3 = smov (!%p134_p3), 8  }
   0xd   : > { %s914_s4 = smov (!%p134_p3), 16   ;;  %s915_s5 = smov (!%p134_p3), 24  }
   0xe   : > { %s1055_s9 = smov (!%p159_p4, %s890_s9), 5 }
   0xf   : > { %s743_s13 = sshll.u32 %s1055_s9, 3  ;;  %s165_s22 = scalar_lea.vmem %s1048_s1, %s1055_s9 }
  0x10   : > { %s162_s16 = scalar_lea.vmem %s1047_s0, %s743_s13  ;;  %v978_v6 = vld [vmem:[%s165_s22] ss:$0 sm:$0xff]  ;;  %s172_s8 = scalar_lea.vmem %s1049_s2, %s743_s13 }
  0x11   : > { %v177_v1 = vld [vmem:[%s162_s16] sm:$0xff] }
  0x12   : > { %v963_v2 = vpack.c.bf16 %v177_v1, %v177_v1 }
  0x14   : > { %182 = vrot.lane.b32.xlu0 %v963_v2, %s902_s17  ;;  %251 = vrot.lane.b32.xlu1 %v963_v2, %s903_s18 }
  0x18   : > { %303 = vrot.lane.b32.xlu1 %v963_v2, %s904_s19 }
  0x86   : > { %v183_v3 = vpop.permute.xlu0 %182  ;;  %v252_v13 = vpop.permute.xlu1 %251 }
  0x87   : > { %v189_v4 = vsel %vm184_vm1, %v183_v3, 0  ;;  %v258_v14 = vsel %vm256_vm2, %v252_v13, 0 }
  0x88   : > { %773 = vmatpush3.bf16.xpose.msra.mxu0 %v189_v4  ;;  %779 = vmatpush3.bf16.msra.mxu1 %v258_v14 }
  0x89   : > { %790 = vmatprep.subr.bf16.mxu0 %v900_v0  ;;  %784 = vmatprep.subr.bf16.mxu1 %v900_v0 }
  0x8a   : > { %v304_v20 = vpop.permute.xlu1 %303 }
  0x8b   : > { %v309_v26 = vsel %vm184_vm1, %v304_v20, 0 }
  0x8f   : > { %775 = vmatmul.mubr.msk.bf16.vlgmr.msra.gmra.mrb[0].mxu0 %vm184_vm1, %v963_v2 }
  0x90   : > { %792 = vmatprep.mubr.msk.bf16.mxu0 %vm901_vm0, %v900_v0 }
 0x162   : > { %v225_v5 = vpop.f32.mrb[0].mxu0 }
 0x163   : > { %v231_v7 = vmul.f32 0.35355338, %v225_v5  ;;  %v776_v8 = vpop.f32.mrb[1].mxu0 }
 0x164   : > { %v228_v9 = vpop.f32.mrb[2].mxu0 }
 0x165   : > { %v777_v10 = vpop.f32.mrb[3].mxu0  ;;  %v238_v11 = vadd.f32 %v978_v6, %v231_v7 }
 0x167   : > { %v239_v12 = vsel %vm184_vm1, %v238_v11, -inf }
 0x168   : > { %240 = vmax.xlane.f32.xlu0 %v239_v12 }
 0x17e   : > { %527 = vrot.lane.b32.xlu0 %v963_v2, %s905_s23 }
 0x1f5   : > { %v241_v15 = vpop.xlane.xlu0 %240 }
 0x1f6   : > { %v242_v16 = vsub.f32 %v238_v11, %v241_v15 }
 0x1f8   : > { %v243_v17 = vmul.f32 1.442695, %v242_v16 }
 0x1f9   : > { %v528_v29 = vpop.permute.xlu0 %527 }
 0x1fa   : > { %860 = vpow2.f32 %v243_v17  ;;  %v533_v31 = vsel %vm184_vm1, %v528_v29, 0 }
 0x204   : > { %v861_v18 = vpop.eup %860 }
 0x205   : > { %v245_v19 = vsel %vm184_vm1, %v861_v18, 0.0 }
 0x206   : > { %246 = vadd.xlane.f32.xlu1 %v245_v19 }
 0x217   : > { %301 = vrot.lane.b32.xlu1 %v963_v2, %s906_s24 }
 0x21b   : > { %415 = vrot.lane.b32.xlu1 %v963_v2, %s907_s25 }
 0x21f   : > { %413 = vrot.lane.b32.xlu1 %v963_v2, %s908_s26 }
 0x223   : > { %525 = vrot.lane.b32.xlu1 %v963_v2, %s909_s27 }
 0x293   : > { %v247_v21 = vpop.xlane.xlu1 %246 }
 0x294   : > { %862 = vrcp.f32 %v247_v21 }
 0x297   : > { %v302_v24 = vpop.permute.xlu1 %301 }
 0x29b   : > { %v416_v27 = vpop.permute.xlu1 %415 }
 0x29c   : > { %v421_v28 = vsel %vm184_vm1, %v416_v27, 0 }
 0x29e   : > { %v863_v22 = vpop.eup %862 }
 0x29f   : > { %v249_v23 = vmul.f32 %v863_v22, %v861_v18  ;;  %v414_v30 = vpop.permute.xlu1 %413 }
 0x2a1   : > { %v250_v25 = vpack.c.bf16 %v249_v23, %v249_v23 }
 0x2a3   : > { %781 = vmatmul.mubr.msk.bf16.vlgmr.msra.gmra.mrb[0].mxu1 %vm184_vm1, %v250_v25  ;;  %v526_v32 = vpop.permute.xlu1 %525 }
 0x2a4   : > { %785 = vmatpush3.bf16.xpose.msra.mxu1 %v309_v26  ;;  %786 = vmatprep.mubr.msk.bf16.mxu1 %vm901_vm0, %v900_v0 }
 0x2a5   : > { %796 = vmatprep.subr.bf16.mxu1 %v900_v0 }
 0x2ab   : > { %787 = vmatmul.mubr.msk.bf16.vlgmr.msra.gmra.mrb[4].mxu1 %vm184_vm1, %v302_v24 }
 0x2ac   : > { %797 = vmatpush3.bf16.xpose.msra.mxu1 %v421_v28  ;;  %798 = vmatprep.mubr.msk.bf16.mxu1 %vm901_vm0, %v900_v0 }
 0x2ad   : > { %808 = vmatprep.subr.bf16.mxu1 %v900_v0 }
 0x2b3   : > { %799 = vmatmul.mubr.msk.bf16.vlgmr.msra.gmra.mrb[8].mxu1 %vm184_vm1, %v414_v30 }
 0x2b4   : > { %809 = vmatpush3.bf16.xpose.msra.mxu1 %v533_v31  ;;  %810 = vmatprep.mubr.msk.bf16.mxu1 %vm901_vm0, %v900_v0 }
 0x2bb   : > { %811 = vmatmul.mubr.msk.bf16.vlgmr.msra.gmra.mrb[12].mxu1 %vm184_vm1, %v526_v32 }
 0x376   : > { %v1005_v33 = vpop.f32.mrb[0].mxu1 }
 0x377   : > { %v782_v34 = vpop.f32.mrb[1].mxu1 }
 0x378   : > { %v297_v35 = vpop.f32.mrb[2].mxu1 }
 0x379   : > { %v783_v36 = vpop.f32.mrb[3].mxu1 }
 0x37e   : > { %v345_v37 = vpop.f32.mrb[4].mxu1 }
 0x37f   : > { %v351_v38 = vmul.f32 0.35355338, %v345_v37  ;;  %v788_v39 = vpop.f32.mrb[5].mxu1 }
 0x380   : > { %v348_v40 = vpop.f32.mrb[6].mxu1 }
 0x381   : > { %v789_v41 = vpop.f32.mrb[7].mxu1  ;;  %v352_v42 = vadd.f32 %v978_v6, %v351_v38 }
 0x383   : > { %v353_v43 = vsel %vm184_vm1, %v352_v42, -inf }
 0x384   : > { %354 = vmax.xlane.f32.xlu1 %v353_v43 }
 0x386   : > { %v457_v44 = vpop.f32.mrb[8].mxu1 }
 0x387   : > { %v463_v45 = vmul.f32 0.35355338, %v457_v44  ;;  %v800_v46 = vpop.f32.mrb[9].mxu1 }
 0x388   : > { %v460_v47 = vpop.f32.mrb[10].mxu1 }
 0x389   : > { %v464_v48 = vadd.f32 %v978_v6, %v463_v45  ;;  %v801_v49 = vpop.f32.mrb[11].mxu1 }
 0x38b   : > { %v465_v50 = vsel %vm184_vm1, %v464_v48, -inf }
 0x38c   : > { %466 = vmax.xlane.f32.xlu0 %v465_v50 }
 0x38e   : > { %v569_v51 = vpop.f32.mrb[12].mxu1 }
 0x38f   : > { %v575_v52 = vmul.f32 0.35355338, %v569_v51  ;;  %v812_v53 = vpop.f32.mrb[13].mxu1 }
 0x390   : > { %v572_v54 = vpop.f32.mrb[14].mxu1 }
 0x391   : > { %v576_v55 = vadd.f32 %v978_v6, %v575_v52  ;;  %v813_v56 = vpop.f32.mrb[15].mxu1 }
 0x393   : > { %v577_v57 = vsel %vm184_vm1, %v576_v55, -inf }
 0x394   : > { %578 = vmax.xlane.f32.xlu1 %v577_v57 }
 0x411   : > { %v355_v58 = vpop.xlane.xlu1 %354 }
 0x412   : > { %v356_v59 = vsub.f32 %v352_v42, %v355_v58 }
 0x414   : > { %v357_v60 = vmul.f32 1.442695, %v356_v59 }
 0x416   : > { %864 = vpow2.f32 %v357_v60 }
 0x419   : > { %v467_v6 = vpop.xlane.xlu0 %466 }
 0x41a   : > { %v468_v7 = vsub.f32 %v464_v48, %v467_v6 }
 0x41c   : > { %v469_v8 = vmul.f32 1.442695, %v468_v7 }
 0x420   : > { %v865_v61 = vpop.eup %864 }
 0x421   : > { %v579_v62 = vpop.xlane.xlu1 %578  ;;  %v359_v63 = vsel %vm184_vm1, %v865_v61, 0.0 }
 0x422   : > { %v580_v1 = vsub.f32 %v576_v55, %v579_v62  ;;  %360 = vadd.xlane.f32.xlu1 %v359_v63 }
 0x424   : > { %v581_v3 = vmul.f32 1.442695, %v580_v1 }
 0x426   : > { %866 = vpow2.f32 %v581_v3 }
 0x427   : > { %868 = vpow2.f32 %v469_v8 }
 0x430   : > { %v867_v4 = vpop.eup %866 }
 0x431   : > { %v583_v5 = vsel %vm184_vm1, %v867_v4, 0.0  ;;  %v869_v9 = vpop.eup %868 }
 0x432   : > { %584 = vadd.xlane.f32.xlu0 %v583_v5  ;;  %v471_v10 = vsel %vm184_vm1, %v869_v9, 0.0 }
 0x433   : > { %365 = vrot.lane.b32.xlu1 %v963_v2, %s910_s28 }
 0x448   : > { %477 = vrot.lane.b32.xlu0 %v963_v2, %s911_s29 }
 0x457   : > { %472 = vadd.xlane.f32.xlu1 %v471_v10 }
 0x468   : > { %589 = vrot.lane.b32.xlu1 %v963_v2, %s912_s30 }
 0x4af   : > { %v361_v11 = vpop.xlane.xlu1 %360 }
 0x4b0   : > { %870 = vrcp.f32 %v361_v11 }
 0x4b3   : > { %v366_v12 = vpop.permute.xlu1 %365 }
 0x4b4   : > { %v371_v13 = vsel %vm256_vm2, %v366_v12, 0 }
 0x4b5   : > { %791 = vmatpush3.bf16.msra.mxu0 %v371_v13 }
 0x4b6   : > { %802 = vmatprep.subr.bf16.mxu0 %v900_v0 }
 0x4ba   : > { %v871_v14 = vpop.eup %870 }
 0x4bb   : > { %v363_v15 = vmul.f32 %v871_v14, %v865_v61 }
 0x4bd   : > { %v364_v16 = vpack.c.bf16 %v363_v15, %v363_v15 }
 0x4bf   : > { %793 = vmatmul.mubr.msk.bf16.vlgmr.msra.gmra.mrb[4].mxu0 %vm184_vm1, %v364_v16  ;;  %v585_v17 = vpop.xlane.xlu0 %584 }
 0x4c0   : > { %804 = vmatprep.mubr.msk.bf16.mxu0 %vm901_vm0, %v900_v0 }
 0x4c3   : > { %v478_v18 = vpop.permute.xlu0 %477 }
 0x4c4   : > { %v483_v2 = vsel %vm256_vm2, %v478_v18, 0 }
 0x4c5   : > { %803 = vmatpush3.bf16.msra.mxu0 %v483_v2 }
 0x4c6   : > { %814 = vmatprep.subr.bf16.mxu0 %v900_v0 }
 0x4e4   : > { %v473_v19 = vpop.xlane.xlu1 %472 }
 0x4e5   : > { %872 = vrcp.f32 %v473_v19 }
 0x4e6   : > { %874 = vrcp.f32 %v585_v17 }
 0x4e8   : > { %v590_v21 = vpop.permute.xlu1 %589 }
 0x4e9   : > { %v595_v23 = vsel %vm256_vm2, %v590_v21, 0 }
 0x4ef   : > { %v873_v20 = vpop.eup %872 }
 0x4f0   : > { %v475_v22 = vmul.f32 %v873_v20, %v869_v9  ;;  %v875_v25 = vpop.eup %874 }
 0x4f1   : > { %v587_v26 = vmul.f32 %v875_v25, %v867_v4 }
 0x4f2   : > { %v476_v24 = vpack.c.bf16 %v475_v22, %v475_v22 }
 0x4f3   : > { %v588_v27 = vpack.c.bf16 %v587_v26, %v587_v26 }
 0x4f4   : > { %805 = vmatmul.mubr.msk.bf16.vlgmr.msra.gmra.mrb[8].mxu0 %vm184_vm1, %v476_v24 }
 0x4f5   : > { %815 = vmatpush3.bf16.msra.mxu0 %v595_v23  ;;  %816 = vmatprep.mubr.msk.bf16.mxu0 %vm901_vm0, %v900_v0 }
 0x4fc   : > { %817 = vmatmul.mubr.msk.bf16.vlgmr.msra.gmra.mrb[12].mxu0 %vm184_vm1, %v588_v27 }
 0x592   : > { %v407_v28 = vpop.f32.mrb[4].mxu0 }
 0x593   : > { %638 = vrot.lane.b32.xlu1 %v407_v28, %s913_s3  ;;  %v794_v29 = vpop.f32.mrb[5].mxu0 }
 0x594   : > { %v410_v30 = vpop.f32.mrb[6].mxu0 }
 0x595   : > { %v795_v31 = vpop.f32.mrb[7].mxu0 }
 0x5c7   : > { %v519_v32 = vpop.f32.mrb[8].mxu0 }
 0x5c8   : > { %642 = vrot.lane.b32.xlu0 %v519_v32, %s914_s4  ;;  %v806_v34 = vpop.f32.mrb[9].mxu0 }
 0x5c9   : > { %v522_v35 = vpop.f32.mrb[10].mxu0 }
 0x5ca   : > { %v807_v36 = vpop.f32.mrb[11].mxu0 }
 0x5cf   : > { %v631_v37 = vpop.f32.mrb[12].mxu0 }
 0x5d0   : > { %646 = vrot.lane.b32.xlu1 %v631_v37, %s915_s5  ;;  %v818_v0 = vpop.f32.mrb[13].mxu0 }
 0x5d1   : > { %v634_v38 = vpop.f32.mrb[14].mxu0 }
 0x5d2   : > { %v819_v39 = vpop.f32.mrb[15].mxu0 }
 0x605   : > { %v639_v40 = vpop.permute.xlu1 %638 }
 0x606   : > { %v649_v42 = vsel %vm184_vm1, %v1005_v33, %v639_v40 }
 0x63a   : > { %v643_v41 = vpop.permute.xlu0 %642 }
 0x63b   : > { %v651_v43 = vsel %vm650_vm3, %v649_v42, %v643_v41 }
 0x642   : > { %v647_v44 = vpop.permute.xlu1 %646 }
 0x643   : > { %v653_v45 = vsel %vm652_vm4, %v651_v43, %v647_v44 }
 0x644   : > { %655 = vst.msk [vmem:[%s172_s8] sm:$0xff] %vm654_vm5, %v653_v45 }
 0x645 PF: > { %s12_s11 = sadd.s32 1, %s898_s11   ;;  %s1050_s9 = smov %s894_s10 }
 0x646   : > { %p9_p5 = scmp.ge.s32.totalorder %s12_s11, 8   ;;  %s1051_s10 = smov %s1053_s12 }
 0x648   :  { %11 = sbr.rel (!%p9_p5) target bundleno = 2 (0x2), region = 62 }

// kernel: encoder_forward.53
= control target key start
LH: loop header
LB: loop body
LE: loop exit
PB: predicated region body
PF: predicated region fallthrough
CT: control target
= control target key end

     0   :  { %vm31_vm0 = vcmask 261120   ;;  %v301_v43 = vmov 0.0   ;;  %vm302_vm1 = vmmov 0   ;;  %s451_s0 = inlined_call_operand.vmem [shape: f32[48,32], index: 0, kind: input, shape index: {}]   ;;  %s452_s3 = inlined_call_operand.vmem [shape: bf16[32,32], index: 3, kind: input, shape index: {}]   ;;  %s453_s1 = inlined_call_operand.vmem [shape: f32[1,32], index: 1, kind: input, shape index: {}]   ;;  %s454_s2 = inlined_call_operand.vmem [shape: f32[1,32], index: 2, kind: input, shape index: {}]   ;;  %s455_s4 = inlined_call_operand.vmem [shape: f32[1,32], index: 4, kind: input, shape index: {}]   ;;  %s456_s5 = inlined_call_operand.vmem [shape: f32[48,32], index: 5, kind: output, shape index: {}]  }
   0x1   :  { %v27_v0 = vld [vmem:[%s451_s0 + $0x10] sm:$0xff]  ;;  %v28_v1 = vld [vmem:[%s451_s0 + $0x18] sm:$0xff]  ;;  %v25_v2 = vld [vmem:[%s451_s0] sm:$0xff]  ;;  %281 = vmatprep.subr.bf16.mxu1 %v301_v43  ;;  %265 = vmatprep.subr.bf16.mxu0 %v301_v43 }
   0x2   :  { %v38_v3 = vsel %vm31_vm0, %v27_v0, 0.0  ;;  %v32_v4 = vsel %vm31_vm0, %v25_v2, 0.0  ;;  %v26_v5 = vld [vmem:[%s451_s0 + $0x8] sm:$0xff]  ;;  %v41_v6 = vsel %vm31_vm0, %v28_v1, 0.0  ;;  %v29_v8 = vld [vmem:[%s451_s0 + $0x20] sm:$0xff]  ;;  %273 = vmatprep.mubr.msk.bf16.mxu1 %vm302_vm1, %v301_v43  ;;  %269 = vmatprep.mubr.msk.bf16.mxu0 %vm302_vm1, %v301_v43 }
   0x3   :  { %39 = vadd.xlane.f32.xlu0 %v38_v3  ;;  %33 = vadd.xlane.f32.xlu1 %v32_v4  ;;  %v35_v7 = vsel %vm31_vm0, %v26_v5, 0.0  ;;  %v30_v9 = vld [vmem:[%s451_s0 + $0x28] sm:$0xff]  ;;  %v44_v10 = vsel %vm31_vm0, %v29_v8, 0.0  ;;  %v287_v42 = vld [vmem:[%s452_s3] sm:$0xff]  }
   0x4   :  { %v47_v11 = vsel %vm31_vm0, %v30_v9, 0.0  ;;  %283 = vmatpush3.bf16.msra.mxu1 %v287_v42  ;;  %266 = vmatpush3.bf16.msra.mxu0 %v287_v42  ;;  %v288_v44 = vld [vmem:[%s452_s3 + $0x8] sm:$0xff]   ;;  %v252_v63 = vld [vmem:[%s453_s1] ss:$0 sm:$0xff] }
   0x5   :  { %282 = vmatprep.subr.bf16.mxu1 %v301_v43  ;;  %267 = vmatprep.subr.bf16.mxu0 %v301_v43 }
   0x7   :  { %42 = vadd.xlane.f32.xlu0 %v41_v6  ;;  %36 = vadd.xlane.f32.xlu1 %v35_v7 }
   0x8   :  { %284 = vmatpush3.bf16.msra.mxu1 %v288_v44  ;;  %268 = vmatpush3.bf16.msra.mxu0 %v288_v44 }
   0xb   :  { %45 = vadd.xlane.f32.xlu0 %v44_v10  ;;  %48 = vadd.xlane.f32.xlu1 %v47_v11 }
  0x90   :  { %v40_v12 = vpop.xlane.xlu0 %39  ;;  %v34_v13 = vpop.xlane.xlu1 %33 }
  0x91   :  { %v53_v14 = vmul.f32 0.03125, %v40_v12  ;;  %v51_v15 = vmul.f32 0.03125, %v34_v13 }
  0x93   :  { %v357_v16 = vsub.f32 %v27_v0, %v53_v14  ;;  %v359_v17 = vsub.f32 %v25_v2, %v51_v15  ;;  %v253_v2 = vld [vmem:[%s454_s2] ss:$0 sm:$0xff] }
  0x94   :  { %v43_v18 = vpop.xlane.xlu0 %42  ;;  %v37_v19 = vpop.xlane.xlu1 %36 }
  0x95   :  { %v54_v20 = vmul.f32 0.03125, %v43_v18  ;;  %v65_v21 = vmul.f32 %v357_v16, %v357_v16  ;;  %v52_v22 = vmul.f32 0.03125, %v37_v19  ;;  %v63_v23 = vmul.f32 %v359_v17, %v359_v17 }
  0x97   :  { %v365_v24 = vsub.f32 %v28_v1, %v54_v20  ;;  %v75_v25 = vsel %vm31_vm0, %v65_v21, 0.0  ;;  %v368_v26 = vsub.f32 %v26_v5, %v52_v22  ;;  %v69_v28 = vsel %vm31_vm0, %v63_v23, 0.0 }
  0x98   :  { %76 = vadd.xlane.f32.xlu0 %v75_v25  ;;  %v46_v27 = vpop.xlane.xlu0 %45  ;;  %v49_v29 = vpop.xlane.xlu1 %48 }
  0x99   :  { %v55_v30 = vmul.f32 0.03125, %v46_v27  ;;  %v66_v31 = vmul.f32 %v365_v24, %v365_v24  ;;  %v56_v32 = vmul.f32 0.03125, %v49_v29  ;;  %v64_v33 = vmul.f32 %v368_v26, %v368_v26 }
  0x9b   :  { %v375_v34 = vsub.f32 %v29_v8, %v55_v30  ;;  %v78_v35 = vsel %vm31_vm0, %v66_v31, 0.0  ;;  %v378_v36 = vsub.f32 %v30_v9, %v56_v32  ;;  %v72_v38 = vsel %vm31_vm0, %v64_v33, 0.0 }
  0x9c   :  { %79 = vadd.xlane.f32.xlu1 %v78_v35  ;;  %70 = vadd.xlane.f32.xlu0 %v69_v28 }
  0x9d   :  { %v67_v37 = vmul.f32 %v375_v34, %v375_v34  ;;  %v68_v39 = vmul.f32 %v378_v36, %v378_v36 }
  0x9f   :  { %v81_v40 = vsel %vm31_vm0, %v67_v37, 0.0  ;;  %v84_v41 = vsel %vm31_vm0, %v68_v39, 0.0 }
  0xa0   :  { %82 = vadd.xlane.f32.xlu0 %v81_v40  ;;  %73 = vadd.xlane.f32.xlu1 %v72_v38 }
  0xa4   :  { %85 = vadd.xlane.f32.xlu1 %v84_v41 }
 0x125   :  { %v77_v45 = vpop.xlane.xlu0 %76 }
 0x126   :  { %v89_v46 = vmul.f32 0.03125, %v77_v45 }
 0x128   :  { %v95_v47 = vadd.f32 1e-06, %v89_v46 }
 0x129   :  { %v71_v48 = vpop.xlane.xlu0 %70  ;;  %v80_v49 = vpop.xlane.xlu1 %79 }
 0x12a   :  { %289 = vrsqrt.f32 %v95_v47  ;;  %v87_v50 = vmul.f32 0.03125, %v71_v48  ;;  %v90_v51 = vmul.f32 0.03125, %v80_v49 }
 0x12c   :  { %v93_v52 = vadd.f32 1e-06, %v87_v50  ;;  %v96_v53 = vadd.f32 1e-06, %v90_v51 }
 0x12d   :  { %v83_v54 = vpop.xlane.xlu0 %82  ;;  %v74_v55 = vpop.xlane.xlu1 %73 }
 0x12e   :  { %291 = vrsqrt.f32 %v93_v52  ;;  %v91_v56 = vmul.f32 0.03125, %v83_v54  ;;  %v88_v57 = vmul.f32 0.03125, %v74_v55 }
 0x12f   :  { %293 = vrsqrt.f32 %v96_v53 }
 0x130   :  { %v97_v58 = vadd.f32 1e-06, %v91_v56  ;;  %v94_v59 = vadd.f32 1e-06, %v88_v57 }
 0x131   :  { %v86_v60 = vpop.xlane.xlu1 %85 }
 0x132   :  { %295 = vrsqrt.f32 %v97_v58  ;;  %v92_v61 = vmul.f32 0.03125, %v86_v60 }
 0x133   :  { %297 = vrsqrt.f32 %v94_v59 }
 0x134   :  { %v290_v62 = vpop.eup %289  ;;  %v98_v0 = vadd.f32 1e-06, %v92_v61 }
 0x135   :  { %v107_v1 = vmul.f32 %v290_v62, %v357_v16 }
 0x136   :  { %299 = vrsqrt.f32 %v98_v0 }
 0x137   :  { %v120_v3 = vmul.f32 %v252_v63, %v107_v1 }
 0x138   :  { %v292_v4 = vpop.eup %291 }
 0x139   :  { %v294_v5 = vpop.eup %293  ;;  %v133_v6 = vadd.f32 %v253_v2, %v120_v3  ;;  %v105_v7 = vmul.f32 %v292_v4, %v359_v17 }
 0x13a   :  { %v108_v8 = vmul.f32 %v294_v5, %v365_v24 }
 0x13b   :  { %139 = vst.msk [vmem:[#allocation2 + $0x10] sm:$0xff] %vm31_vm0, %v133_v6  ;;  %v118_v9 = vmul.f32 %v252_v63, %v105_v7 }
 0x13c   :  { %v296_v10 = vpop.eup %295  ;;  %v121_v11 = vmul.f32 %v252_v63, %v108_v8 }
 0x13d   :  { %v298_v12 = vpop.eup %297  ;;  %v131_v13 = vadd.f32 %v253_v2, %v118_v9  ;;  %v109_v14 = vmul.f32 %v296_v10, %v375_v34  ;;  %v254_v34 = vld [vmem:[%s455_s4] ss:$0 sm:$0xff] }
 0x13e   :  { %v134_v15 = vadd.f32 %v253_v2, %v121_v11  ;;  %v106_v16 = vmul.f32 %v298_v12, %v368_v26 }
 0x13f   :  { %137 = vst.msk [vmem:[#allocation2] sm:$0xff] %vm31_vm0, %v131_v13  ;;  %v122_v18 = vmul.f32 %v252_v63, %v109_v14 }
 0x140   :  { %v300_v19 = vpop.eup %299  ;;  %140 = vst.msk [vmem:[#allocation2 + $0x18] sm:$0xff] %vm31_vm0, %v134_v15  ;;  %v119_v17 = vmul.f32 %v252_v63, %v106_v16 }
 0x141   :  { %v135_v20 = vadd.f32 %v253_v2, %v122_v18  ;;  %v110_v21 = vmul.f32 %v300_v19, %v378_v36 }
 0x142   :  { %v132_v22 = vadd.f32 %v253_v2, %v119_v17  ;;  %v145_v25 = vld [vmem:[#allocation2 + $0x10] sm:$0xff] }
 0x143   :  { %141 = vst.msk [vmem:[#allocation2 + $0x20] sm:$0xff] %vm31_vm0, %v135_v20  ;;  %v123_v23 = vmul.f32 %v252_v63, %v110_v21 }
 0x144   :  { %138 = vst.msk [vmem:[#allocation2 + $0x8] sm:$0xff] %vm31_vm0, %v132_v22 }
 0x145   :  { %v136_v24 = vadd.f32 %v253_v2, %v123_v23 }
 0x146   :  { %v143_v28 = vld [vmem:[#allocation2] sm:$0xff] }
 0x147   :  { %142 = vst.msk [vmem:[#allocation2 + $0x28] sm:$0xff] %vm31_vm0, %v136_v24  ;;  %v146_v26 = vld [vmem:[#allocation2 + $0x18] sm:$0xff] }
 0x148   :  { %v150_v27 = vpack.c.bf16 %v146_v26, %v145_v25 }
 0x14a   :  { %274 = vmatmul.mubr.msk.bf16.vlgmr.msra.gmra.mrb[0].mxu1 %vm31_vm0, %v150_v27  ;;  %v147_v31 = vld [vmem:[#allocation2 + $0x20] sm:$0xff] }
 0x14b   :  { %v144_v29 = vld [vmem:[#allocation2 + $0x8] sm:$0xff]  ;;  %277 = vmatprep.mubr.msk.bf16.mxu1 %vm302_vm1, %v301_v43 }
 0x14c   :  { %v149_v30 = vpack.c.bf16 %v144_v29, %v143_v28 }
 0x14e   :  { %270 = vmatmul.mubr.msk.bf16.vlgmr.msra.gmra.mrb[0].mxu0 %vm31_vm0, %v149_v30  ;;  %v148_v32 = vld [vmem:[#allocation2 + $0x28] sm:$0xff] }
 0x14f   :  { %v151_v33 = vpack.c.bf16 %v148_v32, %v147_v31 }
 0x152   :  { %278 = vmatmul.mubr.msk.bf16.gmra.mrb[4].mxu1 %vm31_vm0, %v151_v33 }
 0x21d   :  { %v227_v35 = vpop.f32.mrb[0].mxu1 }
 0x21e   :  { %v228_v36 = vadd.f32 %v254_v34, %v227_v35  ;;  %v275_v37 = vpop.f32.mrb[1].mxu1 }
 0x21f   :  { %v230_v38 = vpop.f32.mrb[2].mxu1 }
 0x220   :  { %244 = vst.msk [vmem:[%s456_s5 + $0x10] sm:$0xff] %vm31_vm0, %v228_v36  ;;  %v231_v39 = vadd.f32 %v254_v34, %v230_v38  ;;  %v276_v40 = vpop.f32.mrb[3].mxu1 }
 0x221   :  { %v219_v41 = vpop.f32.mrb[0].mxu0 }
 0x222   :  { %245 = vst.msk [vmem:[%s456_s5 + $0x18] sm:$0xff] %vm31_vm0, %v231_v39  ;;  %v220_v42 = vadd.f32 %v254_v34, %v219_v41  ;;  %v271_v43 = vpop.f32.mrb[1].mxu0 }
 0x223   :  { %v222_v44 = vpop.f32.mrb[2].mxu0 }
 0x224   :  { %242 = vst.msk [vmem:[%s456_s5] sm:$0xff] %vm31_vm0, %v220_v42  ;;  %v223_v45 = vadd.f32 %v254_v34, %v222_v44  ;;  %v272_v46 = vpop.f32.mrb[3].mxu0 }
 0x225   :  { %v235_v47 = vpop.f32.mrb[4].mxu1 }
 0x226   :  { %243 = vst.msk [vmem:[%s456_s5 + $0x8] sm:$0xff] %vm31_vm0, %v223_v45  ;;  %v236_v48 = vadd.f32 %v254_v34, %v235_v47  ;;  %v279_v49 = vpop.f32.mrb[5].mxu1 }
 0x227   :  { %v238_v50 = vpop.f32.mrb[6].mxu1 }
 0x228   :  { %246 = vst.msk [vmem:[%s456_s5 + $0x20] sm:$0xff] %vm31_vm0, %v236_v48  ;;  %v239_v51 = vadd.f32 %v254_v34, %v238_v50  ;;  %v280_v52 = vpop.f32.mrb[7].mxu1 }
 0x22a   :  { %247 = vst.msk [vmem:[%s456_s5 + $0x28] sm:$0xff] %vm31_vm0, %v239_v51 }

// kernel: encoder_forward.55
= control target key start
LH: loop header
LB: loop body
LE: loop exit
PB: predicated region body
PF: predicated region fallthrough
CT: control target
= control target key end

     0   :  { %s990_s12 = smov 0   ;;  %s992_s13 = smov 0   ;;  %s1103_s0 = inlined_call_operand.vmem [shape: f32[6,8,32], index: 0, kind: input, shape index: {}]   ;;  %s1104_s1 = inlined_call_operand.vmem [shape: f32[6,16,64], index: 1, kind: input, shape index: {}]   ;;  %s1105_s2 = inlined_call_operand.vmem [shape: f32[6,1,16], index: 2, kind: input, shape index: {}]   ;;  %s1106_s3 = inlined_call_operand.vmem [shape: f32[6,8,32], index: 3, kind: output, shape index: {}]  }
   0x1   :  { %s994_s14 = smov 0  }
   0x2 LB: > { %s25_s15 = sadd.s32 1, %s952_s13  ;;  %p801_p0 = scmp.ge.s32.totalorder %s956_s14, 1  ;;  %s956_s14 = sphi %s994_s14, %s13_s14   ;;  %s952_s13 = sphi %s992_s13, %s1108_s13   ;;  %s948_s12 = sphi %s990_s12, %s1107_s12  }
   0x3   : > { %p27_p1 = scmp.ge.s32.totalorder %s25_s15, 6  ;;  %p173_p2 = scmp.lt.s32.totalorder %s956_s14, 7 }
   0x5   : > { %s1110_s15 = smov (%p27_p1, %s25_s15), 0  ;;  %p174_p3 = pnand %p801_p0, %p173_p2 }
   0x6   : > { %p209_p4 = scmp.lt.s32.totalorder (!%p174_p3), %s948_s12, 5  ;;  %v958_v0 = vmov (!%p174_p3), 0.0   ;;  %vm959_vm0 = vmmov (!%p174_p3), 0   ;;  %vm238_vm1 = vcmask (!%p174_p3), 64512   ;;  %vm293_vm2 = vcmask (!%p174_p3), 130048   ;;  %s960_s27 = smov (!%p174_p3), 96  }
   0x7   : > { %177 = sbr.rel (%p174_p3) target bundleno = 1445 (0x5a5), region = 32  ;;  %834 = vmatprep.subr.bf16.mxu0 (!%p174_p3), %v958_v0  ;;  %836 = vmatprep.mubr.msk.bf16.mxu0 (!%p174_p3), %vm959_vm0, %v958_v0  ;;  %s961_s28 = smov (!%p174_p3), 120   ;;  %vm698_vm3 = vcmask (!%p174_p3), 195584   ;;  %vm700_vm4 = vcmask (!%p174_p3), 261120  }
   0x8   : > { %840 = vmatprep.subr.bf16.mxu1 (!%p174_p3), %v958_v0  ;;  %842 = vmatprep.mubr.msk.bf16.mxu1 (!%p174_p3), %vm959_vm0, %v958_v0  ;;  %s962_s29 = smov (!%p174_p3), 112   ;;  %s963_s30 = smov (!%p174_p3), 104  }
   0x9   : > { %s964_s4 = smov (!%p174_p3), 88   ;;  %s965_s5 = smov (!%p174_p3), 72  }
   0xa   : > { %s966_s6 = smov (!%p174_p3), 80   ;;  %s967_s7 = smov (!%p174_p3), 8  }
   0xb   : > { %s968_s8 = smov (!%p174_p3), 16   ;;  %s969_s9 = smov (!%p174_p3), 24  }
   0xe   : > { %s1112_s12 = smov (!%p209_p4, %s948_s12), 5 }
   0xf   : > { %s817_s16 = sshll.u32 %s1112_s12, 4  ;;  %s802_s17 = sshll.u32 %s1112_s12, 3 }
  0x10   : > { %s220_s20 = scalar_lea.vmem %s1104_s1, %s817_s16  ;;  %s215_s23 = scalar_lea.vmem %s1103_s0, %s802_s17 }
  0x11   : > { %v233_v1 = vld [vmem:[%s220_s20] sm:$0xff]  ;;  %v234_v2 = vld [vmem:[%s220_s20 + $0x8] sm:$0xff]  ;;  %s223_s26 = scalar_lea.vmem %s1105_s2, %s1112_s12  ;;  %s230_s16 = scalar_lea.vmem %s1106_s3, %s802_s17 }
  0x12   : > { %v1021_v3 = vpack.c.bf16 %v234_v2, %v233_v1  ;;  %v232_v5 = vld [vmem:[%s215_s23] sm:$0xff] }
  0x13   : > { %v236_v6 = vpack.c.bf16 %v232_v5, %v232_v5  ;;  %v1038_v8 = vld [vmem:[%s223_s26] ss:$0 sm:$0xff] }
  0x14   : > { %v243_v4 = vsel %vm238_vm1, %v1021_v3, 0  ;;  %307 = vrot.lane.b32.xlu1 %v1021_v3, %s960_s27 }
  0x15   : > { %835 = vmatpush3.bf16.xpose.msra.mxu0 %v243_v4 }
  0x16   : > { %852 = vmatprep.subr.bf16.mxu0 %v958_v0 }
  0x18   : > { %356 = vrot.lane.b32.xlu1 %v1021_v3, %s961_s28 }
  0x1c   : > { %837 = vmatmul.mubr.msk.bf16.vlgmr.msra.gmra.mrb[0].mxu0 %vm238_vm1, %v236_v6  ;;  %466 = vrot.lane.b32.xlu1 %v1021_v3, %s962_s29 }
  0x1d   : > { %854 = vmatprep.mubr.msk.bf16.mxu0 %vm959_vm0, %v958_v0 }
  0x20   : > { %464 = vrot.lane.b32.xlu1 %v236_v6, %s962_s29 }
  0x24   : > { %576 = vrot.lane.b32.xlu1 %v1021_v3, %s963_s30 }
  0x28   : > { %574 = vrot.lane.b32.xlu1 %v236_v6, %s963_s30 }
  0x86   : > { %v308_v20 = vpop.permute.xlu1 %307 }
  0x87   : > { %841 = vmatpush3.bf16.msra.mxu1 %v308_v20 }
  0x88   : > { %846 = vmatprep.subr.bf16.mxu1 %v958_v0 }
  0x8a   : > { %v357_v23 = vpop.permute.xlu1 %356 }
  0x8b   : > { %v362_v25 = vsel %vm238_vm1, %v357_v23, 0 }
  0x8e   : > { %v467_v27 = vpop.permute.xlu1 %466 }
  0x8f   : > { %v472_v30 = vsel %vm238_vm1, %v467_v27, 0 }
  0x92   : > { %v465_v29 = vpop.permute.xlu1 %464 }
  0x96   : > { %v577_v31 = vpop.permute.xlu1 %576 }
  0x97   : > { %v582_v32 = vsel %vm238_vm1, %v577_v31, 0 }
  0x9a   : > { %v575_v33 = vpop.permute.xlu1 %574 }
  0xef   : > { %v279_v7 = vpop.f32.mrb[0].mxu0 }
  0xf0   : > { %v285_v9 = vmul.f32 0.35355338, %v279_v7  ;;  %v838_v10 = vpop.f32.mrb[1].mxu0 }
  0xf1   : > { %v282_v11 = vpop.f32.mrb[2].mxu0 }
  0xf2   : > { %v839_v12 = vpop.f32.mrb[3].mxu0  ;;  %v292_v13 = vadd.f32 %v1038_v8, %v285_v9 }
  0xf4   : > { %v294_v14 = vsel %vm293_vm2, %v292_v13, -inf }
  0xf5   : > { %295 = vmax.xlane.f32.xlu0 %v294_v14 }
 0x182   : > { %v296_v15 = vpop.xlane.xlu0 %295 }
 0x183   : > { %v297_v16 = vsub.f32 %v292_v13, %v296_v15 }
 0x185   : > { %v298_v17 = vmul.f32 1.442695, %v297_v16 }
 0x187   : > { %918 = vpow2.f32 %v298_v17 }
 0x191   : > { %v919_v18 = vpop.eup %918 }
 0x192   : > { %v300_v19 = vsel %vm293_vm2, %v919_v18, 0.0 }
 0x193   : > { %301 = vadd.xlane.f32.xlu0 %v300_v19 }
 0x1a9   : > { %354 = vrot.lane.b32.xlu0 %v236_v6, %s961_s28 }
 0x220   : > { %v302_v21 = vpop.xlane.xlu0 %301 }
 0x221   : > { %920 = vrcp.f32 %v302_v21 }
 0x224   : > { %v355_v28 = vpop.permute.xlu0 %354 }
 0x22b   : > { %v921_v22 = vpop.eup %920 }
 0x22c   : > { %v304_v24 = vmul.f32 %v921_v22, %v919_v18 }
 0x22e   : > { %v305_v26 = vpack.c.bf16 %v304_v24, %v304_v24 }
 0x230   : > { %843 = vmatmul.mubr.msk.bf16.vlgmr.msra.gmra.mrb[0].mxu1 %vm293_vm2, %v305_v26 }
 0x231   : > { %847 = vmatpush3.bf16.xpose.msra.mxu1 %v362_v25  ;;  %848 = vmatprep.mubr.msk.bf16.mxu1 %vm959_vm0, %v958_v0 }
 0x232   : > { %858 = vmatprep.subr.bf16.mxu1 %v958_v0 }
 0x238   : > { %849 = vmatmul.mubr.msk.bf16.vlgmr.msra.gmra.mrb[4].mxu1 %vm238_vm1, %v355_v28 }
 0x239   : > { %859 = vmatpush3.bf16.xpose.msra.mxu1 %v472_v30  ;;  %860 = vmatprep.mubr.msk.bf16.mxu1 %vm959_vm0, %v958_v0 }
 0x23a   : > { %870 = vmatprep.subr.bf16.mxu1 %v958_v0 }
 0x240   : > { %861 = vmatmul.mubr.msk.bf16.vlgmr.msra.gmra.mrb[8].mxu1 %vm238_vm1, %v465_v29 }
 0x241   : > { %871 = vmatpush3.bf16.xpose.msra.mxu1 %v582_v32  ;;  %872 = vmatprep.mubr.msk.bf16.mxu1 %vm959_vm0, %v958_v0 }
 0x248   : > { %873 = vmatmul.mubr.msk.bf16.vlgmr.msra.gmra.mrb[12].mxu1 %vm238_vm1, %v575_v33 }
 0x303   : > { %v1063_v34 = vpop.f32.mrb[0].mxu1 }
 0x304   : > { %v844_v35 = vpop.f32.mrb[1].mxu1 }
 0x305   : > { %v350_v36 = vpop.f32.mrb[2].mxu1 }
 0x306   : > { %v845_v37 = vpop.f32.mrb[3].mxu1 }
 0x30b   : > { %v398_v38 = vpop.f32.mrb[4].mxu1 }
 0x30c   : > { %v404_v39 = vmul.f32 0.35355338, %v398_v38  ;;  %v850_v40 = vpop.f32.mrb[5].mxu1 }
 0x30d   : > { %v401_v41 = vpop.f32.mrb[6].mxu1 }
 0x30e   : > { %v851_v42 = vpop.f32.mrb[7].mxu1  ;;  %v405_v43 = vadd.f32 %v1038_v8, %v404_v39 }
 0x310   : > { %v406_v44 = vsel %vm293_vm2, %v405_v43, -inf }
 0x311   : > { %407 = vmax.xlane.f32.xlu1 %v406_v44 }
 0x313   : > { %v508_v45 = vpop.f32.mrb[8].mxu1 }
 0x314   : > { %v514_v46 = vmul.f32 0.35355338, %v508_v45  ;;  %v862_v47 = vpop.f32.mrb[9].mxu1 }
 0x315   : > { %v511_v48 = vpop.f32.mrb[10].mxu1 }
 0x316   : > { %v863_v49 = vpop.f32.mrb[11].mxu1  ;;  %v515_v50 = vadd.f32 %v1038_v8, %v514_v46 }
 0x318   : > { %v516_v51 = vsel %vm293_vm2, %v515_v50, -inf }
 0x319   : > { %517 = vmax.xlane.f32.xlu0 %v516_v51 }
 0x31b   : > { %v618_v52 = vpop.f32.mrb[12].mxu1 }
 0x31c   : > { %v624_v53 = vmul.f32 0.35355338, %v618_v52  ;;  %v874_v54 = vpop.f32.mrb[13].mxu1 }
 0x31d   : > { %v621_v55 = vpop.f32.mrb[14].mxu1 }
 0x31e   : > { %v875_v56 = vpop.f32.mrb[15].mxu1  ;;  %v625_v57 = vadd.f32 %v1038_v8, %v624_v53 }
 0x320   : > { %v626_v58 = vsel %vm293_vm2, %v625_v57, -inf }
 0x321   : > { %627 = vmax.xlane.f32.xlu1 %v626_v58 }
 0x332   : > { %418 = vrot.lane.b32.xlu1 %v1021_v3, %s964_s4 }
 0x39e   : > { %v408_v59 = vpop.xlane.xlu1 %407 }
 0x39f   : > { %v409_v60 = vsub.f32 %v405_v43, %v408_v59 }
 0x3a1   : > { %v410_v61 = vmul.f32 1.442695, %v409_v60 }
 0x3a3   : > { %922 = vpow2.f32 %v410_v61 }
 0x3a6   : > { %v518_v62 = vpop.xlane.xlu0 %517 }
 0x3a7   : > { %v519_v63 = vsub.f32 %v515_v50, %v518_v62 }
 0x3a9   : > { %v520_v1 = vmul.f32 1.442695, %v519_v63 }
 0x3ab   : > { %924 = vpow2.f32 %v520_v1 }
 0x3ad   : > { %v923_v2 = vpop.eup %922 }
 0x3ae   : > { %v628_v4 = vpop.xlane.xlu1 %627  ;;  %v412_v5 = vsel %vm293_vm2, %v923_v2, 0.0 }
 0x3af   : > { %v629_v6 = vsub.f32 %v625_v57, %v628_v4  ;;  %413 = vadd.xlane.f32.xlu0 %v412_v5 }
 0x3b1   : > { %v630_v7 = vmul.f32 1.442695, %v629_v6 }
 0x3b2   : > { %v419_v8 = vpop.permute.xlu1 %418 }
 0x3b3   : > { %926 = vpow2.f32 %v630_v7  ;;  %853 = vmatpush3.bf16.msra.mxu0 %v419_v8 }
 0x3b4   : > { %864 = vmatprep.subr.bf16.mxu0 %v958_v0 }
 0x3b5   : > { %v925_v9 = vpop.eup %924 }
 0x3b6   : > { %v522_v10 = vsel %vm293_vm2, %v925_v9, 0.0 }
 0x3b7   : > { %523 = vadd.xlane.f32.xlu1 %v522_v10 }
 0x3bd   : > { %v927_v11 = vpop.eup %926 }
 0x3be   : > { %v632_v12 = vsel %vm293_vm2, %v927_v11, 0.0 }
 0x3bf   : > { %633 = vadd.xlane.f32.xlu0 %v632_v12 }
 0x3c8   : > { %638 = vrot.lane.b32.xlu1 %v1021_v3, %s965_s5 }
 0x3d5   : > { %528 = vrot.lane.b32.xlu0 %v1021_v3, %s966_s6 }
 0x43c   : > { %v414_v13 = vpop.xlane.xlu0 %413 }
 0x43d   : > { %928 = vrcp.f32 %v414_v13 }
 0x444   : > { %v524_v14 = vpop.xlane.xlu1 %523 }
 0x445   : > { %930 = vrcp.f32 %v524_v14 }
 0x447   : > { %v929_v15 = vpop.eup %928 }
 0x448   : > { %v416_v16 = vmul.f32 %v929_v15, %v923_v2  ;;  %v639_v3 = vpop.permute.xlu1 %638 }
 0x44a   : > { %v417_v17 = vpack.c.bf16 %v416_v16, %v416_v16 }
 0x44c   : > { %v634_v18 = vpop.xlane.xlu0 %633  ;;  %855 = vmatmul.mubr.msk.bf16.vlgmr.msra.gmra.mrb[4].mxu0 %vm293_vm2, %v417_v17 }
 0x44d   : > { %932 = vrcp.f32 %v634_v18  ;;  %866 = vmatprep.mubr.msk.bf16.mxu0 %vm959_vm0, %v958_v0 }
 0x44f   : > { %v931_v19 = vpop.eup %930 }
 0x450   : > { %v526_v20 = vmul.f32 %v931_v19, %v925_v9  ;;  %v529_v21 = vpop.permute.xlu0 %528 }
 0x451   : > { %865 = vmatpush3.bf16.msra.mxu0 %v529_v21 }
 0x452   : > { %v527_v22 = vpack.c.bf16 %v526_v20, %v526_v20  ;;  %876 = vmatprep.subr.bf16.mxu0 %v958_v0 }
 0x454   : > { %867 = vmatmul.mubr.msk.bf16.vlgmr.msra.gmra.mrb[8].mxu0 %vm293_vm2, %v527_v22 }
 0x455   : > { %877 = vmatpush3.bf16.msra.mxu0 %v639_v3  ;;  %878 = vmatprep.mubr.msk.bf16.mxu0 %vm959_vm0, %v958_v0 }
 0x457   : > { %v933_v23 = vpop.eup %932 }
 0x458   : > { %v636_v24 = vmul.f32 %v933_v23, %v927_v11 }
 0x45a   : > { %v637_v25 = vpack.c.bf16 %v636_v24, %v636_v24 }
 0x45c   : > { %879 = vmatmul.mubr.msk.bf16.vlgmr.msra.gmra.mrb[12].mxu0 %vm293_vm2, %v637_v25 }
 0x51f   : > { %v458_v26 = vpop.f32.mrb[4].mxu0 }
 0x520   : > { %685 = vrot.lane.b32.xlu1 %v458_v26, %s967_s7  ;;  %v856_v27 = vpop.f32.mrb[5].mxu0 }
 0x521   : > { %v461_v28 = vpop.f32.mrb[6].mxu0 }
 0x522   : > { %v857_v29 = vpop.f32.mrb[7].mxu0 }
 0x527   : > { %v568_v30 = vpop.f32.mrb[8].mxu0 }
 0x528   : > { %689 = vrot.lane.b32.xlu0 %v568_v30, %s968_s8  ;;  %v868_v31 = vpop.f32.mrb[9].mxu0 }
 0x529   : > { %v571_v32 = vpop.f32.mrb[10].mxu0 }
 0x52a   : > { %v869_v33 = vpop.f32.mrb[11].mxu0 }
 0x52f   : > { %v678_v35 = vpop.f32.mrb[12].mxu0 }
 0x530   : > { %693 = vrot.lane.b32.xlu1 %v678_v35, %s969_s9  ;;  %v880_v0 = vpop.f32.mrb[13].mxu0 }
 0x531   : > { %v681_v36 = vpop.f32.mrb[14].mxu0 }
 0x532   : > { %v881_v37 = vpop.f32.mrb[15].mxu0 }
 0x592   : > { %v686_v38 = vpop.permute.xlu1 %685 }
 0x593   : > { %v696_v40 = vsel %vm238_vm1, %v1063_v34, %v686_v38 }
 0x59a   : > { %v690_v39 = vpop.permute.xlu0 %689 }
 0x59b   : > { %v697_v41 = vsel %vm293_vm2, %v696_v40, %v690_v39 }
 0x5a2   : > { %v694_v42 = vpop.permute.xlu1 %693 }
 0x5a3   : > { %v699_v43 = vsel %vm698_vm3, %v697_v41, %v694_v42 }
 0x5a4   : > { %701 = vst.msk [vmem:[%s230_s16] sm:$0xff] %vm700_vm4, %v699_v43 }
 0x5a5 PF: > { %s13_s14 = sadd.s32 1, %s956_s14   ;;  %s1107_s12 = smov %s952_s13 }
 0x5a6   : > { %p10_p5 = scmp.ge.s32.totalorder %s13_s14, 8   ;;  %s1108_s13 = smov %s1110_s15 }
 0x5a8   :  { %12 = sbr.rel (!%p10_p5) target bundleno = 2 (0x2), region = 68 }

// kernel: encoder_forward.56
= control target key start
LH: loop header
LB: loop body
LE: loop exit
PB: predicated region body
PF: predicated region fallthrough
CT: control target
= control target key end

     0   :  { %v501_v0 = vmov 0.0   ;;  %vm502_vm0 = vmmov 0   ;;  %vm59_vm1 = vcmask 261120   ;;  %s710_s1 = inlined_call_operand.vmem [shape: bf16[32,32], index: 1, kind: input, shape index: {}]   ;;  %s711_s0 = inlined_call_operand.vmem [shape: f32[48,32], index: 0, kind: input, shape index: {}]   ;;  %s712_s5 = inlined_call_operand.vmem [shape: bf16[32,32], index: 5, kind: input, shape index: {}]   ;;  %s713_s4 = inlined_call_operand.vmem [shape: bf16[32,32], index: 4, kind: input, shape index: {}]   ;;  %s714_s3 = inlined_call_operand.vmem [shape: f32[48,32], index: 3, kind: input, shape index: {}]   ;;  %s715_s2 = inlined_call_operand.vmem [shape: f32[1,32], index: 2, kind: input, shape index: {}]   ;;  %s716_s6 = inlined_call_operand.vmem [shape: f32[1,32], index: 6, kind: input, shape index: {}]   ;;  %s717_s7 = inlined_call_operand.vmem [shape: f32[48,32], index: 7, kind: output, shape index: {}]  }
   0x1   :  { %417 = vmatprep.subr.bf16.mxu0 %v501_v0  ;;  %v471_v1 = vld [vmem:[%s710_s1] sm:$0xff]   ;;  %465 = vmatprep.subr.bf16.mxu1 %v501_v0  ;;  %v472_v2 = vld [vmem:[%s710_s1 + $0x8] sm:$0xff]   ;;  %v29_v5 = vld [vmem:[%s711_s0 + $0x10] sm:$0xff] }
   0x2   :  { %421 = vmatprep.mubr.msk.bf16.mxu0 %vm502_vm0, %v501_v0  ;;  %425 = vmatprep.mubr.msk.bf16.mxu1 %vm502_vm0, %v501_v0  ;;  %v27_v3 = vld [vmem:[%s711_s0] sm:$0xff]  ;;  %v28_v4 = vld [vmem:[%s711_s0 + $0x8] sm:$0xff]  ;;  %v30_v6 = vld [vmem:[%s711_s0 + $0x18] sm:$0xff] }
   0x3   :  { %418 = vmatpush3.bf16.msra.mxu0 %v471_v1  ;;  %467 = vmatpush3.bf16.msra.mxu1 %v471_v1  ;;  %v33_v7 = vpack.c.bf16 %v28_v4, %v27_v3  ;;  %v34_v8 = vpack.c.bf16 %v30_v6, %v29_v5  ;;  %v473_v9 = vld [vmem:[%s712_s5] sm:$0xff]   ;;  %v32_v12 = vld [vmem:[%s711_s0 + $0x28] sm:$0xff]  ;;  %v618_v19 = vld [vmem:[%s714_s3 + $0x10] sm:$0xff] }
   0x4   :  { %419 = vmatprep.subr.bf16.mxu0 %v501_v0  ;;  %466 = vmatprep.subr.bf16.mxu1 %v501_v0  ;;  %v475_v10 = vld [vmem:[%s713_s4] sm:$0xff]   ;;  %v474_v13 = vld [vmem:[%s712_s5 + $0x8] sm:$0xff]   ;;  %v623_v20 = vld [vmem:[%s714_s3 + $0x18] sm:$0xff] }
   0x5   :  { %v31_v11 = vld [vmem:[%s711_s0 + $0x20] sm:$0xff]  ;;  %v605_v16 = vld [vmem:[%s714_s3 + $0x8] sm:$0xff]  ;;  %v140_v21 = vpack.c.bf16 %v623_v20, %v618_v19 }
   0x6   :  { %v35_v14 = vpack.c.bf16 %v32_v12, %v31_v11  ;;  %v600_v15 = vld [vmem:[%s714_s3] sm:$0xff]  ;;  %v476_v17 = vld [vmem:[%s713_s4 + $0x8] sm:$0xff]  }
   0x7   :  { %420 = vmatpush3.bf16.msra.mxu0 %v472_v2  ;;  %468 = vmatpush3.bf16.msra.mxu1 %v472_v2  ;;  %v139_v18 = vpack.c.bf16 %v605_v16, %v600_v15  ;;  %v633_v22 = vld [vmem:[%s714_s3 + $0x20] sm:$0xff]  ;;  %v638_v23 = vld [vmem:[%s714_s3 + $0x28] sm:$0xff] }
   0x8   :  { %433 = vmatprep.subr.bf16.mxu1 %v501_v0  ;;  %449 = vmatprep.subr.bf16.mxu0 %v501_v0  ;;  %v141_v24 = vpack.c.bf16 %v638_v23, %v633_v22  ;;  %v385_v25 = vld [vmem:[%s715_s2] ss:$0 sm:$0xff] }
   0x9   :  { %v401_v60 = vld [vmem:[%s716_s6] ss:$0 sm:$0xff] }
   0xa   :  { %422 = vmatmul.mubr.msk.bf16.vlgmr.msra.gmra.mrb[0].mxu0 %vm59_vm1, %v33_v7  ;;  %426 = vmatmul.mubr.msk.bf16.vlgmr.msra.gmra.mrb[0].mxu1 %vm59_vm1, %v34_v8 }
   0xb   :  { %429 = vmatprep.mubr.msk.bf16.mxu1 %vm502_vm0, %v501_v0  ;;  %434 = vmatpush3.bf16.msra.mxu1 %v473_v9 }
   0xc   :  { %435 = vmatprep.subr.bf16.mxu1 %v501_v0  ;;  %450 = vmatpush3.bf16.msra.mxu0 %v475_v10 }
   0xd   :  { %451 = vmatprep.subr.bf16.mxu0 %v501_v0  ;;  %453 = vmatprep.mubr.msk.bf16.mxu0 %vm502_vm0, %v501_v0 }
   0xf   :  { %436 = vmatpush3.bf16.msra.mxu1 %v474_v13 }
  0x10   :  { %452 = vmatpush3.bf16.msra.mxu0 %v476_v17 }
  0x12   :  { %430 = vmatmul.mubr.msk.bf16.gmra.mrb[4].mxu1 %vm59_vm1, %v35_v14 }
  0x13   :  { %437 = vmatprep.mubr.msk.bf16.mxu1 %vm502_vm0, %v501_v0 }
  0x1a   :  { %438 = vmatmul.mubr.msk.bf16.vlgmr.msra.gmra.mrb[8].mxu1 %vm59_vm1, %v139_v18 }
  0x1b   :  { %441 = vmatprep.mubr.msk.bf16.mxu1 %vm502_vm0, %v501_v0 }
  0x22   :  { %442 = vmatmul.mubr.msk.bf16.gmra.mrb[12].mxu1 %vm59_vm1, %v140_v21 }
  0x23   :  { %445 = vmatprep.mubr.msk.bf16.mxu1 %vm502_vm0, %v501_v0 }
  0x2a   :  { %446 = vmatmul.mubr.msk.bf16.gmra.mrb[16].mxu1 %vm59_vm1, %v141_v24 }
  0xdd   :  { %v103_v26 = vpop.f32.mrb[0].mxu0  ;;  %v111_v27 = vpop.f32.mrb[0].mxu1 }
  0xde   :  { %v423_v28 = vpop.f32.mrb[1].mxu0  ;;  %v427_v29 = vpop.f32.mrb[1].mxu1  ;;  %v646_v32 = vadd.f32 %v385_v25, %v103_v26  ;;  %v655_v38 = vadd.f32 %v385_v25, %v111_v27 }
  0xdf   :  { %v106_v30 = vpop.f32.mrb[2].mxu0  ;;  %v114_v31 = vpop.f32.mrb[2].mxu1 }
  0xe0   :  { %v648_v33 = vadd.f32 %v385_v25, %v106_v30  ;;  %v424_v34 = vpop.f32.mrb[3].mxu0  ;;  %v428_v35 = vpop.f32.mrb[3].mxu1  ;;  %v657_v39 = vadd.f32 %v385_v25, %v114_v31 }
  0xe2   :  { %v132_v36 = vpack.c.bf16 %v648_v33, %v646_v32  ;;  %v133_v43 = vpack.c.bf16 %v657_v39, %v655_v38 }
  0xe4   :  { %454 = vmatmul.mubr.msk.bf16.vlgmr.msra.gmra.mrb[4].mxu0 %vm59_vm1, %v132_v36 }
  0xe5   :  { %v119_v37 = vpop.f32.mrb[4].mxu1  ;;  %457 = vmatprep.mubr.msk.bf16.mxu0 %vm502_vm0, %v501_v0 }
  0xe6   :  { %v431_v40 = vpop.f32.mrb[5].mxu1  ;;  %v664_v44 = vadd.f32 %v385_v25, %v119_v37 }
  0xe7   :  { %v122_v41 = vpop.f32.mrb[6].mxu1 }
  0xe8   :  { %v432_v42 = vpop.f32.mrb[7].mxu1  ;;  %v666_v45 = vadd.f32 %v385_v25, %v122_v41 }
  0xea   :  { %v134_v46 = vpack.c.bf16 %v666_v45, %v664_v44 }
  0xec   :  { %458 = vmatmul.mubr.msk.bf16.gmra.mrb[8].mxu0 %vm59_vm1, %v133_v43 }
  0xed   :  { %461 = vmatprep.mubr.msk.bf16.mxu0 %vm502_vm0, %v501_v0  ;;  %v201_v47 = vpop.f32.mrb[8].mxu1 }
  0xee   :  { %v439_v48 = vpop.f32.mrb[9].mxu1 }
  0xef   :  { %v204_v49 = vpop.f32.mrb[10].mxu1 }
  0xf0   :  { %v440_v50 = vpop.f32.mrb[11].mxu1 }
  0xf4   :  { %462 = vmatmul.mubr.msk.bf16.gmra.mrb[12].mxu0 %vm59_vm1, %v134_v46 }
  0xf5   :  { %v209_v51 = vpop.f32.mrb[12].mxu1 }
  0xf6   :  { %v443_v52 = vpop.f32.mrb[13].mxu1 }
  0xf7   :  { %v212_v53 = vpop.f32.mrb[14].mxu1 }
  0xf8   :  { %v444_v54 = vpop.f32.mrb[15].mxu1 }
  0xfd   :  { %v217_v55 = vpop.f32.mrb[16].mxu1 }
  0xfe   :  { %v447_v56 = vpop.f32.mrb[17].mxu1 }
  0xff   :  { %v220_v57 = vpop.f32.mrb[18].mxu1 }
 0x100   :  { %v448_v58 = vpop.f32.mrb[19].mxu1 }
 0x1b7   :  { %v279_v59 = vpop.f32.mrb[4].mxu0 }
 0x1b8   :  { %v280_v61 = vadd.f32 %v279_v59, %v201_v47  ;;  %v455_v62 = vpop.f32.mrb[5].mxu0 }
 0x1b9   :  { %v282_v63 = vpop.f32.mrb[6].mxu0 }
 0x1ba   :  { %v309_v0 = vadd.f32 %v401_v60, %v280_v61  ;;  %v283_v1 = vadd.f32 %v282_v63, %v204_v49  ;;  %v456_v2 = vpop.f32.mrb[7].mxu0 }
 0x1bc   :  { %v315_v3 = vsub.f32 0.0, %v309_v0  ;;  %v310_v4 = vadd.f32 %v401_v60, %v283_v1 }
 0x1be   :  { %v321_v5 = vmul.f32 1.442695, %v315_v3  ;;  %v316_v6 = vsub.f32 0.0, %v310_v4 }
 0x1bf   :  { %v287_v7 = vpop.f32.mrb[8].mxu0 }
 0x1c0   :  { %477 = vpow2.f32 %v321_v5  ;;  %v323_v8 = vmul.f32 1.442695, %v316_v6  ;;  %v288_v9 = vadd.f32 %v287_v7, %v209_v51  ;;  %v459_v10 = vpop.f32.mrb[9].mxu0 }
 0x1c1   :  { %v290_v11 = vpop.f32.mrb[10].mxu0 }
 0x1c2   :  { %479 = vpow2.f32 %v323_v8  ;;  %v311_v12 = vadd.f32 %v401_v60, %v288_v9  ;;  %v291_v13 = vadd.f32 %v290_v11, %v212_v53  ;;  %v460_v14 = vpop.f32.mrb[11].mxu0 }
 0x1c4   :  { %v317_v17 = vsub.f32 0.0, %v311_v12  ;;  %v312_v18 = vadd.f32 %v401_v60, %v291_v13 }
 0x1c6   :  { %v325_v21 = vmul.f32 1.442695, %v317_v17  ;;  %v318_v24 = vsub.f32 0.0, %v312_v18 }
 0x1c7   :  { %v295_v25 = vpop.f32.mrb[12].mxu0 }
 0x1c8   :  { %481 = vpow2.f32 %v325_v21  ;;  %v327_v26 = vmul.f32 1.442695, %v318_v24  ;;  %v296_v27 = vadd.f32 %v295_v25, %v217_v55  ;;  %v463_v28 = vpop.f32.mrb[13].mxu0 }
 0x1c9   :  { %v298_v29 = vpop.f32.mrb[14].mxu0 }
 0x1ca   :  { %v478_v30 = vpop.eup %477  ;;  %483 = vpow2.f32 %v327_v26  ;;  %v313_v31 = vadd.f32 %v401_v60, %v296_v27  ;;  %v299_v34 = vadd.f32 %v298_v29, %v220_v57  ;;  %v464_v35 = vpop.f32.mrb[15].mxu0 }
 0x1cb   :  { %v333_v36 = vadd.f32 1.0, %v478_v30 }
 0x1cc   :  { %v480_v37 = vpop.eup %479  ;;  %v319_v40 = vsub.f32 0.0, %v313_v31  ;;  %v314_v41 = vadd.f32 %v401_v60, %v299_v34 }
 0x1cd   :  { %485 = vrcp.f32 %v333_v36  ;;  %v334_v42 = vadd.f32 1.0, %v480_v37 }
 0x1ce   :  { %v329_v43 = vmul.f32 1.442695, %v319_v40  ;;  %v320_v46 = vsub.f32 0.0, %v314_v41 }
 0x1cf   :  { %487 = vrcp.f32 %v334_v42 }
 0x1d0   :  { %489 = vpow2.f32 %v329_v43  ;;  %v331_v47 = vmul.f32 1.442695, %v320_v46 }
 0x1d2   :  { %v482_v48 = vpop.eup %481  ;;  %491 = vpow2.f32 %v331_v47 }
 0x1d3   :  { %v335_v49 = vadd.f32 1.0, %v482_v48 }
 0x1d4   :  { %v484_v50 = vpop.eup %483 }
 0x1d5   :  { %493 = vrcp.f32 %v335_v49  ;;  %v336_v51 = vadd.f32 1.0, %v484_v50 }
 0x1d7   :  { %v486_v52 = vpop.eup %485  ;;  %495 = vrcp.f32 %v336_v51 }
 0x1d8   :  { %v357_v53 = vsub.f32 1.0, %v486_v52  ;;  %v351_v56 = vmul.f32 %v486_v52, %v646_v32 }
 0x1d9   :  { %v488_v54 = vpop.eup %487 }
 0x1da   :  { %v490_v55 = vpop.eup %489  ;;  %v363_v57 = vmul.f32 %v357_v53, %v600_v15  ;;  %v358_v58 = vsub.f32 1.0, %v488_v54  ;;  %v352_v62 = vmul.f32 %v488_v54, %v648_v33 }
 0x1db   :  { %v337_v59 = vadd.f32 1.0, %v490_v55 }
 0x1dc   :  { %v492_v60 = vpop.eup %491  ;;  %v369_v61 = vadd.f32 %v363_v57, %v351_v56  ;;  %v364_v63 = vmul.f32 %v358_v58, %v605_v16 }
 0x1dd   :  { %497 = vrcp.f32 %v337_v59  ;;  %v338_v0 = vadd.f32 1.0, %v492_v60 }
 0x1de   :  { %375 = vst.msk [vmem:[%s717_s7] sm:$0xff] %vm59_vm1, %v369_v61  ;;  %v370_v1 = vadd.f32 %v364_v63, %v352_v62 }
 0x1df   :  { %v494_v2 = vpop.eup %493  ;;  %499 = vrcp.f32 %v338_v0 }
 0x1e0   :  { %376 = vst.msk [vmem:[%s717_s7 + $0x8] sm:$0xff] %vm59_vm1, %v370_v1  ;;  %v359_v15 = vsub.f32 1.0, %v494_v2  ;;  %v353_v33 = vmul.f32 %v494_v2, %v655_v38 }
 0x1e1   :  { %v496_v32 = vpop.eup %495 }
 0x1e2   :  { %v365_v16 = vmul.f32 %v359_v15, %v618_v19  ;;  %v360_v3 = vsub.f32 1.0, %v496_v32  ;;  %v354_v5 = vmul.f32 %v496_v32, %v657_v39 }
 0x1e4   :  { %v371_v4 = vadd.f32 %v365_v16, %v353_v33  ;;  %v366_v6 = vmul.f32 %v360_v3, %v623_v20 }
 0x1e6   :  { %377 = vst.msk [vmem:[%s717_s7 + $0x10] sm:$0xff] %vm59_vm1, %v371_v4  ;;  %v372_v7 = vadd.f32 %v366_v6, %v354_v5 }
 0x1e7   :  { %v498_v8 = vpop.eup %497 }
 0x1e8   :  { %378 = vst.msk [vmem:[%s717_s7 + $0x18] sm:$0xff] %vm59_vm1, %v372_v7  ;;  %v361_v38 = vsub.f32 1.0, %v498_v8  ;;  %v355_v9 = vmul.f32 %v498_v8, %v664_v44 }
 0x1e9   :  { %v500_v19 = vpop.eup %499 }
 0x1ea   :  { %v367_v39 = vmul.f32 %v361_v38, %v633_v22  ;;  %v362_v10 = vsub.f32 1.0, %v500_v19  ;;  %v356_v11 = vmul.f32 %v500_v19, %v666_v45 }
 0x1ec   :  { %v373_v20 = vadd.f32 %v367_v39, %v355_v9  ;;  %v368_v12 = vmul.f32 %v362_v10, %v638_v23 }
 0x1ee   :  { %379 = vst.msk [vmem:[%s717_s7 + $0x20] sm:$0xff] %vm59_vm1, %v373_v20  ;;  %v374_v13 = vadd.f32 %v368_v12, %v356_v11 }
 0x1f0   :  { %380 = vst.msk [vmem:[%s717_s7 + $0x28] sm:$0xff] %vm59_vm1, %v374_v13 }

// kernel: encoder_forward.57
= control target key start
LH: loop header
LB: loop body
LE: loop exit
PB: predicated region body
PF: predicated region fallthrough
CT: control target
= control target key end

     0   :  { %vm31_vm0 = vcmask 261120   ;;  %v367_v43 = vmov 0.0   ;;  %vm368_vm1 = vmmov 0   ;;  %s511_s0 = inlined_call_operand.vmem [shape: f32[48,32], index: 0, kind: input, shape index: {}]   ;;  %s512_s3 = inlined_call_operand.vmem [shape: bf16[32,128], index: 3, kind: input, shape index: {}]   ;;  %s513_s1 = inlined_call_operand.vmem [shape: f32[1,32], index: 1, kind: input, shape index: {}]   ;;  %s514_s2 = inlined_call_operand.vmem [shape: f32[1,32], index: 2, kind: input, shape index: {}]   ;;  %s515_s4 = inlined_call_operand.vmem [shape: f32[1,128], index: 4, kind: input, shape index: {}]   ;;  %s516_s5 = inlined_call_operand.vmem [shape: f32[48,128], index: 5, kind: output, shape index: {}]  }
   0x1   :  { %v27_v0 = vld [vmem:[%s511_s0 + $0x10] sm:$0xff]  ;;  %v28_v1 = vld [vmem:[%s511_s0 + $0x18] sm:$0xff]  ;;  %v25_v2 = vld [vmem:[%s511_s0] sm:$0xff]  ;;  %335 = vmatprep.subr.bf16.mxu1 %v367_v43  ;;  %319 = vmatprep.subr.bf16.mxu0 %v367_v43 }
   0x2   :  { %v38_v3 = vsel %vm31_vm0, %v27_v0, 0.0  ;;  %v32_v4 = vsel %vm31_vm0, %v25_v2, 0.0  ;;  %v26_v5 = vld [vmem:[%s511_s0 + $0x8] sm:$0xff]  ;;  %v41_v6 = vsel %vm31_vm0, %v28_v1, 0.0  ;;  %v29_v8 = vld [vmem:[%s511_s0 + $0x20] sm:$0xff]  ;;  %327 = vmatprep.mubr.msk.bf16.mxu1 %vm368_vm1, %v367_v43  ;;  %323 = vmatprep.mubr.msk.bf16.mxu0 %vm368_vm1, %v367_v43 }
   0x3   :  { %39 = vadd.xlane.f32.xlu0 %v38_v3  ;;  %33 = vadd.xlane.f32.xlu1 %v32_v4  ;;  %v35_v7 = vsel %vm31_vm0, %v26_v5, 0.0  ;;  %v30_v9 = vld [vmem:[%s511_s0 + $0x28] sm:$0xff]  ;;  %v44_v10 = vsel %vm31_vm0, %v29_v8, 0.0  ;;  %v341_v42 = vld [vmem:[%s512_s3] sm:$0xff]  }
   0x4   :  { %v47_v11 = vsel %vm31_vm0, %v30_v9, 0.0  ;;  %337 = vmatpush3.bf16.msra.mxu1 %v341_v42  ;;  %320 = vmatpush3.bf16.msra.mxu0 %v341_v42  ;;  %v342_v44 = vld [vmem:[%s512_s3 + $0x8] sm:$0xff]   ;;  %v306_v63 = vld [vmem:[%s513_s1] ss:$0 sm:$0xff] }
   0x5   :  { %336 = vmatprep.subr.bf16.mxu1 %v367_v43  ;;  %321 = vmatprep.subr.bf16.mxu0 %v367_v43 }
   0x7   :  { %42 = vadd.xlane.f32.xlu0 %v41_v6  ;;  %36 = vadd.xlane.f32.xlu1 %v35_v7 }
   0x8   :  { %338 = vmatpush3.bf16.msra.mxu1 %v342_v44  ;;  %322 = vmatpush3.bf16.msra.mxu0 %v342_v44 }
   0xb   :  { %45 = vadd.xlane.f32.xlu0 %v44_v10  ;;  %48 = vadd.xlane.f32.xlu1 %v47_v11 }
  0x90   :  { %v40_v12 = vpop.xlane.xlu0 %39  ;;  %v34_v13 = vpop.xlane.xlu1 %33 }
  0x91   :  { %v53_v14 = vmul.f32 0.03125, %v40_v12  ;;  %v51_v15 = vmul.f32 0.03125, %v34_v13 }
  0x93   :  { %v423_v16 = vsub.f32 %v27_v0, %v53_v14  ;;  %v425_v17 = vsub.f32 %v25_v2, %v51_v15  ;;  %v307_v2 = vld [vmem:[%s514_s2] ss:$0 sm:$0xff] }
  0x94   :  { %v43_v18 = vpop.xlane.xlu0 %42  ;;  %v37_v19 = vpop.xlane.xlu1 %36 }
  0x95   :  { %v54_v20 = vmul.f32 0.03125, %v43_v18  ;;  %v65_v21 = vmul.f32 %v423_v16, %v423_v16  ;;  %v52_v22 = vmul.f32 0.03125, %v37_v19  ;;  %v63_v23 = vmul.f32 %v425_v17, %v425_v17 }
  0x97   :  { %v431_v24 = vsub.f32 %v28_v1, %v54_v20  ;;  %v75_v25 = vsel %vm31_vm0, %v65_v21, 0.0  ;;  %v434_v26 = vsub.f32 %v26_v5, %v52_v22  ;;  %v69_v28 = vsel %vm31_vm0, %v63_v23, 0.0 }
  0x98   :  { %76 = vadd.xlane.f32.xlu0 %v75_v25  ;;  %v46_v27 = vpop.xlane.xlu0 %45  ;;  %v49_v29 = vpop.xlane.xlu1 %48 }
  0x99   :  { %v55_v30 = vmul.f32 0.03125, %v46_v27  ;;  %v66_v31 = vmul.f32 %v431_v24, %v431_v24  ;;  %v56_v32 = vmul.f32 0.03125, %v49_v29  ;;  %v64_v33 = vmul.f32 %v434_v26, %v434_v26 }
  0x9b   :  { %v441_v34 = vsub.f32 %v29_v8, %v55_v30  ;;  %v78_v35 = vsel %vm31_vm0, %v66_v31, 0.0  ;;  %v444_v36 = vsub.f32 %v30_v9, %v56_v32  ;;  %v72_v38 = vsel %vm31_vm0, %v64_v33, 0.0 }
  0x9c   :  { %79 = vadd.xlane.f32.xlu1 %v78_v35  ;;  %70 = vadd.xlane.f32.xlu0 %v69_v28 }
  0x9d   :  { %v67_v37 = vmul.f32 %v441_v34, %v441_v34  ;;  %v68_v39 = vmul.f32 %v444_v36, %v444_v36 }
  0x9f   :  { %v81_v40 = vsel %vm31_vm0, %v67_v37, 0.0  ;;  %v84_v41 = vsel %vm31_vm0, %v68_v39, 0.0 }
  0xa0   :  { %82 = vadd.xlane.f32.xlu0 %v81_v40  ;;  %73 = vadd.xlane.f32.xlu1 %v72_v38 }
  0xa4   :  { %85 = vadd.xlane.f32.xlu1 %v84_v41 }
 0x125   :  { %v77_v45 = vpop.xlane.xlu0 %76 }
 0x126   :  { %v89_v46 = vmul.f32 0.03125, %v77_v45 }
 0x128   :  { %v95_v47 = vadd.f32 1e-06, %v89_v46 }
 0x129   :  { %v71_v48 = vpop.xlane.xlu0 %70  ;;  %v80_v49 = vpop.xlane.xlu1 %79 }
 0x12a   :  { %343 = vrsqrt.f32 %v95_v47  ;;  %v87_v50 = vmul.f32 0.03125, %v71_v48  ;;  %v90_v51 = vmul.f32 0.03125, %v80_v49 }
 0x12c   :  { %v93_v52 = vadd.f32 1e-06, %v87_v50  ;;  %v96_v53 = vadd.f32 1e-06, %v90_v51 }
 0x12d   :  { %v83_v54 = vpop.xlane.xlu0 %82  ;;  %v74_v55 = vpop.xlane.xlu1 %73 }
 0x12e   :  { %345 = vrsqrt.f32 %v93_v52  ;;  %v91_v56 = vmul.f32 0.03125, %v83_v54  ;;  %v88_v57 = vmul.f32 0.03125, %v74_v55 }
 0x12f   :  { %347 = vrsqrt.f32 %v96_v53 }
 0x130   :  { %v97_v58 = vadd.f32 1e-06, %v91_v56  ;;  %v94_v59 = vadd.f32 1e-06, %v88_v57 }
 0x131   :  { %v86_v60 = vpop.xlane.xlu1 %85 }
 0x132   :  { %349 = vrsqrt.f32 %v97_v58  ;;  %v92_v61 = vmul.f32 0.03125, %v86_v60 }
 0x133   :  { %351 = vrsqrt.f32 %v94_v59 }
 0x134   :  { %v344_v62 = vpop.eup %343  ;;  %v98_v0 = vadd.f32 1e-06, %v92_v61 }
 0x135   :  { %v107_v1 = vmul.f32 %v344_v62, %v423_v16 }
 0x136   :  { %353 = vrsqrt.f32 %v98_v0 }
 0x137   :  { %v120_v3 = vmul.f32 %v306_v63, %v107_v1 }
 0x138   :  { %v346_v4 = vpop.eup %345 }
 0x139   :  { %v348_v5 = vpop.eup %347  ;;  %v133_v6 = vadd.f32 %v307_v2, %v120_v3  ;;  %v105_v7 = vmul.f32 %v346_v4, %v425_v17 }
 0x13a   :  { %v108_v8 = vmul.f32 %v348_v5, %v431_v24 }
 0x13b   :  { %139 = vst.msk [vmem:[#allocation2 + $0x10] sm:$0xff] %vm31_vm0, %v133_v6  ;;  %v118_v9 = vmul.f32 %v306_v63, %v105_v7 }
 0x13c   :  { %v350_v10 = vpop.eup %349  ;;  %v121_v11 = vmul.f32 %v306_v63, %v108_v8 }
 0x13d   :  { %v352_v12 = vpop.eup %351  ;;  %v131_v13 = vadd.f32 %v307_v2, %v118_v9  ;;  %v109_v14 = vmul.f32 %v350_v10, %v441_v34  ;;  %v308_v34 = vld [vmem:[%s515_s4] ss:$0 sm:$0xff] }
 0x13e   :  { %v134_v15 = vadd.f32 %v307_v2, %v121_v11  ;;  %v106_v16 = vmul.f32 %v352_v12, %v434_v26 }
 0x13f   :  { %137 = vst.msk [vmem:[#allocation2] sm:$0xff] %vm31_vm0, %v131_v13  ;;  %v122_v18 = vmul.f32 %v306_v63, %v109_v14 }
 0x140   :  { %v354_v19 = vpop.eup %353  ;;  %140 = vst.msk [vmem:[#allocation2 + $0x18] sm:$0xff] %vm31_vm0, %v134_v15  ;;  %v119_v17 = vmul.f32 %v306_v63, %v106_v16 }
 0x141   :  { %v135_v20 = vadd.f32 %v307_v2, %v122_v18  ;;  %v110_v21 = vmul.f32 %v354_v19, %v444_v36 }
 0x142   :  { %v132_v22 = vadd.f32 %v307_v2, %v119_v17  ;;  %v145_v25 = vld [vmem:[#allocation2 + $0x10] sm:$0xff] }
 0x143   :  { %141 = vst.msk [vmem:[#allocation2 + $0x20] sm:$0xff] %vm31_vm0, %v135_v20  ;;  %v123_v23 = vmul.f32 %v306_v63, %v110_v21 }
 0x144   :  { %138 = vst.msk [vmem:[#allocation2 + $0x8] sm:$0xff] %vm31_vm0, %v132_v22 }
 0x145   :  { %v136_v24 = vadd.f32 %v307_v2, %v123_v23 }
 0x146   :  { %v143_v28 = vld [vmem:[#allocation2] sm:$0xff] }
 0x147   :  { %142 = vst.msk [vmem:[#allocation2 + $0x28] sm:$0xff] %vm31_vm0, %v136_v24  ;;  %v146_v26 = vld [vmem:[#allocation2 + $0x18] sm:$0xff] }
 0x148   :  { %v150_v27 = vpack.c.bf16 %v146_v26, %v145_v25 }
 0x14a   :  { %328 = vmatmul.mubr.msk.bf16.vlgmr.msra.gmra.mrb[0].mxu1 %vm31_vm0, %v150_v27  ;;  %v147_v31 = vld [vmem:[#allocation2 + $0x20] sm:$0xff] }
 0x14b   :  { %v144_v29 = vld [vmem:[#allocation2 + $0x8] sm:$0xff]  ;;  %331 = vmatprep.mubr.msk.bf16.mxu1 %vm368_vm1, %v367_v43 }
 0x14c   :  { %v149_v30 = vpack.c.bf16 %v144_v29, %v143_v28 }
 0x14e   :  { %324 = vmatmul.mubr.msk.bf16.vlgmr.msra.gmra.mrb[0].mxu0 %vm31_vm0, %v149_v30  ;;  %v148_v32 = vld [vmem:[#allocation2 + $0x28] sm:$0xff] }
 0x14f   :  { %v151_v33 = vpack.c.bf16 %v148_v32, %v147_v31 }
 0x152   :  { %332 = vmatmul.mubr.msk.bf16.gmra.mrb[4].mxu1 %vm31_vm0, %v151_v33 }
 0x21d   :  { %v227_v35 = vpop.f32.mrb[0].mxu1 }
 0x21e   :  { %v228_v36 = vadd.f32 %v308_v34, %v227_v35  ;;  %v329_v37 = vpop.f32.mrb[1].mxu1 }
 0x21f   :  { %v230_v38 = vpop.f32.mrb[2].mxu1 }
 0x220   :  { %v250_v39 = vmul.f32 0.044715, %v228_v36  ;;  %v231_v40 = vadd.f32 %v308_v34, %v230_v38  ;;  %v330_v41 = vpop.f32.mrb[3].mxu1  ;;  %v244_v20 = vmul.f32 0.5, %v228_v36 }
 0x221   :  { %v219_v42 = vpop.f32.mrb[0].mxu0 }
 0x222   :  { %v256_v43 = vmul.f32 %v250_v39, %v228_v36  ;;  %v251_v44 = vmul.f32 0.044715, %v231_v40  ;;  %v220_v45 = vadd.f32 %v308_v34, %v219_v42  ;;  %v325_v46 = vpop.f32.mrb[1].mxu0  ;;  %v245_v24 = vmul.f32 0.5, %v231_v40 }
 0x223   :  { %v222_v47 = vpop.f32.mrb[2].mxu0 }
 0x224   :  { %v262_v48 = vmul.f32 %v256_v43, %v228_v36  ;;  %v257_v49 = vmul.f32 %v251_v44, %v231_v40  ;;  %v248_v50 = vmul.f32 0.044715, %v220_v45  ;;  %v326_v51 = vpop.f32.mrb[3].mxu0  ;;  %v223_v52 = vadd.f32 %v308_v34, %v222_v47 }
 0x225   :  { %v235_v53 = vpop.f32.mrb[4].mxu1  ;;  %v242_v28 = vmul.f32 0.5, %v220_v45 }
 0x226   :  { %v268_v54 = vadd.f32 %v262_v48, %v228_v36  ;;  %v263_v55 = vmul.f32 %v257_v49, %v231_v40  ;;  %v254_v56 = vmul.f32 %v248_v50, %v220_v45  ;;  %v236_v57 = vadd.f32 %v308_v34, %v235_v53  ;;  %v333_v58 = vpop.f32.mrb[5].mxu1 }
 0x227   :  { %v249_v59 = vmul.f32 0.044715, %v223_v52  ;;  %v238_v60 = vpop.f32.mrb[6].mxu1  ;;  %v243_v32 = vmul.f32 0.5, %v223_v52 }
 0x228   :  { %v274_v61 = vmul.f32 0.7978846, %v268_v54  ;;  %v269_v62 = vadd.f32 %v263_v55, %v231_v40  ;;  %v260_v63 = vmul.f32 %v254_v56, %v220_v45  ;;  %v334_v0 = vpop.f32.mrb[7].mxu1  ;;  %v252_v2 = vmul.f32 0.044715, %v236_v57 }
 0x229   :  { %v255_v1 = vmul.f32 %v249_v59, %v223_v52  ;;  %v239_v3 = vadd.f32 %v308_v34, %v238_v60  ;;  %v246_v36 = vmul.f32 0.5, %v236_v57 }
 0x22a   :  { %355 = vtanh.f32 %v274_v61  ;;  %v275_v4 = vmul.f32 0.7978846, %v269_v62  ;;  %v266_v5 = vadd.f32 %v260_v63, %v220_v45  ;;  %v258_v7 = vmul.f32 %v252_v2, %v236_v57 }
 0x22b   :  { %v261_v6 = vmul.f32 %v255_v1, %v223_v52  ;;  %v253_v8 = vmul.f32 0.044715, %v239_v3  ;;  %v247_v40 = vmul.f32 0.5, %v239_v3 }
 0x22c   :  { %357 = vtanh.f32 %v275_v4  ;;  %v272_v9 = vmul.f32 0.7978846, %v266_v5  ;;  %v264_v11 = vmul.f32 %v258_v7, %v236_v57 }
 0x22d   :  { %v267_v10 = vadd.f32 %v261_v6, %v223_v52  ;;  %v259_v12 = vmul.f32 %v253_v8, %v239_v3 }
 0x22e   :  { %359 = vtanh.f32 %v272_v9  ;;  %v270_v14 = vadd.f32 %v264_v11, %v236_v57 }
 0x22f   :  { %v273_v13 = vmul.f32 0.7978846, %v267_v10  ;;  %v265_v15 = vmul.f32 %v259_v12, %v239_v3 }
 0x230   :  { %v276_v16 = vmul.f32 0.7978846, %v270_v14 }
 0x231   :  { %361 = vtanh.f32 %v273_v13  ;;  %v271_v18 = vadd.f32 %v265_v15, %v239_v3 }
 0x232   :  { %363 = vtanh.f32 %v276_v16 }
 0x233   :  { %v277_v19 = vmul.f32 0.7978846, %v271_v18 }
 0x234   :  { %v356_v17 = vpop.eup %355 }
 0x235   :  { %v286_v21 = vadd.f32 1.0, %v356_v17  ;;  %365 = vtanh.f32 %v277_v19 }
 0x236   :  { %v358_v22 = vpop.eup %357 }
 0x237   :  { %v292_v23 = vmul.f32 %v286_v21, %v244_v20  ;;  %v287_v25 = vadd.f32 1.0, %v358_v22 }
 0x238   :  { %v360_v26 = vpop.eup %359 }
 0x239   :  { %298 = vst [vmem:[%s516_s5 + $0x10] sm:$0xff] %v292_v23  ;;  %v293_v27 = vmul.f32 %v287_v25, %v245_v24  ;;  %v284_v29 = vadd.f32 1.0, %v360_v26 }
 0x23b   :  { %v362_v30 = vpop.eup %361  ;;  %299 = vst [vmem:[%s516_s5 + $0x18] sm:$0xff] %v293_v27  ;;  %v290_v31 = vmul.f32 %v284_v29, %v242_v28 }
 0x23c   :  { %v285_v33 = vadd.f32 1.0, %v362_v30  ;;  %v364_v34 = vpop.eup %363 }
 0x23d   :  { %296 = vst [vmem:[%s516_s5] sm:$0xff] %v290_v31  ;;  %v288_v37 = vadd.f32 1.0, %v364_v34 }
 0x23e   :  { %v291_v35 = vmul.f32 %v285_v33, %v243_v32 }
 0x23f   :  { %v366_v38 = vpop.eup %365  ;;  %v294_v39 = vmul.f32 %v288_v37, %v246_v36 }
 0x240   :  { %297 = vst [vmem:[%s516_s5 + $0x8] sm:$0xff] %v291_v35  ;;  %v289_v41 = vadd.f32 1.0, %v366_v38 }
 0x241   :  { %300 = vst [vmem:[%s516_s5 + $0x20] sm:$0xff] %v294_v39 }
 0x242   :  { %v295_v42 = vmul.f32 %v289_v41, %v247_v40 }
 0x244   :  { %301 = vst [vmem:[%s516_s5 + $0x28] sm:$0xff] %v295_v42 }

// kernel: encoder_forward.58
= control target key start
LH: loop header
LB: loop body
LE: loop exit
PB: predicated region body
PF: predicated region fallthrough
CT: control target
= control target key end

     0   :  { %v252_v0 = vmov 0.0   ;;  %vm253_vm0 = vmmov 0   ;;  %vm167_vm1 = vcmask 261120   ;;  %s369_s1 = inlined_call_operand.vmem [shape: bf16[128,32], index: 1, kind: input, shape index: {}]   ;;  %s370_s0 = inlined_call_operand.vmem [shape: f32[48,128], index: 0, kind: input, shape index: {}]   ;;  %s371_s2 = inlined_call_operand.vmem [shape: f32[1,32], index: 2, kind: input, shape index: {}]   ;;  %s372_s3 = inlined_call_operand.vmem [shape: f32[48,32], index: 3, kind: input, shape index: {}]   ;;  %s373_s4 = inlined_call_operand.vmem [shape: f32[48,32], index: 4, kind: output, shape index: {}]  }
   0x1   :  { %226 = vmatprep.subr.bf16.mxu1 %v252_v0  ;;  %v244_v1 = vld [vmem:[%s369_s1] sm:$0xff]   ;;  %198 = vmatprep.subr.bf16.mxu0 %v252_v0  ;;  %v245_v2 = vld [vmem:[%s369_s1 + $0x8] sm:$0xff]   ;;  %v246_v3 = vld [vmem:[%s369_s1 + $0x10] sm:$0xff]  }
   0x2   :  { %218 = vmatprep.mubr.msk.bf16.mxu1 %vm253_vm0, %v252_v0  ;;  %214 = vmatprep.mubr.msk.bf16.mxu0 %vm253_vm0, %v252_v0  ;;  %v247_v4 = vld [vmem:[%s369_s1 + $0x18] sm:$0xff]   ;;  %v248_v5 = vld [vmem:[%s369_s1 + $0x20] sm:$0xff]   ;;  %v249_v6 = vld [vmem:[%s369_s1 + $0x28] sm:$0xff]  }
   0x3   :  { %234 = vmatpush3.bf16.msra.mxu1 %v244_v1  ;;  %199 = vmatpush3.bf16.msra.mxu0 %v244_v1  ;;  %v250_v7 = vld [vmem:[%s369_s1 + $0x30] sm:$0xff]   ;;  %v251_v8 = vld [vmem:[%s369_s1 + $0x38] sm:$0xff]   ;;  %v18_v11 = vld [vmem:[%s370_s0] sm:$0xff] }
   0x4   :  { %227 = vmatprep.subr.bf16.mxu1 %v252_v0  ;;  %200 = vmatprep.subr.bf16.mxu0 %v252_v0  ;;  %v20_v9 = vld [vmem:[%s370_s0 + $0x10] sm:$0xff]  ;;  %v21_v10 = vld [vmem:[%s370_s0 + $0x18] sm:$0xff]  ;;  %v19_v12 = vld [vmem:[%s370_s0 + $0x8] sm:$0xff] }
   0x5   :  { %v25_v13 = vpack.c.bf16 %v21_v10, %v20_v9  ;;  %v24_v14 = vpack.c.bf16 %v19_v12, %v18_v11  ;;  %v22_v15 = vld [vmem:[%s370_s0 + $0x20] sm:$0xff]  ;;  %v23_v16 = vld [vmem:[%s370_s0 + $0x28] sm:$0xff]  ;;  %v157_v20 = vld [vmem:[%s372_s3 + $0x10] sm:$0xff] }
   0x6   :  { %v26_v17 = vpack.c.bf16 %v23_v16, %v22_v15  ;;  %v178_v18 = vld [vmem:[%s371_s2] ss:$0 sm:$0xff]  ;;  %v158_v28 = vld [vmem:[%s372_s3 + $0x18] sm:$0xff]  ;;  %v156_v30 = vld [vmem:[%s372_s3 + $0x8] sm:$0xff] }
   0x7   :  { %235 = vmatpush3.bf16.msra.mxu1 %v245_v2  ;;  %201 = vmatpush3.bf16.msra.mxu0 %v245_v2  ;;  %v155_v22 = vld [vmem:[%s372_s3] sm:$0xff]  ;;  %v160_v44 = vld [vmem:[%s372_s3 + $0x28] sm:$0xff] }
   0x8   :  { %228 = vmatprep.subr.bf16.mxu1 %v252_v0  ;;  %202 = vmatprep.subr.bf16.mxu0 %v252_v0  ;;  %v159_v40 = vld [vmem:[%s372_s3 + $0x20] sm:$0xff] }
   0xb   :  { %236 = vmatpush3.bf16.msra.mxu1 %v246_v3  ;;  %203 = vmatpush3.bf16.msra.mxu0 %v246_v3 }
   0xc   :  { %229 = vmatprep.subr.bf16.mxu1 %v252_v0  ;;  %204 = vmatprep.subr.bf16.mxu0 %v252_v0 }
   0xf   :  { %237 = vmatpush3.bf16.msra.mxu1 %v247_v4  ;;  %205 = vmatpush3.bf16.msra.mxu0 %v247_v4 }
  0x10   :  { %230 = vmatprep.subr.bf16.mxu1 %v252_v0  ;;  %206 = vmatprep.subr.bf16.mxu0 %v252_v0 }
  0x13   :  { %238 = vmatpush3.bf16.msra.mxu1 %v248_v5  ;;  %207 = vmatpush3.bf16.msra.mxu0 %v248_v5 }
  0x14   :  { %231 = vmatprep.subr.bf16.mxu1 %v252_v0  ;;  %208 = vmatprep.subr.bf16.mxu0 %v252_v0 }
  0x17   :  { %239 = vmatpush3.bf16.msra.mxu1 %v249_v6  ;;  %209 = vmatpush3.bf16.msra.mxu0 %v249_v6 }
  0x18   :  { %232 = vmatprep.subr.bf16.mxu1 %v252_v0  ;;  %210 = vmatprep.subr.bf16.mxu0 %v252_v0 }
  0x1b   :  { %240 = vmatpush3.bf16.msra.mxu1 %v250_v7  ;;  %211 = vmatpush3.bf16.msra.mxu0 %v250_v7 }
  0x1c   :  { %233 = vmatprep.subr.bf16.mxu1 %v252_v0  ;;  %212 = vmatprep.subr.bf16.mxu0 %v252_v0 }
  0x1f   :  { %241 = vmatpush3.bf16.msra.mxu1 %v251_v8  ;;  %213 = vmatpush3.bf16.msra.mxu0 %v251_v8 }
  0x22   :  { %219 = vmatmul.mubr.bf16.vlgmr.msra.gmra.mrb[0].mxu1 %v25_v13  ;;  %215 = vmatmul.mubr.bf16.vlgmr.msra.gmra.mrb[0].mxu0 %v24_v14 }
  0x23   :  { %222 = vmatprep.mubr.msk.bf16.mxu1 %vm253_vm0, %v252_v0 }
  0x2a   :  { %223 = vmatmul.mubr.bf16.gmra.mrb[4].mxu1 %v26_v17 }
  0xf5   :  { %v140_v19 = vpop.f32.mrb[0].mxu1  ;;  %v132_v21 = vpop.f32.mrb[0].mxu0 }
  0xf6   :  { %v141_v23 = vadd.f32 %v178_v18, %v140_v19  ;;  %v220_v24 = vpop.f32.mrb[1].mxu1  ;;  %v133_v25 = vadd.f32 %v178_v18, %v132_v21  ;;  %v216_v26 = vpop.f32.mrb[1].mxu0 }
  0xf7   :  { %v143_v27 = vpop.f32.mrb[2].mxu1  ;;  %v135_v29 = vpop.f32.mrb[2].mxu0 }
  0xf8   :  { %v163_v31 = vadd.f32 %v157_v20, %v141_v23  ;;  %v144_v32 = vadd.f32 %v178_v18, %v143_v27  ;;  %v221_v33 = vpop.f32.mrb[3].mxu1  ;;  %v161_v34 = vadd.f32 %v155_v22, %v133_v25  ;;  %v136_v35 = vadd.f32 %v178_v18, %v135_v29  ;;  %v217_v36 = vpop.f32.mrb[3].mxu0 }
  0xfa   :  { %170 = vst.msk [vmem:[%s373_s4 + $0x10] sm:$0xff] %vm167_vm1, %v163_v31  ;;  %v164_v37 = vadd.f32 %v158_v28, %v144_v32  ;;  %168 = vst.msk [vmem:[%s373_s4] sm:$0xff] %vm167_vm1, %v161_v34  ;;  %v162_v38 = vadd.f32 %v156_v30, %v136_v35 }
  0xfc   :  { %171 = vst.msk [vmem:[%s373_s4 + $0x18] sm:$0xff] %vm167_vm1, %v164_v37  ;;  %169 = vst.msk [vmem:[%s373_s4 + $0x8] sm:$0xff] %vm167_vm1, %v162_v38 }
  0xfd   :  { %v148_v39 = vpop.f32.mrb[4].mxu1 }
  0xfe   :  { %v149_v41 = vadd.f32 %v178_v18, %v148_v39  ;;  %v224_v42 = vpop.f32.mrb[5].mxu1 }
  0xff   :  { %v151_v43 = vpop.f32.mrb[6].mxu1 }
 0x100   :  { %v165_v45 = vadd.f32 %v159_v40, %v149_v41  ;;  %v152_v46 = vadd.f32 %v178_v18, %v151_v43  ;;  %v225_v47 = vpop.f32.mrb[7].mxu1 }
 0x102   :  { %172 = vst.msk [vmem:[%s373_s4 + $0x20] sm:$0xff] %vm167_vm1, %v165_v45  ;;  %v166_v48 = vadd.f32 %v160_v44, %v152_v46 }
 0x104   :  { %173 = vst.msk [vmem:[%s373_s4 + $0x28] sm:$0xff] %vm167_vm1, %v166_v48 }

// kernel: encoder_forward.59
= control target key start
LH: loop header
LB: loop body
LE: loop exit
PB: predicated region body
PF: predicated region fallthrough
CT: control target
= control target key end

     0   :  { %vm21_vm0 = vcmask 261120   ;;  %s277_s0 = inlined_call_operand.vmem [shape: f32[48,32], index: 0, kind: input, shape index: {}]   ;;  %s278_s1 = inlined_call_operand.vmem [shape: f32[1,32], index: 1, kind: input, shape index: {}]   ;;  %s279_s2 = inlined_call_operand.vmem [shape: f32[1,32], index: 2, kind: input, shape index: {}]   ;;  %s280_s3 = inlined_call_operand.hbm [shape: f32[48,32], index: 3, kind: output, shape index: {}]  }
   0x1   :  { %v15_v0 = vld [vmem:[%s277_s0] sm:$0xff]  ;;  %v17_v1 = vld [vmem:[%s277_s0 + $0x10] sm:$0xff]  ;;  %v16_v2 = vld [vmem:[%s277_s0 + $0x8] sm:$0xff] }
   0x2   :  { %v22_v3 = vsel %vm21_vm0, %v15_v0, 0.0  ;;  %v28_v4 = vsel %vm21_vm0, %v17_v1, 0.0  ;;  %v18_v5 = vld [vmem:[%s277_s0 + $0x18] sm:$0xff] }
   0x3   :  { %23 = vadd.xlane.f32.xlu0 %v22_v3  ;;  %29 = vadd.xlane.f32.xlu1 %v28_v4 }
   0x4   :  { %8 = vsyncpa [#allocation3], 0  ;;  %v25_v6 = vsel %vm21_vm0, %v16_v2, 0.0  ;;  %v31_v7 = vsel %vm21_vm0, %v18_v5, 0.0  ;;  %v19_v8 = vld [vmem:[%s277_s0 + $0x20] sm:$0xff]  ;;  %v20_v9 = vld [vmem:[%s277_s0 + $0x28] sm:$0xff] }
   0x5   :  { %v34_v10 = vsel %vm21_vm0, %v19_v8, 0.0  ;;  %v37_v11 = vsel %vm21_vm0, %v20_v9, 0.0  ;;  %v149_v60 = vld [vmem:[%s278_s1] ss:$0 sm:$0xff]  ;;  %s190_s1 = smov [#allocation2]  }
   0x6   :  { %v150_v63 = vld [vmem:[%s279_s2] ss:$0 sm:$0xff]  ;;  %s138_s2 = sshll.u32 %s190_s1, 4  ;;  %s139_s2 = int_to_ptr.vmem [resolvable:$true] %s138_s2 }
   0x7   :  { %26 = vadd.xlane.f32.xlu0 %v25_v6  ;;  %32 = vadd.xlane.f32.xlu1 %v31_v7  ;;  %s166_s27 = scalar_lea.vmem %s139_s2, 768  ;;  %p171_p1 = scmp.lt.s32.totalorder %s139_s2, %s139_s2 }
   0x8   :  { %p167_p0 = scmp.ne.s32.totalorder %s139_s2, %s166_s27  ;;  %p172_p2 = scmp.lt.s32.totalorder %s166_s27, %s166_s27 }
   0xa   :  { %p173_p3 = por %p172_p2, %p171_p1 }
   0xb   :  { %35 = vadd.xlane.f32.xlu0 %v34_v10  ;;  %38 = vadd.xlane.f32.xlu1 %v37_v11 }
   0xc   :  { %p174_p4 = pnand %p173_p3, %p167_p0 }
  0x90   :  { %v24_v12 = vpop.xlane.xlu0 %23  ;;  %v30_v13 = vpop.xlane.xlu1 %29 }
  0x91   :  { %v41_v14 = vmul.f32 0.03125, %v24_v12  ;;  %v43_v15 = vmul.f32 0.03125, %v30_v13 }
  0x93   :  { %v47_v16 = vsub.f32 %v15_v0, %v41_v14  ;;  %v237_v17 = vsub.f32 %v17_v1, %v43_v15 }
  0x94   :  { %v27_v18 = vpop.xlane.xlu0 %26  ;;  %v33_v19 = vpop.xlane.xlu1 %32 }
  0x95   :  { %v42_v20 = vmul.f32 0.03125, %v27_v18  ;;  %v44_v21 = vmul.f32 0.03125, %v33_v19  ;;  %v53_v22 = vmul.f32 %v47_v16, %v47_v16  ;;  %v55_v23 = vmul.f32 %v237_v17, %v237_v17 }
  0x97   :  { %v48_v24 = vsub.f32 %v16_v2, %v42_v20  ;;  %v241_v25 = vsub.f32 %v18_v5, %v44_v21  ;;  %v59_v26 = vsel %vm21_vm0, %v53_v22, 0.0  ;;  %v65_v29 = vsel %vm21_vm0, %v55_v23, 0.0 }
  0x98   :  { %60 = vadd.xlane.f32.xlu0 %v59_v26  ;;  %v36_v27 = vpop.xlane.xlu0 %35  ;;  %v39_v28 = vpop.xlane.xlu1 %38 }
  0x99   :  { %v45_v30 = vmul.f32 0.03125, %v36_v27  ;;  %v46_v31 = vmul.f32 0.03125, %v39_v28  ;;  %v54_v32 = vmul.f32 %v48_v24, %v48_v24  ;;  %v56_v33 = vmul.f32 %v241_v25, %v241_v25 }
  0x9b   :  { %v51_v34 = vsub.f32 %v19_v8, %v45_v30  ;;  %v52_v35 = vsub.f32 %v20_v9, %v46_v31  ;;  %v62_v36 = vsel %vm21_vm0, %v54_v32, 0.0  ;;  %v68_v37 = vsel %vm21_vm0, %v56_v33, 0.0 }
  0x9c   :  { %66 = vadd.xlane.f32.xlu0 %v65_v29  ;;  %63 = vadd.xlane.f32.xlu1 %v62_v36 }
  0x9d   :  { %v57_v38 = vmul.f32 %v51_v34, %v51_v34  ;;  %v58_v39 = vmul.f32 %v52_v35, %v52_v35 }
  0x9f   :  { %v71_v40 = vsel %vm21_vm0, %v57_v38, 0.0  ;;  %v74_v41 = vsel %vm21_vm0, %v58_v39, 0.0 }
  0xa0   :  { %69 = vadd.xlane.f32.xlu1 %v68_v37  ;;  %72 = vadd.xlane.f32.xlu0 %v71_v40 }
  0xa4   :  { %75 = vadd.xlane.f32.xlu1 %v74_v41 }
 0x125   :  { %v61_v42 = vpop.xlane.xlu0 %60 }
 0x126   :  { %v77_v43 = vmul.f32 0.03125, %v61_v42 }
 0x128   :  { %v83_v44 = vadd.f32 1e-06, %v77_v43 }
 0x129   :  { %v64_v45 = vpop.xlane.xlu1 %63  ;;  %v67_v46 = vpop.xlane.xlu0 %66 }
 0x12a   :  { %154 = vrsqrt.f32 %v83_v44  ;;  %v78_v47 = vmul.f32 0.03125, %v64_v45  ;;  %v79_v48 = vmul.f32 0.03125, %v67_v46 }
 0x12c   :  { %v84_v49 = vadd.f32 1e-06, %v78_v47  ;;  %v85_v50 = vadd.f32 1e-06, %v79_v48 }
 0x12d   :  { %v70_v51 = vpop.xlane.xlu1 %69  ;;  %v73_v52 = vpop.xlane.xlu0 %72 }
 0x12e   :  { %156 = vrsqrt.f32 %v84_v49  ;;  %v80_v53 = vmul.f32 0.03125, %v70_v51  ;;  %v81_v54 = vmul.f32 0.03125, %v73_v52 }
 0x12f   :  { %158 = vrsqrt.f32 %v85_v50 }
 0x130   :  { %v86_v55 = vadd.f32 1e-06, %v80_v53  ;;  %v87_v56 = vadd.f32 1e-06, %v81_v54 }
 0x131   :  { %v76_v57 = vpop.xlane.xlu1 %75 }
 0x132   :  { %160 = vrsqrt.f32 %v86_v55  ;;  %v82_v58 = vmul.f32 0.03125, %v76_v57 }
 0x133   :  { %162 = vrsqrt.f32 %v87_v56 }
 0x134   :  { %v155_v59 = vpop.eup %154  ;;  %v88_v61 = vadd.f32 1e-06, %v82_v58 }
 0x135   :  { %v95_v62 = vmul.f32 %v155_v59, %v47_v16 }
 0x136   :  { %164 = vrsqrt.f32 %v88_v61 }
 0x137   :  { %v108_v0 = vmul.f32 %v149_v60, %v95_v62 }
 0x138   :  { %v157_v1 = vpop.eup %156 }
 0x139   :  { %v159_v2 = vpop.eup %158  ;;  %v121_v3 = vadd.f32 %v150_v63, %v108_v0  ;;  %v96_v4 = vmul.f32 %v157_v1, %v48_v24 }
 0x13a   :  { %v97_v5 = vmul.f32 %v159_v2, %v237_v17 }
 0x13b   :  { %127 = vst.msk [vmem:[#allocation2] sm:$0xff] %vm21_vm0, %v121_v3  ;;  %v109_v6 = vmul.f32 %v149_v60, %v96_v4 }
 0x13c   :  { %v161_v7 = vpop.eup %160  ;;  %v110_v8 = vmul.f32 %v149_v60, %v97_v5 }
 0x13d   :  { %v163_v9 = vpop.eup %162  ;;  %v122_v10 = vadd.f32 %v150_v63, %v109_v6  ;;  %v98_v11 = vmul.f32 %v161_v7, %v241_v25 }
 0x13e   :  { %v123_v12 = vadd.f32 %v150_v63, %v110_v8  ;;  %v99_v13 = vmul.f32 %v163_v9, %v51_v34 }
 0x13f   :  { %128 = vst.msk [vmem:[#allocation2 + $0x8] sm:$0xff] %vm21_vm0, %v122_v10  ;;  %v111_v14 = vmul.f32 %v149_v60, %v98_v11 }
 0x140   :  { %v165_v15 = vpop.eup %164  ;;  %129 = vst.msk [vmem:[#allocation2 + $0x10] sm:$0xff] %vm21_vm0, %v123_v12  ;;  %v112_v16 = vmul.f32 %v149_v60, %v99_v13 }
 0x141   :  { %v124_v18 = vadd.f32 %v150_v63, %v111_v14  ;;  %v100_v17 = vmul.f32 %v165_v15, %v52_v35 }
 0x142   :  { %v125_v19 = vadd.f32 %v150_v63, %v112_v16 }
 0x143   :  { %130 = vst.msk [vmem:[#allocation2 + $0x18] sm:$0xff] %vm21_vm0, %v124_v18  ;;  %v113_v20 = vmul.f32 %v149_v60, %v100_v17 }
 0x144   :  { %131 = vst.msk [vmem:[#allocation2 + $0x20] sm:$0xff] %vm21_vm0, %v125_v19 }
 0x145   :  { %v126_v21 = vadd.f32 %v150_v63, %v113_v20 }
 0x147   :  { %132 = vst.msk [vmem:[#allocation2 + $0x28] sm:$0xff] %vm21_vm0, %v126_v21 }
 0x148   :  { %177 = shalt.err (!%p174_p4)
}
 0x149   :  { %s178_s30 = scalar_lea.hbm %s280_s3, 768 }
 0x14a   :  { %p179_p5 = scmp.ne.s32.totalorder %s280_s3, %s178_s30  ;;  %p182_p6 = scmp.lt.u32.totalorder %s178_s30, %s280_s3 }
 0x14c   :  { %p184_p7 = pnand %p182_p6, %p179_p5 }
 0x14e   :  { %187 = shalt.err (!%p184_p7)
}
 0x14f   :  { %s191_s8 = smov 128   ;;  %s192_s9 = smov 8  }
 0x150   :  { %144 = dma.vmem_to_hbm [thread:$0]  %s139_s2, 768, %s280_s3, [#allocation3], %s191_s8, %s191_s8, %s192_s9  }
 0x151   :  { %188 = dma.done.wait [#allocation3], 768  }
 0x152   :  { %189 = vsyncadd [#allocation3], 4294966528 }
 0x153   :  { %148 = vsyncpa [#allocation3], 1 }

</bundles_post_ra>
